<compile_context>
chip_gen: v6e
topology: v6e:2x2x1
jax: 0.10.0
libtpu: 0.0.40
codegen_flags: <defaults>
</compile_context>

<pallas_src>
import functools

import jax
import jax.numpy as jnp
from jax.experimental import pallas as pl
from jax.experimental.pallas import tpu as pltpu


def make_divisible(v, divisor=8, min_value=None):
    if min_value is None:
        min_value = divisor
    new_v = max(min_value, int(v + divisor / 2) // divisor * divisor)
    if new_v < 0.9 * v:
        new_v += divisor
    return new_v


def _silu(z):
    # z * sigmoid(z) == z / (1 + exp(-z)); exp and the approximate reciprocal
    # both execute on the EUP, off the VALU critical path.
    return z * pl.reciprocal(1.0 + jnp.exp(-z), approx=True)


def _inverted_residual_kernel(*refs, stride, has_expand, use_res):
    if has_expand:
        (x_ref, w_exp_ref, b_exp_ref, w_dw_ref, b_dw_ref,
         w_red_ref, b_red_ref, out_ref, hpad_ref) = refs
    else:
        (x_ref, w_dw_ref, b_dw_ref,
         w_red_ref, b_red_ref, out_ref, hpad_ref) = refs

    _, H, W, Cin = x_ref.shape
    Hp, Wp, Ch = hpad_ref.shape
    _, Ho, Wo, Cout = out_ref.shape

    # Load the input tile once; reused by the expand matmul and the residual.
    x0 = x_ref[0].astype(jnp.float32)                       # (H, W, Cin)

    # ---- exp_1x1 + folded BN + SiLU : MXU matmul over flattened spatial ----
    if has_expand:
        h = jnp.dot(x0.reshape(H * W, Cin),
                    w_exp_ref[...].astype(jnp.float32),
                    preferred_element_type=jnp.float32)
        h = _silu(h + b_exp_ref[...]).reshape(H, W, Ch)
    else:
        h = x0                                              # hidden_dim == Cin

    # ---- stage activated features into the zero-halo VMEM buffer ----------
    # The interior is fully overwritten every step, so only the 1-element halo
    # is (re)zeroed -- cheaper than zeroing the whole padded buffer.
    hpad_ref[0:1, :, :] = jnp.zeros((1, Wp, Ch), jnp.float32)
    hpad_ref[Hp - 1:Hp, :, :] = jnp.zeros((1, Wp, Ch), jnp.float32)
    hpad_ref[1:H + 1, 0:1, :] = jnp.zeros((H, 1, Ch), jnp.float32)
    hpad_ref[1:H + 1, Wp - 1:Wp, :] = jnp.zeros((H, 1, Ch), jnp.float32)
    hpad_ref[1:H + 1, 1:W + 1, :] = h

    # ---- depthwise conv_3x3 + folded BN + SiLU : shifted-window VPU MACs ---
    w_dw = w_dw_ref[...].astype(jnp.float32)                # (9, Ch) folded taps
    # Seed the accumulator with the folded-BN bias (saves a full add pass).
    acc = jnp.broadcast_to(b_dw_ref[...].reshape(1, 1, Ch), (Ho, Wo, Ch))
    for dy in range(3):
        for dx in range(3):
            if stride == 1:
                win = hpad_ref[dy:dy + Ho, dx:dx + Wo, :]
            else:
                # TODO(synk): stride=2 path (strided window loads) is
                # implemented but not exercised by the demo below.
                win = hpad_ref[pl.ds(dy, Ho, stride), pl.ds(dx, Wo, stride), :]
            tap = w_dw[3 * dy + dx, :].reshape(1, 1, Ch)
            acc = acc + win * tap
    hdw = _silu(acc)                                        # (Ho, Wo, Ch)

    # ---- red_1x1 + folded BN (no activation) : MXU matmul ------------------
    y = jnp.dot(hdw.reshape(Ho * Wo, Ch),
                w_red_ref[...].astype(jnp.float32),
                preferred_element_type=jnp.float32)
    y = (y + b_red_ref[...]).reshape(Ho, Wo, Cout)

    if use_res:                                             # stride==1, Cin==Cout
        y = y + x0

    # Single lane-dense full-block store of the fused result.
    out_ref[0] = y.astype(out_ref.dtype)


def _fold_bn(raw, *, has_expand, eps):
    """Fold eval-mode BatchNorm affine transforms into the conv weights."""
    p = {}
    if has_expand:
        s1 = raw["g1"] / jnp.sqrt(raw["v1"] + eps)
        p["w_exp"] = raw["w_exp"] * s1[None, :]                   # (Cin, Ch)
        p["b_exp"] = (raw["b1"] - raw["m1"] * s1)[None, :]        # (1, Ch)
    s2 = raw["g2"] / jnp.sqrt(raw["v2"] + eps)
    Ch = raw["w_dw"].shape[-1]
    p["w_dw"] = (raw["w_dw"] * s2[None, None, :]).reshape(9, Ch)  # (9, Ch)
    p["b_dw"] = (raw["b2"] - raw["m2"] * s2)[None, :]             # (1, Ch)
    s3 = raw["g3"] / jnp.sqrt(raw["v3"] + eps)
    p["w_red"] = raw["w_red"] * s3[None, :]                       # (Ch, Cout)
    p["b_red"] = (raw["b3"] - raw["m3"] * s3)[None, :]            # (1, Cout)
    return p


def inverted_residual(x_nchw, raw_params, *, stride, expand_ratio,
                      skip_connection=True, eps=1e-5):
    assert stride in (1, 2)
    N, Cin, H, W = x_nchw.shape
    has_expand = expand_ratio != 1
    p = _fold_bn(raw_params, has_expand=has_expand, eps=eps)
    Ch = p["w_dw"].shape[-1]
    Cout = p["w_red"].shape[-1]
    if not has_expand:
        assert Cin == Ch, "expand_ratio==1 requires in_channels == hidden_dim"
    use_res = (stride == 1) and (Cin == Cout) and skip_connection
    Ho = (H - 1) // stride + 1
    Wo = (W - 1) // stride + 1

    # NHWC: channels on the lane axis (lane-dense for C multiple of 128).
    x_nhwc = jnp.transpose(x_nchw, (0, 2, 3, 1))

    in_specs = [pl.BlockSpec((1, H, W, Cin), lambda n: (n, 0, 0, 0))]
    args = [x_nhwc]
    if has_expand:
        in_specs += [pl.BlockSpec(p["w_exp"].shape, lambda n: (0, 0)),
                     pl.BlockSpec(p["b_exp"].shape, lambda n: (0, 0))]
        args += [p["w_exp"], p["b_exp"]]
    in_specs += [pl.BlockSpec(p["w_dw"].shape, lambda n: (0, 0)),
                 pl.BlockSpec(p["b_dw"].shape, lambda n: (0, 0)),
                 pl.BlockSpec(p["w_red"].shape, lambda n: (0, 0)),
                 pl.BlockSpec(p["b_red"].shape, lambda n: (0, 0))]
    args += [p["w_dw"], p["b_dw"], p["w_red"], p["b_red"]]

    kernel = functools.partial(_inverted_residual_kernel, stride=stride,
                               has_expand=has_expand, use_res=use_res)

    out_nhwc = pl.pallas_call(
        kernel,
        out_shape=jax.ShapeDtypeStruct((N, Ho, Wo, Cout), x_nchw.dtype),
        grid=(N,),
        in_specs=in_specs,
        out_specs=pl.BlockSpec((1, Ho, Wo, Cout), lambda n: (n, 0, 0, 0)),
        scratch_shapes=[pltpu.VMEM((H + 2, W + 2, Ch), jnp.float32)],
        compiler_params=pltpu.CompilerParams(
            dimension_semantics=("parallel",)),
    )(*args)

    return jnp.transpose(out_nhwc, (0, 3, 1, 2))                  # back to NCHW


def _reference(x, raw, *, stride, expand_ratio, skip_connection, eps=1e-5):
    """Pure-JAX NCHW reference matching PyTorch eval-mode semantics."""
    N, Cin, H, W = x.shape
    prec = jax.lax.Precision.HIGHEST
    dims = ("NCHW", "OIHW", "NCHW")

    def bn(z, g, b, m, v):
        return ((z - m[None, :, None, None])
                / jnp.sqrt(v + eps)[None, :, None, None]
                * g[None, :, None, None] + b[None, :, None, None])

    def silu(z):
        return z * jax.nn.sigmoid(z)

    h = x
    if expand_ratio != 1:
        w = jnp.transpose(raw["w_exp"], (1, 0))[:, :, None, None]   # (Ch,Cin,1,1)
        h = jax.lax.conv_general_dilated(h, w, (1, 1), [(0, 0), (0, 0)],
                                         dimension_numbers=dims, precision=prec)
        h = silu(bn(h, raw["g1"], raw["b1"], raw["m1"], raw["v1"]))
    Ch = h.shape[1]
    wd = jnp.transpose(raw["w_dw"], (2, 0, 1))[:, None, :, :]       # (Ch,1,3,3)
    h = jax.lax.conv_general_dilated(h, wd, (stride, stride), [(1, 1), (1, 1)],
                                     dimension_numbers=dims,
                                     feature_group_count=Ch, precision=prec)
    h = silu(bn(h, raw["g2"], raw["b2"], raw["m2"], raw["v2"]))
    wr = jnp.transpose(raw["w_red"], (1, 0))[:, :, None, None]      # (Cout,Ch,1,1)
    y = jax.lax.conv_general_dilated(h, wr, (1, 1), [(0, 0), (0, 0)],
                                     dimension_numbers=dims, precision=prec)
    y = bn(y, raw["g3"], raw["b3"], raw["m3"], raw["v3"])
    Cout = y.shape[1]
    use_res = (stride == 1) and (Cin == Cout) and skip_connection
    return x + y if use_res else y


if __name__ == "__main__":
    key = jax.random.PRNGKey(0)

    # Lane-dense small config: Cin=Cout=128, expand_ratio=2 -> hidden=256.
    N, Cin, H, W = 2, 128, 16, 16
    Cout = 128
    expand_ratio = 2
    stride = 1
    skip_connection = True
    hidden = make_divisible(int(round(Cin * expand_ratio)), 8)   # 256

    keys = jax.random.split(key, 16)
    x = jax.random.normal(keys[0], (N, Cin, H, W), dtype=jnp.float32)

    def uni(k, shape, b):
        return jax.random.uniform(k, shape, jnp.float32, -b, b)

    raw = dict(
        # exp_1x1 conv + BN1
        w_exp=uni(keys[1], (Cin, hidden), 1.0 / (Cin ** 0.5)),
        g1=jax.random.uniform(keys[2], (hidden,), jnp.float32, 0.5, 1.5),
        b1=uni(keys[3], (hidden,), 0.2),
        m1=0.1 * jax.random.normal(keys[4], (hidden,), jnp.float32),
        v1=jax.random.uniform(keys[5], (hidden,), jnp.float32, 0.5, 1.5),
        # depthwise conv_3x3 + BN2
        w_dw=uni(keys[6], (3, 3, hidden), 1.0 / 3.0),
        g2=jax.random.uniform(keys[7], (hidden,), jnp.float32, 0.5, 1.5),
        b2=uni(keys[8], (hidden,), 0.2),
        m2=0.1 * jax.random.normal(keys[9], (hidden,), jnp.float32),
        v2=jax.random.uniform(keys[10], (hidden,), jnp.float32, 0.5, 1.5),
        # red_1x1 conv + BN3
        w_red=uni(keys[11], (hidden, Cout), 1.0 / (hidden ** 0.5)),
        g3=jax.random.uniform(keys[12], (Cout,), jnp.float32, 0.5, 1.5),
        b3=uni(keys[13], (Cout,), 0.2),
        m3=0.1 * jax.random.normal(keys[14], (Cout,), jnp.float32),
        v3=jax.random.uniform(keys[15], (Cout,), jnp.float32, 0.5, 1.5),
    )

    out = inverted_residual(x, raw, stride=stride, expand_ratio=expand_ratio,
                            skip_connection=skip_connection)
    out = jax.block_until_ready(out)

    ref = jax.block_until_ready(
        _reference(x, raw, stride=stride, expand_ratio=expand_ratio,
                   skip_connection=skip_connection))

    Ho = (H - 1) // stride + 1
    Wo = (W - 1) // stride + 1
    assert out.shape == (N, Cout, Ho, Wo), out.shape
    max_err = float(jnp.max(jnp.abs(out - ref)))
    assert jnp.allclose(out, ref, atol=2e-2, rtol=2e-2), max_err

    print("KERNEL_OK")
</pallas_src>

<mosaic_0001>
module attributes {stable_mosaic.version = 11 : i64} {
  func.func @_inverted_residual_kernel(%arg0: i32, %arg1: memref<1x16x16x128xf32, #tpu.memory_space<vmem>>, %arg2: memref<128x256xf32, #tpu.memory_space<vmem>>, %arg3: memref<1x256xf32, #tpu.memory_space<vmem>>, %arg4: memref<9x256xf32, #tpu.memory_space<vmem>>, %arg5: memref<1x256xf32, #tpu.memory_space<vmem>>, %arg6: memref<256x128xf32, #tpu.memory_space<vmem>>, %arg7: memref<1x128xf32, #tpu.memory_space<vmem>>, %arg8: memref<1x16x16x128xf32, #tpu.memory_space<vmem>>, %arg9: memref<18x18x256xf32, #tpu.memory_space<vmem>>) attributes {dimension_semantics = [#tpu.dimension_semantics<parallel>], iteration_bounds = array<i64: 2>, scalar_prefetch = 0 : i64, scratch_operands = 1 : i64, tpu.core_type = #tpu.core_type<tc>, window_params = [{transform_indices = @transform_0, window_bounds = array<i64: 1, 16, 16, 128>}, {pipeline_mode = #tpu.pipeline_mode<synchronous>, transform_indices = @transform_1, window_bounds = array<i64: 128, 256>}, {pipeline_mode = #tpu.pipeline_mode<synchronous>, transform_indices = @transform_2, window_bounds = array<i64: 1, 256>}, {pipeline_mode = #tpu.pipeline_mode<synchronous>, transform_indices = @transform_3, window_bounds = array<i64: 9, 256>}, {pipeline_mode = #tpu.pipeline_mode<synchronous>, transform_indices = @transform_4, window_bounds = array<i64: 1, 256>}, {pipeline_mode = #tpu.pipeline_mode<synchronous>, transform_indices = @transform_5, window_bounds = array<i64: 256, 128>}, {pipeline_mode = #tpu.pipeline_mode<synchronous>, transform_indices = @transform_6, window_bounds = array<i64: 1, 128>}, {transform_indices = @transform_7, window_bounds = array<i64: 1, 16, 16, 128>}]} {
    %c0 = arith.constant 0 : index
    %c0_0 = arith.constant 0 : index
    %c0_1 = arith.constant 0 : index
    %c0_2 = arith.constant 0 : index
    %0 = vector.load %arg1[%c0, %c0_0, %c0_1, %c0_2] : memref<1x16x16x128xf32, #tpu.memory_space<vmem>>, vector<1x16x16x128xf32>
    %1 = vector.shape_cast %0 : vector<1x16x16x128xf32> to vector<16x16x128xf32>
    %2 = vector.shape_cast %1 : vector<16x16x128xf32> to vector<256x128xf32>
    %c0_3 = arith.constant 0 : index
    %c0_4 = arith.constant 0 : index
    %3 = vector.load %arg2[%c0_3, %c0_4] : memref<128x256xf32, #tpu.memory_space<vmem>>, vector<128x256xf32>
    %cst = arith.constant dense<0.000000e+00> : vector<256x256xf32>
    %4 = tpu.matmul %2, %3, %cst {dimension_numbers = #tpu.dot_dimension_numbers<[1], [0], [0], [1], [0, 0, 1, 1], [], []>} : vector<256x128xf32>, vector<128x256xf32>, vector<256x256xf32> -> vector<256x256xf32>
    %c0_5 = arith.constant 0 : index
    %c0_6 = arith.constant 0 : index
    %5 = vector.load %arg3[%c0_5, %c0_6] : memref<1x256xf32, #tpu.memory_space<vmem>>, vector<1x256xf32>
    %6 = vector.broadcast %5 : vector<1x256xf32> to vector<256x256xf32>
    %7 = arith.addf %4, %6 : vector<256x256xf32>
    %cst_7 = arith.constant 0.000000e+00 : f32
    %8 = vector.broadcast %cst_7 : f32 to vector<256x256xf32>
    %9 = arith.subf %8, %7 : vector<256x256xf32>
    %10 = math.exp %9 : vector<256x256xf32>
    %cst_8 = arith.constant 1.000000e+00 : f32
    %11 = vector.broadcast %cst_8 : f32 to vector<256x256xf32>
    %12 = arith.addf %11, %10 : vector<256x256xf32>
    %13 = tpu.reciprocal %12 {approx = true} : vector<256x256xf32> -> vector<256x256xf32>
    %14 = arith.mulf %7, %13 : vector<256x256xf32>
    %15 = vector.shape_cast %14 : vector<256x256xf32> to vector<16x16x256xf32>
    %cst_9 = arith.constant 0.000000e+00 : f32
    %16 = vector.broadcast %cst_9 : f32 to vector<1x18x256xf32>
    %c0_10 = arith.constant 0 : index
    %c0_11 = arith.constant 0 : index
    %c0_12 = arith.constant 0 : index
    %17 = vector.load %arg9[%c0_10, %c0_11, %c0_12] : memref<18x18x256xf32, #tpu.memory_space<vmem>>, vector<1x18x256xf32>
    tpu.vector_store %arg9[%c0_10, %c0_11, %c0_12], %16 {strides = array<i32>} : memref<18x18x256xf32, #tpu.memory_space<vmem>>, vector<1x18x256xf32>,
    %cst_13 = arith.constant 0.000000e+00 : f32
    %18 = vector.broadcast %cst_13 : f32 to vector<1x18x256xf32>
    %c17 = arith.constant 17 : index
    %c0_14 = arith.constant 0 : index
    %c0_15 = arith.constant 0 : index
    %19 = vector.load %arg9[%c17, %c0_14, %c0_15] : memref<18x18x256xf32, #tpu.memory_space<vmem>>, vector<1x18x256xf32>
    tpu.vector_store %arg9[%c17, %c0_14, %c0_15], %18 {strides = array<i32>} : memref<18x18x256xf32, #tpu.memory_space<vmem>>, vector<1x18x256xf32>,
    %cst_16 = arith.constant 0.000000e+00 : f32
    %20 = vector.broadcast %cst_16 : f32 to vector<16x1x256xf32>
    %c1 = arith.constant 1 : index
    %c0_17 = arith.constant 0 : index
    %c0_18 = arith.constant 0 : index
    %21 = vector.load %arg9[%c1, %c0_17, %c0_18] : memref<18x18x256xf32, #tpu.memory_space<vmem>>, vector<16x1x256xf32>
    tpu.vector_store %arg9[%c1, %c0_17, %c0_18], %20 {strides = array<i32>} : memref<18x18x256xf32, #tpu.memory_space<vmem>>, vector<16x1x256xf32>,
    %cst_19 = arith.constant 0.000000e+00 : f32
    %22 = vector.broadcast %cst_19 : f32 to vector<16x1x256xf32>
    %c1_20 = arith.constant 1 : index
    %c17_21 = arith.constant 17 : index
    %c0_22 = arith.constant 0 : index
    %23 = vector.load %arg9[%c1_20, %c17_21, %c0_22] : memref<18x18x256xf32, #tpu.memory_space<vmem>>, vector<16x1x256xf32>
    tpu.vector_store %arg9[%c1_20, %c17_21, %c0_22], %22 {strides = array<i32>} : memref<18x18x256xf32, #tpu.memory_space<vmem>>, vector<16x1x256xf32>,
    %c1_23 = arith.constant 1 : index
    %c1_24 = arith.constant 1 : index
    %c0_25 = arith.constant 0 : index
    %24 = vector.load %arg9[%c1_23, %c1_24, %c0_25] : memref<18x18x256xf32, #tpu.memory_space<vmem>>, vector<16x16x256xf32>
    tpu.vector_store %arg9[%c1_23, %c1_24, %c0_25], %15 {strides = array<i32>} : memref<18x18x256xf32, #tpu.memory_space<vmem>>, vector<16x16x256xf32>,
    %c0_26 = arith.constant 0 : index
    %c0_27 = arith.constant 0 : index
    %25 = vector.load %arg4[%c0_26, %c0_27] : memref<9x256xf32, #tpu.memory_space<vmem>>, vector<9x256xf32>
    %c0_28 = arith.constant 0 : index
    %c0_29 = arith.constant 0 : index
    %26 = vector.load %arg5[%c0_28, %c0_29] : memref<1x256xf32, #tpu.memory_space<vmem>>, vector<1x256xf32>
    %27 = vector.shape_cast %26 : vector<1x256xf32> to vector<1x1x256xf32>
    %28 = vector.shape_cast %27 : vector<1x1x256xf32> to vector<1x1x256xf32>
    %29 = vector.broadcast %28 : vector<1x1x256xf32> to vector<16x16x256xf32>
    %c0_30 = arith.constant 0 : index
    %c0_31 = arith.constant 0 : index
    %c0_32 = arith.constant 0 : index
    %30 = vector.load %arg9[%c0_30, %c0_31, %c0_32] : memref<18x18x256xf32, #tpu.memory_space<vmem>>, vector<16x16x256xf32>
    %31 = vector.extract_strided_slice %25 {offsets = [0, 0], sizes = [1, 256], strides = [1, 1]} : vector<9x256xf32> to vector<1x256xf32>
    %32 = vector.shape_cast %31 : vector<1x256xf32> to vector<256xf32>
    %33 = vector.shape_cast %32 : vector<256xf32> to vector<1x1x256xf32>
    %34 = vector.broadcast %33 : vector<1x1x256xf32> to vector<16x16x256xf32>
    %35 = arith.mulf %30, %34 : vector<16x16x256xf32>
    %36 = arith.addf %29, %35 : vector<16x16x256xf32>
    %c0_33 = arith.constant 0 : index
    %c1_34 = arith.constant 1 : index
    %c0_35 = arith.constant 0 : index
    %37 = vector.load %arg9[%c0_33, %c1_34, %c0_35] : memref<18x18x256xf32, #tpu.memory_space<vmem>>, vector<16x16x256xf32>
    %38 = vector.extract_strided_slice %25 {offsets = [1, 0], sizes = [1, 256], strides = [1, 1]} : vector<9x256xf32> to vector<1x256xf32>
    %39 = vector.shape_cast %38 : vector<1x256xf32> to vector<256xf32>
    %40 = vector.shape_cast %39 : vector<256xf32> to vector<1x1x256xf32>
    %41 = vector.broadcast %40 : vector<1x1x256xf32> to vector<16x16x256xf32>
    %42 = arith.mulf %37, %41 : vector<16x16x256xf32>
    %43 = arith.addf %36, %42 : vector<16x16x256xf32>
    %c0_36 = arith.constant 0 : index
    %c2 = arith.constant 2 : index
    %c0_37 = arith.constant 0 : index
    %44 = vector.load %arg9[%c0_36, %c2, %c0_37] : memref<18x18x256xf32, #tpu.memory_space<vmem>>, vector<16x16x256xf32>
    %45 = vector.extract_strided_slice %25 {offsets = [2, 0], sizes = [1, 256], strides = [1, 1]} : vector<9x256xf32> to vector<1x256xf32>
    %46 = vector.shape_cast %45 : vector<1x256xf32> to vector<256xf32>
    %47 = vector.shape_cast %46 : vector<256xf32> to vector<1x1x256xf32>
    %48 = vector.broadcast %47 : vector<1x1x256xf32> to vector<16x16x256xf32>
    %49 = arith.mulf %44, %48 : vector<16x16x256xf32>
    %50 = arith.addf %43, %49 : vector<16x16x256xf32>
    %c1_38 = arith.constant 1 : index
    %c0_39 = arith.constant 0 : index
    %c0_40 = arith.constant 0 : index
    %51 = vector.load %arg9[%c1_38, %c0_39, %c0_40] : memref<18x18x256xf32, #tpu.memory_space<vmem>>, vector<16x16x256xf32>
    %52 = vector.extract_strided_slice %25 {offsets = [3, 0], sizes = [1, 256], strides = [1, 1]} : vector<9x256xf32> to vector<1x256xf32>
    %53 = vector.shape_cast %52 : vector<1x256xf32> to vector<256xf32>
    %54 = vector.shape_cast %53 : vector<256xf32> to vector<1x1x256xf32>
    %55 = vector.broadcast %54 : vector<1x1x256xf32> to vector<16x16x256xf32>
    %56 = arith.mulf %51, %55 : vector<16x16x256xf32>
    %57 = arith.addf %50, %56 : vector<16x16x256xf32>
    %c1_41 = arith.constant 1 : index
    %c1_42 = arith.constant 1 : index
    %c0_43 = arith.constant 0 : index
    %58 = vector.load %arg9[%c1_41, %c1_42, %c0_43] : memref<18x18x256xf32, #tpu.memory_space<vmem>>, vector<16x16x256xf32>
    %59 = vector.extract_strided_slice %25 {offsets = [4, 0], sizes = [1, 256], strides = [1, 1]} : vector<9x256xf32> to vector<1x256xf32>
    %60 = vector.shape_cast %59 : vector<1x256xf32> to vector<256xf32>
    %61 = vector.shape_cast %60 : vector<256xf32> to vector<1x1x256xf32>
    %62 = vector.broadcast %61 : vector<1x1x256xf32> to vector<16x16x256xf32>
    %63 = arith.mulf %58, %62 : vector<16x16x256xf32>
    %64 = arith.addf %57, %63 : vector<16x16x256xf32>
    %c1_44 = arith.constant 1 : index
    %c2_45 = arith.constant 2 : index
    %c0_46 = arith.constant 0 : index
    %65 = vector.load %arg9[%c1_44, %c2_45, %c0_46] : memref<18x18x256xf32, #tpu.memory_space<vmem>>, vector<16x16x256xf32>
    %66 = vector.extract_strided_slice %25 {offsets = [5, 0], sizes = [1, 256], strides = [1, 1]} : vector<9x256xf32> to vector<1x256xf32>
    %67 = vector.shape_cast %66 : vector<1x256xf32> to vector<256xf32>
    %68 = vector.shape_cast %67 : vector<256xf32> to vector<1x1x256xf32>
    %69 = vector.broadcast %68 : vector<1x1x256xf32> to vector<16x16x256xf32>
    %70 = arith.mulf %65, %69 : vector<16x16x256xf32>
    %71 = arith.addf %64, %70 : vector<16x16x256xf32>
    %c2_47 = arith.constant 2 : index
    %c0_48 = arith.constant 0 : index
    %c0_49 = arith.constant 0 : index
    %72 = vector.load %arg9[%c2_47, %c0_48, %c0_49] : memref<18x18x256xf32, #tpu.memory_space<vmem>>, vector<16x16x256xf32>
    %73 = vector.extract_strided_slice %25 {offsets = [6, 0], sizes = [1, 256], strides = [1, 1]} : vector<9x256xf32> to vector<1x256xf32>
    %74 = vector.shape_cast %73 : vector<1x256xf32> to vector<256xf32>
    %75 = vector.shape_cast %74 : vector<256xf32> to vector<1x1x256xf32>
    %76 = vector.broadcast %75 : vector<1x1x256xf32> to vector<16x16x256xf32>
    %77 = arith.mulf %72, %76 : vector<16x16x256xf32>
    %78 = arith.addf %71, %77 : vector<16x16x256xf32>
    %c2_50 = arith.constant 2 : index
    %c1_51 = arith.constant 1 : index
    %c0_52 = arith.constant 0 : index
    %79 = vector.load %arg9[%c2_50, %c1_51, %c0_52] : memref<18x18x256xf32, #tpu.memory_space<vmem>>, vector<16x16x256xf32>
    %80 = vector.extract_strided_slice %25 {offsets = [7, 0], sizes = [1, 256], strides = [1, 1]} : vector<9x256xf32> to vector<1x256xf32>
    %81 = vector.shape_cast %80 : vector<1x256xf32> to vector<256xf32>
    %82 = vector.shape_cast %81 : vector<256xf32> to vector<1x1x256xf32>
    %83 = vector.broadcast %82 : vector<1x1x256xf32> to vector<16x16x256xf32>
    %84 = arith.mulf %79, %83 : vector<16x16x256xf32>
    %85 = arith.addf %78, %84 : vector<16x16x256xf32>
    %c2_53 = arith.constant 2 : index
    %c2_54 = arith.constant 2 : index
    %c0_55 = arith.constant 0 : index
    %86 = vector.load %arg9[%c2_53, %c2_54, %c0_55] : memref<18x18x256xf32, #tpu.memory_space<vmem>>, vector<16x16x256xf32>
    %87 = vector.extract_strided_slice %25 {offsets = [8, 0], sizes = [1, 256], strides = [1, 1]} : vector<9x256xf32> to vector<1x256xf32>
    %88 = vector.shape_cast %87 : vector<1x256xf32> to vector<256xf32>
    %89 = vector.shape_cast %88 : vector<256xf32> to vector<1x1x256xf32>
    %90 = vector.broadcast %89 : vector<1x1x256xf32> to vector<16x16x256xf32>
    %91 = arith.mulf %86, %90 : vector<16x16x256xf32>
    %92 = arith.addf %85, %91 : vector<16x16x256xf32>
    %cst_56 = arith.constant 0.000000e+00 : f32
    %93 = vector.broadcast %cst_56 : f32 to vector<16x16x256xf32>
    %94 = arith.subf %93, %92 : vector<16x16x256xf32>
    %95 = math.exp %94 : vector<16x16x256xf32>
    %cst_57 = arith.constant 1.000000e+00 : f32
    %96 = vector.broadcast %cst_57 : f32 to vector<16x16x256xf32>
    %97 = arith.addf %96, %95 : vector<16x16x256xf32>
    %98 = tpu.reciprocal %97 {approx = true} : vector<16x16x256xf32> -> vector<16x16x256xf32>
    %99 = arith.mulf %92, %98 : vector<16x16x256xf32>
    %100 = vector.shape_cast %99 : vector<16x16x256xf32> to vector<256x256xf32>
    %c0_58 = arith.constant 0 : index
    %c0_59 = arith.constant 0 : index
    %101 = vector.load %arg6[%c0_58, %c0_59] : memref<256x128xf32, #tpu.memory_space<vmem>>, vector<256x128xf32>
    %cst_60 = arith.constant dense<0.000000e+00> : vector<256x128xf32>
    %102 = tpu.matmul %100, %101, %cst_60 {dimension_numbers = #tpu.dot_dimension_numbers<[1], [0], [0], [1], [0, 0, 1, 1], [], []>} : vector<256x256xf32>, vector<256x128xf32>, vector<256x128xf32> -> vector<256x128xf32>
    %c0_61 = arith.constant 0 : index
    %c0_62 = arith.constant 0 : index
    %103 = vector.load %arg7[%c0_61, %c0_62] : memref<1x128xf32, #tpu.memory_space<vmem>>, vector<1x128xf32>
    %104 = vector.broadcast %103 : vector<1x128xf32> to vector<256x128xf32>
    %105 = arith.addf %102, %104 : vector<256x128xf32>
    %106 = vector.shape_cast %105 : vector<256x128xf32> to vector<16x16x128xf32>
    %107 = arith.addf %106, %1 : vector<16x16x128xf32>
    %c0_63 = arith.constant 0 : index
    %c0_64 = arith.constant 0 : index
    %c0_65 = arith.constant 0 : index
    %c0_66 = arith.constant 0 : index
    %108 = vector.load %arg8[%c0_63, %c0_64, %c0_65, %c0_66] : memref<1x16x16x128xf32, #tpu.memory_space<vmem>>, vector<1x16x16x128xf32>
    %109 = vector.shape_cast %108 : vector<1x16x16x128xf32> to vector<16x16x128xf32>
    %110 = vector.shape_cast %107 : vector<16x16x128xf32> to vector<1x16x16x128xf32>
    tpu.vector_store %arg8[%c0_63, %c0_64, %c0_65, %c0_66], %110 {strides = array<i32>} : memref<1x16x16x128xf32, #tpu.memory_space<vmem>>, vector<1x16x16x128xf32>,
    return
  }
  func.func @transform_0(%arg0: i32) -> (i32, i32, i32, i32) {
    %c0_i32 = arith.constant 0 : i32
    %c0_i32_0 = arith.constant 0 : i32
    %c0_i32_1 = arith.constant 0 : i32
    %c0_i32_2 = arith.constant 0 : i32
    return %arg0, %c0_i32, %c0_i32_0, %c0_i32_1 : i32, i32, i32, i32
  }
  func.func @transform_1(%arg0: i32) -> (i32, i32) {
    %c0_i32 = arith.constant 0 : i32
    %c0_i32_0 = arith.constant 0 : i32
    %c0_i32_1 = arith.constant 0 : i32
    return %c0_i32, %c0_i32_0 : i32, i32
  }
  func.func @transform_2(%arg0: i32) -> (i32, i32) {
    %c0_i32 = arith.constant 0 : i32
    %c0_i32_0 = arith.constant 0 : i32
    %c0_i32_1 = arith.constant 0 : i32
    return %c0_i32, %c0_i32_0 : i32, i32
  }
  func.func @transform_3(%arg0: i32) -> (i32, i32) {
    %c0_i32 = arith.constant 0 : i32
    %c0_i32_0 = arith.constant 0 : i32
    %c0_i32_1 = arith.constant 0 : i32
    return %c0_i32, %c0_i32_0 : i32, i32
  }
  func.func @transform_4(%arg0: i32) -> (i32, i32) {
    %c0_i32 = arith.constant 0 : i32
    %c0_i32_0 = arith.constant 0 : i32
    %c0_i32_1 = arith.constant 0 : i32
    return %c0_i32, %c0_i32_0 : i32, i32
  }
  func.func @transform_5(%arg0: i32) -> (i32, i32) {
    %c0_i32 = arith.constant 0 : i32
    %c0_i32_0 = arith.constant 0 : i32
    %c0_i32_1 = arith.constant 0 : i32
    return %c0_i32, %c0_i32_0 : i32, i32
  }
  func.func @transform_6(%arg0: i32) -> (i32, i32) {
    %c0_i32 = arith.constant 0 : i32
    %c0_i32_0 = arith.constant 0 : i32
    %c0_i32_1 = arith.constant 0 : i32
    return %c0_i32, %c0_i32_0 : i32, i32
  }
  func.func @transform_7(%arg0: i32) -> (i32, i32, i32, i32) {
    %c0_i32 = arith.constant 0 : i32
    %c0_i32_0 = arith.constant 0 : i32
    %c0_i32_1 = arith.constant 0 : i32
    %c0_i32_2 = arith.constant 0 : i32
    return %arg0, %c0_i32, %c0_i32_0, %c0_i32_1 : i32, i32, i32, i32
  }
}

</mosaic_0001>

<bundles_post_ra>
// kernel: tpu_custom_call.1
= control target key start
LH: loop header
LB: loop body
LE: loop exit
PB: predicated region body
PF: predicated region fallthrough
CT: control target
= control target key end

     0   :  { %s11752_s0 = inlined_call_operand.hbm [shape: f32[2,16,16,128], index: 0, kind: input, shape index: {}]   ;;  %s11753_s1 = inlined_call_operand.hbm [shape: f32[128,256], index: 1, kind: input, shape index: {}]   ;;  %s11754_s2 = inlined_call_operand.vmem [shape: f32[1,256], index: 2, kind: input, shape index: {}]   ;;  %s11755_s3 = inlined_call_operand.hbm [shape: f32[9,256], index: 3, kind: input, shape index: {}]   ;;  %s11756_s4 = inlined_call_operand.vmem [shape: f32[1,256], index: 4, kind: input, shape index: {}]   ;;  %s11757_s5 = inlined_call_operand.hbm [shape: f32[256,128], index: 5, kind: input, shape index: {}]   ;;  %s11758_s6 = inlined_call_operand.vmem [shape: f32[1,128], index: 6, kind: input, shape index: {}]   ;;  %s11759_s7 = inlined_call_operand.hbm [shape: f32[2,16,16,128], index: 7, kind: output, shape index: {}]  }
   0x1   :  { %12088 = sst [smem:[#allocation33_spill]] %s11753_s1 }
   0x2   :  { %12 = vsyncpa [#allocation4], 0 }
   0x3   :  { %14 = vsyncpa [#allocation4 + $0x1], 0 }
   0x4   :  { %15 = vsyncpa [#allocation7], 0 }
   0x5   :  { %16 = vsyncpa [#allocation10], 0 }
   0x6   :  { %17 = vsyncpa [#allocation5], 0 }
   0x7   :  { %19 = vsyncpa [#allocation5 + $0x1], 0  ;;  %s7282_s24 = smov 0   ;;  %s7284_s25 = smov 0  }
   0x8   :  { %s7286_s26 = smov 0   ;;  %s7288_s27 = smov 0  }
   0x9 LB: > { %s7303_s28 = sadd.s32 4294967295, %s7228_s27   ;;  %s6314_s29 = sadd.s32 4294967294, %s7228_s27   ;;  %s7228_s27 = sphi %s7288_s27, %s12512_s27   ;;  %s7224_s26 = sphi %s7286_s26, %s12511_s26   ;;  %s7220_s25 = sphi %s7284_s25, %s12510_s25   ;;  %s7216_s24 = sphi %s7282_s24, %s12509_s24  }
   0xa   : > { %p45_p0 = scmp.ne.s32.totalorder %s7220_s25, %s7216_s24  ;;  %p11760_p1 = scmp.eq.s32.totalorder %s7303_s28, 0 }
   0xb   : > { %p201_p3 = scmp.eq.s32.totalorder %s6314_s29, 1  ;;  %p6315_p5 = scmp.ge.s32.totalorder %s7228_s27, 1 }
   0xc   : > { %p7312_p4 = por %p11760_p1, %p45_p0  ;;  %p208_p7 = scmp.lt.s32.totalorder %s7228_s27, 3 }
   0xd   : > { %p7317_p6 = por %p201_p3, %p45_p0  ;;  %s7230_s10 = smov [#allocation6]  }
   0xe   : > { %s12089_s30 = scalar_select %p7312_p4, 1, 0 }
   0xf   : > { %s12090_s8 = scalar_select %p7317_p6, 1, 0 }
  0x10   : > { %p7322_p8 = pnand %p6315_p5, %p208_p7  ;;  %s220_s11 = sshll.u32 %s7230_s10, 4  ;;  %s221_s11 = int_to_ptr.vmem [resolvable:$true] %s220_s11 }
  0x11   : > { %s7231_s13 = smov [#allocation8]   ;;  %s7232_s15 = smov [#allocation9]  }
  0x12   : > { %s12091_s9 = scalar_select %p7322_p8, 1, 0 }
  0x13   : > { %p6419_p9 = pneg %p7322_p8  ;;  %s236_s14 = sshll.u32 %s7231_s13, 4  ;;  %s237_s14 = int_to_ptr.vmem [resolvable:$true] %s236_s14 }
  0x14   : > { %s252_s16 = sshll.u32 %s7232_s15, 4  ;;  %s7061_s17 = scalar_lea.vmem %s221_s11, 4096  ;;  %s253_s16 = int_to_ptr.vmem [resolvable:$true] %s252_s16 }
  0x15   : > { %p7331_p11 = pnand %p6419_p9, %p11760_p1  ;;  %p7062_p13 = scmp.ne.s32.totalorder %s221_s11, %s7061_s17 }
  0x16   : > { %p7069_p5 = scmp.lt.s32.totalorder %s221_s11, %s221_s11  ;;  %p7070_p7 = scmp.lt.s32.totalorder %s7061_s17, %s7061_s17 }
  0x17   : > { %p7052_p12 = pneg %p7331_p11 }
  0x18   : > { %p7071_p9 = por %p7070_p7, %p7069_p5 }
  0x19   : > { %p7064_p0 = pnand %p7062_p13, %p7052_p12 }
  0x1b   : > { %p7065_p3 = pneg %p7064_p0 }
  0x1d   : > { %p7072_p10 = pnand %p7071_p9, %p7065_p3 }
  0x1f   : > { %7075 = shalt.err (!%p7072_p10)
}
  0x20   : > { %s7233_s18 = smov 256   ;;  %s7234_s19 = smov 16  }
  0x21   : > { %s12093_s1 = sld [smem:[#allocation33_spill]]  ;;  %s7087_s22 = scalar_lea.vmem %s237_s14, 512 }
  0x22   : > { %p7088_p1 = scmp.ne.s32.totalorder %s237_s14, %s7087_s22  ;;  %p7095_p2 = scmp.lt.s32.totalorder %s237_s14, %s237_s14 }
  0x23   : > { %p7096_p6 = scmp.lt.s32.totalorder %s7087_s22, %s7087_s22 }
  0x24   : > { %p7090_p13 = pnand %p7088_p1, %p7052_p12 }
  0x25   : > { %p7097_p5 = por %p7096_p6, %p7095_p2 }
  0x26   : > { %p7091_p0 = pneg %p7090_p13 }
  0x27   : > { %6422 = dma.hbm_to_vmem [thread:$0]  (!%p7331_p11), %s12093_s1, 4096, %s221_s11, [#allocation7], %s7233_s18, %s7233_s18, %s7234_s19  }
  0x28   : > { %p7098_p3 = pnand %p7097_p5, %p7091_p0 }
  0x2a   : > { %7101 = shalt.err (!%p7098_p3)
}
  0x2b   : > { %6425 = dma.hbm_to_vmem [thread:$0]  (!%p7331_p11), %s11755_s3, 512, %s237_s14, [#allocation7], %s7233_s18, %s7233_s18, %s7234_s19  }
  0x2c   : > { %s7113_s10 = scalar_lea.vmem %s253_s16, 4096  ;;  %p7121_p9 = scmp.lt.s32.totalorder %s253_s16, %s253_s16 }
  0x2d   : > { %p7114_p10 = scmp.ne.s32.totalorder %s253_s16, %s7113_s10  ;;  %p7122_p13 = scmp.lt.s32.totalorder %s7113_s10, %s7113_s10 }
  0x2f   : > { %p7116_p7 = pnand %p7114_p10, %p7052_p12  ;;  %p7123_p4 = por %p7122_p13, %p7121_p9 }
  0x31   : > { %p7117_p1 = pneg %p7116_p7 }
  0x33   : > { %p7124_p2 = pnand %p7123_p4, %p7117_p1 }
  0x35   : > { %7127 = shalt.err (!%p7124_p2)
}
  0x36   : > { %s11762_s11 = smov 128   ;;  %s11763_s13 = smov 8  }
  0x37   : > { %6428 = dma.hbm_to_vmem [thread:$0]  (!%p7331_p11), %s11757_s5, 4096, %s253_s16, [#allocation10], %s11762_s11, %s11762_s11, %s11763_s13  }
  0x38   : > { %s7365_s17 = sadd.s32 1, %s7228_s27   ;;  %s32_s19 = sadd.s32 1, %s7224_s26 }
  0x39   : > { %s29_s18 = ssub.s32 %s7228_s27, %s7365_s17  ;;  %p39_p6 = scmp.ne.s32.totalorder %s7224_s26, %s7220_s25 }
  0x3a   : > { %p30_p4 = scmp.eq.s32.totalorder %s29_s18, 0  ;;  %p40_p12 = scmp.eq.s32.totalorder %s7228_s27, 0 }
  0x3b   : > { %p6440_p0 = scmp.lt.s32.totalorder %s7228_s27, 2  ;;  %p12094_p3 = scmp.eq.s32.totalorder %s7303_s28, 1 }
  0x3c   : > { %s7375_s20 = scalar_select %p30_p4, %s7224_s26, %s32_s19  }
  0x3d   : > { %p41_p5 = por %p40_p12, %p39_p6  ;;  %p7379_p10 = por %p12094_p3, %p39_p6 }
  0x3e   : > { %s269_s21 = sand.u32 1, %s7224_s26   ;;  %s6337_s22 = sshll.u32 %s7228_s27, 12 }
  0x3f   : > { %s12095_s12 = scalar_select %p7379_p10, 1, 0 }
  0x40   : > { %s6320_s16 = sshll.u32 %s269_s21, 8  ;;  %s7388_s10 = scalar_lea.hbm %s11752_s0, %s6337_s22 }
  0x41   : > { %s273_s14 = scalar_lea.vmem [#allocation3], %s6320_s16  ;;  %p7390_p11 = pnand %p6440_p0, %p41_p5 }
  0x42   : > { %s280_s15 = sshll.u32 %s273_s14, 4  ;;  %s7396_s19 = scalar_lea.sflag [#allocation4], %s269_s21  ;;  %s7394_s15 = int_to_ptr.vmem [resolvable:$true] %s280_s15 }
  0x43   : > { %s7128_s11 = scalar_lea.hbm %s7388_s10, 4096  ;;  %p7130_p1 = pneg %p7390_p11 }
  0x44   : > { %p7129_p7 = scmp.ne.s32.totalorder %s7388_s10, %s7128_s11  ;;  %s7133_s16 = scalar_lea.hbm %s11752_s0, 8192 }
  0x45   : > { %p7134_p2 = scmp.lt.s32.totalorder %s7388_s10, %s11752_s0  ;;  %p7135_p4 = scmp.lt.s32.totalorder %s7133_s16, %s7128_s11 }
  0x46   : > { %p7131_p9 = pnand %p7130_p1, %p7129_p7 }
  0x47   : > { %p7136_p6 = por %p7135_p4, %p7134_p2 }
  0x48   : > { %p7132_p13 = pneg %p7131_p9 }
  0x4a   : > { %p7137_p12 = pnand %p7136_p6, %p7132_p13 }
  0x4c   : > { %7140 = shalt.err (!%p7137_p12)
}
  0x4d   : > { %s7141_s21 = scalar_lea.vmem %s7394_s15, 4096  ;;  %s7237_s13 = smov [#allocation3]  }
  0x4e   : > { %p7142_p0 = scmp.ne.s32.totalorder %s7394_s15, %s7141_s21  ;;  %s7146_s1 = sshll.u32 %s7237_s13, 4  ;;  %s7147_s1 = int_to_ptr.vmem [resolvable:$false] %s7146_s1 }
  0x4f   : > { %s7148_s22 = scalar_lea.vmem %s7147_s1, 8192  ;;  %p7149_p7 = scmp.lt.s32.totalorder %s7394_s15, %s7147_s1 }
  0x50   : > { %p7144_p5 = pnand %p7142_p0, %p7130_p1  ;;  %p7150_p9 = scmp.lt.s32.totalorder %s7148_s22, %s7141_s21 }
  0x52   : > { %p7145_p3 = pneg %p7144_p5  ;;  %p7151_p10 = por %p7150_p9, %p7149_p7 }
  0x54   : > { %p7152_p8 = pnand %p7151_p10, %p7145_p3 }
  0x56   : > { %7155 = shalt.err (!%p7152_p8)
}
  0x57   : > { %s12097_s11 = smov 8   ;;  %s12098_s23 = smov 128  }
  0x58   : > { %6432 = dma.hbm_to_vmem [thread:$0]  (!%p7390_p11), %s7388_s10, 4096, %s7394_s15, %s7396_s19, %s12098_s23, %s12098_s23, %s12097_s11  }
  0x59   : > { %p12099_p1 = scmp.ne.s32.totalorder %s12091_s9, 0 }
  0x5b   : > { %292 = sbr.rel (%p12099_p1) target bundleno = 1445 (0x5a5), region = 48 }
  0x60   : > { %s7423_s13 = sand.u32 1, %s7220_s25   ;;  %p12100_p8 = scmp.ne.s32.totalorder %s12089_s30, 0 }
  0x61   : > { %s6324_s1 = sshll.u32 %s7423_s13, 8  ;;  %s295_s16 = scalar_lea.sflag [#allocation4], %s7423_s13 }
  0x62   : > { %s7429_s18 = scalar_lea.vmem [#allocation3], %s6324_s1 }
  0x63   : > { %7199 = dma.done.wait (%p12100_p8), %s295_s16, 4096  }
  0x64   : > { %7201 = vsyncadd (%p12100_p8), %s295_s16, 4294963200  ;;  %p12101_p10 = scmp.eq.s32.totalorder %s7303_s28, 0 }
  0x66   : > { %7203 = dma.done.wait (%p12101_p10), [#allocation7], 4608   ;;  %p12102_p11 = pmov %p12101_p10 }
  0x67   : > { %p12103_p13 = pmov %p12101_p10 }
  0x68   : > { %7205 = vsyncadd (%p12102_p11), [#allocation7], 4294962688 }
  0x69   : > { %7207 = dma.done.wait (%p12103_p13), [#allocation10], 4096   ;;  %p12104_p2 = pmov %p12101_p10 }
  0x6a   : > { %v7238_v0 = vmov 0.0   ;;  %v404_v1 = vld [vmem:[#allocation6 + $0xf8] sm:$0xff]  ;;  %v403_v2 = vld [vmem:[#allocation6 + $0xf0] sm:$0xff]  ;;  %v402_v3 = vld [vmem:[#allocation6 + $0xe8] sm:$0xff]  ;;  %v407_v62 = vlaneseq  ;;  %vm2004_vm1 = vcmask 1046528   ;;  %vm2557_vm2 = vcmask 1045504  }
  0x6b   : > { %7209 = vsyncadd (%p12104_p2), [#allocation10], 4294963200  ;;  %481 = vmatprep.mubr.f32.mxu0 %v7238_v0  ;;  %1058 = vst [vmem:[#allocation2] sm:$0xff] %v7238_v0  ;;  %6339 = vmatprep.subr.mxu1 %v7238_v0  ;;  %v401_v4 = vld [vmem:[#allocation6 + $0xe0] sm:$0xff]  ;;  %v400_v5 = vld [vmem:[#allocation6 + $0xd8] sm:$0xff]  ;;  %vm1235_vm3 = vcmask 1040384  }
  0x6c   : > { %1059 = vst [vmem:[#allocation2 + $0x8] sm:$0xff] %v7238_v0  ;;  %1062 = vst [vmem:[#allocation2 + $0x20] sm:$0x3] %v7238_v0  ;;  %417 = vmatprep.subr.mxu0 %v404_v1  ;;  %v399_v6 = vld [vmem:[#allocation6 + $0xd0] sm:$0xff]  ;;  %v398_v7 = vld [vmem:[#allocation6 + $0xc8] sm:$0xff]  ;;  %vm7512_vm0 = vcmp.lt.s32.totalorder %v407_v62, 256 }
  0x6d   : > { %1063 = vst [vmem:[#allocation2 + $0x28] sm:$0x3] %v7238_v0  ;;  %1065 = vst [vmem:[#allocation2 + $0x330] sm:$0xff] %v7238_v0  ;;  %418 = vmatpush1.msra.mxu0 %v403_v2  ;;  %v397_v8 = vld [vmem:[#allocation6 + $0xc0] sm:$0xff]  ;;  %v396_v9 = vld [vmem:[#allocation6 + $0xb8] sm:$0xff]  ;;  %s11593_s14 = scalar_lea.vmem [#allocation11], %s6324_s1 }
  0x6e   : > { %1066 = vst [vmem:[#allocation2 + $0x338] sm:$0xff] %v7238_v0  ;;  %1069 = vst [vmem:[#allocation2 + $0x350] sm:$0x3] %v7238_v0  ;;  %419 = vmatprep.subr.mxu0 %v402_v3  ;;  %v395_v10 = vld [vmem:[#allocation6 + $0xb0] sm:$0xff]  ;;  %v394_v11 = vld [vmem:[#allocation6 + $0xa8] sm:$0xff]  ;;  %s6338_s21 = sshll.u32 %s7303_s28, 12 }
  0x6f   : > { %1070 = vst [vmem:[#allocation2 + $0x358] sm:$0x3] %v7238_v0  ;;  %420 = vmatpush1.msra.mxu0 %v401_v4  ;;  %v393_v12 = vld [vmem:[#allocation6 + $0xa0] sm:$0xff]  ;;  %v392_v13 = vld [vmem:[#allocation6 + $0x98] sm:$0xff]  ;;  %v391_v14 = vld [vmem:[#allocation6 + $0x90] sm:$0xff]  ;;  %s6181_s22 = sshll.u32 %s11593_s14, 4  ;;  %s11705_s1 = scalar_lea.hbm %s11759_s7, %s6338_s21  ;;  %s11707_s22 = int_to_ptr.vmem [resolvable:$true] %s6181_s22 }
  0x70   : > { %421 = vmatprep.subr.mxu0 %v400_v5  ;;  %v390_v15 = vld [vmem:[#allocation6 + $0x88] sm:$0xff]  ;;  %v389_v16 = vld [vmem:[#allocation6 + $0x80] sm:$0xff]  ;;  %v388_v17 = vld [vmem:[#allocation6 + $0x78] sm:$0xff]  ;;  %1076 = vst.msk [vmem:[#allocation2 + $0x30] ss:$8 sm:$0x3] %vm7512_vm0, %v7238_v0 }
  0x71   : > { %422 = vmatpush1.msra.mxu0 %v399_v6  ;;  %v387_v18 = vld [vmem:[#allocation6 + $0x70] sm:$0xff]  ;;  %v386_v19 = vld [vmem:[#allocation6 + $0x68] sm:$0xff]  ;;  %v385_v20 = vld [vmem:[#allocation6 + $0x60] sm:$0xff]  ;;  %1079 = vst.msk [vmem:[#allocation2 + $0x60] ss:$8 sm:$0x3] %vm7512_vm0, %v7238_v0 }
  0x72   : > { %423 = vmatprep.subr.mxu0 %v398_v7  ;;  %v384_v21 = vld [vmem:[#allocation6 + $0x58] sm:$0xff]  ;;  %v383_v22 = vld [vmem:[#allocation6 + $0x50] sm:$0xff]  ;;  %v382_v23 = vld [vmem:[#allocation6 + $0x48] sm:$0xff]  ;;  %1082 = vst.msk [vmem:[#allocation2 + $0x90] ss:$8 sm:$0x3] %vm7512_vm0, %v7238_v0 }
  0x73   : > { %424 = vmatpush1.msra.mxu0 %v397_v8  ;;  %v381_v24 = vld [vmem:[#allocation6 + $0x40] sm:$0xff]  ;;  %v380_v25 = vld [vmem:[#allocation6 + $0x38] sm:$0xff]  ;;  %v379_v26 = vld [vmem:[#allocation6 + $0x30] sm:$0xff]  ;;  %1085 = vst.msk [vmem:[#allocation2 + $0xc0] ss:$8 sm:$0x3] %vm7512_vm0, %v7238_v0 }
  0x74   : > { %425 = vmatprep.subr.mxu0 %v396_v9  ;;  %v378_v27 = vld [vmem:[#allocation6 + $0x28] sm:$0xff]  ;;  %v377_v28 = vld [vmem:[#allocation6 + $0x20] sm:$0xff]  ;;  %v376_v29 = vld [vmem:[#allocation6 + $0x18] sm:$0xff]  ;;  %1088 = vst.msk [vmem:[#allocation2 + $0xf0] ss:$8 sm:$0x3] %vm7512_vm0, %v7238_v0 }
  0x75   : > { %426 = vmatpush1.msra.mxu0 %v395_v10  ;;  %v375_v30 = vld [vmem:[#allocation6 + $0x10] sm:$0xff]  ;;  %v374_v31 = vld [vmem:[#allocation6 + $0x8] sm:$0xff]  ;;  %v373_v32 = vld [vmem:[#allocation6] sm:$0xff]  ;;  %1091 = vst.msk [vmem:[#allocation2 + $0x120] ss:$8 sm:$0x3] %vm7512_vm0, %v7238_v0 }
  0x76   : > { %427 = vmatprep.subr.mxu0 %v394_v11  ;;  %v341_v33 = vld [vmem:[%s7429_s18] sm:$0xff]  ;;  %v342_v34 = vld [vmem:[%s7429_s18 + $0x8] sm:$0xff]  ;;  %v343_v35 = vld [vmem:[%s7429_s18 + $0x10] sm:$0xff]  ;;  %1094 = vst.msk [vmem:[#allocation2 + $0x150] ss:$8 sm:$0x3] %vm7512_vm0, %v7238_v0 }
  0x77   : > { %428 = vmatpush1.msra.mxu0 %v393_v12  ;;  %v344_v36 = vld [vmem:[%s7429_s18 + $0x18] sm:$0xff]  ;;  %v345_v37 = vld [vmem:[%s7429_s18 + $0x20] sm:$0xff]  ;;  %v346_v38 = vld [vmem:[%s7429_s18 + $0x28] sm:$0xff]  ;;  %1097 = vst.msk [vmem:[#allocation2 + $0x180] ss:$8 sm:$0x3] %vm7512_vm0, %v7238_v0 }
  0x78   : > { %429 = vmatprep.subr.mxu0 %v392_v13  ;;  %v347_v39 = vld [vmem:[%s7429_s18 + $0x30] sm:$0xff]  ;;  %v348_v40 = vld [vmem:[%s7429_s18 + $0x38] sm:$0xff]  ;;  %v349_v41 = vld [vmem:[%s7429_s18 + $0x40] sm:$0xff]  ;;  %1100 = vst.msk [vmem:[#allocation2 + $0x1b0] ss:$8 sm:$0x3] %vm7512_vm0, %v7238_v0 }
  0x79   : > { %430 = vmatpush1.msra.mxu0 %v391_v14  ;;  %v350_v42 = vld [vmem:[%s7429_s18 + $0x48] sm:$0xff]  ;;  %v351_v43 = vld [vmem:[%s7429_s18 + $0x50] sm:$0xff]  ;;  %v352_v44 = vld [vmem:[%s7429_s18 + $0x58] sm:$0xff]  ;;  %1103 = vst.msk [vmem:[#allocation2 + $0x1e0] ss:$8 sm:$0x3] %vm7512_vm0, %v7238_v0 }
  0x7a   : > { %431 = vmatprep.subr.mxu0 %v390_v15  ;;  %v353_v45 = vld [vmem:[%s7429_s18 + $0x60] sm:$0xff]  ;;  %v354_v46 = vld [vmem:[%s7429_s18 + $0x68] sm:$0xff]  ;;  %v355_v47 = vld [vmem:[%s7429_s18 + $0x70] sm:$0xff]  ;;  %1106 = vst.msk [vmem:[#allocation2 + $0x210] ss:$8 sm:$0x3] %vm7512_vm0, %v7238_v0 }
  0x7b   : > { %432 = vmatpush1.msra.mxu0 %v389_v16  ;;  %v356_v48 = vld [vmem:[%s7429_s18 + $0x78] sm:$0xff]  ;;  %v357_v49 = vld [vmem:[%s7429_s18 + $0x80] sm:$0xff]  ;;  %v358_v50 = vld [vmem:[%s7429_s18 + $0x88] sm:$0xff]  ;;  %1109 = vst.msk [vmem:[#allocation2 + $0x240] ss:$8 sm:$0x3] %vm7512_vm0, %v7238_v0 }
  0x7c   : > { %433 = vmatprep.subr.mxu0 %v388_v17  ;;  %v359_v51 = vld [vmem:[%s7429_s18 + $0x90] sm:$0xff]  ;;  %v360_v52 = vld [vmem:[%s7429_s18 + $0x98] sm:$0xff]  ;;  %v361_v53 = vld [vmem:[%s7429_s18 + $0xa0] sm:$0xff]  ;;  %1112 = vst.msk [vmem:[#allocation2 + $0x270] ss:$8 sm:$0x3] %vm7512_vm0, %v7238_v0 }
  0x7d   : > { %434 = vmatpush1.msra.mxu0 %v387_v18  ;;  %v362_v54 = vld [vmem:[%s7429_s18 + $0xa8] sm:$0xff]  ;;  %v363_v55 = vld [vmem:[%s7429_s18 + $0xb0] sm:$0xff]  ;;  %v364_v56 = vld [vmem:[%s7429_s18 + $0xb8] sm:$0xff]  ;;  %1115 = vst.msk [vmem:[#allocation2 + $0x2a0] ss:$8 sm:$0x3] %vm7512_vm0, %v7238_v0 }
  0x7e   : > { %435 = vmatprep.subr.mxu0 %v386_v19  ;;  %v365_v57 = vld [vmem:[%s7429_s18 + $0xc0] sm:$0xff]  ;;  %v366_v58 = vld [vmem:[%s7429_s18 + $0xc8] sm:$0xff]  ;;  %v367_v59 = vld [vmem:[%s7429_s18 + $0xd0] sm:$0xff]  ;;  %1118 = vst.msk [vmem:[#allocation2 + $0x2d0] ss:$8 sm:$0x3] %vm7512_vm0, %v7238_v0 }
  0x7f   : > { %436 = vmatpush1.msra.mxu0 %v385_v20  ;;  %v368_v60 = vld [vmem:[%s7429_s18 + $0xd8] sm:$0xff]  ;;  %v369_v61 = vld [vmem:[%s7429_s18 + $0xe0] sm:$0xff]  ;;  %1121 = vst.msk [vmem:[#allocation2 + $0x300] ss:$8 sm:$0x3] %vm7512_vm0, %v7238_v0  ;;  %v370_v1 = vld [vmem:[%s7429_s18 + $0xe8] sm:$0xff] }
  0x80   : > { %437 = vmatprep.subr.mxu0 %v384_v21  ;;  %1124 = vst.msk [vmem:[#allocation2 + $0x51] ss:$8 sm:$0x3] %vm7512_vm0, %v7238_v0  ;;  %1127 = vst.msk [vmem:[#allocation2 + $0x81] ss:$8 sm:$0x3] %vm7512_vm0, %v7238_v0 }
  0x81   : > { %438 = vmatpush1.msra.mxu0 %v383_v22  ;;  %1130 = vst.msk [vmem:[#allocation2 + $0xb1] ss:$8 sm:$0x3] %vm7512_vm0, %v7238_v0  ;;  %1133 = vst.msk [vmem:[#allocation2 + $0xe1] ss:$8 sm:$0x3] %vm7512_vm0, %v7238_v0 }
  0x82   : > { %439 = vmatprep.subr.mxu0 %v382_v23  ;;  %1136 = vst.msk [vmem:[#allocation2 + $0x111] ss:$8 sm:$0x3] %vm7512_vm0, %v7238_v0  ;;  %1139 = vst.msk [vmem:[#allocation2 + $0x141] ss:$8 sm:$0x3] %vm7512_vm0, %v7238_v0 }
  0x83   : > { %440 = vmatpush1.msra.mxu0 %v381_v24  ;;  %1142 = vst.msk [vmem:[#allocation2 + $0x171] ss:$8 sm:$0x3] %vm7512_vm0, %v7238_v0  ;;  %1145 = vst.msk [vmem:[#allocation2 + $0x1a1] ss:$8 sm:$0x3] %vm7512_vm0, %v7238_v0 }
  0x84   : > { %441 = vmatprep.subr.mxu0 %v380_v25  ;;  %1148 = vst.msk [vmem:[#allocation2 + $0x1d1] ss:$8 sm:$0x3] %vm7512_vm0, %v7238_v0  ;;  %1151 = vst.msk [vmem:[#allocation2 + $0x201] ss:$8 sm:$0x3] %vm7512_vm0, %v7238_v0 }
  0x85   : > { %442 = vmatpush1.msra.mxu0 %v379_v26  ;;  %1154 = vst.msk [vmem:[#allocation2 + $0x231] ss:$8 sm:$0x3] %vm7512_vm0, %v7238_v0  ;;  %1157 = vst.msk [vmem:[#allocation2 + $0x261] ss:$8 sm:$0x3] %vm7512_vm0, %v7238_v0 }
  0x86   : > { %443 = vmatprep.subr.mxu0 %v378_v27  ;;  %1160 = vst.msk [vmem:[#allocation2 + $0x291] ss:$8 sm:$0x3] %vm7512_vm0, %v7238_v0  ;;  %1163 = vst.msk [vmem:[#allocation2 + $0x2c1] ss:$8 sm:$0x3] %vm7512_vm0, %v7238_v0 }
  0x87   : > { %444 = vmatpush1.msra.mxu0 %v377_v28  ;;  %1166 = vst.msk [vmem:[#allocation2 + $0x2f1] ss:$8 sm:$0x3] %vm7512_vm0, %v7238_v0  ;;  %1169 = vst.msk [vmem:[#allocation2 + $0x321] ss:$8 sm:$0x3] %vm7512_vm0, %v7238_v0 }
  0x88   : > { %445 = vmatprep.subr.mxu0 %v376_v29  ;;  %v5854_v2 = vld [vmem:[#allocation9 + $0x78] sm:$0xff]  ;;  %v5853_v3 = vld [vmem:[#allocation9 + $0x70] sm:$0xff]  ;;  %v5852_v5 = vld [vmem:[#allocation9 + $0x68] sm:$0xff]  ;;  %s6168_s16 = scalar_lea.sflag [#allocation5], %s7423_s13  ;;  %s7156_s28 = scalar_lea.vmem %s11707_s22, 4096 }
  0x89   : > { %446 = vmatpush1.msra.mxu0 %v375_v30  ;;  %6371 = vmatpush1.msra.mxu1 %v5854_v2  ;;  %v371_v4 = vld [vmem:[%s7429_s18 + $0xf0] sm:$0xff]  ;;  %v5851_v6 = vld [vmem:[#allocation9 + $0x60] sm:$0xff]  ;;  %v372_v7 = vld [vmem:[%s7429_s18 + $0xf8] sm:$0xff]  ;;  %p7157_p4 = scmp.ne.s32.totalorder %s11707_s22, %s7156_s28  ;;  %p12506_p6 = scmp.ne.s32.totalorder %s12095_s12, 0 }
  0x8a   : > { %447 = vmatprep.subr.mxu0 %v374_v31  ;;  %6340 = vmatprep.subr.mxu1 %v7238_v0  ;;  %v5850_v8 = vld [vmem:[#allocation9 + $0x58] sm:$0xff]  ;;  %v5849_v9 = vld [vmem:[#allocation9 + $0x50] sm:$0xff]  ;;  %v5848_v10 = vld [vmem:[#allocation9 + $0x48] sm:$0xff]  ;;  %s7239_s30 = smov [#allocation11]  }
  0x8b   : > { %448 = vmatpush1.msra.mxu0 %v373_v32  ;;  %6372 = vmatpush1.msra.mxu1 %v5853_v3  ;;  %v5847_v11 = vld [vmem:[#allocation9 + $0x40] sm:$0xff]  ;;  %v5846_v12 = vld [vmem:[#allocation9 + $0x38] sm:$0xff]  ;;  %v5845_v13 = vld [vmem:[#allocation9 + $0x30] sm:$0xff]  ;;  %p7158_p12 = pnand %p7157_p4, %p12506_p6  ;;  %s7160_s9 = sshll.u32 %s7239_s30, 4  ;;  %s7161_s9 = int_to_ptr.vmem [resolvable:$false] %s7160_s9 }
  0x8c   : > { %482 = vmatmul.mubr.f32.vlgmr.msra.gmra.mxu0 %v341_v33  ;;  %5878 = vmatprep.subr.mxu0 %v7238_v0  ;;  %v5844_v14 = vld [vmem:[#allocation9 + $0x28] sm:$0xff]  ;;  %v5843_v15 = vld [vmem:[#allocation9 + $0x20] sm:$0xff]  ;;  %v5842_v16 = vld [vmem:[#allocation9 + $0x18] sm:$0xff]  ;;  %s7162_s10 = scalar_lea.vmem %s7161_s9, 8192  ;;  %p7163_p5 = scmp.lt.s32.totalorder %s11707_s22, %s7161_s9 }
  0x8d   : > { %487 = vmatprep.mubr.f32.mxu0 %v7238_v0  ;;  %5879 = vmatpush1.msra.mxu0 %v5854_v2  ;;  %v5841_v17 = vld [vmem:[#allocation9 + $0x10] sm:$0xff]  ;;  %v5840_v18 = vld [vmem:[#allocation9 + $0x8] sm:$0xff]  ;;  %v5839_v19 = vld [vmem:[#allocation9] sm:$0xff]  ;;  %p7159_p0 = pneg %p7158_p12  ;;  %p7164_p3 = scmp.lt.s32.totalorder %s7162_s10, %s7156_s28 }
  0x8e   : > { %5880 = vmatprep.subr.mxu0 %v7238_v0  ;;  %6341 = vmatprep.subr.mxu1 %v7238_v0  ;;  %v5870_v20 = vld [vmem:[#allocation9 + $0xf8] sm:$0xff]  ;;  %v5869_v21 = vld [vmem:[#allocation9 + $0xf0] sm:$0xff]  ;;  %v5868_v22 = vld [vmem:[#allocation9 + $0xe8] sm:$0xff] }
  0x8f   : > { %5881 = vmatpush1.msra.mxu0 %v5853_v3  ;;  %6373 = vmatpush1.msra.mxu1 %v5852_v5  ;;  %v5867_v23 = vld [vmem:[#allocation9 + $0xe0] sm:$0xff]  ;;  %v5866_v24 = vld [vmem:[#allocation9 + $0xd8] sm:$0xff]  ;;  %v5865_v25 = vld [vmem:[#allocation9 + $0xd0] sm:$0xff]  ;;  %p7165_p7 = por %p7164_p3, %p7163_p5 }
  0x90   : > { %488 = vmatmul.mubr.f32.gmra.mxu0 %v342_v34  ;;  %5882 = vmatprep.subr.mxu0 %v7238_v0  ;;  %v5864_v26 = vld [vmem:[#allocation9 + $0xc8] sm:$0xff]  ;;  %v5863_v27 = vld [vmem:[#allocation9 + $0xc0] sm:$0xff]  ;;  %v5862_v28 = vld [vmem:[#allocation9 + $0xb8] sm:$0xff] }
  0x91   : > { %493 = vmatprep.mubr.f32.mxu0 %v7238_v0  ;;  %5883 = vmatpush1.msra.mxu0 %v5852_v5  ;;  %v5861_v29 = vld [vmem:[#allocation9 + $0xb0] sm:$0xff]  ;;  %v5860_v30 = vld [vmem:[#allocation9 + $0xa8] sm:$0xff]  ;;  %v5859_v31 = vld [vmem:[#allocation9 + $0xa0] sm:$0xff]  ;;  %p7166_p9 = pnand %p7165_p7, %p7159_p0 }
  0x92   : > { %5884 = vmatprep.subr.mxu0 %v7238_v0  ;;  %6342 = vmatprep.subr.mxu1 %v7238_v0  ;;  %v5858_v32 = vld [vmem:[#allocation9 + $0x98] sm:$0xff]  ;;  %v5857_v33 = vld [vmem:[#allocation9 + $0x90] sm:$0xff]  ;;  %v5856_v34 = vld [vmem:[#allocation9 + $0x88] sm:$0xff] }
  0x93   : > { %5885 = vmatpush1.msra.mxu0 %v5851_v6  ;;  %6374 = vmatpush1.msra.mxu1 %v5851_v6 }
  0x94   : > { %494 = vmatmul.mubr.f32.gmra.mxu0 %v343_v35  ;;  %5886 = vmatprep.subr.mxu0 %v7238_v0  ;;  %v5855_v35 = vld [vmem:[#allocation9 + $0x80] sm:$0xff] }
  0x95   : > { %499 = vmatprep.mubr.f32.mxu0 %v7238_v0  ;;  %5887 = vmatpush1.msra.mxu0 %v5850_v8 }
  0x96   : > { %5888 = vmatprep.subr.mxu0 %v7238_v0  ;;  %6343 = vmatprep.subr.mxu1 %v7238_v0 }
  0x97   : > { %5889 = vmatpush1.msra.mxu0 %v5849_v9  ;;  %6375 = vmatpush1.msra.mxu1 %v5850_v8 }
  0x98   : > { %500 = vmatmul.mubr.f32.gmra.mxu0 %v344_v36  ;;  %5890 = vmatprep.subr.mxu0 %v7238_v0  ;;  %v7680_v36 = vshrl.u32 %v407_v62, 7 }
  0x99   : > { %505 = vmatprep.mubr.f32.mxu0 %v7238_v0  ;;  %5891 = vmatpush1.msra.mxu0 %v5848_v10 }
  0x9a   : > { %5892 = vmatprep.subr.mxu0 %v7238_v0  ;;  %6344 = vmatprep.subr.mxu1 %v7238_v0 }
  0x9b   : > { %6376 = vmatpush1.msra.mxu1 %v5849_v9  ;;  %5893 = vmatpush1.msra.mxu0 %v5847_v11 }
  0x9c   : > { %506 = vmatmul.mubr.f32.gmra.mxu0 %v345_v37  ;;  %6345 = vmatprep.subr.mxu1 %v7238_v0  ;;  %v409_v37 = vsub.s32 0, %v7680_v36 }
  0x9d   : > { %511 = vmatprep.mubr.f32.mxu0 %v7238_v0  ;;  %5894 = vmatprep.subr.mxu0 %v7238_v0 }
  0x9e   : > { %6377 = vmatpush1.msra.mxu1 %v5848_v10  ;;  %5895 = vmatpush1.msra.mxu0 %v5846_v12 }
  0x9f   : > { %6346 = vmatprep.subr.mxu1 %v7238_v0  ;;  %5896 = vmatprep.subr.mxu0 %v7238_v0 }
  0xa0   : > { %512 = vmatmul.mubr.f32.gmra.mxu0 %v346_v38  ;;  %6378 = vmatpush1.msra.mxu1 %v5847_v11  ;;  %v7684_v38 = vld [vmem:[#allocation8 + $0x8] sm:$0xff]  ;;  %v2293_v11 = vld [vmem:[#allocation2] sm:$0xfc] }
  0xa1   : > { %517 = vmatprep.mubr.f32.mxu0 %v7238_v0  ;;  %5897 = vmatpush1.msra.mxu0 %v5845_v13 }
  0xa2   : > { %6347 = vmatprep.subr.mxu1 %v7238_v0  ;;  %5898 = vmatprep.subr.mxu0 %v7238_v0 }
  0xa3   : > { %6379 = vmatpush1.msra.mxu1 %v5846_v12  ;;  %5899 = vmatpush1.msra.mxu0 %v5844_v14 }
  0xa4   : > { %518 = vmatmul.mubr.f32.gmra.mxu0 %v347_v39  ;;  %6348 = vmatprep.subr.mxu1 %v7238_v0  ;;  %v405_v39 = vld [vmem:[%s11754_s2] sm:$0x3] }
  0xa5   : > { %523 = vmatprep.mubr.f32.mxu0 %v7238_v0  ;;  %5900 = vmatprep.subr.mxu0 %v7238_v0 }
  0xa6   : > { %6380 = vmatpush1.msra.mxu1 %v5845_v13  ;;  %5901 = vmatpush1.msra.mxu0 %v5843_v15 }
  0xa7   : > { %6349 = vmatprep.subr.mxu1 %v7238_v0  ;;  %5902 = vmatprep.subr.mxu0 %v7238_v0 }
  0xa8   : > { %524 = vmatmul.mubr.f32.gmra.mxu0 %v348_v40  ;;  %6381 = vmatpush1.msra.mxu1 %v5844_v14  ;;  %v413_v40 = vsub.s32 1, %v7680_v36 }
  0xa9   : > { %529 = vmatprep.mubr.f32.mxu0 %v7238_v0  ;;  %5903 = vmatpush1.msra.mxu0 %v5842_v16 }
  0xaa   : > { %6350 = vmatprep.subr.mxu1 %v7238_v0  ;;  %5904 = vmatprep.subr.mxu0 %v7238_v0 }
  0xab   : > { %6382 = vmatpush1.msra.mxu1 %v5843_v15  ;;  %5905 = vmatpush1.msra.mxu0 %v5841_v17 }
  0xac   : > { %530 = vmatmul.mubr.f32.gmra.mxu0 %v349_v41  ;;  %6351 = vmatprep.subr.mxu1 %v7238_v0  ;;  %v7691_v41 = vrot.slane %v7684_v38, %v413_v40 }
  0xad   : > { %535 = vmatprep.mubr.f32.mxu0 %v7238_v0  ;;  %5906 = vmatprep.subr.mxu0 %v7238_v0 }
  0xae   : > { %6383 = vmatpush1.msra.mxu1 %v5842_v16  ;;  %5907 = vmatpush1.msra.mxu0 %v5840_v18  ;;  %12107 = vst [vmem:[#allocation16_spill] sm:$0xff] %v7691_v41 }
  0xaf   : > { %6352 = vmatprep.subr.mxu1 %v7238_v0  ;;  %5908 = vmatprep.subr.mxu0 %v7238_v0 }
  0xb0   : > { %536 = vmatmul.mubr.f32.gmra.mxu0 %v350_v42  ;;  %6384 = vmatpush1.msra.mxu1 %v5841_v17  ;;  %v7693_v42 = vrot.slane %v405_v39, %v409_v37 }
  0xb1   : > { %541 = vmatprep.mubr.f32.mxu0 %v7238_v0  ;;  %5909 = vmatpush1.msra.mxu0 %v5839_v19 }
  0xb2   : > { %6353 = vmatprep.subr.mxu1 %v7238_v0  ;;  %5910 = vmatprep.subr.mxu0 %v7238_v0 }
  0xb3   : > { %6385 = vmatpush1.msra.mxu1 %v5840_v18  ;;  %5911 = vmatpush2.msra.mxu0 %v5870_v20 }
  0xb4   : > { %542 = vmatmul.mubr.f32.gmra.mxu0 %v351_v43  ;;  %6354 = vmatprep.subr.mxu1 %v7238_v0  ;;  %v7695_v43 = vld [vmem:[#allocation8] sm:$0xff] }
  0xb5   : > { %547 = vmatprep.mubr.f32.mxu0 %v7238_v0  ;;  %5912 = vmatprep.subr.mxu0 %v7238_v0 }
  0xb6   : > { %6386 = vmatpush1.msra.mxu1 %v5839_v19  ;;  %5913 = vmatpush2.msra.mxu0 %v5869_v21 }
  0xb7   : > { %6355 = vmatprep.subr.mxu1 %v7238_v0  ;;  %5914 = vmatprep.subr.mxu0 %v7238_v0 }
  0xb8   : > { %548 = vmatmul.mubr.f32.gmra.mxu0 %v352_v44  ;;  %6387 = vmatpush2.msra.mxu1 %v5870_v20  ;;  %v1741_v44 = vld [vmem:[#allocation2 + $0x8] sm:$0xfe] }
  0xb9   : > { %553 = vmatprep.mubr.f32.mxu0 %v7238_v0  ;;  %5915 = vmatpush2.msra.mxu0 %v5868_v22 }
  0xba   : > { %6356 = vmatprep.subr.mxu1 %v7238_v0  ;;  %5916 = vmatprep.subr.mxu0 %v7238_v0 }
  0xbb   : > { %6388 = vmatpush2.msra.mxu1 %v5869_v21  ;;  %5917 = vmatpush2.msra.mxu0 %v5867_v23 }
  0xbc   : > { %554 = vmatmul.mubr.f32.gmra.mxu0 %v353_v45  ;;  %6357 = vmatprep.subr.mxu1 %v7238_v0  ;;  %v2359_v45 = vsub.s32 2, %v7680_v36 }
  0xbd   : > { %559 = vmatprep.mubr.f32.mxu0 %v7238_v0  ;;  %5918 = vmatprep.subr.mxu0 %v7238_v0 }
  0xbe   : > { %6389 = vmatpush2.msra.mxu1 %v5868_v22  ;;  %5919 = vmatpush2.msra.mxu0 %v5866_v24 }
  0xbf   : > { %6358 = vmatprep.subr.mxu1 %v7238_v0  ;;  %5920 = vmatprep.subr.mxu0 %v7238_v0 }
  0xc0   : > { %560 = vmatmul.mubr.f32.gmra.mxu0 %v354_v46  ;;  %6390 = vmatpush2.msra.mxu1 %v5867_v23  ;;  %v7701_v46 = vrot.slane %v405_v39, %v413_v40 }
  0xc1   : > { %565 = vmatprep.mubr.f32.mxu0 %v7238_v0  ;;  %5921 = vmatpush2.msra.mxu0 %v5865_v25 }
  0xc2   : > { %6359 = vmatprep.subr.mxu1 %v7238_v0  ;;  %5922 = vmatprep.subr.mxu0 %v7238_v0 }
  0xc3   : > { %6391 = vmatpush2.msra.mxu1 %v5866_v24  ;;  %5923 = vmatpush2.msra.mxu0 %v5864_v26 }
  0xc4   : > { %566 = vmatmul.mubr.f32.gmra.mxu0 %v355_v47  ;;  %6360 = vmatprep.subr.mxu1 %v7238_v0  ;;  %v1528_v47 = vld [vmem:[%s11756_s4] sm:$0x3] }
  0xc5   : > { %571 = vmatprep.mubr.f32.mxu0 %v7238_v0  ;;  %6392 = vmatpush2.msra.mxu1 %v5865_v25 }
  0xc6   : > { %5924 = vmatprep.subr.mxu0 %v7238_v0  ;;  %6361 = vmatprep.subr.mxu1 %v7238_v0 }
  0xc7   : > { %5925 = vmatpush2.msra.mxu0 %v5863_v27  ;;  %6393 = vmatpush2.msra.mxu1 %v5864_v26 }
  0xc8   : > { %572 = vmatmul.mubr.f32.gmra.mxu0 %v356_v48  ;;  %5926 = vmatprep.subr.mxu0 %v7238_v0 }
  0xc9   : > { %577 = vmatprep.mubr.f32.mxu0 %v7238_v0  ;;  %6362 = vmatprep.subr.mxu1 %v7238_v0 }
  0xca   : > { %5927 = vmatpush2.msra.mxu0 %v5862_v28  ;;  %6394 = vmatpush2.msra.mxu1 %v5863_v27 }
  0xcb   : > { %5928 = vmatprep.subr.mxu0 %v7238_v0  ;;  %6363 = vmatprep.subr.mxu1 %v7238_v0 }
  0xcc   : > { %578 = vmatmul.mubr.f32.gmra.mxu0 %v357_v49  ;;  %6395 = vmatpush2.msra.mxu1 %v5862_v28  ;;  %v7707_v49 = vrot.slane %v7695_v43, %v413_v40 }
  0xcd   : > { %583 = vmatprep.mubr.f32.mxu0 %v7238_v0  ;;  %5929 = vmatpush2.msra.mxu0 %v5861_v29 }
  0xce   : > { %5930 = vmatprep.subr.mxu0 %v7238_v0  ;;  %6364 = vmatprep.subr.mxu1 %v7238_v0  ;;  %12108 = vst [vmem:[#allocation17_spill] sm:$0xff] %v7707_v49  ;;  %v7738_v6 = vmul.f32 0.0, %v7707_v49 }
  0xcf   : > { %5931 = vmatpush2.msra.mxu0 %v5860_v30  ;;  %6396 = vmatpush2.msra.mxu1 %v5861_v29 }
  0xd0   : > { %584 = vmatmul.mubr.f32.gmra.mxu0 %v358_v50  ;;  %5932 = vmatprep.subr.mxu0 %v7238_v0  ;;  %v1813_v50 = vmul.f32 %v7691_v41, %v1741_v44  ;;  %v2006_v21 = vrot.slane %v7738_v6, 1 }
  0xd1   : > { %589 = vmatprep.mubr.f32.mxu0 %v7238_v0  ;;  %6365 = vmatprep.subr.mxu1 %v7238_v0 }
  0xd2   : > { %5933 = vmatpush2.msra.mxu0 %v5859_v31  ;;  %6397 = vmatpush2.msra.mxu1 %v5860_v30  ;;  %v2008_v3 = vrot.slane %v1813_v50, 1 }
  0xd3   : > { %5934 = vmatprep.subr.mxu0 %v7238_v0  ;;  %6366 = vmatprep.subr.mxu1 %v7238_v0 }
  0xd4   : > { %590 = vmatmul.mubr.f32.gmra.mxu0 %v359_v51  ;;  %6398 = vmatpush2.msra.mxu1 %v5859_v31  ;;  %v7711_v51 = vmul.f32 0.0, %v7691_v41 }
  0xd5   : > { %595 = vmatprep.mubr.f32.mxu0 %v7238_v0  ;;  %5935 = vmatpush2.msra.mxu0 %v5858_v32 }
  0xd6   : > { %5936 = vmatprep.subr.mxu0 %v7238_v0  ;;  %6367 = vmatprep.subr.mxu1 %v7238_v0 }
  0xd7   : > { %5937 = vmatpush2.msra.mxu0 %v5857_v33  ;;  %6399 = vmatpush2.msra.mxu1 %v5858_v32 }
  0xd8   : > { %596 = vmatmul.mubr.f32.gmra.mxu0 %v360_v52  ;;  %5938 = vmatprep.subr.mxu0 %v7238_v0 }
  0xd9   : > { %601 = vmatprep.mubr.f32.mxu0 %v7238_v0  ;;  %6368 = vmatprep.subr.mxu1 %v7238_v0 }
  0xda   : > { %5939 = vmatpush2.msra.mxu0 %v5856_v34  ;;  %6400 = vmatpush2.msra.mxu1 %v5857_v33 }
  0xdb   : > { %5940 = vmatprep.subr.mxu0 %v7238_v0  ;;  %6369 = vmatprep.subr.mxu1 %v7238_v0 }
  0xdc   : > { %602 = vmatmul.mubr.f32.gmra.mxu0 %v361_v53  ;;  %6401 = vmatpush2.msra.mxu1 %v5856_v34  ;;  %v7717_v53 = vrot.slane %v7695_v43, %v409_v37 }
  0xdd   : > { %607 = vmatprep.mubr.f32.mxu0 %v7238_v0  ;;  %5941 = vmatpush2.msra.mxu0 %v5855_v35 }
  0xde   : > { %6370 = vmatprep.subr.mxu1 %v7238_v0  ;;  %12109 = vst [vmem:[#allocation18_spill] sm:$0xff] %v7717_v53  ;;  %v1612_v15 = vmul.f32 0.0, %v7717_v53 }
  0xdf   : > { %6402 = vmatpush2.msra.mxu1 %v5855_v35 }
  0xe0   : > { %608 = vmatmul.mubr.f32.gmra.mxu0 %v362_v54  ;;  %v7720_v54 = vrot.slane %v7684_v38, %v2359_v45 }
  0xe1   : > { %613 = vmatprep.mubr.f32.mxu0 %v7238_v0 }
  0xe2   : > { %12110 = vst [vmem:[#allocation19_spill] sm:$0xff] %v7720_v54  ;;  %v7749_v14 = vmul.f32 0.0, %v7720_v54 }
  0xe4   : > { %614 = vmatmul.mubr.f32.gmra.mxu0 %v363_v55  ;;  %v1740_v55 = vld [vmem:[#allocation2] sm:$0xfe]  ;;  %v11767_v30 = vrot.slane %v7749_v14, 2 }
  0xe5   : > { %619 = vmatprep.mubr.f32.mxu0 %v7238_v0  ;;  %v1812_v5 = vmul.f32 %v7707_v49, %v1740_v55 }
  0xe7   : > { %v2005_v20 = vrot.slane %v1812_v5, 1 }
  0xe8   : > { %620 = vmatmul.mubr.f32.gmra.mxu0 %v364_v56 }
  0xe9   : > { %625 = vmatprep.mubr.f32.mxu0 %v7238_v0  ;;  %v2007_v39 = vsel %vm2004_vm1, %v2005_v20, %v2006_v21 }
  0xec   : > { %626 = vmatmul.mubr.f32.gmra.mxu0 %v365_v57  ;;  %v7722_v57 = vrot.slane %v1528_v47, %v409_v37 }
  0xed   : > { %631 = vmatprep.mubr.f32.mxu0 %v7238_v0 }
  0xee   : > { %12111 = vst [vmem:[#allocation20_spill] sm:$0xff] %v7722_v57 }
  0xf0   : > { %632 = vmatmul.mubr.f32.gmra.mxu0 %v366_v58  ;;  %v7724_v58 = vrot.slane %v1528_v47, %v413_v40 }
  0xf1   : > { %637 = vmatprep.mubr.f32.mxu0 %v7238_v0 }
  0xf4   : > { %638 = vmatmul.mubr.f32.gmra.mxu0 %v367_v59 }
  0xf5   : > { %643 = vmatprep.mubr.f32.mxu0 %v7238_v0 }
  0xf8   : > { %644 = vmatmul.mubr.f32.gmra.mxu0 %v368_v60  ;;  %v2294_v60 = vld [vmem:[#allocation2 + $0x8] sm:$0xfc] }
  0xf9   : > { %649 = vmatprep.mubr.f32.mxu0 %v7238_v0  ;;  %v2366_v10 = vmul.f32 %v7720_v54, %v2294_v60  ;;  %v3112_v60 = vsub.s32 4, %v7680_v36 }
  0xfb   : > { %v2561_v29 = vrot.slane %v2366_v10, 2  ;;  %v7815_v20 = vrot.slane %v7684_v38, %v3112_v60 }
  0xfc   : > { %650 = vmatmul.mubr.f32.gmra.mxu0 %v369_v61  ;;  %v7728_v61 = vrot.slane %v7695_v43, %v2359_v45 }
  0xfd   : > { %655 = vmatprep.mubr.f32.mxu0 %v7238_v0  ;;  %12114 = vst [vmem:[#allocation23_spill] sm:$0xff] %v7815_v20 }
  0xfe   : > { %12112 = vst [vmem:[#allocation21_spill] sm:$0xff] %v7728_v61  ;;  %v2365_v22 = vmul.f32 %v7728_v61, %v2293_v11  ;;  %v7759_v23 = vmul.f32 0.0, %v7728_v61 }
 0x100   : > { %656 = vmatmul.mubr.f32.gmra.mxu0 %v370_v1  ;;  %v2912_v1 = vsub.s32 3, %v7680_v36  ;;  %v2558_v40 = vrot.slane %v2365_v22, 2  ;;  %v11766_v44 = vrot.slane %v7759_v23, 2  ;;  %v4417_v22 = vsub.s32 7, %v7680_v36 }
 0x101   : > { %661 = vmatprep.mubr.f32.mxu0 %v7238_v0 }
 0x102   : > { %v7770_v31 = vrot.slane %v7695_v43, %v2912_v1 }
 0x104   : > { %662 = vmatmul.mubr.f32.gmra.mxu0 %v371_v4  ;;  %v2009_v4 = vrot.slane %v7711_v51, 1 }
 0x105   : > { %667 = vmatprep.mubr.f32.mxu0 %v7238_v0  ;;  %v7698_v0 = vrot.slane %v7684_v38, %v409_v37  ;;  %v7777_v37 = vadd.f32 %v1612_v15, %v7722_v57 }
 0x106   : > { %v2010_v28 = vsel %vm2004_vm1, %v2008_v3, %v2009_v4 }
 0x107   : > { %v1613_v59 = vmul.f32 0.0, %v7698_v0  ;;  %v2229_v10 = vadd.f32 %v2007_v39, %v7777_v37 }
 0x108   : > { %668 = vmatmul.mubr.f32.gmra.mxu0 %v372_v7 }
 0x109   : > { %v7746_v13 = vadd.f32 %v1613_v59, %v7724_v58  ;;  %v7792_v59 = vrot.slane %v7684_v38, %v2912_v1  ;;  %v2560_v1 = vsel %vm2557_vm2, %v2558_v40, %v11766_v44 }
 0x10b   : > { %v2230_v55 = vadd.f32 %v2010_v28, %v7746_v13  ;;  %12113 = vst [vmem:[#allocation22_spill] sm:$0xff] %v7792_v59  ;;  %v1743_v28 = vld [vmem:[#allocation2 + $0x28] sm:$0x1] }
 0x14c   : > { %v483_v48 = vpop.f32.mrf.mxu0 }
 0x14d   : > { %v7714_v52 = vadd.f32 %v483_v48, %v7693_v42 }
 0x14e   : > { %v485_v56 = vpop.f32.mrf.mxu0 }
 0x14f   : > { %v674_v62 = vsub.f32 0.0, %v7714_v52  ;;  %v7732_v63 = vadd.f32 %v485_v56, %v7701_v46  ;;  %v2563_v56 = vsel %vm2557_vm2, %v2561_v29, %v11767_v30 }
 0x150   : > { %v489_v2 = vpop.f32.mrf.mxu0 }
 0x151   : > { %v738_v7 = vmul.f32 1.442695, %v674_v62  ;;  %v675_v8 = vsub.f32 0.0, %v7732_v63  ;;  %v7742_v9 = vadd.f32 %v489_v2, %v7693_v42 }
 0x152   : > { %v491_v12 = vpop.f32.mrf.mxu0 }
 0x153   : > { %6487 = vpow2.f32 %v738_v7  ;;  %v740_v16 = vmul.f32 1.442695, %v675_v8  ;;  %v676_v17 = vsub.f32 0.0, %v7742_v9  ;;  %v7754_v18 = vadd.f32 %v491_v12, %v7701_v46 }
 0x154   : > { %v495_v19 = vpop.f32.mrf.mxu0  ;;  %v3664_v7 = vsub.s32 5, %v7680_v36  ;;  %v4217_v8 = vsub.s32 6, %v7680_v36  ;;  %v7831_v36 = vadd.f32 %v2560_v1, %v2229_v10 }
 0x155   : > { %6489 = vpow2.f32 %v740_v16  ;;  %v742_v24 = vmul.f32 1.442695, %v676_v17  ;;  %v677_v25 = vsub.f32 0.0, %v7754_v18  ;;  %v7763_v26 = vadd.f32 %v495_v19, %v7693_v42 }
 0x156   : > { %v497_v27 = vpop.f32.mrf.mxu0  ;;  %v7809_v17 = vadd.f32 %v2563_v56, %v2230_v55  ;;  %v7812_v19 = vrot.slane %v7695_v43, %v3112_v60  ;;  %v7829_v39 = vrot.slane %v7695_v43, %v4217_v8 }
 0x157   : > { %6491 = vpow2.f32 %v742_v24  ;;  %v744_v32 = vmul.f32 1.442695, %v677_v25  ;;  %v678_v33 = vsub.f32 0.0, %v7763_v26  ;;  %v7774_v34 = vadd.f32 %v497_v27, %v7701_v46 }
 0x158   : > { %v501_v35 = vpop.f32.mrf.mxu0 }
 0x159   : > { %6493 = vpow2.f32 %v744_v32  ;;  %v746_v45 = vmul.f32 1.442695, %v678_v33  ;;  %v679_v47 = vsub.f32 0.0, %v7774_v34  ;;  %v7785_v48 = vadd.f32 %v501_v35, %v7693_v42 }
 0x15a   : > { %v503_v50 = vpop.f32.mrf.mxu0  ;;  %v7823_v33 = vrot.slane %v7695_v43, %v3664_v7  ;;  %v7826_v35 = vrot.slane %v7684_v38, %v3664_v7 }
 0x15b   : > { %6495 = vpow2.f32 %v746_v45  ;;  %v748_v62 = vmul.f32 1.442695, %v679_v47  ;;  %v680_v2 = vsub.f32 0.0, %v7785_v48  ;;  %v7797_v3 = vadd.f32 %v503_v50, %v7701_v46  ;;  %v1742_v50 = vld [vmem:[#allocation2 + $0x20] sm:$0x1] }
 0x15c   : > { %v507_v5 = vpop.f32.mrf.mxu0  ;;  %12115 = vst [vmem:[#allocation24_spill] sm:$0xff] %v7826_v35 }
 0x15d   : > { %6497 = vpow2.f32 %v748_v62  ;;  %v750_v11 = vmul.f32 1.442695, %v680_v2  ;;  %v681_v12 = vsub.f32 0.0, %v7797_v3  ;;  %v7807_v15 = vadd.f32 %v507_v5, %v7693_v42 }
 0x15e   : > { %v509_v16 = vpop.f32.mrf.mxu0  ;;  %v7838_v62 = vrot.slane %v7684_v38, %v4217_v8  ;;  %v7841_v2 = vrot.slane %v7695_v43, %v4417_v22  ;;  %v1817_v5 = vmul.f32 %v7691_v41, %v1743_v28  ;;  %v7849_v8 = vrot.slane %v7684_v38, %v4417_v22 }
 0x15f   : > { %6499 = vpow2.f32 %v750_v11  ;;  %v752_v24 = vmul.f32 1.442695, %v681_v12  ;;  %v682_v25 = vsub.f32 0.0, %v7807_v15  ;;  %v7820_v27 = vadd.f32 %v509_v16, %v7701_v46  ;;  %v2296_v11 = vld [vmem:[#allocation2 + $0x28] sm:$0x3] }
 0x160   : > { %v6488_v29 = vpop.eup %6487  ;;  %v513_v32 = vpop.f32.mrf.mxu0  ;;  %12116 = vst [vmem:[#allocation25_spill] sm:$0xff] %v7838_v62  ;;  %12117 = vst [vmem:[#allocation26_spill] sm:$0xff] %v7849_v8  ;;  %v1816_v43 = vmul.f32 %v7707_v49, %v1742_v50 }
 0x161   : > { %v866_v40 = vadd.f32 1.0, %v6488_v29  ;;  %6501 = vpow2.f32 %v752_v24  ;;  %v754_v45 = vmul.f32 1.442695, %v682_v25  ;;  %v683_v47 = vsub.f32 0.0, %v7820_v27 }
 0x162   : > { %v6490_v55 = vpop.eup %6489  ;;  %v7835_v56 = vadd.f32 %v513_v32, %v7693_v42  ;;  %v515_v60 = vpop.f32.mrf.mxu0  ;;  %v2295_v32 = vld [vmem:[#allocation2 + $0x20] sm:$0x3]  ;;  %v2011_v44 = vrot.slane %v1816_v43, 1 }
 0x163   : > { %6503 = vrcp.f32 %v866_v40  ;;  %v867_v7 = vadd.f32 1.0, %v6490_v55  ;;  %v756_v10 = vmul.f32 1.442695, %v683_v47  ;;  %v7845_v1 = vadd.f32 %v515_v60, %v7701_v46 }
 0x164   : > { %v6492_v12 = vpop.eup %6491  ;;  %6505 = vpow2.f32 %v754_v45  ;;  %v684_v16 = vsub.f32 0.0, %v7835_v56  ;;  %v519_v24 = vpop.f32.mrf.mxu0  ;;  %v2013_v55 = vrot.slane %v1817_v5, 1  ;;  %v2370_v60 = vmul.f32 %v7720_v54, %v2296_v11 }
 0x165   : > { %6507 = vrcp.f32 %v867_v7  ;;  %v868_v25 = vadd.f32 1.0, %v6492_v12  ;;  %v685_v28 = vsub.f32 0.0, %v7845_v1  ;;  %v7854_v29 = vadd.f32 %v519_v24, %v7693_v42 }
 0x166   : > { %v6494_v40 = vpop.eup %6493  ;;  %6509 = vpow2.f32 %v756_v10  ;;  %v758_v47 = vmul.f32 1.442695, %v684_v16  ;;  %v521_v45 = vpop.f32.mrf.mxu0  ;;  %v2369_v30 = vmul.f32 %v7728_v61, %v2295_v32 }
 0x167   : > { %6511 = vrcp.f32 %v868_v25  ;;  %v869_v38 = vadd.f32 1.0, %v6494_v40  ;;  %v760_v22 = vmul.f32 1.442695, %v685_v28  ;;  %v686_v50 = vsub.f32 0.0, %v7854_v29 }
 0x168   : > { %v6496_v7 = vpop.eup %6495  ;;  %6513 = vpow2.f32 %v758_v47  ;;  %v7859_v12 = vadd.f32 %v521_v45, %v7701_v46  ;;  %v525_v24 = vpop.f32.mrf.mxu0  ;;  %v2014_v40 = vsel %vm2004_vm1, %v2009_v4, %v2013_v55  ;;  %v2566_v47 = vrot.slane %v2370_v60, 2 }
 0x169   : > { %6515 = vrcp.f32 %v869_v38  ;;  %v870_v10 = vadd.f32 1.0, %v6496_v7  ;;  %v762_v16 = vmul.f32 1.442695, %v686_v50  ;;  %v7863_v5 = vadd.f32 %v525_v24, %v7693_v42 }
 0x16a   : > { %v6498_v11 = vpop.eup %6497  ;;  %6517 = vpow2.f32 %v760_v22  ;;  %v687_v25 = vsub.f32 0.0, %v7859_v12  ;;  %v527_v28 = vpop.f32.mrf.mxu0  ;;  %v2012_v22 = vsel %vm2004_vm1, %v2006_v21, %v2011_v44  ;;  %v2564_v24 = vrot.slane %v2369_v30, 2 }
 0x16b   : > { %6519 = vrcp.f32 %v870_v10  ;;  %v871_v43 = vadd.f32 1.0, %v6498_v11  ;;  %v688_v32 = vsub.f32 0.0, %v7863_v5  ;;  %v7871_v45 = vadd.f32 %v527_v28, %v7701_v46 }
 0x16c   : > { %v6500_v38 = vpop.eup %6499  ;;  %6521 = vpow2.f32 %v762_v16  ;;  %v764_v50 = vmul.f32 1.442695, %v687_v25  ;;  %v531_v7 = vpop.f32.mrf.mxu0  ;;  %v2232_v16 = vadd.f32 %v2014_v40, %v7746_v13  ;;  %v12118_v25 = vrot.slane %v7749_v14, 2 }
 0x16d   : > { %6523 = vrcp.f32 %v871_v43  ;;  %v872_v51 = vadd.f32 1.0, %v6500_v38  ;;  %v766_v4 = vmul.f32 1.442695, %v688_v32  ;;  %v689_v55 = vsub.f32 0.0, %v7871_v45 }
 0x16e   : > { %v6502_v60 = vpop.eup %6501  ;;  %6525 = vpow2.f32 %v764_v50  ;;  %v7878_v10 = vadd.f32 %v531_v7, %v7693_v42  ;;  %v533_v11 = vpop.f32.mrf.mxu0  ;;  %v2567_v6 = vsel %vm2557_vm2, %v12118_v25, %v2566_v47  ;;  %v2231_v38 = vadd.f32 %v2012_v22, %v7777_v37 }
 0x16f   : > { %6527 = vrcp.f32 %v872_v51  ;;  %v873_v21 = vadd.f32 1.0, %v6502_v60  ;;  %v768_v30 = vmul.f32 1.442695, %v689_v55  ;;  %v7885_v44 = vadd.f32 %v533_v11, %v7701_v46 }
 0x170   : > { %v6504_v28 = vpop.eup %6503  ;;  %6529 = vpow2.f32 %v766_v4  ;;  %v690_v43 = vsub.f32 0.0, %v7878_v10  ;;  %v537_v32 = vpop.f32.mrf.mxu0  ;;  %v12119_v50 = vrot.slane %v7759_v23, 2  ;;  %v7897_v11 = vadd.f32 %v2567_v6, %v2232_v16 }
 0x171   : > { %v6506_v14 = vpop.eup %6505  ;;  %v994_v40 = vmul.f32 %v6504_v28, %v7714_v52  ;;  %6531 = vrcp.f32 %v873_v21  ;;  %v691_v47 = vsub.f32 0.0, %v7885_v44  ;;  %v7895_v7 = vadd.f32 %v537_v32, %v7693_v42 }
 0x172   : > { %v2565_v13 = vsel %vm2557_vm2, %v12119_v50, %v2564_v24  ;;  %v6508_v51 = vpop.eup %6507  ;;  %v874_v4 = vadd.f32 1.0, %v6506_v14  ;;  %6533 = vpow2.f32 %v768_v30  ;;  %v770_v55 = vmul.f32 1.442695, %v690_v43  ;;  %v539_v60 = vpop.f32.mrf.mxu0 }
 0x173   : > { %v6510_v37 = vpop.eup %6509  ;;  %v1236_v23 = vrot.slane %v994_v40, 7  ;;  %v995_v22 = vmul.f32 %v6508_v51, %v7732_v63  ;;  %v772_v24 = vmul.f32 1.442695, %v691_v47  ;;  %v692_v52 = vsub.f32 0.0, %v7895_v7 }
 0x174   : > { %v6512_v25 = vpop.eup %6511  ;;  %6535 = vrcp.f32 %v874_v4  ;;  %v875_v21 = vadd.f32 1.0, %v6510_v37  ;;  %v7902_v28 = vadd.f32 %v539_v60, %v7701_v46  ;;  %v543_v32 = vpop.f32.mrf.mxu0  ;;  %v7904_v50 = vadd.f32 %v2565_v13, %v2231_v38 }
 0x175   : > { %v6514_v30 = vpop.eup %6513  ;;  %1428 = vst [vmem:[#allocation2 + $0x30] sm:$0xfe] %v1236_v23  ;;  %v1237_v16 = vrot.slane %v995_v22, 7  ;;  %v996_v6 = vmul.f32 %v6512_v25, %v7742_v9  ;;  %6537 = vpow2.f32 %v770_v55  ;;  %v774_v43 = vmul.f32 1.442695, %v692_v52 }
 0x176   : > { %v6516_v63 = vpop.eup %6515  ;;  %6539 = vrcp.f32 %v875_v21  ;;  %v876_v14 = vadd.f32 1.0, %v6514_v30  ;;  %v693_v40 = vsub.f32 0.0, %v7902_v28  ;;  %v7909_v47 = vadd.f32 %v543_v32, %v7693_v42  ;;  %v545_v51 = vpop.f32.mrf.mxu0 }
 0x177   : > { %v6518_v4 = vpop.eup %6517  ;;  %1429 = vst [vmem:[#allocation2 + $0x38] sm:$0xfe] %v1237_v16  ;;  %v1238_v38 = vrot.slane %v996_v6, 7  ;;  %v997_v13 = vmul.f32 %v6516_v63, %v7754_v18  ;;  %6541 = vpow2.f32 %v772_v24  ;;  %v7913_v60 = vadd.f32 %v545_v51, %v7701_v46 }
 0x178   : > { %v6520_v9 = vpop.eup %6519  ;;  %6543 = vrcp.f32 %v876_v14  ;;  %v877_v55 = vadd.f32 1.0, %v6518_v4  ;;  %v776_v37 = vmul.f32 1.442695, %v693_v40  ;;  %v694_v22 = vsub.f32 0.0, %v7909_v47  ;;  %v549_v52 = vpop.f32.mrf.mxu0 }
 0x179   : > { %v6522_v25 = vpop.eup %6521  ;;  %v1239_v21 = vsel %vm1235_vm3, %v1236_v23, %v1238_v38  ;;  %1432 = vst [vmem:[#allocation2 + $0x50] sm:$0x1] %v1238_v38  ;;  %v1240_v32 = vrot.slane %v997_v13, 7  ;;  %v998_v30 = vmul.f32 %v6520_v9, %v7763_v26  ;;  %6545 = vpow2.f32 %v774_v43 }
 0x17a   : > { %v6524_v18 = vpop.eup %6523  ;;  %1430 = vst [vmem:[#allocation2 + $0x40] sm:$0xff] %v1239_v21  ;;  %6547 = vrcp.f32 %v877_v55  ;;  %v878_v24 = vadd.f32 1.0, %v6522_v25  ;;  %v778_v6 = vmul.f32 1.442695, %v694_v22  ;;  %v695_v63 = vsub.f32 0.0, %v7913_v60  ;;  %v551_v14 = vpop.f32.mrf.mxu0 }
 0x17b   : > { %v6526_v40 = vpop.eup %6525  ;;  %v1241_v51 = vsel %vm1235_vm3, %v1237_v16, %v1240_v32  ;;  %1433 = vst [vmem:[#allocation2 + $0x58] sm:$0x1] %v1240_v32  ;;  %v1242_v4 = vrot.slane %v998_v30, 7  ;;  %v999_v23 = vmul.f32 %v6524_v18, %v7774_v34  ;;  %6549 = vpow2.f32 %v776_v37 }
 0x17c   : > { %v6528_v38 = vpop.eup %6527  ;;  %1431 = vst [vmem:[#allocation2 + $0x48] sm:$0xff] %v1241_v51  ;;  %6551 = vrcp.f32 %v878_v24  ;;  %v879_v26 = vadd.f32 1.0, %v6526_v40  ;;  %v780_v43 = vmul.f32 1.442695, %v695_v63  ;;  %v7922_v13 = vadd.f32 %v549_v52, %v7693_v42  ;;  %v555_v9 = vpop.f32.mrf.mxu0 }
 0x17d   : > { %v6530_v55 = vpop.eup %6529  ;;  %1434 = vst [vmem:[#allocation2 + $0x60] sm:$0xfe] %v1242_v4  ;;  %v1243_v22 = vrot.slane %v999_v23, 7  ;;  %v1000_v25 = vmul.f32 %v6528_v38, %v7785_v48  ;;  %6553 = vpow2.f32 %v778_v6  ;;  %v7926_v16 = vadd.f32 %v551_v14, %v7701_v46 }
 0x17e   : > { %v6532_v34 = vpop.eup %6531  ;;  %6555 = vrcp.f32 %v879_v26  ;;  %v880_v37 = vadd.f32 1.0, %v6530_v55  ;;  %v696_v21 = vsub.f32 0.0, %v7922_v13  ;;  %v7930_v32 = vadd.f32 %v555_v9, %v7693_v42  ;;  %v557_v52 = vpop.f32.mrf.mxu0 }
 0x17f   : > { %v6534_v30 = vpop.eup %6533  ;;  %1435 = vst [vmem:[#allocation2 + $0x68] sm:$0xfe] %v1243_v22  ;;  %v1244_v18 = vrot.slane %v1000_v25, 7  ;;  %v1001_v24 = vmul.f32 %v6532_v34, %v7797_v3  ;;  %6557 = vpow2.f32 %v780_v43  ;;  %v697_v48 = vsub.f32 0.0, %v7926_v16 }
 0x180   : > { %6559 = vrcp.f32 %v880_v37  ;;  %v881_v6 = vadd.f32 1.0, %v6534_v30  ;;  %v782_v63 = vmul.f32 1.442695, %v696_v21  ;;  %v698_v14 = vsub.f32 0.0, %v7930_v32  ;;  %v561_v40 = vpop.f32.mrf.mxu0 }
 0x181   : > { %v6536_v51 = vpop.eup %6535  ;;  %v1245_v23 = vsel %vm1235_vm3, %v1242_v4, %v1244_v18  ;;  %1438 = vst [vmem:[#allocation2 + $0x80] sm:$0x1] %v1244_v18  ;;  %v1246_v38 = vrot.slane %v1001_v24, 7  ;;  %v784_v26 = vmul.f32 1.442695, %v697_v48  ;;  %v7937_v9 = vadd.f32 %v557_v52, %v7701_v46 }
 0x182   : > { %v6538_v55 = vpop.eup %6537  ;;  %1436 = vst [vmem:[#allocation2 + $0x70] sm:$0xff] %v1245_v23  ;;  %v1002_v3 = vmul.f32 %v6536_v51, %v7807_v15  ;;  %6561 = vrcp.f32 %v881_v6  ;;  %v786_v43 = vmul.f32 1.442695, %v698_v14  ;;  %v7941_v25 = vadd.f32 %v561_v40, %v7693_v42  ;;  %v563_v34 = vpop.f32.mrf.mxu0 }
 0x183   : > { %v6540_v37 = vpop.eup %6539  ;;  %v1247_v21 = vsel %vm1235_vm3, %v1243_v22, %v1246_v38  ;;  %1439 = vst [vmem:[#allocation2 + $0x88] sm:$0x1] %v1246_v38  ;;  %v882_v4 = vadd.f32 1.0, %v6538_v55  ;;  %6563 = vpow2.f32 %v782_v63  ;;  %v699_v30 = vsub.f32 0.0, %v7937_v9 }
 0x184   : > { %v6542_v52 = vpop.eup %6541  ;;  %1437 = vst [vmem:[#allocation2 + $0x78] sm:$0xff] %v1247_v21  ;;  %v1248_v18 = vrot.slane %v1002_v3, 7  ;;  %v1003_v24 = vmul.f32 %v6540_v37, %v7820_v27  ;;  %6565 = vpow2.f32 %v784_v26  ;;  %v700_v15 = vsub.f32 0.0, %v7941_v25  ;;  %v567_v48 = vpop.f32.mrf.mxu0 }
 0x185   : > { %v6544_v6 = vpop.eup %6543  ;;  %6567 = vrcp.f32 %v882_v4  ;;  %v883_v14 = vadd.f32 1.0, %v6542_v52  ;;  %v788_v40 = vmul.f32 1.442695, %v699_v30  ;;  %v7948_v22 = vadd.f32 %v563_v34, %v7701_v46 }
 0x186   : > { %v6546_v51 = vpop.eup %6545  ;;  %1440 = vst [vmem:[#allocation2 + $0x90] sm:$0xfe] %v1248_v18  ;;  %v1249_v63 = vrot.slane %v1003_v24, 7  ;;  %v1004_v23 = vmul.f32 %v6544_v6, %v7835_v56  ;;  %6569 = vpow2.f32 %v786_v43  ;;  %v790_v38 = vmul.f32 1.442695, %v700_v15  ;;  %v569_v55 = vpop.f32.mrf.mxu0 }
 0x187   : > { %v6548_v27 = vpop.eup %6547  ;;  %6571 = vrcp.f32 %v883_v14  ;;  %v884_v26 = vadd.f32 1.0, %v6546_v51  ;;  %v701_v3 = vsub.f32 0.0, %v7948_v22  ;;  %v7953_v37 = vadd.f32 %v567_v48, %v7693_v42 }
 0x188   : > { %v6550_v21 = vpop.eup %6549  ;;  %1441 = vst [vmem:[#allocation2 + $0x98] sm:$0xfe] %v1249_v63  ;;  %v1250_v34 = vrot.slane %v1004_v23, 7  ;;  %v1005_v4 = vmul.f32 %v6548_v27, %v7845_v1  ;;  %6573 = vpow2.f32 %v788_v40  ;;  %v7957_v30 = vadd.f32 %v569_v55, %v7701_v46  ;;  %v573_v56 = vpop.f32.mrf.mxu0 }
 0x189   : > { %v6552_v43 = vpop.eup %6551  ;;  %6575 = vrcp.f32 %v884_v26  ;;  %v885_v52 = vadd.f32 1.0, %v6550_v21  ;;  %v792_v24 = vmul.f32 1.442695, %v701_v3  ;;  %v702_v15 = vsub.f32 0.0, %v7953_v37 }
 0x18a   : > { %v6554_v6 = vpop.eup %6553  ;;  %v1251_v48 = vsel %vm1235_vm3, %v1248_v18, %v1250_v34  ;;  %1444 = vst [vmem:[#allocation2 + $0xb0] sm:$0x1] %v1250_v34  ;;  %v1252_v14 = vrot.slane %v1005_v4, 7  ;;  %v1006_v51 = vmul.f32 %v6552_v43, %v7854_v29  ;;  %6577 = vpow2.f32 %v790_v38  ;;  %v575_v1 = vpop.f32.mrf.mxu0 }
 0x18b   : > { %v6556_v40 = vpop.eup %6555  ;;  %1442 = vst [vmem:[#allocation2 + $0xa0] sm:$0xff] %v1251_v48  ;;  %6579 = vrcp.f32 %v885_v52  ;;  %v886_v23 = vadd.f32 1.0, %v6554_v6  ;;  %v794_v55 = vmul.f32 1.442695, %v702_v15  ;;  %v703_v27 = vsub.f32 0.0, %v7957_v30 }
 0x18c   : > { %v6558_v26 = vpop.eup %6557  ;;  %v1253_v3 = vsel %vm1235_vm3, %v1249_v63, %v1252_v14  ;;  %1445 = vst [vmem:[#allocation2 + $0xb8] sm:$0x1] %v1252_v14  ;;  %v1254_v21 = vrot.slane %v1006_v51, 7  ;;  %v1007_v18 = vmul.f32 %v6556_v40, %v7859_v12  ;;  %6581 = vpow2.f32 %v792_v24  ;;  %v579_v34 = vpop.f32.mrf.mxu0 }
 0x18d   : > { %v6560_v4 = vpop.eup %6559  ;;  %1443 = vst [vmem:[#allocation2 + $0xa8] sm:$0xff] %v1253_v3  ;;  %6583 = vrcp.f32 %v886_v23  ;;  %v887_v29 = vadd.f32 1.0, %v6558_v26  ;;  %v796_v38 = vmul.f32 1.442695, %v703_v27  ;;  %v7966_v43 = vadd.f32 %v573_v56, %v7693_v42 }
 0x18e   : > { %1446 = vst [vmem:[#allocation2 + $0xc0] sm:$0xfe] %v1254_v21  ;;  %v1255_v52 = vrot.slane %v1007_v18, 7  ;;  %v1008_v15 = vmul.f32 %v6560_v4, %v7863_v5  ;;  %6585 = vpow2.f32 %v794_v55  ;;  %v7970_v63 = vadd.f32 %v575_v1, %v7701_v46  ;;  %v581_v6 = vpop.f32.mrf.mxu0 }
 0x18f   : > { %v6562_v12 = vpop.eup %6561  ;;  %6587 = vrcp.f32 %v887_v29  ;;  %v704_v24 = vsub.f32 0.0, %v7966_v43  ;;  %v7974_v48 = vadd.f32 %v579_v34, %v7693_v42  ;;  %v7977_v14 = vadd.f32 %v581_v6, %v7701_v46 }
 0x190   : > { %v6564_v56 = vpop.eup %6563  ;;  %1447 = vst [vmem:[#allocation2 + $0xc8] sm:$0xfe] %v1255_v52  ;;  %v1256_v51 = vrot.slane %v1008_v15, 7  ;;  %v1009_v5 = vmul.f32 %v6562_v12, %v7871_v45  ;;  %6589 = vpow2.f32 %v796_v38  ;;  %v705_v1 = vsub.f32 0.0, %v7970_v63  ;;  %v585_v40 = vpop.f32.mrf.mxu0 }
 0x191   : > { %v6566_v23 = vpop.eup %6565  ;;  %v888_v55 = vadd.f32 1.0, %v6564_v56  ;;  %v798_v27 = vmul.f32 1.442695, %v704_v24  ;;  %v706_v26 = vsub.f32 0.0, %v7974_v48  ;;  %v707_v3 = vsub.f32 0.0, %v7977_v14 }
 0x192   : > { %v6568_v18 = vpop.eup %6567  ;;  %v1257_v34 = vsel %vm1235_vm3, %v1254_v21, %v1256_v51  ;;  %1450 = vst [vmem:[#allocation2 + $0xe0] sm:$0x1] %v1256_v51  ;;  %v1258_v4 = vrot.slane %v1009_v5, 7  ;;  %v889_v29 = vadd.f32 1.0, %v6566_v23  ;;  %v800_v15 = vmul.f32 1.442695, %v705_v1  ;;  %v587_v6 = vpop.f32.mrf.mxu0 }
 0x193   : > { %v6570_v45 = vpop.eup %6569  ;;  %1448 = vst [vmem:[#allocation2 + $0xd0] sm:$0xff] %v1257_v34  ;;  %v1010_v38 = vmul.f32 %v6568_v18, %v7878_v10  ;;  %6591 = vrcp.f32 %v888_v55  ;;  %v802_v12 = vmul.f32 1.442695, %v706_v26  ;;  %v804_v56 = vmul.f32 1.442695, %v707_v3 }
 0x194   : > { %v6572_v24 = vpop.eup %6571  ;;  %v1259_v61 = vsel %vm1235_vm3, %v1255_v52, %v1258_v4  ;;  %1451 = vst [vmem:[#allocation2 + $0xe8] sm:$0x1] %v1258_v4  ;;  %6593 = vrcp.f32 %v889_v29  ;;  %v890_v57 = vadd.f32 1.0, %v6570_v45  ;;  %v7987_v21 = vadd.f32 %v585_v40, %v7693_v42  ;;  %v591_v51 = vpop.f32.mrf.mxu0 }
 0x195   : > { %v6574_v5 = vpop.eup %6573  ;;  %1449 = vst [vmem:[#allocation2 + $0xd8] sm:$0xff] %v1259_v61  ;;  %v1260_v1 = vrot.slane %v1010_v38, 7  ;;  %v1011_v23 = vmul.f32 %v6572_v24, %v7885_v44  ;;  %6595 = vpow2.f32 %v798_v27  ;;  %v7991_v10 = vadd.f32 %v587_v6, %v7701_v46 }
 0x196   : > { %v6576_v55 = vpop.eup %6575  ;;  %6597 = vrcp.f32 %v890_v57  ;;  %v891_v26 = vadd.f32 1.0, %v6574_v5  ;;  %v708_v52 = vsub.f32 0.0, %v7987_v21  ;;  %v7995_v3 = vadd.f32 %v591_v51, %v7693_v42  ;;  %v593_v40 = vpop.f32.mrf.mxu0 }
 0x197   : > { %v6578_v18 = vpop.eup %6577  ;;  %1452 = vst [vmem:[#allocation2 + $0xf0] sm:$0xfe] %v1260_v1  ;;  %v1261_v34 = vrot.slane %v1011_v23, 7  ;;  %v1012_v61 = vmul.f32 %v6576_v55, %v7895_v7  ;;  %6599 = vpow2.f32 %v800_v15  ;;  %v709_v44 = vsub.f32 0.0, %v7991_v10 }
 0x198   : > { %v6580_v27 = vpop.eup %6579  ;;  %6601 = vrcp.f32 %v891_v26  ;;  %v892_v4 = vadd.f32 1.0, %v6578_v18  ;;  %v806_v29 = vmul.f32 1.442695, %v708_v52  ;;  %v710_v57 = vsub.f32 0.0, %v7995_v3  ;;  %v597_v6 = vpop.f32.mrf.mxu0 }
 0x199   : > { %v6582_v45 = vpop.eup %6581  ;;  %1453 = vst [vmem:[#allocation2 + $0xf8] sm:$0xfe] %v1261_v34  ;;  %v1262_v38 = vrot.slane %v1012_v61, 7  ;;  %v1013_v24 = vmul.f32 %v6580_v27, %v7902_v28  ;;  %6603 = vpow2.f32 %v802_v12  ;;  %v808_v51 = vmul.f32 1.442695, %v709_v44 }
 0x19a   : > { %v6584_v5 = vpop.eup %6583  ;;  %6605 = vrcp.f32 %v892_v4  ;;  %v893_v7 = vadd.f32 1.0, %v6582_v45  ;;  %v810_v15 = vmul.f32 1.442695, %v710_v57  ;;  %v8002_v23 = vadd.f32 %v593_v40, %v7701_v46  ;;  %v599_v55 = vpop.f32.mrf.mxu0 }
 0x19b   : > { %v6586_v26 = vpop.eup %6585  ;;  %v1263_v52 = vsel %vm1235_vm3, %v1260_v1, %v1262_v38  ;;  %1456 = vst [vmem:[#allocation2 + $0x110] sm:$0x1] %v1262_v38  ;;  %v1264_v18 = vrot.slane %v1013_v24, 7  ;;  %v1014_v49 = vmul.f32 %v6584_v5, %v7909_v47  ;;  %6607 = vpow2.f32 %v804_v56  ;;  %v8012_v47 = vld [vmem:[#allocation2 + $0x38] sm:$0xff] }
 0x19c   : > { %v6588_v61 = vpop.eup %6587  ;;  %1454 = vst [vmem:[#allocation2 + $0x100] sm:$0xff] %v1263_v52  ;;  %6609 = vrcp.f32 %v893_v7  ;;  %v894_v28 = vadd.f32 1.0, %v6586_v26  ;;  %v711_v12 = vsub.f32 0.0, %v8002_v23  ;;  %v8008_v44 = vadd.f32 %v597_v6, %v7693_v42  ;;  %v603_v40 = vpop.f32.mrf.mxu0 }
 0x19d   : > { %v6590_v27 = vpop.eup %6589  ;;  %v1265_v4 = vsel %vm1235_vm3, %v1261_v34, %v1264_v18  ;;  %1457 = vst [vmem:[#allocation2 + $0x118] sm:$0x1] %v1264_v18  ;;  %v1266_v1 = vrot.slane %v1014_v49, 7  ;;  %v1015_v57 = vmul.f32 %v6588_v61, %v7913_v60  ;;  %6611 = vpow2.f32 %v806_v29 }
 0x19e   : > { %1455 = vst [vmem:[#allocation2 + $0x108] sm:$0xff] %v1265_v4  ;;  %6613 = vrcp.f32 %v894_v28  ;;  %v895_v56 = vadd.f32 1.0, %v6590_v27  ;;  %v812_v45 = vmul.f32 1.442695, %v711_v12  ;;  %v712_v38 = vsub.f32 0.0, %v8008_v44  ;;  %v605_v24 = vpop.f32.mrf.mxu0 }
 0x19f   : > { %1458 = vst [vmem:[#allocation2 + $0x120] sm:$0xfe] %v1266_v1  ;;  %v1267_v6 = vrot.slane %v1015_v57, 7  ;;  %6615 = vpow2.f32 %v808_v51  ;;  %v8016_v5 = vadd.f32 %v599_v55, %v7701_v46  ;;  %v8019_v49 = vadd.f32 %v603_v40, %v7693_v42 }
 0x1a0   : > { %v6592_v60 = vpop.eup %6591  ;;  %6617 = vrcp.f32 %v895_v56  ;;  %v814_v34 = vmul.f32 1.442695, %v712_v38  ;;  %v8022_v29 = vadd.f32 %v605_v24, %v7701_v46  ;;  %v609_v7 = vpop.f32.mrf.mxu0  ;;  %v8026_v26 = vmul.f32 %v7792_v59, %v8012_v47 }
 0x1a1   : > { %v6594_v52 = vpop.eup %6593  ;;  %1459 = vst [vmem:[#allocation2 + $0x128] sm:$0xfe] %v1267_v6  ;;  %v1016_v51 = vmul.f32 %v6592_v60, %v7922_v13  ;;  %6619 = vpow2.f32 %v810_v15  ;;  %v713_v55 = vsub.f32 0.0, %v8016_v5  ;;  %v714_v18 = vsub.f32 0.0, %v8019_v49 }
 0x1a2   : > { %v6596_v61 = vpop.eup %6595  ;;  %v1017_v28 = vmul.f32 %v6594_v52, %v7926_v16  ;;  %6621 = vpow2.f32 %v812_v45  ;;  %v715_v12 = vsub.f32 0.0, %v8022_v29  ;;  %v8034_v40 = vadd.f32 %v609_v7, %v7693_v42  ;;  %v611_v27 = vpop.f32.mrf.mxu0 }
 0x1a3   : > { %v6598_v4 = vpop.eup %6597  ;;  %v1268_v57 = vrot.slane %v1016_v51, 7  ;;  %v896_v56 = vadd.f32 1.0, %v6596_v61  ;;  %6623 = vpow2.f32 %v814_v34  ;;  %v816_v13 = vmul.f32 1.442695, %v713_v55 }
 0x1a4   : > { %v6600_v15 = vpop.eup %6599  ;;  %v1270_v38 = vrot.slane %v1017_v28, 7  ;;  %v1018_v24 = vmul.f32 %v6598_v4, %v7930_v32  ;;  %v818_v60 = vmul.f32 1.442695, %v714_v18  ;;  %v820_v53 = vmul.f32 1.442695, %v715_v12  ;;  %v615_v54 = vpop.f32.mrf.mxu0 }
 0x1a5   : > { %v6602_v16 = vpop.eup %6601  ;;  %v1269_v45 = vsel %vm1235_vm3, %v1266_v1, %v1268_v57  ;;  %1462 = vst [vmem:[#allocation2 + $0x140] sm:$0x1] %v1268_v57  ;;  %6625 = vrcp.f32 %v896_v56  ;;  %v897_v7 = vadd.f32 1.0, %v6600_v15  ;;  %v716_v52 = vsub.f32 0.0, %v8034_v40 }
 0x1a6   : > { %v6604_v41 = vpop.eup %6603  ;;  %1460 = vst [vmem:[#allocation2 + $0x130] sm:$0xff] %v1269_v45  ;;  %v1271_v34 = vsel %vm1235_vm3, %v1267_v6, %v1270_v38  ;;  %1463 = vst [vmem:[#allocation2 + $0x148] sm:$0x1] %v1270_v38  ;;  %v1272_v51 = vrot.slane %v1018_v24, 7  ;;  %v1019_v55 = vmul.f32 %v6602_v16, %v7937_v9  ;;  %6627 = vpow2.f32 %v816_v13  ;;  %v617_v32 = vpop.f32.mrf.mxu0 }
 0x1a7   : > { %v6606_v18 = vpop.eup %6605  ;;  %1461 = vst [vmem:[#allocation2 + $0x138] sm:$0xff] %v1271_v34  ;;  %6629 = vrcp.f32 %v897_v7  ;;  %v898_v61 = vadd.f32 1.0, %v6604_v41  ;;  %v822_v1 = vmul.f32 1.442695, %v716_v52  ;;  %v8042_v28 = vadd.f32 %v611_v27, %v7701_v46 }
 0x1a8   : > { %v6608_v12 = vpop.eup %6607  ;;  %1464 = vst [vmem:[#allocation2 + $0x150] sm:$0xfe] %v1272_v51  ;;  %v1273_v4 = vrot.slane %v1019_v55, 7  ;;  %v1020_v57 = vmul.f32 %v6606_v18, %v7941_v25  ;;  %6631 = vpow2.f32 %v818_v60  ;;  %v8046_v6 = vadd.f32 %v615_v54, %v7693_v42  ;;  %v621_v9 = vpop.f32.mrf.mxu0 }
 0x1a9   : > { %v6610_v56 = vpop.eup %6609  ;;  %6633 = vrcp.f32 %v898_v61  ;;  %v899_v13 = vadd.f32 1.0, %v6608_v12  ;;  %v717_v15 = vsub.f32 0.0, %v8042_v28  ;;  %v8050_v41 = vadd.f32 %v617_v32, %v7701_v46 }
 0x1aa   : > { %v6612_v27 = vpop.eup %6611  ;;  %1465 = vst [vmem:[#allocation2 + $0x158] sm:$0xfe] %v1273_v4  ;;  %v1274_v38 = vrot.slane %v1020_v57, 7  ;;  %v1021_v24 = vmul.f32 %v6610_v56, %v7948_v22  ;;  %6635 = vpow2.f32 %v820_v53  ;;  %v718_v25 = vsub.f32 0.0, %v8046_v6  ;;  %v623_v60 = vpop.f32.mrf.mxu0 }
 0x1ab   : > { %v6614_v54 = vpop.eup %6613  ;;  %6637 = vrcp.f32 %v899_v13  ;;  %v900_v16 = vadd.f32 1.0, %v6612_v27  ;;  %v824_v45 = vmul.f32 1.442695, %v717_v15  ;;  %v719_v7 = vsub.f32 0.0, %v8050_v41 }
 0x1ac   : > { %v6616_v52 = vpop.eup %6615  ;;  %v1275_v34 = vsel %vm1235_vm3, %v1272_v51, %v1274_v38  ;;  %1468 = vst [vmem:[#allocation2 + $0x170] sm:$0x1] %v1274_v38  ;;  %v1276_v55 = vrot.slane %v1021_v24, 7  ;;  %v8057_v32 = vmul.f32 %v6614_v54, %v7953_v37  ;;  %6639 = vpow2.f32 %v822_v1  ;;  %v627_v22 = vpop.f32.mrf.mxu0 }
 0x1ad   : > { %v6618_v53 = vpop.eup %6617  ;;  %1466 = vst [vmem:[#allocation2 + $0x160] sm:$0xff] %v1275_v34  ;;  %6641 = vrcp.f32 %v900_v16  ;;  %v901_v18 = vadd.f32 1.0, %v6616_v52  ;;  %v826_v61 = vmul.f32 1.442695, %v718_v25  ;;  %v828_v12 = vmul.f32 1.442695, %v719_v7 }
 0x1ae   : > { %v6620_v57 = vpop.eup %6619  ;;  %v1277_v56 = vsel %vm1235_vm3, %v1273_v4, %v1276_v55  ;;  %1469 = vst [vmem:[#allocation2 + $0x178] sm:$0x1] %v1276_v55  ;;  %v1278_v13 = vrot.slane %v8057_v32, 7  ;;  %v8062_v51 = vmul.f32 %v6618_v53, %v7957_v30  ;;  %6643 = vpow2.f32 %v824_v45  ;;  %v629_v37 = vpop.f32.mrf.mxu0 }
 0x1af   : > { %v6622_v15 = vpop.eup %6621  ;;  %1467 = vst [vmem:[#allocation2 + $0x168] sm:$0xff] %v1277_v56  ;;  %6645 = vrcp.f32 %v901_v18  ;;  %v902_v1 = vadd.f32 1.0, %v6620_v57  ;;  %v8065_v27 = vadd.f32 %v621_v9, %v7693_v42  ;;  %v8068_v38 = vadd.f32 %v623_v60, %v7701_v46 }
 0x1b0   : > { %v6624_v24 = vpop.eup %6623  ;;  %1470 = vst [vmem:[#allocation2 + $0x180] sm:$0xfe] %v1278_v13  ;;  %v1279_v4 = vrot.slane %v8062_v51, 7  ;;  %v903_v25 = vadd.f32 1.0, %v6622_v15  ;;  %6647 = vpow2.f32 %v826_v61  ;;  %v8072_v30 = vadd.f32 %v627_v22, %v7693_v42  ;;  %v633_v54 = vpop.f32.mrf.mxu0 }
 0x1b1   : > { %6649 = vrcp.f32 %v902_v1  ;;  %v904_v16 = vadd.f32 1.0, %v6624_v24  ;;  %v720_v45 = vsub.f32 0.0, %v8065_v27  ;;  %v721_v9 = vsub.f32 0.0, %v8068_v38 }
 0x1b2   : > { %v6626_v7 = vpop.eup %6625  ;;  %1471 = vst [vmem:[#allocation2 + $0x188] sm:$0xfe] %v1279_v4  ;;  %6651 = vrcp.f32 %v903_v25  ;;  %v722_v60 = vsub.f32 0.0, %v8072_v30  ;;  %v8078_v52 = vadd.f32 %v629_v37, %v7701_v46  ;;  %v8081_v34 = vadd.f32 %v633_v54, %v7693_v42  ;;  %v635_v55 = vpop.f32.mrf.mxu0 }
 0x1b3   : > { %v6628_v32 = vpop.eup %6627  ;;  %v1024_v22 = vmul.f32 %v6626_v7, %v7966_v43  ;;  %6653 = vrcp.f32 %v904_v16  ;;  %v830_v53 = vmul.f32 1.442695, %v720_v45  ;;  %v832_v18 = vmul.f32 1.442695, %v721_v9 }
 0x1b4   : > { %v6630_v61 = vpop.eup %6629  ;;  %v905_v57 = vadd.f32 1.0, %v6628_v32  ;;  %6655 = vpow2.f32 %v828_v12  ;;  %v834_v56 = vmul.f32 1.442695, %v722_v60  ;;  %v723_v51 = vsub.f32 0.0, %v8078_v52  ;;  %v639_v15 = vpop.f32.mrf.mxu0 }
 0x1b5   : > { %v6632_v1 = vpop.eup %6631  ;;  %v1280_v37 = vrot.slane %v1024_v22, 7  ;;  %v1025_v24 = vmul.f32 %v6630_v61, %v7970_v63  ;;  %6657 = vpow2.f32 %v830_v53  ;;  %v724_v25 = vsub.f32 0.0, %v8081_v34 }
 0x1b6   : > { %v6634_v54 = vpop.eup %6633  ;;  %6659 = vrcp.f32 %v905_v57  ;;  %v906_v43 = vadd.f32 1.0, %v6632_v1  ;;  %v836_v16 = vmul.f32 1.442695, %v723_v51  ;;  %v8088_v45 = vadd.f32 %v635_v55, %v7701_v46  ;;  %v641_v9 = vpop.f32.mrf.mxu0 }
 0x1b7   : > { %v6636_v12 = vpop.eup %6635  ;;  %v1281_v7 = vsel %vm1235_vm3, %v1278_v13, %v1280_v37  ;;  %1474 = vst [vmem:[#allocation2 + $0x1a0] sm:$0x1] %v1280_v37  ;;  %v1282_v60 = vrot.slane %v1025_v24, 7  ;;  %v1026_v32 = vmul.f32 %v6634_v54, %v7974_v48  ;;  %6661 = vpow2.f32 %v832_v18 }
 0x1b8   : > { %v6638_v63 = vpop.eup %6637  ;;  %1472 = vst [vmem:[#allocation2 + $0x190] sm:$0xff] %v1281_v7  ;;  %6663 = vrcp.f32 %v906_v43  ;;  %v907_v22 = vadd.f32 1.0, %v6636_v12  ;;  %v838_v53 = vmul.f32 1.442695, %v724_v25  ;;  %v725_v61 = vsub.f32 0.0, %v8088_v45  ;;  %v645_v13 = vpop.f32.mrf.mxu0 }
 0x1b9   : > { %v6640_v57 = vpop.eup %6639  ;;  %v1283_v55 = vsel %vm1235_vm3, %v1279_v4, %v1282_v60  ;;  %1475 = vst [vmem:[#allocation2 + $0x1a8] sm:$0x1] %v1282_v60  ;;  %v1284_v51 = vrot.slane %v1026_v32, 7  ;;  %v1027_v1 = vmul.f32 %v6638_v63, %v7977_v14  ;;  %6665 = vpow2.f32 %v834_v56 }
 0x1ba   : > { %v6642_v37 = vpop.eup %6641  ;;  %1473 = vst [vmem:[#allocation2 + $0x198] sm:$0xff] %v1283_v55  ;;  %6667 = vrcp.f32 %v907_v22  ;;  %v908_v48 = vadd.f32 1.0, %v6640_v57  ;;  %v840_v18 = vmul.f32 1.442695, %v725_v61  ;;  %v8096_v24 = vadd.f32 %v639_v15, %v7693_v42 }
 0x1bb   : > { %v6644_v25 = vpop.eup %6643  ;;  %1476 = vst [vmem:[#allocation2 + $0x1b0] sm:$0xfe] %v1284_v51  ;;  %v1285_v54 = vrot.slane %v1027_v1, 7  ;;  %v1028_v43 = vmul.f32 %v6642_v37, %v7987_v21  ;;  %6669 = vpow2.f32 %v836_v16  ;;  %v8100_v4 = vadd.f32 %v641_v9, %v7701_v46 }
 0x1bc   : > { %v6646_v14 = vpop.eup %6645  ;;  %6671 = vrcp.f32 %v908_v48  ;;  %v909_v56 = vadd.f32 1.0, %v6644_v25  ;;  %v726_v12 = vsub.f32 0.0, %v8096_v24  ;;  %v8104_v7 = vadd.f32 %v645_v13, %v7693_v42  ;;  %v3047_v48 = vld [vmem:[#allocation2 + $0x38] sm:$0xfe] }
 0x1bd   : > { %v6648_v60 = vpop.eup %6647  ;;  %1477 = vst [vmem:[#allocation2 + $0x1b8] sm:$0xfe] %v1285_v54  ;;  %v1286_v15 = vrot.slane %v1028_v43, 7  ;;  %v1029_v32 = vmul.f32 %v6646_v14, %v7991_v10  ;;  %6673 = vpow2.f32 %v838_v53  ;;  %v727_v21 = vsub.f32 0.0, %v8100_v4 }
 0x1be   : > { %v6650_v16 = vpop.eup %6649  ;;  %6675 = vrcp.f32 %v909_v56  ;;  %v910_v9 = vadd.f32 1.0, %v6648_v60  ;;  %v842_v63 = vmul.f32 1.442695, %v726_v12  ;;  %v728_v22 = vsub.f32 0.0, %v8104_v7  ;;  %v8114_v56 = vld [vmem:[#allocation2 + $0x48] sm:$0xff] }
 0x1bf   : > { %v6652_v61 = vpop.eup %6651  ;;  %v1287_v57 = vsel %vm1235_vm3, %v1284_v51, %v1286_v15  ;;  %1480 = vst [vmem:[#allocation2 + $0x1d0] sm:$0x1] %v1286_v15  ;;  %v1288_v55 = vrot.slane %v1029_v32, 7  ;;  %v1030_v1 = vmul.f32 %v6650_v16, %v7995_v3  ;;  %6677 = vpow2.f32 %v840_v18  ;;  %v3599_v3 = vld [vmem:[#allocation2 + $0x38] sm:$0xfc] }
 0x1c0   : > { %v6654_v13 = vpop.eup %6653  ;;  %1478 = vst [vmem:[#allocation2 + $0x1c0] sm:$0xff] %v1287_v57  ;;  %v1031_v10 = vmul.f32 %v6652_v61, %v8002_v23  ;;  %6679 = vrcp.f32 %v910_v9  ;;  %v844_v53 = vmul.f32 1.442695, %v727_v21  ;;  %v846_v37 = vmul.f32 1.442695, %v728_v22  ;;  %v8125_v22 = vld [vmem:[#allocation2 + $0x68] sm:$0xff] }
 0x1c1   : > { %v6656_v25 = vpop.eup %6655  ;;  %v1289_v43 = vsel %vm1235_vm3, %v1285_v54, %v1288_v55  ;;  %1481 = vst [vmem:[#allocation2 + $0x1d8] sm:$0x1] %v1288_v55  ;;  %v1290_v14 = vrot.slane %v1030_v1, 7  ;;  %v1032_v51 = vmul.f32 %v6654_v13, %v8008_v44  ;;  %6681 = vpow2.f32 %v842_v63 }
 0x1c2   : > { %v6658_v18 = vpop.eup %6657  ;;  %1479 = vst [vmem:[#allocation2 + $0x1c8] sm:$0xff] %v1289_v43  ;;  %v1291_v12 = vrot.slane %v1031_v10, 7  ;;  %v911_v60 = vadd.f32 1.0, %v6656_v25  ;;  %6683 = vpow2.f32 %v844_v53  ;;  %v2983_v23 = vadd.f32 %v8026_v26, %v7809_v17  ;;  %v8134_v25 = vld [vmem:[#allocation2 + $0x78] sm:$0xff] }
 0x1c3   : > { %v6660_v15 = vpop.eup %6659  ;;  %1482 = vst [vmem:[#allocation2 + $0x1e0] sm:$0xfe] %v1290_v14  ;;  %v1292_v32 = vrot.slane %v1032_v51, 7  ;;  %v912_v54 = vadd.f32 1.0, %v6658_v18  ;;  %6685 = vpow2.f32 %v846_v37  ;;  %v3119_v21 = vmul.f32 %v7815_v20, %v3047_v48 }
 0x1c4   : > { %v6662_v44 = vpop.eup %6661  ;;  %1483 = vst [vmem:[#allocation2 + $0x1e8] sm:$0xfe] %v1291_v12  ;;  %v1033_v16 = vmul.f32 %v6660_v15, %v8016_v5  ;;  %6687 = vrcp.f32 %v911_v60  ;;  %v8122_v9 = vmul.f32 %v7815_v20, %v8114_v56  ;;  %v3671_v63 = vmul.f32 %v7826_v35, %v3599_v3  ;;  %v8140_v60 = vld [vmem:[#allocation8 + $0x18] ss:$0 sm:$0xff] }
 0x1c5   : > { %v6664_v17 = vpop.eup %6663  ;;  %v1293_v26 = vsel %vm1235_vm3, %v1290_v14, %v1292_v32  ;;  %1486 = vst [vmem:[#allocation2 + $0x200] sm:$0x1] %v1292_v32  ;;  %6689 = vrcp.f32 %v912_v54  ;;  %v913_v61 = vadd.f32 1.0, %v6662_v44  ;;  %v3313_v57 = vrot.slane %v3119_v21, 1  ;;  %v4352_v14 = vld [vmem:[#allocation2 + $0x68] sm:$0xfe] }
 0x1c6   : > { %v6666_v55 = vpop.eup %6665  ;;  %1484 = vst [vmem:[#allocation2 + $0x1f0] sm:$0xff] %v1293_v26  ;;  %v1294_v1 = vrot.slane %v1033_v16, 7  ;;  %v1034_v5 = vmul.f32 %v6664_v17, %v8019_v49  ;;  %v3314_v13 = vrot.slane %v8122_v9, 1  ;;  %v8132_v10 = vmul.f32 %v7826_v35, %v8114_v56  ;;  %v4904_v32 = vld [vmem:[#allocation2 + $0x68] sm:$0xfc] }
 0x1c7   : > { %v6668_v53 = vpop.eup %6667  ;;  %6691 = vrcp.f32 %v913_v61  ;;  %v914_v37 = vadd.f32 1.0, %v6666_v55  ;;  %v3865_v48 = vrot.slane %v3671_v63, 2  ;;  %v4224_v43 = vmul.f32 %v7838_v62, %v8125_v22 }
 0x1c8   : > { %v6670_v51 = vpop.eup %6669  ;;  %v1295_v3 = vsel %vm1235_vm3, %v1291_v12, %v1294_v1  ;;  %1487 = vst [vmem:[#allocation2 + $0x208] sm:$0x1] %v1294_v1  ;;  %v1296_v49 = vrot.slane %v1034_v5, 7  ;;  %v1035_v18 = vmul.f32 %v6668_v53, %v8022_v29  ;;  %v3315_v15 = vsel %vm2004_vm1, %v3313_v57, %v3314_v13 }
 0x1c9   : > { %v6672_v54 = vpop.eup %6671  ;;  %1485 = vst [vmem:[#allocation2 + $0x1f8] sm:$0xff] %v1295_v3  ;;  %6693 = vrcp.f32 %v914_v37  ;;  %v915_v21 = vadd.f32 1.0, %v6670_v51  ;;  %v3535_v44 = vadd.f32 %v3315_v15, %v2983_v23  ;;  %v11784_v16 = vrot.slane %v8132_v10, 2 }
 0x1ca   : > { %v6674_v63 = vpop.eup %6673  ;;  %1488 = vst [vmem:[#allocation2 + $0x210] sm:$0xfe] %v1296_v49  ;;  %v1297_v12 = vrot.slane %v1035_v18, 7  ;;  %v1036_v17 = vmul.f32 %v6672_v54, %v8034_v40  ;;  %v4424_v29 = vmul.f32 %v7849_v8, %v4352_v14  ;;  %v8150_v26 = vmul.f32 %v7849_v8, %v8134_v25 }
 0x1cb   : > { %v6676_v61 = vpop.eup %6675  ;;  %6695 = vrcp.f32 %v915_v21  ;;  %v916_v57 = vadd.f32 1.0, %v6674_v63  ;;  %v3867_v23 = vsel %vm2557_vm2, %v3865_v48, %v11784_v16  ;;  %v4976_v55 = vmul.f32 %v8140_v60, %v4904_v32 }
 0x1cc   : > { %v6678_v1 = vpop.eup %6677  ;;  %1489 = vst [vmem:[#allocation2 + $0x218] sm:$0xfe] %v1297_v12  ;;  %v1298_v5 = vrot.slane %v1036_v17, 7  ;;  %v1037_v40 = vmul.f32 %v6676_v61, %v8042_v28  ;;  %v4087_v53 = vadd.f32 %v3867_v23, %v3535_v44  ;;  %v4618_v37 = vrot.slane %v4424_v29, 1  ;;  %v647_v28 = vpop.f32.mrf.mxu0  ;;  %v8167_v61 = vld [vmem:[#allocation2 + $0x30] sm:$0xff] }
 0x1cd   : > { %v6680_v14 = vpop.eup %6679  ;;  %6697 = vrcp.f32 %v916_v57  ;;  %v917_v51 = vadd.f32 1.0, %v6678_v1  ;;  %v11783_v3 = vrot.slane %v8150_v26, 1  ;;  %v8160_v18 = vmul.f32 %v8140_v60, %v8134_v25  ;;  %v3046_v57 = vld [vmem:[#allocation2 + $0x30] sm:$0xfe] }
 0x1ce   : > { %v6682_v15 = vpop.eup %6681  ;;  %v1299_v48 = vsel %vm1235_vm3, %v1296_v49, %v1298_v5  ;;  %1492 = vst [vmem:[#allocation2 + $0x230] sm:$0x1] %v1298_v5  ;;  %v1300_v32 = vrot.slane %v1037_v40, 7  ;;  %v1038_v54 = vmul.f32 %v6680_v14, %v8046_v6  ;;  %v4288_v21 = vadd.f32 %v4224_v43, %v4087_v53 }
 0x1cf   : > { %v6684_v44 = vpop.eup %6683  ;;  %1490 = vst [vmem:[#allocation2 + $0x220] sm:$0xff] %v1299_v48  ;;  %6699 = vrcp.f32 %v917_v51  ;;  %v918_v63 = vadd.f32 1.0, %v6682_v15  ;;  %v4620_v17 = vsel %vm2004_vm1, %v4618_v37, %v11783_v3  ;;  %v5170_v29 = vrot.slane %v4976_v55, 2  ;;  %v8174_v55 = vld [vmem:[#allocation2 + $0x40] sm:$0xff] }
 0x1d0   : > { %v6686_v23 = vpop.eup %6685  ;;  %v1301_v49 = vsel %vm1235_vm3, %v1297_v12, %v1300_v32  ;;  %1493 = vst [vmem:[#allocation2 + $0x238] sm:$0x1] %v1300_v32  ;;  %v1302_v1 = vrot.slane %v1038_v54, 7  ;;  %v919_v6 = vadd.f32 1.0, %v6684_v44  ;;  %v4840_v43 = vadd.f32 %v4620_v17, %v4288_v21  ;;  %v3598_v21 = vld [vmem:[#allocation2 + $0x30] sm:$0xfc] }
 0x1d1   : > { %v6688_v5 = vpop.eup %6687  ;;  %1491 = vst [vmem:[#allocation2 + $0x228] sm:$0xff] %v1301_v49  ;;  %6701 = vrcp.f32 %v918_v63  ;;  %v920_v40 = vadd.f32 1.0, %v6686_v23  ;;  %v11782_v53 = vrot.slane %v8160_v18, 2  ;;  %v8172_v14 = vadd.f32 %v647_v28, %v7701_v46 }
 0x1d2   : > { %v6690_v37 = vpop.eup %6689  ;;  %1494 = vst [vmem:[#allocation2 + $0x240] sm:$0xfe] %v1302_v1  ;;  %v1039_v51 = vmul.f32 %v6688_v5, %v8050_v41  ;;  %6703 = vrcp.f32 %v919_v6  ;;  %v2918_v12 = vmul.f32 %v7770_v31, %v8167_v61  ;;  %v3118_v15 = vmul.f32 %v7812_v19, %v3046_v57 }
 0x1d3   : > { %v1040_v48 = vmul.f32 %v6690_v37, %v8065_v27  ;;  %6705 = vrcp.f32 %v920_v40  ;;  %v5172_v32 = vsel %vm2557_vm2, %v5170_v29, %v11782_v53  ;;  %v729_v54 = vsub.f32 0.0, %v8172_v14  ;;  %v3601_v53 = vld [vmem:[#allocation2 + $0x58] sm:$0x3] }
 0x1d4   : > { %v6692_v28 = vpop.eup %6691  ;;  %v1303_v44 = vrot.slane %v1039_v51, 7  ;;  %v8185_v63 = vadd.f32 %v5172_v32, %v4840_v43  ;;  %v2982_v41 = vadd.f32 %v2918_v12, %v7831_v36  ;;  %v8190_v17 = vmul.f32 %v7812_v19, %v8174_v55  ;;  %v8202_v51 = vld [vmem:[#allocation2 + $0x60] sm:$0xff] }
 0x1d5   : > { %v1304_v57 = vrot.slane %v1040_v48, 7  ;;  %v1041_v27 = vmul.f32 %v6692_v28, %v8068_v38  ;;  %v848_v23 = vmul.f32 1.442695, %v729_v54  ;;  %v3310_v49 = vrot.slane %v3118_v15, 1  ;;  %12120 = vst [vmem:[#allocation27_spill] sm:$0xff] %v8202_v51  ;;  %v8208_v28 = vld [vmem:[#allocation2 + $0x70] sm:$0xff] }
 0x1d6   : > { %v6694_v6 = vpop.eup %6693  ;;  %1495 = vst [vmem:[#allocation2 + $0x248] sm:$0xfe] %v1303_v44  ;;  %v5456_v29 = vsub.f32 0.0, %v8185_v63  ;;  %v11781_v5 = vrot.slane %v8190_v17, 1  ;;  %v3670_v43 = vmul.f32 %v7823_v33, %v3598_v21  ;;  %v8198_v36 = vmul.f32 %v7823_v33, %v8174_v55  ;;  %v4351_v12 = vld [vmem:[#allocation2 + $0x60] sm:$0xfe] }
 0x1d7   : > { %v1305_v40 = vsel %vm1235_vm3, %v1302_v1, %v1304_v57  ;;  %1498 = vst [vmem:[#allocation2 + $0x260] sm:$0x1] %v1304_v57  ;;  %v1306_v37 = vrot.slane %v1041_v27, 7  ;;  %v1042_v38 = vmul.f32 %v6694_v6, %v8072_v30  ;;  %6707 = vpow2.f32 %v848_v23  ;;  %v8212_v27 = vld [vmem:[#allocation8 + $0x10] ss:$0 sm:$0xff] }
 0x1d8   : > { %v6696_v15 = vpop.eup %6695  ;;  %1496 = vst [vmem:[#allocation2 + $0x250] sm:$0xff] %v1305_v40  ;;  %v5521_v48 = vmul.f32 1.442695, %v5456_v29  ;;  %v3312_v32 = vsel %vm2004_vm1, %v3310_v49, %v11781_v5  ;;  %v3862_v54 = vrot.slane %v3670_v43, 2  ;;  %v11780_v21 = vrot.slane %v8198_v36, 2 }
 0x1d9   : > { %v1307_v1 = vsel %vm1235_vm3, %v1303_v44, %v1306_v37  ;;  %1499 = vst [vmem:[#allocation2 + $0x268] sm:$0x1] %v1306_v37  ;;  %v1308_v30 = vrot.slane %v1042_v38, 7  ;;  %v1043_v57 = vmul.f32 %v6696_v15, %v8078_v52  ;;  %v3534_v23 = vadd.f32 %v3312_v32, %v2982_v41  ;;  %v4903_v6 = vld [vmem:[#allocation2 + $0x60] sm:$0xfc] }
 0x1da   : > { %v6698_v29 = vpop.eup %6697  ;;  %1497 = vst [vmem:[#allocation2 + $0x258] sm:$0xff] %v1307_v1  ;;  %6709 = vpow2.f32 %v5521_v48  ;;  %v3864_v49 = vsel %vm2557_vm2, %v3862_v54, %v11780_v21  ;;  %v4223_v43 = vmul.f32 %v7829_v39, %v8202_v51  ;;  %v4423_v44 = vmul.f32 %v7841_v2, %v4351_v12  ;;  %v3049_v38 = vld [vmem:[#allocation2 + $0x58] sm:$0x1] }
 0x1db   : > { %1500 = vst [vmem:[#allocation2 + $0x270] sm:$0xfe] %v1308_v30  ;;  %v1309_v40 = vrot.slane %v1043_v57, 7  ;;  %v1044_v52 = vmul.f32 %v6698_v29, %v8081_v34  ;;  %v4086_v37 = vadd.f32 %v3864_v49, %v3534_v23  ;;  %v8223_v41 = vmul.f32 %v7841_v2, %v8208_v28  ;;  %v651_v29 = vpop.f32.mrf.mxu0 }
 0x1dc   : > { %v6700_v15 = vpop.eup %6699  ;;  %v4615_v48 = vrot.slane %v4423_v44, 1  ;;  %v4975_v32 = vmul.f32 %v8212_v27, %v4903_v6  ;;  %v8228_v54 = vmul.f32 %v8212_v27, %v8208_v28  ;;  %v2921_v12 = vmul.f32 %v7792_v59, %v8114_v56 }
 0x1dd   : > { %1501 = vst [vmem:[#allocation2 + $0x278] sm:$0xfe] %v1309_v40  ;;  %v1310_v1 = vrot.slane %v1044_v52, 7  ;;  %v1045_v34 = vmul.f32 %v6700_v15, %v8088_v45  ;;  %v4287_v57 = vadd.f32 %v4223_v43, %v4086_v37  ;;  %v4616_v23 = vrot.slane %v8223_v41, 1  ;;  %v12127_v41 = vld [vmem:[#allocation19_spill] sm:$0xff] }
 0x1de   : > { %v6702_v49 = vpop.eup %6701  ;;  %v5167_v21 = vrot.slane %v4975_v32, 2  ;;  %v5168_v44 = vrot.slane %v8228_v54, 2  ;;  %v2985_v6 = vadd.f32 %v2921_v12, %v7897_v11  ;;  %v3123_v5 = vmul.f32 %v7815_v20, %v3049_v38 }
 0x1df   : > { %v6704_v3 = vpop.eup %6703  ;;  %v1311_v16 = vsel %vm1235_vm3, %v1308_v30, %v1310_v1  ;;  %1504 = vst [vmem:[#allocation2 + $0x290] sm:$0x1] %v1310_v1  ;;  %v1312_v52 = vrot.slane %v1045_v34, 7  ;;  %v1046_v45 = vmul.f32 %v6702_v49, %v8096_v24  ;;  %v4617_v43 = vsel %vm2004_vm1, %v4615_v48, %v4616_v23  ;;  %v4354_v30 = vld [vmem:[#allocation2 + $0x88] sm:$0x1] }
 0x1e0   : > { %v6706_v37 = vpop.eup %6705  ;;  %1502 = vst [vmem:[#allocation2 + $0x280] sm:$0xff] %v1311_v16  ;;  %v8243_v15 = vmul.f32 %v6704_v3, %v8100_v4  ;;  %v4839_v11 = vadd.f32 %v4617_v43, %v4287_v57  ;;  %v5169_v38 = vsel %vm2557_vm2, %v5167_v21, %v5168_v44  ;;  %v3318_v32 = vrot.slane %v3123_v5, 1  ;;  %v4906_v34 = vld [vmem:[#allocation2 + $0x88] sm:$0x3]  ;;  %v653_v16 = vpop.f32.mrf.mxu0 }
 0x1e1   : > { %v1313_v12 = vsel %vm1235_vm3, %v1309_v40, %v1312_v52  ;;  %1505 = vst [vmem:[#allocation2 + $0x298] sm:$0x1] %v1312_v52  ;;  %v1314_v24 = vrot.slane %v1046_v45, 7  ;;  %v1048_v1 = vmul.f32 %v6706_v37, %v8104_v7  ;;  %v3675_v48 = vmul.f32 %v7826_v35, %v3601_v53 }
 0x1e2   : > { %1503 = vst [vmem:[#allocation2 + $0x288] sm:$0xff] %v1313_v12  ;;  %v1315_v4 = vrot.slane %v8243_v15, 7  ;;  %v8252_v3 = vadd.f32 %v5169_v38, %v4839_v11  ;;  %v3319_v5 = vsel %vm2004_vm1, %v3314_v13, %v3318_v32  ;;  %v4226_v21 = vmul.f32 %v7838_v62, %v8134_v25 }
 0x1e3   : > { %1506 = vst [vmem:[#allocation2 + $0x2a0] sm:$0xfe] %v1314_v24  ;;  %v1316_v40 = vrot.slane %v1048_v1, 7  ;;  %v3537_v57 = vadd.f32 %v3319_v5, %v2985_v6  ;;  %v3870_v7 = vrot.slane %v3675_v48, 2  ;;  %v4428_v53 = vmul.f32 %v7849_v8, %v4354_v30  ;;  %v3600_v5 = vld [vmem:[#allocation2 + $0x50] sm:$0x3] }
 0x1e4   : > { %v6708_v49 = vpop.eup %6707  ;;  %1507 = vst [vmem:[#allocation2 + $0x2a8] sm:$0xfe] %v1315_v4  ;;  %v5455_v52 = vsub.f32 0.0, %v8252_v3  ;;  %v4980_v45 = vmul.f32 %v8140_v60, %v4906_v34  ;;  %v8265_v9 = vadd.f32 %v651_v29, %v7693_v42  ;;  %v8268_v13 = vadd.f32 %v653_v16, %v7701_v46  ;;  %v3048_v29 = vld [vmem:[#allocation2 + $0x50] sm:$0x1] }
 0x1e5   : > { %v1317_v43 = vsel %vm1235_vm3, %v1314_v24, %v1316_v40  ;;  %1510 = vst [vmem:[#allocation2 + $0x2c0] sm:$0x1] %v1316_v40  ;;  %v921_v6 = vadd.f32 1.0, %v6708_v49  ;;  %v12121_v37 = vrot.slane %v8132_v10, 2  ;;  %v4623_v38 = vrot.slane %v4428_v53, 1 }
 0x1e6   : > { %1508 = vst [vmem:[#allocation2 + $0x2b0] sm:$0xff] %v1317_v43  ;;  %v5519_v32 = vmul.f32 1.442695, %v5455_v52  ;;  %v5175_v12 = vrot.slane %v4980_v45, 2  ;;  %v730_v1 = vsub.f32 0.0, %v8265_v9  ;;  %v12122_v34 = vrot.slane %v8150_v26, 1 }
 0x1e7   : > { %v3871_v11 = vsel %vm2557_vm2, %v12121_v37, %v3870_v7  ;;  %v6710_v48 = vpop.eup %6709  ;;  %6711 = vrcp.f32 %v921_v6  ;;  %v731_v16 = vsub.f32 0.0, %v8268_v13  ;;  %v2920_v10 = vmul.f32 %v7770_v31, %v8174_v55  ;;  %v4353_v49 = vld [vmem:[#allocation2 + $0x80] sm:$0x1]  ;;  %v657_v37 = vpop.f32.mrf.mxu0 }
 0x1e8   : > { %v4089_v30 = vadd.f32 %v3871_v11, %v3537_v57  ;;  %v4624_v24 = vsel %vm2004_vm1, %v12122_v34, %v4623_v38  ;;  %v5648_v40 = vadd.f32 1.0, %v6710_v48  ;;  %6713 = vpow2.f32 %v5519_v32  ;;  %v4905_v52 = vld [vmem:[#allocation2 + $0x80] sm:$0x3] }
 0x1e9   : > { %v12123_v57 = vrot.slane %v8160_v18, 2  ;;  %v850_v45 = vmul.f32 1.442695, %v730_v1  ;;  %v852_v43 = vmul.f32 1.442695, %v731_v16  ;;  %v2984_v26 = vadd.f32 %v2920_v10, %v7904_v50 }
 0x1ea   : > { %v4290_v7 = vadd.f32 %v4226_v21, %v4089_v30  ;;  %v3122_v6 = vmul.f32 %v7812_v19, %v3048_v29  ;;  %6715 = vrcp.f32 %v5648_v40  ;;  %v3674_v38 = vmul.f32 %v7823_v33, %v3600_v5  ;;  %v1745_v29 = vld [vmem:[#allocation2 + $0x38] sm:$0xfe] }
 0x1eb   : > { %v5176_v53 = vsel %vm2557_vm2, %v12123_v57, %v5175_v12  ;;  %v4225_v21 = vmul.f32 %v7829_v39, %v8208_v28  ;;  %6717 = vpow2.f32 %v850_v45  ;;  %v4427_v32 = vmul.f32 %v7841_v2, %v4353_v49  ;;  %v2298_v49 = vld [vmem:[#allocation2 + $0x38] sm:$0xfc]  ;;  %v12126_v45 = vld [vmem:[#allocation16_spill] sm:$0xff] }
 0x1ec   : > { %v4842_v11 = vadd.f32 %v4624_v24, %v4290_v7  ;;  %v3316_v18 = vrot.slane %v3122_v6, 1  ;;  %v4979_v30 = vmul.f32 %v8212_v27, %v4905_v52  ;;  %6719 = vpow2.f32 %v852_v43 }
 0x1ed   : > { %v3868_v50 = vrot.slane %v3674_v38, 2  ;;  %v8294_v1 = vadd.f32 %v657_v37, %v7693_v42  ;;  %v12124_v48 = vrot.slane %v8190_v17, 1  ;;  %v4621_v24 = vrot.slane %v4427_v32, 1 }
 0x1ee   : > { %v8291_v12 = vadd.f32 %v5176_v53, %v4842_v11  ;;  %v5173_v16 = vrot.slane %v4979_v30, 2  ;;  %v1617_v10 = vmul.f32 %v8012_v47, %v7698_v0  ;;  %v12125_v7 = vrot.slane %v8198_v36, 2 }
 0x1ef   : > { %v3317_v34 = vsel %vm2004_vm1, %v12124_v48, %v3316_v18  ;;  %v732_v53 = vsub.f32 0.0, %v8294_v1  ;;  %v4622_v17 = vsel %vm2004_vm1, %v4616_v23, %v4621_v24  ;;  %v1819_v43 = vmul.f32 %v12126_v45, %v1745_v29 }
 0x1f0   : > { %v5458_v5 = vsub.f32 0.0, %v8291_v12  ;;  %v3536_v40 = vadd.f32 %v3317_v34, %v2984_v26  ;;  %v3869_v57 = vsel %vm2557_vm2, %v12125_v7, %v3868_v50  ;;  %v5174_v52 = vsel %vm2557_vm2, %v5168_v44, %v5173_v16  ;;  %v3051_v26 = vld [vmem:[#allocation2 + $0x68] sm:$0xfe] }
 0x1f1   : > { %v1681_v47 = vadd.f32 %v1617_v10, %v7724_v58  ;;  %v854_v37 = vmul.f32 1.442695, %v732_v53  ;;  %v8316_v11 = vmul.f32 %v8114_v56, %v12126_v45  ;;  %v2018_v38 = vrot.slane %v1819_v43, 1  ;;  %v3603_v44 = vld [vmem:[#allocation2 + $0x68] sm:$0xfc] }
 0x1f2   : > { %v5525_v6 = vmul.f32 1.442695, %v5458_v5  ;;  %v4088_v36 = vadd.f32 %v3869_v57, %v3536_v40  ;;  %v2372_v18 = vmul.f32 %v12127_v41, %v2298_v49  ;;  %v8321_v54 = vmul.f32 %v8114_v56, %v12127_v41  ;;  %v8336_v5 = vld [vmem:[#allocation2 + $0x98] sm:$0xff] }
 0x1f3   : > { %v2923_v23 = vmul.f32 %v8125_v22, %v7792_v59  ;;  %v11789_v30 = vrot.slane %v8316_v11, 1  ;;  %v3125_v50 = vmul.f32 %v7815_v20, %v3051_v26  ;;  %v8330_v34 = vmul.f32 %v8134_v25, %v7815_v20  ;;  %12128 = vst [vmem:[#allocation16_spill] sm:$0xff] %v8336_v5 }
 0x1f4   : > { %6721 = vpow2.f32 %v5525_v6  ;;  %v4289_v32 = vadd.f32 %v4225_v21, %v4088_v36  ;;  %v2571_v29 = vrot.slane %v2372_v18, 2  ;;  %v11788_v48 = vrot.slane %v8321_v54, 2  ;;  %v6712_v24 = vpop.eup %6711  ;;  %v4356_v36 = vld [vmem:[#allocation2 + $0x98] sm:$0xfe] }
 0x1f5   : > { %6723 = vpow2.f32 %v854_v37  ;;  %v2020_v22 = vsel %vm2004_vm1, %v2018_v38, %v11789_v30  ;;  %v3323_v10 = vrot.slane %v3125_v50, 1  ;;  %v3677_v21 = vmul.f32 %v7826_v35, %v3603_v44  ;;  %v6714_v40 = vpop.eup %6713 }
 0x1f6   : > { %v4841_v16 = vadd.f32 %v4622_v17, %v4289_v32  ;;  %v1049_v7 = vmul.f32 %v6712_v24, %v8172_v14  ;;  %v2234_v57 = vadd.f32 %v2020_v22, %v1681_v47  ;;  %v2573_v53 = vsel %vm2557_vm2, %v2571_v29, %v11788_v48  ;;  %v8352_v47 = vld [vmem:[#allocation2 + $0xa8] sm:$0xff]  ;;  %v4908_v24 = vld [vmem:[#allocation2 + $0x98] sm:$0xfc] }
 0x1f7   : > { %v11786_v49 = vrot.slane %v8330_v34, 1  ;;  %v5647_v17 = vadd.f32 1.0, %v6714_v40  ;;  %v8347_v26 = vmul.f32 %v8134_v25, %v7826_v35  ;;  %v3875_v6 = vrot.slane %v3677_v21, 2  ;;  %v6716_v37 = vpop.eup %6715  ;;  %12129 = vst [vmem:[#allocation28_spill] sm:$0xff] %v8352_v47 }
 0x1f8   : > { %v8343_v43 = vadd.f32 %v5174_v52, %v4841_v16  ;;  %v1318_v38 = vrot.slane %v1049_v7, 7  ;;  %v2787_v18 = vadd.f32 %v2573_v53, %v2234_v57  ;;  %v4228_v44 = vmul.f32 %v7838_v62, %v8336_v5  ;;  %v6718_v52 = vpop.eup %6717  ;;  %v659_v7 = vpop.f32.mrf.mxu0  ;;  %v3602_v5 = vld [vmem:[#allocation2 + $0x60] sm:$0xfc] }
 0x1f9   : > { %v3325_v14 = vsel %vm2004_vm1, %v3323_v10, %v11786_v49  ;;  %v5776_v32 = vmul.f32 %v6716_v37, %v8185_v63  ;;  %6725 = vrcp.f32 %v5647_v17  ;;  %v11785_v29 = vrot.slane %v8347_v26, 2  ;;  %v6720_v16 = vpop.eup %6719  ;;  %v1744_v37 = vld [vmem:[#allocation2 + $0x30] sm:$0xfe] }
 0x1fa   : > { %v5457_v50 = vsub.f32 0.0, %v8343_v43  ;;  %v1319_v22 = vsel %vm1235_vm3, %v1315_v4, %v1318_v38  ;;  %1511 = vst [vmem:[#allocation2 + $0x2c8] sm:$0x1] %v1318_v38  ;;  %v922_v10 = vadd.f32 1.0, %v6718_v52  ;;  %v2987_v21 = vadd.f32 %v2923_v23, %v2787_v18 }
 0x1fb   : > { %v4430_v40 = vmul.f32 %v7849_v8, %v4356_v36  ;;  %5942 = vmatprep.mubr.f32.mxu0 %v5776_v32  ;;  %1509 = vst [vmem:[#allocation2 + $0x2b8] sm:$0xff] %v1319_v22  ;;  %v923_v63 = vadd.f32 1.0, %v6720_v16  ;;  %v3877_v53 = vsel %vm2557_vm2, %v3875_v6, %v11785_v29  ;;  %v8368_v17 = vmul.f32 %v7849_v8, %v8352_v47  ;;  %v2297_v6 = vld [vmem:[#allocation2 + $0x30] sm:$0xfc] }
 0x1fc   : > { %v5523_v57 = vmul.f32 1.442695, %v5457_v50  ;;  %6727 = vrcp.f32 %v922_v10  ;;  %v3539_v15 = vadd.f32 %v3325_v14, %v2987_v21  ;;  %v4982_v23 = vmul.f32 %v8140_v60, %v4908_v24  ;;  %v12131_v50 = vld [vmem:[#allocation18_spill] sm:$0xff]  ;;  %v12132_v10 = vld [vmem:[#allocation17_spill] sm:$0xff] }
 0x1fd   : > { %v4628_v4 = vrot.slane %v4430_v40, 1  ;;  %6729 = vrcp.f32 %v923_v63  ;;  %v11787_v36 = vrot.slane %v8368_v17, 1  ;;  %v8374_v38 = vmul.f32 %v8140_v60, %v8352_v47  ;;  %v12133_v63 = vld [vmem:[#allocation20_spill] sm:$0xff] }
 0x1fe   : > { %v8377_v18 = vadd.f32 %v659_v7, %v7701_v46  ;;  %6731 = vpow2.f32 %v5523_v57  ;;  %v4091_v52 = vadd.f32 %v3877_v53, %v3539_v15  ;;  %v5180_v32 = vrot.slane %v4982_v23, 2  ;;  %v12134_v53 = vld [vmem:[#allocation21_spill] sm:$0xff]  ;;  %v3050_v15 = vld [vmem:[#allocation2 + $0x60] sm:$0xfe] }
 0x1ff   : > { %v1616_v14 = vmul.f32 %v8167_v61, %v12131_v50  ;;  %v4630_v24 = vsel %vm2004_vm1, %v4628_v4, %v11787_v36  ;;  %v11793_v16 = vrot.slane %v8374_v38, 2  ;;  %v1818_v21 = vmul.f32 %v12132_v10, %v1744_v37 }
 0x200   : > { %12130 = vst [vmem:[#allocation29_spill] sm:$0xff] %v8377_v18  ;;  %v733_v22 = vsub.f32 0.0, %v8377_v18  ;;  %v4292_v7 = vadd.f32 %v4228_v44, %v4091_v52  ;;  %v8390_v57 = vmul.f32 %v8174_v55, %v12132_v10  ;;  %v2371_v61 = vmul.f32 %v12134_v53, %v2297_v6 }
 0x201   : > { %v6722_v40 = vpop.eup %6721  ;;  %v1680_v29 = vadd.f32 %v1616_v14, %v12133_v63  ;;  %v5182_v4 = vsel %vm2557_vm2, %v5180_v32, %v11793_v16  ;;  %v2015_v48 = vrot.slane %v1818_v21, 1  ;;  %v8399_v52 = vmul.f32 %v8174_v55, %v12134_v53  ;;  %v8410_v21 = vld [vmem:[#allocation2 + $0x90] sm:$0xff] }
 0x202   : > { %v6724_v23 = vpop.eup %6723  ;;  %v5650_v49 = vadd.f32 1.0, %v6722_v40  ;;  %v856_v36 = vmul.f32 1.442695, %v733_v22  ;;  %v4844_v30 = vadd.f32 %v4630_v24, %v4292_v7  ;;  %v11792_v44 = vrot.slane %v8390_v57, 1  ;;  %12137 = vst [vmem:[#allocation20_spill] sm:$0xff] %v8410_v21 }
 0x203   : > { %v924_v37 = vadd.f32 1.0, %v6724_v23  ;;  %12135 = vst [vmem:[#allocation18_spill] sm:$0xff] %v8399_v52  ;;  %v2568_v14 = vrot.slane %v2371_v61, 2  ;;  %v2922_v6 = vmul.f32 %v8202_v51, %v7770_v31  ;;  %v3124_v40 = vmul.f32 %v7812_v19, %v3050_v15  ;;  %v4355_v15 = vld [vmem:[#allocation2 + $0x90] sm:$0xfe] }
 0x204   : > { %6733 = vrcp.f32 %v5650_v49  ;;  %v8404_v32 = vadd.f32 %v5182_v4, %v4844_v30  ;;  %v2017_v24 = vsel %vm2004_vm1, %v2015_v48, %v11792_v44  ;;  %v11796_v22 = vrot.slane %v8399_v52, 2 }
 0x205   : > { %6735 = vrcp.f32 %v924_v37  ;;  %v2233_v49 = vadd.f32 %v2017_v24, %v1680_v29  ;;  %v8414_v7 = vmul.f32 %v8208_v28, %v7812_v19  ;;  %v3320_v61 = vrot.slane %v3124_v40, 1  ;;  %v8425_v29 = vld [vmem:[#allocation2 + $0xa0] sm:$0xff] }
 0x206   : > { %12136 = vst [vmem:[#allocation17_spill] sm:$0xff] %v8404_v32  ;;  %6737 = vpow2.f32 %v856_v36  ;;  %v6726_v23 = vpop.eup %6725  ;;  %v5460_v30 = vsub.f32 0.0, %v8404_v32  ;;  %v2570_v4 = vsel %vm2557_vm2, %v2568_v14, %v11796_v22  ;;  %v3676_v48 = vmul.f32 %v7823_v33, %v3602_v5  ;;  %v4907_v36 = vld [vmem:[#allocation2 + $0x90] sm:$0xfc] }
 0x207   : > { %v8423_v37 = vmul.f32 %v8208_v28, %v7823_v33  ;;  %v5775_v24 = vmul.f32 %v6726_v23, %v8252_v3  ;;  %v2786_v40 = vadd.f32 %v2570_v4, %v2233_v49  ;;  %v11799_v44 = vrot.slane %v8414_v7, 1 }
 0x208   : > { %v4227_v16 = vmul.f32 %v7829_v39, %v8410_v21  ;;  %v5529_v51 = vmul.f32 1.442695, %v5460_v30  ;;  %v3872_v32 = vrot.slane %v3676_v48, 2  ;;  %v4429_v5 = vmul.f32 %v7841_v2, %v4355_v15 }
 0x209   : > { %v11800_v14 = vrot.slane %v8423_v37, 2  ;;  %v6728_v22 = vpop.eup %6727  ;;  %5943 = vmatmul.mubr.f32.vlgmr.msra.gmra.mxu0 %v5775_v24  ;;  %v2986_v18 = vadd.f32 %v2922_v6, %v2786_v40  ;;  %v3322_v52 = vsel %vm2004_vm1, %v3320_v61, %v11799_v44  ;;  %v8438_v3 = vmul.f32 %v7841_v2, %v8425_v29  ;;  %v1747_v40 = vld [vmem:[#allocation2 + $0x58] sm:$0x1] }
 0x20a   : > { %v4981_v49 = vmul.f32 %v8212_v27, %v4907_v36  ;;  %v6730_v23 = vpop.eup %6729  ;;  %v8442_v30 = vmul.f32 %v6728_v22, %v8265_v9  ;;  %6739 = vpow2.f32 %v5529_v51  ;;  %v4625_v6 = vrot.slane %v4429_v5, 1  ;;  %v2300_v9 = vld [vmem:[#allocation2 + $0x58] sm:$0x3]  ;;  %v3053_v5 = vld [vmem:[#allocation2 + $0x88] sm:$0x1] }
 0x20b   : > { %v3874_v15 = vsel %vm2557_vm2, %v3872_v32, %v11800_v14  ;;  %v6732_v4 = vpop.eup %6731  ;;  %v8448_v48 = vmul.f32 %v6730_v23, %v8268_v13  ;;  %v3538_v61 = vadd.f32 %v3322_v52, %v2986_v18  ;;  %v11801_v24 = vrot.slane %v8438_v3, 1  ;;  %v3605_v14 = vld [vmem:[#allocation2 + $0x88] sm:$0x3] }
 0x20c   : > { %v8453_v36 = vmul.f32 %v8212_v27, %v8425_v29  ;;  %v1320_v51 = vrot.slane %v8442_v30, 7  ;;  %v5649_v22 = vadd.f32 1.0, %v6732_v4  ;;  %v5177_v44 = vrot.slane %v4981_v49, 2 }
 0x20d   : > { %12138 = vst [vmem:[#allocation21_spill] sm:$0xff] %v8448_v48  ;;  %v1619_v32 = vmul.f32 %v8114_v56, %v7698_v0  ;;  %v11805_v13 = vrot.slane %v8448_v48, 7  ;;  %v4090_v23 = vadd.f32 %v3874_v15, %v3538_v61  ;;  %v4627_v18 = vsel %vm2004_vm1, %v4625_v6, %v11801_v24  ;;  %v4358_v56 = vld [vmem:[#allocation2 + $0xb8] sm:$0x1]  ;;  %v663_v24 = vpop.f32.mrf.mxu0 }
 0x20e   : > { %v11806_v52 = vrot.slane %v8453_v36, 2  ;;  %1512 = vst [vmem:[#allocation2 + $0x2d0] sm:$0xfe] %v1320_v51  ;;  %6741 = vrcp.f32 %v5649_v22  ;;  %v1823_v49 = vmul.f32 %v12126_v45, %v1747_v40  ;;  %v2376_v4 = vmul.f32 %v12127_v41, %v2300_v9 }
 0x20f   : > { %v1683_v30 = vadd.f32 %v1619_v32, %v7724_v58  ;;  %1513 = vst [vmem:[#allocation2 + $0x2d8] sm:$0xfe] %v11805_v13  ;;  %v4291_v15 = vadd.f32 %v4227_v16, %v4090_v23  ;;  %v2925_v61 = vmul.f32 %v8134_v25, %v7792_v59  ;;  %v3129_v22 = vmul.f32 %v7815_v20, %v3053_v5  ;;  %v4910_v25 = vld [vmem:[#allocation2 + $0xb8] sm:$0x3] }
 0x210   : > { %v5179_v6 = vsel %vm2557_vm2, %v5177_v44, %v11806_v52  ;;  %v2023_v21 = vrot.slane %v1823_v49, 1  ;;  %v2576_v40 = vrot.slane %v2376_v4, 2  ;;  %v3681_v9 = vmul.f32 %v7826_v35, %v3605_v14 }
 0x211   : > { %v6734_v32 = vpop.eup %6733  ;;  %v8477_v48 = vmul.f32 %v7838_v62, %v8352_v47  ;;  %v4843_v13 = vadd.f32 %v4627_v18, %v4291_v15  ;;  %v3328_v44 = vrot.slane %v3129_v22, 1  ;;  %v4434_v52 = vmul.f32 %v7849_v8, %v4358_v56  ;;  %v665_v22 = vpop.f32.mrf.mxu0 }
 0x212   : > { %v6736_v16 = vpop.eup %6735  ;;  %v5778_v23 = vmul.f32 %v6734_v32, %v8291_v12  ;;  %v12139_v49 = vrot.slane %v8316_v11, 1  ;;  %v12140_v14 = vrot.slane %v8321_v54, 2  ;;  %v3880_v35 = vrot.slane %v3681_v9, 2 }
 0x213   : > { %v6738_v59 = vpop.eup %6737  ;;  %v1052_v5 = vmul.f32 %v6736_v16, %v8294_v1  ;;  %v8488_v12 = vadd.f32 %v5179_v6, %v4843_v13  ;;  %v12141_v56 = vrot.slane %v8330_v34, 1  ;;  %v12142_v11 = vrot.slane %v8347_v26, 2  ;;  %v2299_v16 = vld [vmem:[#allocation2 + $0x50] sm:$0x3] }
 0x214   : > { %v2024_v4 = vsel %vm2004_vm1, %v12139_v49, %v2023_v21  ;;  %v2577_v62 = vsel %vm2557_vm2, %v12140_v14, %v2576_v40  ;;  %5947 = vmatprep.mubr.f32.mxu0 %v5778_v23  ;;  %v925_v47 = vadd.f32 1.0, %v6738_v59  ;;  %v4633_v32 = vrot.slane %v4434_v52, 1 }
 0x215   : > { %v2236_v18 = vadd.f32 %v2024_v4, %v1683_v30  ;;  %v3329_v15 = vsel %vm2004_vm1, %v12141_v56, %v3328_v44  ;;  %v1322_v1 = vrot.slane %v1052_v5, 7  ;;  %v3881_v21 = vsel %vm2557_vm2, %v12142_v11, %v3880_v35  ;;  %v1746_v30 = vld [vmem:[#allocation2 + $0x50] sm:$0x1]  ;;  %v3052_v5 = vld [vmem:[#allocation2 + $0x80] sm:$0x1] }
 0x216   : > { %v4986_v54 = vmul.f32 %v8140_v60, %v4910_v25  ;;  %6743 = vrcp.f32 %v925_v47  ;;  %v5459_v40 = vsub.f32 0.0, %v8488_v12  ;;  %v8499_v13 = vadd.f32 %v663_v24, %v7693_v42  ;;  %v3604_v56 = vld [vmem:[#allocation2 + $0x80] sm:$0x3] }
 0x217   : > { %v2789_v59 = vadd.f32 %v2577_v62, %v2236_v18  ;;  %v1323_v34 = vsel %vm1235_vm3, %v1320_v51, %v1322_v1  ;;  %1516 = vst [vmem:[#allocation2 + $0x2f0] sm:$0x1] %v1322_v1  ;;  %v12143_v6 = vrot.slane %v8368_v17, 1  ;;  %v8506_v35 = vadd.f32 %v665_v22, %v7701_v46  ;;  %v6740_v60 = vpop.eup %6739 }
 0x218   : > { %v5185_v9 = vrot.slane %v4986_v54, 2  ;;  %1514 = vst [vmem:[#allocation2 + $0x2e0] sm:$0xff] %v1323_v34  ;;  %v5527_v47 = vmul.f32 1.442695, %v5459_v40  ;;  %v734_v62 = vsub.f32 0.0, %v8499_v13  ;;  %v1618_v24 = vmul.f32 %v8174_v55, %v12131_v50 }
 0x219   : > { %v4634_v26 = vsel %vm2004_vm1, %v12143_v6, %v4633_v32  ;;  %v2989_v52 = vadd.f32 %v2925_v61, %v2789_v59  ;;  %v5652_v51 = vadd.f32 1.0, %v6740_v60  ;;  %v12144_v23 = vrot.slane %v8374_v38, 2  ;;  %v4357_v32 = vld [vmem:[#allocation2 + $0xb0] sm:$0x1]  ;;  %v669_v60 = vpop.f32.mrf.mxu0 }
 0x21a   : > { %v735_v44 = vsub.f32 0.0, %v8506_v35  ;;  %v1822_v25 = vmul.f32 %v12132_v10, %v1746_v30  ;;  %6745 = vpow2.f32 %v5527_v47  ;;  %v858_v4 = vmul.f32 1.442695, %v734_v62  ;;  %v4909_v54 = vld [vmem:[#allocation2 + $0xb0] sm:$0x3]  ;;  %v1549_v47 = vld [vmem:[#allocation2 + $0x68] sm:$0xff] }
 0x21b   : > { %v5186_v17 = vsel %vm2557_vm2, %v12144_v23, %v5185_v9  ;;  %v3541_v49 = vadd.f32 %v3329_v15, %v2989_v52  ;;  %v1682_v61 = vadd.f32 %v1618_v24, %v12133_v63  ;;  %6747 = vrcp.f32 %v5652_v51  ;;  %v6742_v22 = vpop.eup %6741  ;;  %v12146_v52 = vld [vmem:[#allocation18_spill] sm:$0xff]  ;;  %v1749_v51 = vld [vmem:[#allocation2 + $0x68] sm:$0xfe] }
 0x21c   : > { %v860_v14 = vmul.f32 1.442695, %v735_v44  ;;  %v2021_v18 = vrot.slane %v1822_v25, 1  ;;  %v2375_v55 = vmul.f32 %v12134_v53, %v2299_v16  ;;  %6749 = vpow2.f32 %v858_v4 }
 0x21d   : > { %v4093_v38 = vadd.f32 %v3881_v21, %v3541_v49  ;;  %v2924_v1 = vmul.f32 %v8208_v28, %v7770_v31  ;;  %v3128_v11 = vmul.f32 %v7812_v19, %v3052_v5  ;;  %v5777_v15 = vmul.f32 %v6742_v22, %v8343_v43  ;;  %v2302_v22 = vld [vmem:[#allocation2 + $0x68] sm:$0xfc] }
 0x21e   : > { %6751 = vpow2.f32 %v860_v14  ;;  %v12145_v40 = vrot.slane %v8390_v57, 1  ;;  %v2574_v30 = vrot.slane %v2375_v55, 2  ;;  %v3680_v9 = vmul.f32 %v7823_v33, %v3604_v56  ;;  %v8540_v14 = vld [vmem:[#allocation2 + $0x78] sm:$0xff] }
 0x21f   : > { %v4294_v34 = vadd.f32 %v8477_v48, %v4093_v38  ;;  %v3326_v21 = vrot.slane %v3128_v11, 1  ;;  %5948 = vmatmul.mubr.f32.gmra.mxu0 %v5777_v15  ;;  %v12147_v62 = vrot.slane %v12146_v52, 2  ;;  %v4229_v43 = vmul.f32 %v7829_v39, %v8425_v29  ;;  %v12152_v15 = vld [vmem:[#allocation29_spill] sm:$0xff]  ;;  %v3055_v52 = vld [vmem:[#allocation2 + $0x98] sm:$0xfe] }
 0x220   : > { %v2022_v59 = vsel %vm2004_vm1, %v12145_v40, %v2021_v18  ;;  %v4433_v57 = vmul.f32 %v7841_v2, %v4357_v32  ;;  %v4985_v16 = vmul.f32 %v8212_v27, %v4909_v54  ;;  %v12148_v44 = vrot.slane %v8414_v7, 1 }
 0x221   : > { %v2235_v6 = vadd.f32 %v2022_v59, %v1682_v61  ;;  %v2575_v24 = vsel %vm2557_vm2, %v12147_v62, %v2574_v30  ;;  %v4846_v48 = vadd.f32 %v4634_v26, %v4294_v34  ;;  %v3878_v5 = vrot.slane %v3680_v9, 2 }
 0x222   : > { %v3327_v25 = vsel %vm2004_vm1, %v12148_v44, %v3326_v21  ;;  %v4631_v49 = vrot.slane %v4433_v57, 1  ;;  %v5183_v4 = vrot.slane %v4985_v16, 2  ;;  %v8538_v61 = vadd.f32 %v669_v60, %v7693_v42  ;;  %v12153_v16 = vld [vmem:[#allocation22_spill] sm:$0xff]  ;;  %v12155_v44 = vld [vmem:[#allocation21_spill] sm:$0xff] }
 0x223   : > { %v2788_v23 = vadd.f32 %v2575_v24, %v2235_v6  ;;  %v1621_v18 = vmul.f32 %v7698_v0, %v1549_v47  ;;  %v8543_v55 = vadd.f32 %v5186_v17, %v4846_v48  ;;  %v12149_v26 = vrot.slane %v8423_v37, 2  ;;  %v6744_v38 = vpop.eup %6743 }
 0x224   : > { %v1825_v7 = vmul.f32 %v12126_v45, %v1749_v51  ;;  %v12150_v11 = vrot.slane %v8438_v3, 1  ;;  %v12151_v32 = vrot.slane %v8453_v36, 2  ;;  %v736_v17 = vsub.f32 0.0, %v8538_v61  ;;  %v12154_v51 = vld [vmem:[#allocation16_spill] sm:$0xff] }
 0x225   : > { %v2988_v27 = vadd.f32 %v2924_v1, %v2788_v23  ;;  %v3879_v56 = vsel %vm2557_vm2, %v12149_v26, %v3878_v5  ;;  %v1685_v1 = vadd.f32 %v1621_v18, %v7724_v58  ;;  %v1053_v37 = vmul.f32 %v6744_v38, %v12152_v15  ;;  %v3607_v18 = vld [vmem:[#allocation2 + $0x98] sm:$0xfc]  ;;  %v12157_v26 = vld [vmem:[#allocation17_spill] sm:$0xff] }
 0x226   : > { %v4632_v42 = vsel %vm2004_vm1, %v12150_v11, %v4631_v49  ;;  %v5184_v54 = vsel %vm2557_vm2, %v12151_v32, %v5183_v4  ;;  %v5462_v40 = vsub.f32 0.0, %v8543_v55  ;;  %v8561_v30 = vmul.f32 %v12126_v45, %v8540_v14  ;;  %v8583_v15 = vld [vmem:[#allocation2 + $0xc8] sm:$0xff] }
 0x227   : > { %v3540_v59 = vadd.f32 %v3327_v25, %v2988_v27  ;;  %v862_v3 = vmul.f32 1.442695, %v736_v17  ;;  %v2028_v34 = vrot.slane %v1825_v7, 1  ;;  %v2378_v6 = vmul.f32 %v12127_v41, %v2302_v22  ;;  %v6746_v62 = vpop.eup %6745  ;;  %12158 = vst [vmem:[#allocation18_spill] sm:$0xff] %v8583_v15 }
 0x228   : > { %v8566_v36 = vmul.f32 %v12127_v41, %v8540_v14  ;;  %v1324_v21 = vrot.slane %v1053_v37, 7  ;;  %v5533_v9 = vmul.f32 1.442695, %v5462_v40  ;;  %v11822_v47 = vrot.slane %v8561_v30, 1  ;;  %v6748_v23 = vpop.eup %6747  ;;  %v12159_v40 = vld [vmem:[#allocation28_spill] sm:$0xff] }
 0x229   : > { %v4092_v60 = vadd.f32 %v3879_v56, %v3540_v59  ;;  %6753 = vpow2.f32 %v862_v3  ;;  %v2581_v24 = vrot.slane %v2378_v6, 2  ;;  %v2927_v48 = vmul.f32 %v12154_v51, %v12153_v16  ;;  %v6750_v27 = vpop.eup %6749 }
 0x22a   : > { %v11821_v57 = vrot.slane %v8566_v36, 2  ;;  %v12156_v25 = vrot.slane %v12155_v44, 7  ;;  %1517 = vst [vmem:[#allocation2 + $0x2f8] sm:$0x1] %v1324_v21  ;;  %v5651_v49 = vadd.f32 1.0, %v6746_v62  ;;  %6755 = vpow2.f32 %v5533_v9 }
 0x22b   : > { %v4293_v4 = vadd.f32 %v4229_v43, %v4092_v60  ;;  %v5780_v56 = vmul.f32 %v6748_v23, %v12157_v26  ;;  %v2030_v7 = vsel %vm2004_vm1, %v2028_v34, %v11822_v47  ;;  %v3131_v38 = vmul.f32 %v7815_v20, %v3055_v52  ;;  %v6752_v11 = vpop.eup %6751  ;;  %v12160_v34 = vld [vmem:[#allocation24_spill] sm:$0xff]  ;;  %v4912_v52 = vld [vmem:[#allocation2 + $0xc8] sm:$0xfc]  ;;  %v8611_v26 = vld [vmem:[#allocation8 + $0x18] ss:$0 sm:$0xff] }
 0x22c   : > { %v1325_v5 = vsel %vm1235_vm3, %v12156_v25, %v1324_v21  ;;  %v2583_v22 = vsel %vm2557_vm2, %v2581_v24, %v11821_v57  ;;  %6757 = vrcp.f32 %v5651_v49  ;;  %v926_v32 = vadd.f32 1.0, %v6750_v27  ;;  %v4360_v21 = vld [vmem:[#allocation2 + $0xc8] sm:$0xfe] }
 0x22d   : > { %1515 = vst [vmem:[#allocation2 + $0x2e8] sm:$0xff] %v1325_v5  ;;  %v4845_v17 = vadd.f32 %v4632_v42, %v4293_v4  ;;  %v2238_v43 = vadd.f32 %v2030_v7, %v1685_v1  ;;  %5952 = vmatprep.mubr.f32.mxu0 %v5780_v56  ;;  %v927_v37 = vadd.f32 1.0, %v6752_v11  ;;  %v8587_v59 = vmul.f32 %v12159_v40, %v7815_v20  ;;  %v8596_v1 = vld [vmem:[#allocation2 + $0xd8] sm:$0xff]  ;;  %v12161_v23 = vld [vmem:[#allocation25_spill] sm:$0xff]  ;;  %v671_v4 = vpop.f32.mrf.mxu0  ;;  %v1748_v7 = vld [vmem:[#allocation2 + $0x60] sm:$0xfe] }
 0x22e   : > { %v3333_v3 = vrot.slane %v3131_v38, 1  ;;  %v3683_v6 = vmul.f32 %v12160_v34, %v3607_v18  ;;  %6759 = vrcp.f32 %v926_v32  ;;  %v8594_v42 = vmul.f32 %v12159_v40, %v12160_v34  ;;  %v2304_v47 = vld [vmem:[#allocation2 + $0x88] sm:$0x3] }
 0x22f   : > { %v8590_v9 = vadd.f32 %v5184_v54, %v4845_v17  ;;  %v2791_v60 = vadd.f32 %v2583_v22, %v2238_v43  ;;  %6761 = vrcp.f32 %v927_v37  ;;  %v11818_v62 = vrot.slane %v8587_v59, 1 }
 0x230   : > { %v3885_v24 = vrot.slane %v3683_v6, 2  ;;  %v4232_v44 = vmul.f32 %v12161_v23, %v8583_v15  ;;  %v11817_v54 = vrot.slane %v8594_v42, 2  ;;  %v4436_v49 = vmul.f32 %v7849_v8, %v4360_v21  ;;  %v2301_v6 = vld [vmem:[#allocation2 + $0x60] sm:$0xfc] }
 0x231   : > { %v5461_v25 = vsub.f32 0.0, %v8590_v9  ;;  %v2991_v5 = vadd.f32 %v2927_v48, %v2791_v60  ;;  %v3335_v18 = vsel %vm2004_vm1, %v3333_v3, %v11818_v62  ;;  %v8609_v27 = vmul.f32 %v7849_v8, %v8596_v1  ;;  %v12163_v60 = vld [vmem:[#allocation27_spill] sm:$0xff] }
 0x232   : > { %v4988_v56 = vmul.f32 %v8611_v26, %v4912_v52  ;;  %v8616_v48 = vmul.f32 %v8611_v26, %v8596_v1  ;;  %v3887_v11 = vsel %vm2557_vm2, %v3885_v24, %v11817_v54  ;;  %v4638_v32 = vrot.slane %v4436_v49, 1 }
 0x233   : > { %v5531_v22 = vmul.f32 1.442695, %v5461_v25  ;;  %v3543_v38 = vadd.f32 %v3335_v18, %v2991_v5  ;;  %v11815_v17 = vrot.slane %v8609_v27, 1  ;;  %v8624_v3 = vadd.f32 %v671_v4, %v7701_v46 }
 0x234   : > { %v5190_v43 = vrot.slane %v4988_v56, 2  ;;  %v11816_v37 = vrot.slane %v8616_v48, 2  ;;  %v1620_v52 = vmul.f32 %v12163_v60, %v12131_v50  ;;  %v1824_v25 = vmul.f32 %v12132_v10, %v1748_v7 }
 0x235   : > { %12162 = vst [vmem:[#allocation29_spill] sm:$0xff] %v8624_v3  ;;  %6763 = vpow2.f32 %v5531_v22  ;;  %v4095_v21 = vadd.f32 %v3887_v11, %v3543_v38  ;;  %v4640_v24 = vsel %vm2004_vm1, %v4638_v32, %v11815_v17  ;;  %v737_v49 = vsub.f32 0.0, %v8624_v3  ;;  %v3054_v38 = vld [vmem:[#allocation2 + $0x90] sm:$0xfe] }
 0x236   : > { %v5192_v5 = vsel %vm2557_vm2, %v5190_v43, %v11816_v37  ;;  %v8638_v46 = vmul.f32 %v8208_v28, %v12132_v10  ;;  %v6754_v4 = vpop.eup %6753  ;;  %v1684_v56 = vadd.f32 %v1620_v52, %v12133_v63  ;;  %v2025_v22 = vrot.slane %v1824_v25, 1 }
 0x237   : > { %v4296_v18 = vadd.f32 %v4232_v44, %v4095_v21  ;;  %v2377_v7 = vmul.f32 %v12134_v53, %v2301_v6  ;;  %v6756_v11 = vpop.eup %6755  ;;  %v928_v32 = vadd.f32 1.0, %v6754_v4  ;;  %v864_v60 = vmul.f32 1.442695, %v737_v49  ;;  %v12164_v44 = vld [vmem:[#allocation20_spill] sm:$0xff]  ;;  %v3606_v4 = vld [vmem:[#allocation2 + $0x90] sm:$0xfc] }
 0x238   : > { %v11819_v17 = vrot.slane %v8638_v46, 1  ;;  %v8645_v43 = vmul.f32 %v8208_v28, %v12134_v53  ;;  %v5654_v37 = vadd.f32 1.0, %v6756_v11  ;;  %v2926_v21 = vmul.f32 %v12164_v44, %v7770_v31  ;;  %v3057_v44 = vld [vmem:[#allocation2 + $0xb8] sm:$0x1] }
 0x239   : > { %v4848_v54 = vadd.f32 %v4640_v24, %v4296_v18  ;;  %v2578_v62 = vrot.slane %v2377_v7, 2  ;;  %v6758_v52 = vpop.eup %6757  ;;  %6765 = vrcp.f32 %v928_v32  ;;  %v3130_v49 = vmul.f32 %v7812_v19, %v3054_v38  ;;  %v8657_v18 = vld [vmem:[#allocation2 + $0xc0] sm:$0xff] }
 0x23a   : > { %v2027_v6 = vsel %vm2004_vm1, %v2025_v22, %v11819_v17  ;;  %v11820_v25 = vrot.slane %v8645_v43, 2  ;;  %v5779_v28 = vmul.f32 %v6758_v52, %v8488_v12  ;;  %6767 = vrcp.f32 %v5654_v37  ;;  %12166 = vst [vmem:[#allocation21_spill] sm:$0xff] %v8657_v18 }
 0x23b   : > { %v8655_v11 = vadd.f32 %v5192_v5, %v4848_v54  ;;  %v2237_v24 = vadd.f32 %v2027_v6, %v1684_v56  ;;  %v6760_v7 = vpop.eup %6759  ;;  %6769 = vpow2.f32 %v864_v60  ;;  %v8664_v22 = vmul.f32 %v8425_v29, %v7812_v19  ;;  %v4359_v56 = vld [vmem:[#allocation2 + $0xc0] sm:$0xfe]  ;;  %v8679_v6 = vld [vmem:[#allocation2 + $0xd0] sm:$0xff] }
 0x23c   : > { %v2580_v32 = vsel %vm2557_vm2, %v2578_v62, %v11820_v25  ;;  %v3330_v38 = vrot.slane %v3130_v49, 1  ;;  %v6762_v17 = vpop.eup %6761  ;;  %5953 = vmatmul.mubr.f32.gmra.mxu0 %v5779_v28  ;;  %v8667_v12 = vmul.f32 %v6760_v7, %v8499_v13  ;;  %v3682_v5 = vmul.f32 %v7823_v33, %v3606_v4  ;;  %v4911_v49 = vld [vmem:[#allocation2 + $0xc0] sm:$0xfc] }
 0x23d   : > { %12165 = vst [vmem:[#allocation16_spill] sm:$0xff] %v8655_v11  ;;  %v5464_v54 = vsub.f32 0.0, %v8655_v11  ;;  %v2790_v37 = vadd.f32 %v2580_v32, %v2237_v24  ;;  %v8672_v60 = vmul.f32 %v6762_v17, %v8506_v35  ;;  %v11823_v62 = vrot.slane %v8664_v22, 1 }
 0x23e   : > { %v8677_v52 = vmul.f32 %v8425_v29, %v7823_v33  ;;  %v4231_v13 = vmul.f32 %v7829_v39, %v8657_v18  ;;  %v11824_v28 = vrot.slane %v8667_v12, 7  ;;  %v3882_v7 = vrot.slane %v3682_v5, 2  ;;  %v1751_v5 = vld [vmem:[#allocation2 + $0x88] sm:$0x1] }
 0x23f   : > { %12167 = vst [vmem:[#allocation17_spill] sm:$0xff] %v8672_v60  ;;  %v5537_v24 = vmul.f32 1.442695, %v5464_v54  ;;  %v2990_v4 = vadd.f32 %v2926_v21, %v2790_v37  ;;  %v11827_v35 = vrot.slane %v8672_v60, 7  ;;  %v3332_v17 = vsel %vm2004_vm1, %v3330_v38, %v11823_v62  ;;  %v8696_v21 = vld [vmem:[#allocation8 + $0x10] ss:$0 sm:$0xff] }
 0x240   : > { %v11829_v32 = vrot.slane %v8677_v52, 2  ;;  %v4435_v25 = vmul.f32 %v7841_v2, %v4359_v56  ;;  %1518 = vst [vmem:[#allocation2 + $0x300] sm:$0xfe] %v11824_v28  ;;  %v8694_v54 = vmul.f32 %v7841_v2, %v8679_v6  ;;  %v4987_v37 = vmul.f32 %v8696_v21, %v4911_v49  ;;  %v4362_v60 = vld [vmem:[#allocation2 + $0xe8] sm:$0x1] }
 0x241   : > { %6771 = vpow2.f32 %v5537_v24  ;;  %v3542_v57 = vadd.f32 %v3332_v17, %v2990_v4  ;;  %1519 = vst [vmem:[#allocation2 + $0x308] sm:$0xfe] %v11827_v35  ;;  %v8706_v4 = vmul.f32 %v8696_v21, %v8679_v6  ;;  %v1623_v17 = vmul.f32 %v7698_v0, %v8540_v14 }
 0x242   : > { %v6764_v38 = vpop.eup %6763  ;;  %v3884_v56 = vsel %vm2557_vm2, %v3882_v7, %v11829_v32  ;;  %v4635_v24 = vrot.slane %v4435_v25, 1  ;;  %v11832_v28 = vrot.slane %v8694_v54, 1  ;;  %v5187_v18 = vrot.slane %v4987_v37, 2  ;;  %v3609_v32 = vld [vmem:[#allocation2 + $0xb8] sm:$0x3] }
 0x243   : > { %v5653_v62 = vadd.f32 1.0, %v6764_v38  ;;  %v4094_v49 = vadd.f32 %v3884_v56, %v3542_v57  ;;  %v11835_v35 = vrot.slane %v8706_v4, 2  ;;  %v1687_v11 = vadd.f32 %v1623_v17, %v7724_v58 }
 0x244   : > { %v1829_v7 = vmul.f32 %v12126_v45, %v1751_v5  ;;  %v2382_v25 = vmul.f32 %v12127_v41, %v2304_v47  ;;  %v4637_v14 = vsel %vm2004_vm1, %v4635_v24, %v11832_v28  ;;  %v2929_v57 = vmul.f32 %v12159_v40, %v12153_v16 }
 0x245   : > { %6773 = vrcp.f32 %v5653_v62  ;;  %v4295_v3 = vadd.f32 %v4231_v13, %v4094_v49  ;;  %v5189_v37 = vsel %vm2557_vm2, %v5187_v18, %v11835_v35  ;;  %v3135_v5 = vmul.f32 %v7815_v20, %v3057_v44 }
 0x246   : > { %v2033_v38 = vrot.slane %v1829_v7, 1  ;;  %v2586_v56 = vrot.slane %v2382_v25, 2  ;;  %v6766_v47 = vpop.eup %6765  ;;  %v3687_v62 = vmul.f32 %v12160_v34, %v3609_v32  ;;  %v8727_v13 = vmul.f32 %v12161_v23, %v8596_v1  ;;  %v4914_v25 = vld [vmem:[#allocation2 + $0xe8] sm:$0x3] }
 0x247   : > { %v4847_v17 = vadd.f32 %v4637_v14, %v4295_v3  ;;  %v4440_v24 = vmul.f32 %v7849_v8, %v4362_v60  ;;  %v6768_v49 = vpop.eup %6767  ;;  %v1056_v28 = vmul.f32 %v6766_v47, %v8538_v61  ;;  %v12168_v15 = vrot.slane %v8561_v30, 1  ;;  %v3056_v47 = vld [vmem:[#allocation2 + $0xb0] sm:$0x1] }
 0x248   : > { %v12169_v7 = vrot.slane %v8566_v36, 2  ;;  %v3338_v3 = vrot.slane %v3135_v5, 1  ;;  %v6770_v32 = vpop.eup %6769  ;;  %v5782_v14 = vmul.f32 %v6768_v49, %v8543_v55  ;;  %v3890_v60 = vrot.slane %v3687_v62, 2 }
 0x249   : > { %v2034_v18 = vsel %vm2004_vm1, %v12168_v15, %v2033_v38  ;;  %v8738_v35 = vadd.f32 %v5189_v37, %v4847_v17  ;;  %v1328_v8 = vrot.slane %v1056_v28, 7  ;;  %v929_v34 = vadd.f32 1.0, %v6770_v32  ;;  %v1750_v38 = vld [vmem:[#allocation2 + $0x80] sm:$0x1] }
 0x24a   : > { %v2587_v44 = vsel %vm2557_vm2, %v12169_v7, %v2586_v56  ;;  %v2240_v23 = vadd.f32 %v2034_v18, %v1687_v11  ;;  %v12170_v61 = vrot.slane %v8587_v59, 1  ;;  %v4643_v15 = vrot.slane %v4440_v24, 1  ;;  %5957 = vmatprep.mubr.f32.mxu0 %v5782_v14  ;;  %v2303_v11 = vld [vmem:[#allocation2 + $0x80] sm:$0x3]  ;;  %v7001_v24 = vld [vmem:[#allocation2 + $0x70] sm:$0xff] }
 0x24b   : > { %v5463_v36 = vsub.f32 0.0, %v8738_v35  ;;  %v12171_v5 = vrot.slane %v8594_v42, 2  ;;  %v4992_v37 = vmul.f32 %v8611_v26, %v4914_v25  ;;  %v12172_v28 = vrot.slane %v8667_v12, 7  ;;  %1522 = vst [vmem:[#allocation2 + $0x320] sm:$0x1] %v1328_v8 }
 0x24c   : > { %v3339_v30 = vsel %vm2004_vm1, %v12170_v61, %v3338_v3  ;;  %v2793_v56 = vadd.f32 %v2587_v44, %v2240_v23  ;;  %6775 = vrcp.f32 %v929_v34  ;;  %v12173_v17 = vrot.slane %v8609_v27, 1  ;;  %v3608_v44 = vld [vmem:[#allocation2 + $0xb0] sm:$0x3]  ;;  %v4361_v25 = vld [vmem:[#allocation2 + $0xe0] sm:$0x1] }
 0x24d   : > { %v3891_v55 = vsel %vm2557_vm2, %v12171_v5, %v3890_v60  ;;  %v1329_v59 = vsel %vm1235_vm3, %v12172_v28, %v1328_v8  ;;  %v1622_v23 = vmul.f32 %v7001_v24, %v12131_v50  ;;  %v5535_v42 = vmul.f32 1.442695, %v5463_v36 }
 0x24e   : > { %v4644_v62 = vsel %vm2004_vm1, %v12173_v17, %v4643_v15  ;;  %1520 = vst [vmem:[#allocation2 + $0x310] sm:$0xff] %v1329_v59  ;;  %v2993_v49 = vadd.f32 %v2929_v57, %v2793_v56  ;;  %v5195_v18 = vrot.slane %v4992_v37, 2  ;;  %v1828_v7 = vmul.f32 %v12132_v10, %v1750_v38  ;;  %v6772_v3 = vpop.eup %6771 }
 0x24f   : > { %v1686_v12 = vadd.f32 %v1622_v23, %v12133_v63  ;;  %v2381_v8 = vmul.f32 %v12134_v53, %v2303_v11  ;;  %v2928_v34 = vmul.f32 %v8425_v29, %v7770_v31  ;;  %v3134_v27 = vmul.f32 %v7812_v19, %v3056_v47  ;;  %v4913_v11 = vld [vmem:[#allocation2 + $0xe0] sm:$0x3]  ;;  %v1753_v47 = vld [vmem:[#allocation2 + $0x98] sm:$0xfe] }
 0x250   : > { %v5656_v32 = vadd.f32 1.0, %v6772_v3  ;;  %6777 = vpow2.f32 %v5535_v42  ;;  %v3545_v14 = vadd.f32 %v3339_v30, %v2993_v49  ;;  %v12174_v57 = vrot.slane %v8616_v48, 2 }
 0x251   : > { %v2031_v61 = vrot.slane %v1828_v7, 1  ;;  %v2584_v15 = vrot.slane %v2381_v8, 2  ;;  %v3336_v38 = vrot.slane %v3134_v27, 1  ;;  %v3686_v36 = vmul.f32 %v7823_v33, %v3608_v44  ;;  %v2306_v44 = vld [vmem:[#allocation2 + $0x98] sm:$0xfc] }
 0x252   : > { %v5196_v60 = vsel %vm2557_vm2, %v12174_v57, %v5195_v18  ;;  %6779 = vrcp.f32 %v5656_v32  ;;  %v4097_v56 = vadd.f32 %v3891_v55, %v3545_v14  ;;  %v4233_v5 = vmul.f32 %v7829_v39, %v8679_v6  ;;  %v6774_v28 = vpop.eup %6773 }
 0x253   : > { %v4439_v37 = vmul.f32 %v7841_v2, %v4361_v25  ;;  %v12175_v30 = vrot.slane %v8638_v46, 1  ;;  %v12176_v59 = vrot.slane %v8645_v43, 2  ;;  %v12177_v24 = vrot.slane %v8664_v22, 1 }
 0x254   : > { %v3888_v23 = vrot.slane %v3686_v36, 2  ;;  %v5781_v42 = vmul.f32 %v6774_v28, %v8590_v9  ;;  %v4298_v49 = vadd.f32 %v8727_v13, %v4097_v56  ;;  %v12178_v46 = vrot.slane %v8677_v52, 2  ;;  %v3059_v52 = vld [vmem:[#allocation2 + $0xc8] sm:$0xfe] }
 0x255   : > { %v2032_v48 = vsel %vm2004_vm1, %v12175_v30, %v2031_v61  ;;  %v2585_v17 = vsel %vm2557_vm2, %v12176_v59, %v2584_v15  ;;  %v3337_v55 = vsel %vm2004_vm1, %v12177_v24, %v3336_v38  ;;  %v4641_v7 = vrot.slane %v4439_v37, 1  ;;  %v12181_v37 = vld [vmem:[#allocation18_spill] sm:$0xff]  ;;  %v3611_v28 = vld [vmem:[#allocation2 + $0xc8] sm:$0xfc] }
 0x256   : > { %v2239_v18 = vadd.f32 %v2032_v48, %v1686_v12  ;;  %v3889_v3 = vsel %vm2557_vm2, %v12178_v46, %v3888_v23  ;;  %v4991_v43 = vmul.f32 %v8696_v21, %v4913_v11  ;;  %v1625_v8 = vmul.f32 %v12154_v51, %v7698_v0  ;;  %5958 = vmatmul.mubr.f32.gmra.mxu0 %v5781_v42 }
 0x257   : > { %v1831_v22 = vmul.f32 %v12126_v45, %v1753_v47  ;;  %v4850_v27 = vadd.f32 %v4644_v62, %v4298_v49  ;;  %v12179_v9 = vrot.slane %v8694_v54, 1  ;;  %v8791_v12 = vmul.f32 %v12159_v40, %v12126_v45 }
 0x258   : > { %v2792_v25 = vadd.f32 %v2585_v17, %v2239_v18  ;;  %v5193_v32 = vrot.slane %v4991_v43, 2  ;;  %v1689_v14 = vadd.f32 %v1625_v8, %v7724_v58  ;;  %v2384_v51 = vmul.f32 %v12127_v41, %v2306_v44  ;;  %v12183_v18 = vld [vmem:[#allocation24_spill] sm:$0xff] }
 0x259   : > { %v4642_v13 = vsel %vm2004_vm1, %v12179_v9, %v4641_v7  ;;  %v2038_v57 = vrot.slane %v1831_v22, 1  ;;  %v8795_v61 = vadd.f32 %v5196_v60, %v4850_v27  ;;  %v11847_v62 = vrot.slane %v8791_v12, 1  ;;  %v6776_v60 = vpop.eup %6775  ;;  %v8827_v27 = vld [vmem:[#allocation2 + $0xf8] sm:$0xff] }
 0x25a   : > { %v2992_v15 = vadd.f32 %v2928_v34, %v2792_v25  ;;  %v8800_v54 = vmul.f32 %v12159_v40, %v12127_v41  ;;  %v12180_v38 = vrot.slane %v8706_v4, 2  ;;  %v2591_v56 = vrot.slane %v2384_v51, 2  ;;  %v12182_v4 = vld [vmem:[#allocation29_spill] sm:$0xff] }
 0x25b   : > { %v2931_v11 = vmul.f32 %v12181_v37, %v12153_v16  ;;  %v3137_v47 = vmul.f32 %v7815_v20, %v3059_v52  ;;  %v5466_v34 = vsub.f32 0.0, %v8795_v61  ;;  %v2040_v40 = vsel %vm2004_vm1, %v2038_v57, %v11847_v62  ;;  %v8829_v52 = vld [vmem:[#allocation2 + $0x108] sm:$0xff] }
 0x25c   : > { %v5194_v36 = vsel %vm2557_vm2, %v12180_v38, %v5193_v32  ;;  %v3544_v30 = vadd.f32 %v3337_v55, %v2992_v15  ;;  %v11846_v48 = vrot.slane %v8800_v54, 2  ;;  %v1057_v59 = vmul.f32 %v6776_v60, %v12182_v4  ;;  %v4364_v32 = vld [vmem:[#allocation2 + $0xf8] sm:$0xfe]  ;;  %v12184_v57 = vld [vmem:[#allocation17_spill] sm:$0xff]  ;;  %v12186_v60 = vld [vmem:[#allocation16_spill] sm:$0xff] }
 0x25d   : > { %v2242_v17 = vadd.f32 %v2040_v40, %v1689_v14  ;;  %v8816_v24 = vmul.f32 %v8596_v1, %v7815_v20  ;;  %v3343_v23 = vrot.slane %v3137_v47, 1  ;;  %v5541_v42 = vmul.f32 1.442695, %v5466_v34  ;;  %v6778_v44 = vpop.eup %6777  ;;  %v1752_v4 = vld [vmem:[#allocation2 + $0x90] sm:$0xfe] }
 0x25e   : > { %v4096_v49 = vadd.f32 %v3889_v3, %v3544_v30  ;;  %v2593_v55 = vsel %vm2557_vm2, %v2591_v56, %v11846_v48  ;;  %v3689_v7 = vmul.f32 %v12183_v18, %v3611_v28  ;;  %v1330_v46 = vrot.slane %v1057_v59, 7  ;;  %v4916_v28 = vld [vmem:[#allocation2 + $0xf8] sm:$0xfc]  ;;  %v12187_v30 = vld [vmem:[#allocation25_spill] sm:$0xff] }
 0x25f   : > { %v2795_v43 = vadd.f32 %v2593_v55, %v2242_v17  ;;  %v11845_v8 = vrot.slane %v8816_v24, 1  ;;  %v8825_v22 = vmul.f32 %v8596_v1, %v12183_v18  ;;  %v5655_v25 = vadd.f32 1.0, %v6778_v44  ;;  %v6780_v14 = vpop.eup %6779  ;;  %v12188_v17 = vld [vmem:[#allocation26_spill] sm:$0xff] }
 0x260   : > { %6781 = vpow2.f32 %v5541_v42  ;;  %v4297_v3 = vadd.f32 %v4233_v5, %v4096_v49  ;;  %v3895_v9 = vrot.slane %v3689_v7, 2  ;;  %v12185_v51 = vrot.slane %v12184_v57, 7  ;;  %1523 = vst [vmem:[#allocation2 + $0x328] sm:$0x1] %v1330_v46  ;;  %v12190_v7 = vld [vmem:[#allocation20_spill] sm:$0xff] }
 0x261   : > { %v2995_v38 = vadd.f32 %v2931_v11, %v2795_v43  ;;  %v3345_v56 = vsel %vm2004_vm1, %v3343_v23, %v11845_v8  ;;  %v11844_v47 = vrot.slane %v8825_v22, 2  ;;  %v5784_v5 = vmul.f32 %v6780_v14, %v12186_v60 }
 0x262   : > { %v1331_v15 = vsel %vm1235_vm3, %v12185_v51, %v1330_v46  ;;  %6783 = vrcp.f32 %v5655_v25  ;;  %v4849_v34 = vadd.f32 %v4642_v13, %v4297_v3  ;;  %v4236_v40 = vmul.f32 %v12187_v30, %v8827_v27  ;;  %v3058_v51 = vld [vmem:[#allocation2 + $0xc0] sm:$0xfe] }
 0x263   : > { %1521 = vst [vmem:[#allocation2 + $0x318] sm:$0xff] %v1331_v15  ;;  %v3547_v59 = vadd.f32 %v3345_v56, %v2995_v38  ;;  %v3897_v11 = vsel %vm2557_vm2, %v3895_v9, %v11844_v47  ;;  %v4442_v42 = vmul.f32 %v12188_v17, %v4364_v32  ;;  %v8847_v23 = vmul.f32 %v12188_v17, %v8829_v52  ;;  %v2305_v9 = vld [vmem:[#allocation2 + $0x90] sm:$0xfc] }
 0x264   : > { %5962 = vmatprep.mubr.f32.mxu1 %v5784_v5  ;;  %v8849_v49 = vadd.f32 %v5194_v36, %v4849_v34  ;;  %v4994_v13 = vmul.f32 %v8611_v26, %v4916_v28  ;;  %v8854_v55 = vmul.f32 %v8611_v26, %v8829_v52  ;;  %v1624_v44 = vmul.f32 %v12190_v7, %v12131_v50 }
 0x265   : > { %v4099_v46 = vadd.f32 %v3897_v11, %v3547_v59  ;;  %v4648_v43 = vrot.slane %v4442_v42, 1  ;;  %v11843_v25 = vrot.slane %v8847_v23, 1  ;;  %v1830_v3 = vmul.f32 %v12132_v10, %v1752_v4  ;;  %v12191_v42 = vld [vmem:[#allocation21_spill] sm:$0xff] }
 0x266   : > { %12189 = vst [vmem:[#allocation28_spill] sm:$0xff] %v8849_v49  ;;  %v5465_v32 = vsub.f32 0.0, %v8849_v49  ;;  %v5200_v36 = vrot.slane %v4994_v13, 2  ;;  %v11840_v14 = vrot.slane %v8854_v55, 2  ;;  %v1688_v57 = vadd.f32 %v1624_v44, %v12133_v63 }
 0x267   : > { %v4300_v15 = vadd.f32 %v4236_v40, %v4099_v46  ;;  %v4650_v38 = vsel %vm2004_vm1, %v4648_v43, %v11843_v25  ;;  %v8868_v56 = vmul.f32 %v8425_v29, %v12132_v10  ;;  %v2035_v28 = vrot.slane %v1830_v3, 1  ;;  %v3610_v40 = vld [vmem:[#allocation2 + $0xc0] sm:$0xfc]  ;;  %v8887_v3 = vld [vmem:[#allocation2 + $0xf0] sm:$0xff]  ;;  %v1755_v25 = vld [vmem:[#allocation2 + $0xb8] sm:$0x1] }
 0x268   : > { %v5539_v60 = vmul.f32 1.442695, %v5465_v32  ;;  %v5202_v5 = vsel %vm2557_vm2, %v5200_v36, %v11840_v14  ;;  %v2383_v34 = vmul.f32 %v12134_v53, %v2305_v9  ;;  %v8876_v4 = vmul.f32 %v8425_v29, %v12134_v53  ;;  %12192 = vst [vmem:[#allocation27_spill] sm:$0xff] %v8887_v3  ;;  %v4363_v29 = vld [vmem:[#allocation2 + $0xf0] sm:$0xfe] }
 0x269   : > { %v4852_v59 = vadd.f32 %v4650_v38, %v4300_v15  ;;  %v11842_v11 = vrot.slane %v8868_v56, 1  ;;  %v2930_v13 = vmul.f32 %v12191_v42, %v7770_v31  ;;  %v3136_v7 = vmul.f32 %v7812_v19, %v3058_v51 }
 0x26a   : > { %6785 = vpow2.f32 %v5539_v60  ;;  %v2588_v44 = vrot.slane %v2383_v34, 2  ;;  %v11841_v46 = vrot.slane %v8876_v4, 2  ;;  %v8885_v43 = vmul.f32 %v8679_v6, %v7812_v19 }
 0x26b   : > { %v8889_v9 = vadd.f32 %v5202_v5, %v4852_v59  ;;  %v2037_v32 = vsel %vm2004_vm1, %v2035_v28, %v11842_v11  ;;  %v3340_v36 = vrot.slane %v3136_v7, 1  ;;  %v3688_v51 = vmul.f32 %v7823_v33, %v3610_v40  ;;  %v8903_v5 = vld [vmem:[#allocation2 + $0x100] sm:$0xff]  ;;  %v4915_v59 = vld [vmem:[#allocation2 + $0xf0] sm:$0xfc] }
 0x26c   : > { %v2241_v15 = vadd.f32 %v2037_v32, %v1688_v57  ;;  %v2590_v38 = vsel %vm2557_vm2, %v2588_v44, %v11841_v46  ;;  %v11850_v60 = vrot.slane %v8885_v43, 1  ;;  %v8901_v34 = vmul.f32 %v8679_v6, %v7823_v33 }
 0x26d   : > { %12193 = vst [vmem:[#allocation18_spill] sm:$0xff] %v8889_v9  ;;  %v6782_v14 = vpop.eup %6781  ;;  %v5468_v28 = vsub.f32 0.0, %v8889_v9  ;;  %v3892_v7 = vrot.slane %v3688_v51, 2  ;;  %v4235_v57 = vmul.f32 %v7829_v39, %v8887_v3  ;;  %v4441_v40 = vmul.f32 %v7841_v2, %v4363_v29  ;;  %v2308_v3 = vld [vmem:[#allocation2 + $0xb8] sm:$0x3] }
 0x26e   : > { %v5658_v32 = vadd.f32 1.0, %v6782_v14  ;;  %v2794_v44 = vadd.f32 %v2590_v38, %v2241_v15  ;;  %v3342_v46 = vsel %vm2004_vm1, %v3340_v36, %v11850_v60  ;;  %v11851_v11 = vrot.slane %v8901_v34, 2  ;;  %v3061_v15 = vld [vmem:[#allocation2 + $0xe8] sm:$0x1] }
 0x26f   : > { %v6784_v47 = vpop.eup %6783  ;;  %v5545_v8 = vmul.f32 1.442695, %v5468_v28  ;;  %v8915_v48 = vmul.f32 %v7841_v2, %v8903_v5  ;;  %v4645_v51 = vrot.slane %v4441_v40, 1  ;;  %v4993_v62 = vmul.f32 %v8696_v21, %v4915_v59  ;;  %v7002_v60 = vld [vmem:[#allocation2 + $0xa8] sm:$0xff] }
 0x270   : > { %v5783_v14 = vmul.f32 %v6784_v47, %v8738_v35  ;;  %6787 = vrcp.f32 %v5658_v32  ;;  %v2994_v29 = vadd.f32 %v2930_v13, %v2794_v44  ;;  %v3894_v36 = vsel %vm2557_vm2, %v3892_v7, %v11851_v11  ;;  %v3613_v32 = vld [vmem:[#allocation2 + $0xe8] sm:$0x3]  ;;  %v4918_v11 = vld [vmem:[#allocation2 + $0x118] sm:$0x3] }
 0x271   : > { %6789 = vpow2.f32 %v5545_v8  ;;  %v11853_v38 = vrot.slane %v8915_v48, 1  ;;  %v8925_v28 = vmul.f32 %v8696_v21, %v8903_v5  ;;  %v5197_v40 = vrot.slane %v4993_v62, 2 }
 0x272   : > { %5963 = vmatmul.mubr.f32.vlgmr.msra.gmra.mxu1 %v5783_v14  ;;  %v3546_v59 = vadd.f32 %v3342_v46, %v2994_v29  ;;  %v1627_v35 = vmul.f32 %v7002_v60, %v7698_v0  ;;  %v1835_v47 = vmul.f32 %v12126_v45, %v1755_v25  ;;  %v2388_v13 = vmul.f32 %v12127_v41, %v2308_v3  ;;  %v4366_v46 = vld [vmem:[#allocation2 + $0x118] sm:$0x1] }
 0x273   : > { %v4647_v8 = vsel %vm2004_vm1, %v4645_v51, %v11853_v38  ;;  %v11855_v7 = vrot.slane %v8925_v28, 2  ;;  %v2933_v44 = vmul.f32 %v8596_v1, %v12153_v16  ;;  %v3141_v62 = vmul.f32 %v7815_v20, %v3061_v15 }
 0x274   : > { %v4098_v14 = vadd.f32 %v3894_v36, %v3546_v59  ;;  %v1691_v60 = vadd.f32 %v1627_v35, %v7724_v58  ;;  %v2043_v29 = vrot.slane %v1835_v47, 1  ;;  %v2596_v25 = vrot.slane %v2388_v13, 2  ;;  %v1754_v13 = vld [vmem:[#allocation2 + $0xb0] sm:$0x1] }
 0x275   : > { %v5199_v3 = vsel %vm2557_vm2, %v5197_v40, %v11855_v7  ;;  %v3348_v9 = vrot.slane %v3141_v62, 1  ;;  %v3693_v51 = vmul.f32 %v12183_v18, %v3613_v32  ;;  %v4238_v38 = vmul.f32 %v12187_v30, %v8829_v52 }
 0x276   : > { %v4299_v42 = vadd.f32 %v4235_v57, %v4098_v14  ;;  %v12194_v15 = vrot.slane %v8791_v12, 1  ;;  %v12195_v59 = vrot.slane %v8800_v54, 2  ;;  %v4446_v47 = vmul.f32 %v12188_v17, %v4366_v46 }
 0x277   : > { %v6786_v49 = vpop.eup %6785  ;;  %v12196_v62 = vrot.slane %v8816_v24, 1  ;;  %v3900_v7 = vrot.slane %v3693_v51, 2  ;;  %v4998_v57 = vmul.f32 %v8611_v26, %v4918_v11  ;;  %v12197_v46 = vrot.slane %v8825_v22, 2 }
 0x278   : > { %v2044_v36 = vsel %vm2004_vm1, %v12194_v15, %v2043_v29  ;;  %v2597_v35 = vsel %vm2557_vm2, %v12195_v59, %v2596_v25  ;;  %v5657_v14 = vadd.f32 1.0, %v6786_v49  ;;  %v4851_v12 = vadd.f32 %v4647_v8, %v4299_v42  ;;  %v7003_v29 = vld [vmem:[#allocation2 + $0xa0] sm:$0xff]  ;;  %v2307_v15 = vld [vmem:[#allocation2 + $0xb0] sm:$0x3] }
 0x279   : > { %v2244_v40 = vadd.f32 %v2044_v36, %v1691_v60  ;;  %v3349_v32 = vsel %vm2004_vm1, %v12196_v62, %v3348_v9  ;;  %v4653_v30 = vrot.slane %v4446_v47, 1  ;;  %v1626_v54 = vmul.f32 %v7003_v29, %v12131_v50  ;;  %v3060_v36 = vld [vmem:[#allocation2 + $0xe0] sm:$0x1] }
 0x27a   : > { %v3901_v59 = vsel %vm2557_vm2, %v12197_v46, %v3900_v7  ;;  %v5205_v60 = vrot.slane %v4998_v57, 2  ;;  %v1834_v24 = vmul.f32 %v12132_v10, %v1754_v13  ;;  %v3612_v9 = vld [vmem:[#allocation2 + $0xe0] sm:$0x3]  ;;  %6791 = vrcp.f32 %v5657_v14 }
 0x27b   : > { %v2797_v25 = vadd.f32 %v2597_v35, %v2244_v40  ;;  %v8960_v51 = vadd.f32 %v5199_v3, %v4851_v12  ;;  %v12198_v49 = vrot.slane %v8847_v23, 1  ;;  %v1690_v42 = vadd.f32 %v1626_v54, %v12133_v63  ;;  %v4365_v12 = vld [vmem:[#allocation2 + $0x110] sm:$0x1] }
 0x27c   : > { %v12199_v35 = vrot.slane %v8854_v55, 2  ;;  %v2041_v7 = vrot.slane %v1834_v24, 1  ;;  %v2387_v47 = vmul.f32 %v12134_v53, %v2307_v15  ;;  %v2932_v3 = vmul.f32 %v8679_v6, %v7770_v31 }
 0x27d   : > { %v4654_v11 = vsel %vm2004_vm1, %v12198_v49, %v4653_v30  ;;  %v2997_v8 = vadd.f32 %v2933_v44, %v2797_v25  ;;  %v5467_v13 = vsub.f32 0.0, %v8960_v51  ;;  %v3140_v40 = vmul.f32 %v7812_v19, %v3060_v36  ;;  %v6788_v30 = vpop.eup %6787  ;;  %v1757_v49 = vld [vmem:[#allocation2 + $0xc8] sm:$0xfe] }
 0x27e   : > { %v5206_v22 = vsel %vm2557_vm2, %v12199_v35, %v5205_v60  ;;  %v3692_v23 = vmul.f32 %v7823_v33, %v3612_v9  ;;  %v12200_v44 = vrot.slane %v8868_v56, 1  ;;  %v2594_v57 = vrot.slane %v2387_v47, 2  ;;  %v6790_v29 = vpop.eup %6789  ;;  %v4917_v60 = vld [vmem:[#allocation2 + $0x110] sm:$0x3] }
 0x27f   : > { %v3549_v62 = vadd.f32 %v3349_v32, %v2997_v8  ;;  %v4237_v14 = vmul.f32 %v7829_v39, %v8903_v5  ;;  %v5786_v54 = vmul.f32 %v6788_v30, %v8795_v61  ;;  %v5543_v15 = vmul.f32 1.442695, %v5467_v13 }
 0x280   : > { %v2042_v55 = vsel %vm2004_vm1, %v12200_v44, %v2041_v7  ;;  %v3346_v46 = vrot.slane %v3140_v40, 1  ;;  %v5660_v24 = vadd.f32 1.0, %v6790_v29  ;;  %v12201_v32 = vrot.slane %v8876_v4, 2 }
 0x281   : > { %v2243_v25 = vadd.f32 %v2042_v55, %v1690_v42  ;;  %v4101_v36 = vadd.f32 %v3901_v59, %v3549_v62  ;;  %v3898_v9 = vrot.slane %v3692_v23, 2  ;;  %5967 = vmatprep.mubr.f32.mxu1 %v5786_v54  ;;  %6793 = vpow2.f32 %v5543_v15  ;;  %v2310_v42 = vld [vmem:[#allocation2 + $0xc8] sm:$0xfc] }
 0x282   : > { %v2595_v56 = vsel %vm2557_vm2, %v12201_v32, %v2594_v57  ;;  %v12202_v35 = vrot.slane %v8885_v43, 1  ;;  %v4445_v61 = vmul.f32 %v7841_v2, %v4365_v12  ;;  %6795 = vrcp.f32 %v5660_v24  ;;  %v3615_v32 = vld [vmem:[#allocation2 + $0xf8] sm:$0xfc] }
 0x283   : > { %v2796_v8 = vadd.f32 %v2595_v56, %v2243_v25  ;;  %v4302_v47 = vadd.f32 %v4238_v38, %v4101_v36  ;;  %v12203_v59 = vrot.slane %v8901_v34, 2  ;;  %v4997_v13 = vmul.f32 %v8696_v21, %v4917_v60  ;;  %v3063_v34 = vld [vmem:[#allocation2 + $0xf8] sm:$0xfe] }
 0x284   : > { %v3347_v7 = vsel %vm2004_vm1, %v12202_v35, %v3346_v46  ;;  %v4651_v23 = vrot.slane %v4445_v61, 1  ;;  %v1629_v30 = vmul.f32 %v12181_v37, %v7698_v0  ;;  %v1837_v43 = vmul.f32 %v12126_v45, %v1757_v49  ;;  %v9026_v49 = vld [vmem:[#allocation2 + $0x128] sm:$0xff] }
 0x285   : > { %v3899_v4 = vsel %vm2557_vm2, %v12203_v59, %v3898_v9  ;;  %v2996_v40 = vadd.f32 %v2932_v3, %v2796_v8  ;;  %v4854_v62 = vadd.f32 %v4654_v11, %v4302_v47  ;;  %v5203_v44 = vrot.slane %v4997_v13, 2  ;;  %12206 = vst [vmem:[#allocation29_spill] sm:$0xff] %v9026_v49  ;;  %v12207_v8 = vld [vmem:[#allocation28_spill] sm:$0xff]  ;;  %v4368_v47 = vld [vmem:[#allocation2 + $0x128] sm:$0xfe] }
 0x286   : > { %v8997_v55 = vmul.f32 %v8596_v1, %v12126_v45  ;;  %v2390_v38 = vmul.f32 %v12127_v41, %v2310_v42  ;;  %v12204_v12 = vrot.slane %v8915_v48, 1  ;;  %v1693_v29 = vadd.f32 %v1629_v30, %v7724_v58 }
 0x287   : > { %v3548_v57 = vadd.f32 %v3347_v7, %v2996_v40  ;;  %v2048_v54 = vrot.slane %v1837_v43, 1  ;;  %v9004_v37 = vadd.f32 %v5206_v22, %v4854_v62  ;;  %v12205_v11 = vrot.slane %v8925_v28, 2  ;;  %v6792_v22 = vpop.eup %6791  ;;  %v12208_v62 = vld [vmem:[#allocation25_spill] sm:$0xff] }
 0x288   : > { %v4652_v3 = vsel %vm2004_vm1, %v12204_v12, %v4651_v23  ;;  %v11864_v25 = vrot.slane %v8997_v55, 1  ;;  %v9012_v46 = vmul.f32 %v8596_v1, %v12127_v41  ;;  %v2601_v24 = vrot.slane %v2390_v38, 2  ;;  %v9034_v23 = vld [vmem:[#allocation2 + $0x138] sm:$0xff]  ;;  %v4920_v38 = vld [vmem:[#allocation2 + $0x128] sm:$0xfc] }
 0x289   : > { %v5204_v15 = vsel %vm2557_vm2, %v12205_v11, %v5203_v44  ;;  %v4100_v60 = vadd.f32 %v3899_v4, %v3548_v57  ;;  %v2935_v48 = vmul.f32 %v8827_v27, %v12153_v16  ;;  %v3143_v36 = vmul.f32 %v7815_v20, %v3063_v34 }
 0x28a   : > { %v5470_v56 = vsub.f32 0.0, %v9004_v37  ;;  %v2050_v28 = vsel %vm2004_vm1, %v2048_v54, %v11864_v25  ;;  %v11863_v9 = vrot.slane %v9012_v46, 2  ;;  %v9024_v1 = vmul.f32 %v8829_v52, %v7815_v20 }
 0x28b   : > { %v5785_v35 = vmul.f32 %v6792_v22, %v12207_v8  ;;  %v4301_v7 = vadd.f32 %v4237_v14, %v4100_v60  ;;  %v2246_v61 = vadd.f32 %v2050_v28, %v1693_v29  ;;  %v3353_v42 = vrot.slane %v3143_v36, 1  ;;  %v12209_v22 = vld [vmem:[#allocation21_spill] sm:$0xff] }
 0x28c   : > { %v5549_v59 = vmul.f32 1.442695, %v5470_v56  ;;  %v2603_v4 = vsel %vm2557_vm2, %v2601_v24, %v11863_v9  ;;  %v11862_v13 = vrot.slane %v9024_v1, 1  ;;  %v3695_v40 = vmul.f32 %v12183_v18, %v3615_v32 }
 0x28d   : > { %5968 = vmatmul.mubr.f32.gmra.mxu1 %v5785_v35  ;;  %v4853_v30 = vadd.f32 %v4652_v3, %v4301_v7  ;;  %v2799_v43 = vadd.f32 %v2603_v4, %v2246_v61  ;;  %v9038_v14 = vmul.f32 %v8829_v52, %v12183_v18  ;;  %v4240_v44 = vmul.f32 %v12208_v62, %v9026_v49  ;;  %v1756_v7 = vld [vmem:[#allocation2 + $0xc0] sm:$0xfe]  ;;  %v12210_v61 = vld [vmem:[#allocation18_spill] sm:$0xff]  ;;  %v9157_v49 = vld [vmem:[#allocation8 + $0x18] ss:$0 sm:$0xff] }
 0x28e   : > { %6797 = vpow2.f32 %v5549_v59  ;;  %v3355_v34 = vsel %vm2004_vm1, %v3353_v42, %v11862_v13  ;;  %v3905_v57 = vrot.slane %v3695_v40, 2  ;;  %v4448_v12 = vmul.f32 %v12188_v17, %v4368_v47  ;;  %v6794_v60 = vpop.eup %6793  ;;  %v2309_v4 = vld [vmem:[#allocation2 + $0xc0] sm:$0xfc] }
 0x28f   : > { %v9046_v29 = vadd.f32 %v5204_v15, %v4853_v30  ;;  %v2999_v3 = vadd.f32 %v2935_v48, %v2799_v43  ;;  %v11860_v54 = vrot.slane %v9038_v14, 2  ;;  %v9051_v11 = vmul.f32 %v12188_v17, %v9034_v23  ;;  %v6796_v15 = vpop.eup %6795 }
 0x290   : > { %v4658_v24 = vrot.slane %v4448_v12, 1  ;;  %v5000_v36 = vmul.f32 %v8611_v26, %v4920_v38  ;;  %v9056_v32 = vmul.f32 %v8611_v26, %v9034_v23  ;;  %v1628_v56 = vmul.f32 %v12209_v22, %v12131_v50  ;;  %v3062_v38 = vld [vmem:[#allocation2 + $0xf0] sm:$0xfe] }
 0x291   : > { %v5659_v28 = vadd.f32 1.0, %v6794_v60  ;;  %v5469_v48 = vsub.f32 0.0, %v9046_v29  ;;  %v3551_v8 = vadd.f32 %v3355_v34, %v2999_v3  ;;  %v3907_v35 = vsel %vm2557_vm2, %v3905_v57, %v11860_v54 }
 0x292   : > { %v5788_v42 = vmul.f32 %v6796_v15, %v12210_v61  ;;  %v11858_v47 = vrot.slane %v9051_v11, 1  ;;  %v5210_v59 = vrot.slane %v5000_v36, 2  ;;  %v11857_v26 = vrot.slane %v9056_v32, 2 }
 0x293   : > { %6799 = vrcp.f32 %v5659_v28  ;;  %v5547_v40 = vmul.f32 1.442695, %v5469_v48  ;;  %v4103_v30 = vadd.f32 %v3907_v35, %v3551_v8  ;;  %v1692_v43 = vadd.f32 %v1628_v56, %v12133_v63  ;;  %v3614_v56 = vld [vmem:[#allocation2 + $0xf0] sm:$0xfc]  ;;  %v12211_v28 = vld [vmem:[#allocation27_spill] sm:$0xff] }
 0x294   : > { %5972 = vmatprep.mubr.f32.mxu1 %v5788_v42  ;;  %v4660_v34 = vsel %vm2004_vm1, %v4658_v24, %v11858_v47  ;;  %v5212_v57 = vsel %vm2557_vm2, %v5210_v59, %v11857_v26  ;;  %v1836_v12 = vmul.f32 %v12132_v10, %v1756_v7  ;;  %v9077_v3 = vmul.f32 %v8679_v6, %v12132_v10  ;;  %v9093_v42 = vld [vmem:[#allocation2 + $0x120] sm:$0xff] }
 0x295   : > { %6801 = vpow2.f32 %v5547_v40  ;;  %v4304_v60 = vadd.f32 %v4240_v44, %v4103_v30  ;;  %v2389_v36 = vmul.f32 %v12134_v53, %v2309_v4  ;;  %v9082_v22 = vmul.f32 %v8679_v6, %v12134_v53  ;;  %12212 = vst [vmem:[#allocation17_spill] sm:$0xff] %v9093_v42  ;;  %v4367_v59 = vld [vmem:[#allocation2 + $0x120] sm:$0xfe] }
 0x296   : > { %v2045_v24 = vrot.slane %v1836_v12, 1  ;;  %v11859_v15 = vrot.slane %v9077_v3, 1  ;;  %v2934_v48 = vmul.f32 %v12211_v28, %v7770_v31  ;;  %v3142_v8 = vmul.f32 %v7812_v19, %v3062_v38  ;;  %v4919_v47 = vld [vmem:[#allocation2 + $0x120] sm:$0xfc] }
 0x297   : > { %v4856_v35 = vadd.f32 %v4660_v34, %v4304_v60  ;;  %v2598_v7 = vrot.slane %v2389_v36, 2  ;;  %v11861_v61 = vrot.slane %v9082_v22, 2  ;;  %v9091_v44 = vmul.f32 %v8903_v5, %v7812_v19  ;;  %v9103_v34 = vld [vmem:[#allocation2 + $0x130] sm:$0xff] }
 0x298   : > { %v2047_v4 = vsel %vm2004_vm1, %v2045_v24, %v11859_v15  ;;  %v3350_v40 = vrot.slane %v3142_v8, 1  ;;  %v3694_v30 = vmul.f32 %v7823_v33, %v3614_v56  ;;  %v9101_v38 = vmul.f32 %v8903_v5, %v7823_v33 }
 0x299   : > { %v9105_v12 = vadd.f32 %v5212_v57, %v4856_v35  ;;  %v2245_v60 = vadd.f32 %v2047_v4, %v1692_v43  ;;  %v2600_v36 = vsel %vm2557_vm2, %v2598_v7, %v11861_v61  ;;  %v11865_v26 = vrot.slane %v9091_v44, 1  ;;  %v1759_v4 = vld [vmem:[#allocation2 + $0xe8] sm:$0x1] }
 0x29a   : > { %v3902_v24 = vrot.slane %v3694_v30, 2  ;;  %v11870_v8 = vrot.slane %v9101_v38, 2  ;;  %v4239_v56 = vmul.f32 %v7829_v39, %v9093_v42  ;;  %v4447_v15 = vmul.f32 %v7841_v2, %v4367_v59  ;;  %v7004_v42 = vld [vmem:[#allocation2 + $0xd8] sm:$0xff] }
 0x29b   : > { %12213 = vst [vmem:[#allocation16_spill] sm:$0xff] %v9105_v12  ;;  %v6798_v54 = vpop.eup %6797  ;;  %v5472_v57 = vsub.f32 0.0, %v9105_v12  ;;  %v2798_v35 = vadd.f32 %v2600_v36, %v2245_v60  ;;  %v3352_v43 = vsel %vm2004_vm1, %v3350_v40, %v11865_v26  ;;  %v9121_v7 = vmul.f32 %v7841_v2, %v9103_v34  ;;  %v2312_v36 = vld [vmem:[#allocation2 + $0xe8] sm:$0x3] }
 0x29c   : > { %v5662_v30 = vadd.f32 1.0, %v6798_v54  ;;  %v3904_v61 = vsel %vm2557_vm2, %v3902_v24, %v11870_v8  ;;  %v4655_v13 = vrot.slane %v4447_v15, 1  ;;  %v4999_v59 = vmul.f32 %v8696_v21, %v4919_v47  ;;  %v3065_v24 = vld [vmem:[#allocation2 + $0x118] sm:$0x1] }
 0x29d   : > { %v5553_v9 = vmul.f32 1.442695, %v5472_v57  ;;  %v2998_v25 = vadd.f32 %v2934_v48, %v2798_v35  ;;  %v11869_v60 = vrot.slane %v9121_v7, 1  ;;  %v9130_v40 = vmul.f32 %v8696_v21, %v9103_v34  ;;  %v3617_v57 = vld [vmem:[#allocation2 + $0x118] sm:$0x3] }
 0x29e   : > { %6803 = vrcp.f32 %v5662_v30  ;;  %v5207_v26 = vrot.slane %v4999_v59, 2  ;;  %v1631_v54 = vmul.f32 %v7004_v42, %v7698_v0  ;;  %v1841_v12 = vmul.f32 %v12126_v45, %v1759_v4 }
 0x29f   : > { %6805 = vpow2.f32 %v5553_v9  ;;  %v3550_v15 = vadd.f32 %v3352_v43, %v2998_v25  ;;  %v4657_v47 = vsel %vm2004_vm1, %v4655_v13, %v11869_v60  ;;  %v11871_v48 = vrot.slane %v9130_v40, 2  ;;  %v4370_v43 = vld [vmem:[#allocation2 + $0x148] sm:$0x1] }
 0x2a0   : > { %v6800_v21 = vpop.eup %6799  ;;  %v1695_v35 = vadd.f32 %v1631_v54, %v7724_v58  ;;  %v2053_v30 = vrot.slane %v1841_v12, 1  ;;  %v2394_v59 = vmul.f32 %v12127_v41, %v2312_v36  ;;  %v2937_v42 = vmul.f32 %v8829_v52, %v12153_v16  ;;  %v4922_v60 = vld [vmem:[#allocation2 + $0x148] sm:$0x3] }
 0x2a1   : > { %v5787_v4 = vmul.f32 %v6800_v21, %v8960_v51  ;;  %v4102_v9 = vadd.f32 %v3904_v61, %v3550_v15  ;;  %v5209_v25 = vsel %vm2557_vm2, %v5207_v26, %v11871_v48  ;;  %v3147_v13 = vmul.f32 %v7815_v20, %v3065_v24 }
 0x2a2   : > { %v6802_v8 = vpop.eup %6801  ;;  %v12214_v54 = vrot.slane %v8997_v55, 1  ;;  %v2606_v36 = vrot.slane %v2394_v59, 2  ;;  %v3699_v28 = vmul.f32 %v12183_v18, %v3617_v57  ;;  %v4242_v51 = vmul.f32 %v12208_v62, %v9034_v23  ;;  %v1758_v57 = vld [vmem:[#allocation2 + $0xe0] sm:$0x1] }
 0x2a3   : > { %5973 = vmatmul.mubr.f32.gmra.mxu1 %v5787_v4  ;;  %v5661_v61 = vadd.f32 1.0, %v6802_v8  ;;  %v4303_v15 = vadd.f32 %v4239_v56, %v4102_v9  ;;  %v3358_v26 = vrot.slane %v3147_v13, 1  ;;  %v12215_v24 = vrot.slane %v9012_v46, 2  ;;  %v2311_v59 = vld [vmem:[#allocation2 + $0xe0] sm:$0x3] }
 0x2a4   : > { %v2054_v12 = vsel %vm2004_vm1, %v12214_v54, %v2053_v30  ;;  %v3910_v20 = vrot.slane %v3699_v28, 2  ;;  %v4452_v55 = vmul.f32 %v12188_v17, %v4370_v43  ;;  %v5004_v30 = vmul.f32 %v9157_v49, %v4922_v60 }
 0x2a5   : > { %v2248_v21 = vadd.f32 %v2054_v12, %v1695_v35  ;;  %v2607_v48 = vsel %vm2557_vm2, %v12215_v24, %v2606_v36  ;;  %6807 = vrcp.f32 %v5661_v61  ;;  %v4855_v54 = vadd.f32 %v4657_v47, %v4303_v15  ;;  %v4369_v36 = vld [vmem:[#allocation2 + $0x140] sm:$0x1] }
 0x2a6   : > { %v12216_v8 = vrot.slane %v9024_v1, 1  ;;  %v12217_v46 = vrot.slane %v9038_v14, 2  ;;  %v4663_v28 = vrot.slane %v4452_v55, 1  ;;  %v5215_v9 = vrot.slane %v5004_v30, 2  ;;  %v3616_v1 = vld [vmem:[#allocation2 + $0x110] sm:$0x3] }
 0x2a7   : > { %v2801_v4 = vadd.f32 %v2607_v48, %v2248_v21  ;;  %v1630_v13 = vmul.f32 %v8679_v6, %v12131_v50  ;;  %v9168_v43 = vadd.f32 %v5209_v25, %v4855_v54  ;;  %v1840_v12 = vmul.f32 %v12132_v10, %v1758_v57  ;;  %v3064_v48 = vld [vmem:[#allocation2 + $0x110] sm:$0x1] }
 0x2a8   : > { %v3359_v56 = vsel %vm2004_vm1, %v12216_v8, %v3358_v26  ;;  %v3911_v35 = vsel %vm2557_vm2, %v12217_v46, %v3910_v20  ;;  %v2393_v47 = vmul.f32 %v12134_v53, %v2311_v59  ;;  %v12218_v61 = vrot.slane %v9051_v11, 1 }
 0x2a9   : > { %v3001_v60 = vadd.f32 %v2937_v42, %v2801_v4  ;;  %v12219_v20 = vrot.slane %v9056_v32, 2  ;;  %v1694_v6 = vadd.f32 %v1630_v13, %v12133_v63  ;;  %v2936_v42 = vmul.f32 %v8903_v5, %v7770_v31 }
 0x2aa   : > { %v4664_v14 = vsel %vm2004_vm1, %v12218_v61, %v4663_v28  ;;  %v5471_v25 = vsub.f32 0.0, %v9168_v43  ;;  %v2051_v26 = vrot.slane %v1840_v12, 1  ;;  %v2604_v24 = vrot.slane %v2393_v47, 2  ;;  %v4921_v28 = vld [vmem:[#allocation2 + $0x140] sm:$0x3] }
 0x2ab   : > { %v5216_v15 = vsel %vm2557_vm2, %v12219_v20, %v5215_v9  ;;  %v3553_v21 = vadd.f32 %v3359_v56, %v3001_v60  ;;  %v3146_v55 = vmul.f32 %v7812_v19, %v3064_v48  ;;  %v3698_v11 = vmul.f32 %v7823_v33, %v3616_v1  ;;  %v6804_v57 = vpop.eup %6803 }
 0x2ac   : > { %v4241_v30 = vmul.f32 %v7829_v39, %v9103_v34  ;;  %v4451_v32 = vmul.f32 %v7841_v2, %v4369_v36  ;;  %v5551_v59 = vmul.f32 1.442695, %v5471_v25  ;;  %v12220_v4 = vrot.slane %v9077_v3, 1  ;;  %v6806_v9 = vpop.eup %6805 }
 0x2ad   : > { %v4105_v54 = vadd.f32 %v3911_v35, %v3553_v21  ;;  %v12221_v56 = vrot.slane %v9082_v22, 2  ;;  %v5790_v13 = vmul.f32 %v6804_v57, %v9004_v37  ;;  %v3356_v12 = vrot.slane %v3146_v55, 1  ;;  %v1761_v35 = vld [vmem:[#allocation2 + $0xf8] sm:$0xfe]  ;;  %v9200_v21 = vld [vmem:[#allocation8 + $0x10] ss:$0 sm:$0xff] }
 0x2ae   : > { %v2052_v8 = vsel %vm2004_vm1, %v12220_v4, %v2051_v26  ;;  %v3908_v47 = vrot.slane %v3698_v11, 2  ;;  %v5664_v48 = vadd.f32 1.0, %v6806_v9  ;;  %6809 = vpow2.f32 %v5551_v59 }
 0x2af   : > { %v2605_v46 = vsel %vm2557_vm2, %v12221_v56, %v2604_v24  ;;  %v2247_v60 = vadd.f32 %v2052_v8, %v1694_v6  ;;  %v4306_v1 = vadd.f32 %v4242_v51, %v4105_v54  ;;  %v4661_v36 = vrot.slane %v4451_v32, 1  ;;  %5977 = vmatprep.mubr.f32.mxu1 %v5790_v13  ;;  %v2314_v6 = vld [vmem:[#allocation2 + $0xf8] sm:$0xfc]  ;;  %v3067_v54 = vld [vmem:[#allocation2 + $0x128] sm:$0xfe] }
 0x2b0   : > { %v12222_v61 = vrot.slane %v9091_v44, 1  ;;  %v12223_v20 = vrot.slane %v9101_v38, 2  ;;  %v5003_v37 = vmul.f32 %v9200_v21, %v4921_v28  ;;  %6811 = vrcp.f32 %v5664_v48 }
 0x2b1   : > { %v2800_v3 = vadd.f32 %v2605_v46, %v2247_v60  ;;  %v4858_v26 = vadd.f32 %v4664_v14, %v4306_v1  ;;  %v12224_v51 = vrot.slane %v9121_v7, 1  ;;  %v1633_v44 = vmul.f32 %v8827_v27, %v7698_v0  ;;  %v3619_v60 = vld [vmem:[#allocation2 + $0x128] sm:$0xfc]  ;;  %v12227_v1 = vld [vmem:[#allocation23_spill] sm:$0xff] }
 0x2b2   : > { %v3357_v22 = vsel %vm2004_vm1, %v12222_v61, %v3356_v12  ;;  %v3909_v25 = vsel %vm2557_vm2, %v12223_v20, %v3908_v47  ;;  %v5213_v11 = vrot.slane %v5003_v37, 2  ;;  %v1843_v38 = vmul.f32 %v12126_v45, %v1761_v35  ;;  %v6808_v27 = vpop.eup %6807  ;;  %v9234_v35 = vld [vmem:[#allocation2 + $0x158] sm:$0xff] }
 0x2b3   : > { %v4662_v24 = vsel %vm2004_vm1, %v12224_v51, %v4661_v36  ;;  %v3000_v55 = vadd.f32 %v2936_v42, %v2800_v3  ;;  %v9211_v32 = vmul.f32 %v8829_v52, %v12126_v45  ;;  %v9213_v57 = vadd.f32 %v5216_v15, %v4858_v26  ;;  %12228 = vst [vmem:[#allocation20_spill] sm:$0xff] %v9234_v35  ;;  %v4372_v20 = vld [vmem:[#allocation2 + $0x158] sm:$0xfe]  ;;  %v9248_v51 = vld [vmem:[#allocation2 + $0x168] sm:$0xff] }
 0x2b4   : > { %v1697_v59 = vadd.f32 %v1633_v44, %v7724_v58  ;;  %v2396_v14 = vmul.f32 %v12127_v41, %v2314_v6  ;;  %v9219_v7 = vmul.f32 %v8829_v52, %v12127_v41  ;;  %v12225_v4 = vrot.slane %v9130_v40, 2  ;;  %v12226_v40 = vld [vmem:[#allocation29_spill] sm:$0xff]  ;;  %v4924_v44 = vld [vmem:[#allocation2 + $0x158] sm:$0xfc] }
 0x2b5   : > { %v3552_v42 = vadd.f32 %v3357_v22, %v3000_v55  ;;  %v2058_v56 = vrot.slane %v1843_v38, 1  ;;  %v11883_v46 = vrot.slane %v9211_v32, 1  ;;  %v5789_v15 = vmul.f32 %v6808_v27, %v9046_v29 }
 0x2b6   : > { %v5214_v8 = vsel %vm2557_vm2, %v12225_v4, %v5213_v11  ;;  %v5474_v28 = vsub.f32 0.0, %v9213_v57  ;;  %v2611_v9 = vrot.slane %v2396_v14, 2  ;;  %v11882_v13 = vrot.slane %v9219_v7, 2 }
 0x2b7   : > { %v4104_v12 = vadd.f32 %v3909_v25, %v3552_v42  ;;  %v2060_v47 = vsel %vm2004_vm1, %v2058_v56, %v11883_v46  ;;  %v2939_v48 = vmul.f32 %v12226_v40, %v12153_v16  ;;  %v3149_v36 = vmul.f32 %v12227_v1, %v3067_v54  ;;  %5978 = vmatmul.mubr.f32.gmra.mxu1 %v5789_v15  ;;  %v1760_v15 = vld [vmem:[#allocation2 + $0xf0] sm:$0xfe] }
 0x2b8   : > { %v5557_v29 = vmul.f32 1.442695, %v5474_v28  ;;  %v2250_v3 = vadd.f32 %v2060_v47, %v1697_v59  ;;  %v2613_v61 = vsel %vm2557_vm2, %v2611_v9, %v11882_v13  ;;  %v9241_v22 = vmul.f32 %v9034_v23, %v12227_v1 }
 0x2b9   : > { %v4305_v25 = vadd.f32 %v4241_v30, %v4104_v12  ;;  %v3363_v37 = vrot.slane %v3149_v36, 1  ;;  %v3701_v6 = vmul.f32 %v12183_v18, %v3619_v60  ;;  %v9246_v26 = vmul.f32 %v9034_v23, %v12183_v18 }
 0x2ba   : > { %6813 = vpow2.f32 %v5557_v29  ;;  %v2803_v55 = vadd.f32 %v2613_v61, %v2250_v3  ;;  %v11879_v11 = vrot.slane %v9241_v22, 1  ;;  %v4244_v38 = vmul.f32 %v12208_v62, %v9234_v35 }
 0x2bb   : > { %v4857_v59 = vadd.f32 %v4662_v24, %v4305_v25  ;;  %v3915_v14 = vrot.slane %v3701_v6, 2  ;;  %v11878_v30 = vrot.slane %v9246_v26, 2  ;;  %v4454_v54 = vmul.f32 %v12188_v17, %v4372_v20  ;;  %v6810_v28 = vpop.eup %6809  ;;  %v12230_v20 = vld [vmem:[#allocation27_spill] sm:$0xff]  ;;  %v2313_v6 = vld [vmem:[#allocation2 + $0xf0] sm:$0xfc] }
 0x2bc   : > { %v3003_v27 = vadd.f32 %v2939_v48, %v2803_v55  ;;  %v3365_v42 = vsel %vm2004_vm1, %v3363_v37, %v11879_v11  ;;  %v9260_v4 = vmul.f32 %v12188_v17, %v9248_v51  ;;  %v5006_v56 = vmul.f32 %v9157_v49, %v4924_v44  ;;  %v12231_v44 = vld [vmem:[#allocation16_spill] sm:$0xff]  ;;  %v4923_v11 = vld [vmem:[#allocation2 + $0x150] sm:$0xfc] }
 0x2bd   : > { %v9263_v9 = vadd.f32 %v5214_v8, %v4857_v59  ;;  %v3917_v24 = vsel %vm2557_vm2, %v3915_v14, %v11878_v30  ;;  %v4668_v60 = vrot.slane %v4454_v54, 1  ;;  %v9270_v12 = vmul.f32 %v9157_v49, %v9248_v51  ;;  %v6812_v3 = vpop.eup %6811  ;;  %v3066_v54 = vld [vmem:[#allocation2 + $0x120] sm:$0xfe] }
 0x2be   : > { %v5663_v47 = vadd.f32 1.0, %v6810_v28  ;;  %v3555_v48 = vadd.f32 %v3365_v42, %v3003_v27  ;;  %v11877_v36 = vrot.slane %v9260_v4, 1  ;;  %v5220_v29 = vrot.slane %v5006_v56, 2  ;;  %v9320_v30 = vld [vmem:[#allocation2 + $0x160] sm:$0xff] }
 0x2bf   : > { %12229 = vst [vmem:[#allocation28_spill] sm:$0xff] %v9263_v9  ;;  %v5473_v61 = vsub.f32 0.0, %v9263_v9  ;;  %v11876_v8 = vrot.slane %v9270_v12, 2  ;;  %v1632_v25 = vmul.f32 %v12230_v20, %v12131_v50  ;;  %v1842_v37 = vmul.f32 %v12132_v10, %v1760_v15  ;;  %v4926_v9 = vld [vmem:[#allocation2 + $0x178] sm:$0x3] }
 0x2c0   : > { %v5792_v55 = vmul.f32 %v6812_v3, %v12231_v44  ;;  %6815 = vrcp.f32 %v5663_v47  ;;  %v4107_v59 = vadd.f32 %v3917_v24, %v3555_v48  ;;  %v4670_v14 = vsel %vm2004_vm1, %v4668_v60, %v11877_v36  ;;  %v3618_v48 = vld [vmem:[#allocation2 + $0x120] sm:$0xfc] }
 0x2c1   : > { %v5555_v27 = vmul.f32 1.442695, %v5473_v61  ;;  %v5222_v42 = vsel %vm2557_vm2, %v5220_v29, %v11876_v8  ;;  %v1696_v56 = vadd.f32 %v1632_v25, %v12133_v63  ;;  %v9288_v15 = vmul.f32 %v8903_v5, %v12132_v10  ;;  %v12232_v29 = vld [vmem:[#allocation17_spill] sm:$0xff] }
 0x2c2   : > { %5982 = vmatprep.mubr.f32.mxu1 %v5792_v55  ;;  %v4308_v28 = vadd.f32 %v4244_v38, %v4107_v59  ;;  %v2055_v47 = vrot.slane %v1842_v37, 1  ;;  %v2395_v24 = vmul.f32 %v12134_v53, %v2313_v6  ;;  %v9293_v60 = vmul.f32 %v8903_v5, %v12134_v53  ;;  %v9304_v6 = vld [vmem:[#allocation2 + $0x150] sm:$0xff] }
 0x2c3   : > { %6817 = vpow2.f32 %v5555_v27  ;;  %v11880_v3 = vrot.slane %v9288_v15, 1  ;;  %v2938_v61 = vmul.f32 %v12232_v29, %v7770_v31  ;;  %v3148_v20 = vmul.f32 %v7812_v19, %v3066_v54  ;;  %12233 = vst [vmem:[#allocation21_spill] sm:$0xff] %v9304_v6  ;;  %v4371_v55 = vld [vmem:[#allocation2 + $0x150] sm:$0xfe] }
 0x2c4   : > { %v4860_v25 = vadd.f32 %v4670_v14, %v4308_v28  ;;  %v2608_v44 = vrot.slane %v2395_v24, 2  ;;  %v11881_v38 = vrot.slane %v9293_v60, 2  ;;  %v9302_v37 = vmul.f32 %v9103_v34, %v7812_v19 }
 0x2c5   : > { %v2057_v59 = vsel %vm2004_vm1, %v2055_v47, %v11880_v3  ;;  %v3360_v27 = vrot.slane %v3148_v20, 1  ;;  %v3700_v8 = vmul.f32 %v7823_v33, %v3618_v48  ;;  %v9312_v14 = vmul.f32 %v9103_v34, %v7823_v33 }
 0x2c6   : > { %v9314_v54 = vadd.f32 %v5222_v42, %v4860_v25  ;;  %v2249_v28 = vadd.f32 %v2057_v59, %v1696_v56  ;;  %v2610_v24 = vsel %vm2557_vm2, %v2608_v44, %v11881_v38  ;;  %v11886_v36 = vrot.slane %v9302_v37, 1  ;;  %v1763_v38 = vld [vmem:[#allocation2 + $0x118] sm:$0x1] }
 0x2c7   : > { %v6814_v47 = vpop.eup %6813  ;;  %v3912_v20 = vrot.slane %v3700_v8, 2  ;;  %v11887_v48 = vrot.slane %v9312_v14, 2  ;;  %v4243_v3 = vmul.f32 %v7829_v39, %v9304_v6  ;;  %v4453_v42 = vmul.f32 %v7841_v2, %v4371_v55 }
 0x2c8   : > { %12234 = vst [vmem:[#allocation18_spill] sm:$0xff] %v9314_v54  ;;  %v5666_v25 = vadd.f32 1.0, %v6814_v47  ;;  %v5476_v56 = vsub.f32 0.0, %v9314_v54  ;;  %v2802_v59 = vadd.f32 %v2610_v24, %v2249_v28  ;;  %v3362_v44 = vsel %vm2004_vm1, %v3360_v27, %v11886_v36  ;;  %v2316_v47 = vld [vmem:[#allocation2 + $0x118] sm:$0x3] }
 0x2c9   : > { %v3914_v8 = vsel %vm2557_vm2, %v3912_v20, %v11887_v48  ;;  %v9335_v13 = vmul.f32 %v7841_v2, %v9320_v30  ;;  %v4665_v46 = vrot.slane %v4453_v42, 1  ;;  %v5005_v55 = vmul.f32 %v9200_v21, %v4923_v11 }
 0x2ca   : > { %6819 = vrcp.f32 %v5666_v25  ;;  %v5561_v6 = vmul.f32 1.442695, %v5476_v56  ;;  %v3002_v28 = vadd.f32 %v2938_v61, %v2802_v59  ;;  %v9340_v24 = vmul.f32 %v9200_v21, %v9320_v30  ;;  %v3069_v56 = vld [vmem:[#allocation2 + $0x148] sm:$0x1] }
 0x2cb   : > { %v11892_v27 = vrot.slane %v9335_v13, 1  ;;  %v5217_v36 = vrot.slane %v5005_v55, 2  ;;  %v1635_v20 = vmul.f32 %v8829_v52, %v7698_v0  ;;  %v1847_v48 = vmul.f32 %v12126_v45, %v1763_v38  ;;  %v3621_v61 = vld [vmem:[#allocation2 + $0x148] sm:$0x3]  ;;  %v4374_v38 = vld [vmem:[#allocation2 + $0x178] sm:$0x1] }
 0x2cc   : > { %6821 = vpow2.f32 %v5561_v6  ;;  %v3554_v42 = vadd.f32 %v3362_v44, %v3002_v28  ;;  %v11894_v11 = vrot.slane %v9340_v24, 2  ;;  %v2400_v25 = vmul.f32 %v12127_v41, %v2316_v47 }
 0x2cd   : > { %v6816_v59 = vpop.eup %6815  ;;  %v4667_v54 = vsel %vm2004_vm1, %v4665_v46, %v11892_v27  ;;  %v1699_v55 = vadd.f32 %v1635_v20, %v7724_v58  ;;  %v2063_v29 = vrot.slane %v1847_v48, 1  ;;  %v2941_v52 = vmul.f32 %v9034_v23, %v12153_v16 }
 0x2ce   : > { %v5791_v6 = vmul.f32 %v6816_v59, %v9168_v43  ;;  %v4106_v44 = vadd.f32 %v3914_v8, %v3554_v42  ;;  %v5219_v47 = vsel %vm2557_vm2, %v5217_v36, %v11894_v11  ;;  %v2616_v28 = vrot.slane %v2400_v25, 2 }
 0x2cf   : > { %v12235_v35 = vrot.slane %v9211_v32, 1  ;;  %v3153_v20 = vmul.f32 %v12227_v1, %v3069_v56  ;;  %v3705_v48 = vmul.f32 %v12183_v18, %v3621_v61  ;;  %v4246_v27 = vmul.f32 %v12208_v62, %v9248_v51 }
 0x2d0   : > { %v6818_v16 = vpop.eup %6817  ;;  %5983 = vmatmul.mubr.f32.gmra.mxu1 %v5791_v6  ;;  %v4307_v43 = vadd.f32 %v4243_v3, %v4106_v44  ;;  %v12236_v42 = vrot.slane %v9219_v7, 2  ;;  %v4458_v25 = vmul.f32 %v12188_v17, %v4374_v38  ;;  %v1634_v62 = vmul.f32 %v8903_v5, %v12131_v50  ;;  %v1762_v6 = vld [vmem:[#allocation2 + $0x110] sm:$0x1] }
 0x2d1   : > { %v2064_v46 = vsel %vm2004_vm1, %v12235_v35, %v2063_v29  ;;  %v5665_v32 = vadd.f32 1.0, %v6818_v16  ;;  %v3368_v59 = vrot.slane %v3153_v20, 1  ;;  %v3920_v35 = vrot.slane %v3705_v48, 2  ;;  %v2315_v3 = vld [vmem:[#allocation2 + $0x110] sm:$0x3] }
 0x2d2   : > { %v2252_v8 = vadd.f32 %v2064_v46, %v1699_v55  ;;  %v2617_v36 = vsel %vm2557_vm2, %v12236_v42, %v2616_v28  ;;  %v5010_v29 = vmul.f32 %v9157_v49, %v4926_v9  ;;  %v4859_v56 = vadd.f32 %v4667_v54, %v4307_v43  ;;  %v3068_v28 = vld [vmem:[#allocation2 + $0x140] sm:$0x1]  ;;  %v4373_v43 = vld [vmem:[#allocation2 + $0x170] sm:$0x1] }
 0x2d3   : > { %v4673_v11 = vrot.slane %v4458_v25, 1  ;;  %6823 = vrcp.f32 %v5665_v32  ;;  %v12237_v7 = vrot.slane %v9241_v22, 1  ;;  %v12238_v38 = vrot.slane %v9246_v26, 2  ;;  %v3620_v9 = vld [vmem:[#allocation2 + $0x140] sm:$0x3] }
 0x2d4   : > { %v2805_v61 = vadd.f32 %v2617_v36, %v2252_v8  ;;  %v5225_v44 = vrot.slane %v5010_v29, 2  ;;  %v9378_v54 = vadd.f32 %v5219_v47, %v4859_v56  ;;  %v12239_v20 = vrot.slane %v9260_v4, 1 }
 0x2d5   : > { %v3369_v55 = vsel %vm2004_vm1, %v12237_v7, %v3368_v59  ;;  %v3921_v16 = vsel %vm2557_vm2, %v12238_v38, %v3920_v35  ;;  %v1698_v48 = vadd.f32 %v1634_v62, %v12133_v63  ;;  %v12240_v22 = vrot.slane %v9270_v12, 2 }
 0x2d6   : > { %v3005_v46 = vadd.f32 %v2941_v52, %v2805_v61  ;;  %v4674_v5 = vsel %vm2004_vm1, %v12239_v20, %v4673_v11  ;;  %v1846_v26 = vmul.f32 %v12132_v10, %v1762_v6  ;;  %v2399_v42 = vmul.f32 %v12134_v53, %v2315_v3  ;;  %v4925_v6 = vld [vmem:[#allocation2 + $0x170] sm:$0x3] }
 0x2d7   : > { %v5226_v8 = vsel %vm2557_vm2, %v12240_v22, %v5225_v44  ;;  %v2940_v47 = vmul.f32 %v9103_v34, %v7770_v31  ;;  %v5475_v52 = vsub.f32 0.0, %v9378_v54  ;;  %v3152_v4 = vmul.f32 %v7812_v19, %v3068_v28  ;;  %v6820_v62 = vpop.eup %6819 }
 0x2d8   : > { %v3557_v36 = vadd.f32 %v3369_v55, %v3005_v46  ;;  %v3704_v11 = vmul.f32 %v7823_v33, %v3620_v9  ;;  %v2061_v25 = vrot.slane %v1846_v26, 1  ;;  %v2614_v32 = vrot.slane %v2399_v42, 2 }
 0x2d9   : > { %v9396_v12 = vmul.f32 %v7829_v39, %v9320_v30  ;;  %v4457_v59 = vmul.f32 %v7841_v2, %v4373_v43  ;;  %v5794_v35 = vmul.f32 %v6820_v62, %v9213_v57  ;;  %v5559_v29 = vmul.f32 1.442695, %v5475_v52  ;;  %v6822_v3 = vpop.eup %6821  ;;  %v1765_v43 = vld [vmem:[#allocation2 + $0x128] sm:$0xfe] }
 0x2da   : > { %v4109_v56 = vadd.f32 %v3921_v16, %v3557_v36  ;;  %v3366_v61 = vrot.slane %v3152_v4, 1  ;;  %v12241_v7 = vrot.slane %v9288_v15, 1  ;;  %v12242_v38 = vrot.slane %v9293_v60, 2  ;;  %v2318_v16 = vld [vmem:[#allocation2 + $0x128] sm:$0xfc] }
 0x2db   : > { %v3918_v28 = vrot.slane %v3704_v11, 2  ;;  %v4671_v9 = vrot.slane %v4457_v59, 1  ;;  %5987 = vmatprep.mubr.f32.mxu1 %v5794_v35  ;;  %v5668_v46 = vadd.f32 1.0, %v6822_v3  ;;  %6825 = vpow2.f32 %v5559_v29  ;;  %v3071_v59 = vld [vmem:[#allocation2 + $0x158] sm:$0xfe] }
 0x2dc   : > { %v2062_v55 = vsel %vm2004_vm1, %v12241_v7, %v2061_v25  ;;  %v2615_v44 = vsel %vm2557_vm2, %v12242_v38, %v2614_v32  ;;  %v4310_v20 = vadd.f32 %v4246_v27, %v4109_v56  ;;  %v12243_v22 = vrot.slane %v9302_v37, 1  ;;  %v12247_v7 = vld [vmem:[#allocation22_spill] sm:$0xff] }
 0x2dd   : > { %v2251_v57 = vadd.f32 %v2062_v55, %v1698_v48  ;;  %v12244_v15 = vrot.slane %v9312_v14, 2  ;;  %v12245_v60 = vrot.slane %v9335_v13, 1  ;;  %v5009_v36 = vmul.f32 %v9200_v21, %v4925_v6  ;;  %v12248_v55 = vld [vmem:[#allocation20_spill] sm:$0xff] }
 0x2de   : > { %v3367_v26 = vsel %vm2004_vm1, %v12243_v22, %v3366_v61  ;;  %6827 = vrcp.f32 %v5668_v46  ;;  %v4862_v4 = vadd.f32 %v4674_v5, %v4310_v20  ;;  %v1637_v48 = vmul.f32 %v12226_v40, %v7698_v0 }
 0x2df   : > { %v3919_v42 = vsel %vm2557_vm2, %v12244_v15, %v3918_v28  ;;  %v4672_v52 = vsel %vm2004_vm1, %v12245_v60, %v4671_v9  ;;  %v2804_v27 = vadd.f32 %v2615_v44, %v2251_v57  ;;  %v5223_v11 = vrot.slane %v5009_v36, 2  ;;  %v3623_v44 = vld [vmem:[#allocation2 + $0x158] sm:$0xfc]  ;;  %v12249_v28 = vld [vmem:[#allocation28_spill] sm:$0xff]  ;;  %v9448_v57 = vld [vmem:[#allocation2 + $0x188] sm:$0xff] }
 0x2e0   : > { %v1849_v37 = vmul.f32 %v12126_v45, %v1765_v43  ;;  %v9421_v14 = vmul.f32 %v9034_v23, %v12126_v45  ;;  %v2402_v62 = vmul.f32 %v12127_v41, %v2318_v16  ;;  %v9424_v13 = vadd.f32 %v5226_v8, %v4862_v4  ;;  %v6824_v6 = vpop.eup %6823  ;;  %12250 = vst [vmem:[#allocation29_spill] sm:$0xff] %v9448_v57  ;;  %v4376_v15 = vld [vmem:[#allocation2 + $0x188] sm:$0xfe] }
 0x2e1   : > { %v3004_v25 = vadd.f32 %v2940_v47, %v2804_v27  ;;  %v1701_v32 = vadd.f32 %v1637_v48, %v7724_v58  ;;  %v9429_v5 = vmul.f32 %v9034_v23, %v12127_v41  ;;  %v12246_v40 = vrot.slane %v9340_v24, 2  ;;  %v9459_v48 = vld [vmem:[#allocation2 + $0x198] sm:$0xff] }
 0x2e2   : > { %v2068_v29 = vrot.slane %v1849_v37, 1  ;;  %v11903_v56 = vrot.slane %v9421_v14, 1  ;;  %v2621_v61 = vrot.slane %v2402_v62, 2  ;;  %v5478_v8 = vsub.f32 0.0, %v9424_v13  ;;  %v12251_v62 = vld [vmem:[#allocation25_spill] sm:$0xff] }
 0x2e3   : > { %v5224_v35 = vsel %vm2557_vm2, %v12246_v40, %v5223_v11  ;;  %v3556_v3 = vadd.f32 %v3367_v26, %v3004_v25  ;;  %v11902_v47 = vrot.slane %v9429_v5, 2  ;;  %v2943_v38 = vmul.f32 %v12248_v55, %v12247_v7  ;;  %v4928_v11 = vld [vmem:[#allocation2 + $0x188] sm:$0xfc] }
 0x2e4   : > { %v5793_v9 = vmul.f32 %v6824_v6, %v12249_v28  ;;  %v2070_v24 = vsel %vm2004_vm1, %v2068_v29, %v11903_v56  ;;  %v3155_v46 = vmul.f32 %v12227_v1, %v3071_v59  ;;  %v9446_v20 = vmul.f32 %v9248_v51, %v12227_v1 }
 0x2e5   : > { %v5565_v43 = vmul.f32 1.442695, %v5478_v8  ;;  %v4108_v16 = vadd.f32 %v3919_v42, %v3556_v3  ;;  %v2254_v22 = vadd.f32 %v2070_v24, %v1701_v32  ;;  %v2623_v26 = vsel %vm2557_vm2, %v2621_v61, %v11902_v47  ;;  %v1764_v3 = vld [vmem:[#allocation2 + $0x120] sm:$0xfe] }
 0x2e6   : > { %5988 = vmatmul.mubr.f32.gmra.mxu1 %v5793_v9  ;;  %v3373_v60 = vrot.slane %v3155_v46, 1  ;;  %v11899_v36 = vrot.slane %v9446_v20, 1  ;;  %v3707_v4 = vmul.f32 %v12183_v18, %v3623_v44  ;;  %v9457_v27 = vmul.f32 %v9248_v51, %v12183_v18 }
 0x2e7   : > { %6829 = vpow2.f32 %v5565_v43  ;;  %v4309_v42 = vadd.f32 %v9396_v12, %v4108_v16  ;;  %v2807_v37 = vadd.f32 %v2623_v26, %v2254_v22  ;;  %v4248_v25 = vmul.f32 %v12251_v62, %v9448_v57 }
 0x2e8   : > { %v3375_v32 = vsel %vm2004_vm1, %v3373_v60, %v11899_v36  ;;  %v3925_v59 = vrot.slane %v3707_v4, 2  ;;  %v11898_v40 = vrot.slane %v9457_v27, 2  ;;  %v4460_v29 = vmul.f32 %v12188_v17, %v4376_v15  ;;  %v6826_v44 = vpop.eup %6825 }
 0x2e9   : > { %v4861_v61 = vadd.f32 %v4672_v52, %v4309_v42  ;;  %v3007_v6 = vadd.f32 %v2943_v38, %v2807_v37  ;;  %v9471_v8 = vmul.f32 %v12188_v17, %v9459_v48  ;;  %v5012_v12 = vmul.f32 %v9157_v49, %v4928_v11  ;;  %v12252_v52 = vld [vmem:[#allocation17_spill] sm:$0xff]  ;;  %v2317_v42 = vld [vmem:[#allocation2 + $0x120] sm:$0xfc]  ;;  %v12254_v37 = vld [vmem:[#allocation18_spill] sm:$0xff] }
 0x2ea   : > { %v3927_v28 = vsel %vm2557_vm2, %v3925_v59, %v11898_v40  ;;  %v4678_v9 = vrot.slane %v4460_v29, 1  ;;  %v9479_v24 = vmul.f32 %v9157_v49, %v9459_v48  ;;  %v1636_v38 = vmul.f32 %v12252_v52, %v12131_v50 }
 0x2eb   : > { %v5667_v46 = vadd.f32 1.0, %v6826_v44  ;;  %v9483_v43 = vadd.f32 %v5224_v35, %v4861_v61  ;;  %v3559_v16 = vadd.f32 %v3375_v32, %v3007_v6  ;;  %v11897_v22 = vrot.slane %v9471_v8, 1  ;;  %v6828_v26 = vpop.eup %6827  ;;  %v3070_v35 = vld [vmem:[#allocation2 + $0x150] sm:$0xfe] }
 0x2ec   : > { %v5230_v15 = vrot.slane %v5012_v12, 2  ;;  %v11896_v60 = vrot.slane %v9479_v24, 2  ;;  %v1700_v4 = vadd.f32 %v1636_v38, %v12133_v63  ;;  %v1848_v11 = vmul.f32 %v12132_v10, %v1764_v3 }
 0x2ed   : > { %12253 = vst [vmem:[#allocation23_spill] sm:$0xff] %v9483_v43  ;;  %v5796_v59 = vmul.f32 %v6828_v26, %v12254_v37  ;;  %6831 = vrcp.f32 %v5667_v46  ;;  %v5477_v29 = vsub.f32 0.0, %v9483_v43  ;;  %v4111_v44 = vadd.f32 %v3927_v28, %v3559_v16  ;;  %v3622_v46 = vld [vmem:[#allocation2 + $0x150] sm:$0xfc]  ;;  %v12255_v16 = vld [vmem:[#allocation21_spill] sm:$0xff] }
 0x2ee   : > { %v4680_v32 = vsel %vm2004_vm1, %v4678_v9, %v11897_v22  ;;  %v5232_v61 = vsel %vm2557_vm2, %v5230_v15, %v11896_v60  ;;  %v9499_v6 = vmul.f32 %v9103_v34, %v12132_v10  ;;  %v2065_v12 = vrot.slane %v1848_v11, 1 }
 0x2ef   : > { %5992 = vmatprep.mubr.f32.mxu1 %v5796_v59  ;;  %v5563_v3 = vmul.f32 1.442695, %v5477_v29  ;;  %v4312_v52 = vadd.f32 %v4248_v25, %v4111_v44  ;;  %v2401_v38 = vmul.f32 %v12134_v53, %v2317_v42  ;;  %v9504_v28 = vmul.f32 %v9103_v34, %v12134_v53  ;;  %v9515_v59 = vld [vmem:[#allocation2 + $0x180] sm:$0xff] }
 0x2f0   : > { %v11901_v9 = vrot.slane %v9499_v6, 1  ;;  %v2942_v26 = vmul.f32 %v12255_v16, %v7770_v31  ;;  %v3154_v15 = vmul.f32 %v7812_v19, %v3070_v35  ;;  %v9512_v11 = vmul.f32 %v9320_v30, %v7812_v19  ;;  %12256 = vst [vmem:[#allocation27_spill] sm:$0xff] %v9515_v59  ;;  %v4375_v29 = vld [vmem:[#allocation2 + $0x180] sm:$0xfe] }
 0x2f1   : > { %6833 = vpow2.f32 %v5563_v3  ;;  %v4864_v25 = vadd.f32 %v4680_v32, %v4312_v52  ;;  %v2618_v37 = vrot.slane %v2401_v38, 2  ;;  %v11900_v42 = vrot.slane %v9504_v28, 2  ;;  %v9531_v52 = vld [vmem:[#allocation2 + $0x190] sm:$0xff]  ;;  %v4927_v38 = vld [vmem:[#allocation2 + $0x180] sm:$0xfc] }
 0x2f2   : > { %v2067_v44 = vsel %vm2004_vm1, %v2065_v12, %v11901_v9  ;;  %v3370_v60 = vrot.slane %v3154_v15, 1  ;;  %v11904_v22 = vrot.slane %v9512_v11, 1  ;;  %v3706_v35 = vmul.f32 %v7823_v33, %v3622_v46 }
 0x2f3   : > { %v9522_v40 = vadd.f32 %v5232_v61, %v4864_v25  ;;  %v2253_v36 = vadd.f32 %v2067_v44, %v1700_v4  ;;  %v2620_v32 = vsel %vm2557_vm2, %v2618_v37, %v11900_v42  ;;  %v9529_v3 = vmul.f32 %v9320_v30, %v7823_v33 }
 0x2f4   : > { %v6830_v12 = vpop.eup %6829  ;;  %v3372_v15 = vsel %vm2004_vm1, %v3370_v60, %v11904_v22  ;;  %v3922_v46 = vrot.slane %v3706_v35, 2  ;;  %v4247_v4 = vmul.f32 %v7829_v39, %v9515_v59  ;;  %v4459_v61 = vmul.f32 %v7841_v2, %v4375_v29  ;;  %v1767_v35 = vld [vmem:[#allocation2 + $0x148] sm:$0x1] }
 0x2f5   : > { %12257 = vst [vmem:[#allocation16_spill] sm:$0xff] %v9522_v40  ;;  %v5670_v25 = vadd.f32 1.0, %v6830_v12  ;;  %v5480_v37 = vsub.f32 0.0, %v9522_v40  ;;  %v2806_v44 = vadd.f32 %v2620_v32, %v2253_v36  ;;  %v11909_v42 = vrot.slane %v9529_v3, 2  ;;  %v2320_v22 = vld [vmem:[#allocation2 + $0x148] sm:$0x3] }
 0x2f6   : > { %v9543_v9 = vmul.f32 %v7841_v2, %v9531_v52  ;;  %v4675_v47 = vrot.slane %v4459_v61, 1  ;;  %v5011_v56 = vmul.f32 %v9200_v21, %v4927_v38  ;;  %v9548_v60 = vmul.f32 %v9200_v21, %v9531_v52 }
 0x2f7   : > { %6835 = vrcp.f32 %v5670_v25  ;;  %v5569_v29 = vmul.f32 1.442695, %v5480_v37  ;;  %v3006_v12 = vadd.f32 %v2942_v26, %v2806_v44  ;;  %v3924_v36 = vsel %vm2557_vm2, %v3922_v46, %v11909_v42  ;;  %v3073_v37 = vld [vmem:[#allocation2 + $0x178] sm:$0x1]  ;;  %v4378_v44 = vld [vmem:[#allocation2 + $0x1a8] sm:$0x1] }
 0x2f8   : > { %v11914_v32 = vrot.slane %v9543_v9, 1  ;;  %v5227_v59 = vrot.slane %v5011_v56, 2  ;;  %v11913_v61 = vrot.slane %v9548_v60, 2  ;;  %v1639_v38 = vmul.f32 %v9034_v23, %v7698_v0  ;;  %v3625_v26 = vld [vmem:[#allocation2 + $0x178] sm:$0x3] }
 0x2f9   : > { %6837 = vpow2.f32 %v5569_v29  ;;  %v3558_v40 = vadd.f32 %v3372_v15, %v3006_v12  ;;  %v1853_v16 = vmul.f32 %v12126_v45, %v1767_v35  ;;  %v2406_v25 = vmul.f32 %v12127_v41, %v2320_v22  ;;  %v4930_v35 = vld [vmem:[#allocation2 + $0x1a8] sm:$0x3] }
 0x2fa   : > { %v6832_v43 = vpop.eup %6831  ;;  %v4677_v46 = vsel %vm2004_vm1, %v4675_v47, %v11914_v32  ;;  %v5229_v56 = vsel %vm2557_vm2, %v5227_v59, %v11913_v61  ;;  %v1703_v23 = vadd.f32 %v1639_v38, %v7724_v58  ;;  %v2945_v15 = vmul.f32 %v9248_v51, %v12247_v7 }
 0x2fb   : > { %v5795_v22 = vmul.f32 %v6832_v43, %v9378_v54  ;;  %v4110_v29 = vadd.f32 %v3924_v36, %v3558_v40  ;;  %v2073_v12 = vrot.slane %v1853_v16, 1  ;;  %v2626_v42 = vrot.slane %v2406_v25, 2 }
 0x2fc   : > { %v3159_v57 = vmul.f32 %v12227_v1, %v3073_v37  ;;  %v3711_v41 = vmul.f32 %v12183_v18, %v3625_v26  ;;  %v4250_v47 = vmul.f32 %v12251_v62, %v9459_v48  ;;  %v4464_v59 = vmul.f32 %v12188_v17, %v4378_v44 }
 0x2fd   : > { %5993 = vmatmul.mubr.f32.gmra.mxu1 %v5795_v22  ;;  %v4311_v38 = vadd.f32 %v4247_v4, %v4110_v29  ;;  %v12258_v61 = vrot.slane %v9421_v14, 1  ;;  %v12259_v54 = vrot.slane %v9429_v5, 2  ;;  %v5016_v43 = vmul.f32 %v9157_v49, %v4930_v35  ;;  %v1766_v14 = vld [vmem:[#allocation2 + $0x140] sm:$0x1] }
 0x2fe   : > { %v6834_v16 = vpop.eup %6833  ;;  %v3378_v25 = vrot.slane %v3159_v57, 1  ;;  %v3930_v37 = vrot.slane %v3711_v41, 2  ;;  %v4683_v26 = vrot.slane %v4464_v59, 1  ;;  %v1638_v4 = vmul.f32 %v9103_v34, %v12131_v50  ;;  %v2319_v22 = vld [vmem:[#allocation2 + $0x140] sm:$0x3] }
 0x2ff   : > { %v2074_v32 = vsel %vm2004_vm1, %v12258_v61, %v2073_v12  ;;  %v2627_v40 = vsel %vm2557_vm2, %v12259_v54, %v2626_v42  ;;  %v5669_v62 = vadd.f32 1.0, %v6834_v16  ;;  %v4863_v18 = vadd.f32 %v4677_v46, %v4311_v38  ;;  %v3072_v46 = vld [vmem:[#allocation2 + $0x170] sm:$0x1]  ;;  %v4377_v12 = vld [vmem:[#allocation2 + $0x1a0] sm:$0x1] }
 0x300   : > { %v2256_v36 = vadd.f32 %v2074_v32, %v1703_v23  ;;  %v5235_v44 = vrot.slane %v5016_v43, 2  ;;  %v12260_v5 = vrot.slane %v9446_v20, 1  ;;  %v12261_v49 = vrot.slane %v9457_v27, 2  ;;  %v3624_v23 = vld [vmem:[#allocation2 + $0x170] sm:$0x3] }
 0x301   : > { %v12262_v41 = vrot.slane %v9471_v8, 1  ;;  %6839 = vrcp.f32 %v5669_v62  ;;  %v9592_v35 = vadd.f32 %v5229_v56, %v4863_v18  ;;  %v12263_v34 = vrot.slane %v9479_v24, 2 }
 0x302   : > { %v2809_v61 = vadd.f32 %v2627_v40, %v2256_v36  ;;  %v3379_v42 = vsel %vm2004_vm1, %v12260_v5, %v3378_v25  ;;  %v3931_v32 = vsel %vm2557_vm2, %v12261_v49, %v3930_v37  ;;  %v1702_v20 = vadd.f32 %v1638_v4, %v12133_v63 }
 0x303   : > { %v4684_v57 = vsel %vm2004_vm1, %v12262_v41, %v4683_v26  ;;  %v5236_v29 = vsel %vm2557_vm2, %v12263_v34, %v5235_v44  ;;  %v1852_v27 = vmul.f32 %v12132_v10, %v1766_v14  ;;  %v2405_v38 = vmul.f32 %v12134_v53, %v2319_v22  ;;  %v4929_v44 = vld [vmem:[#allocation2 + $0x1a0] sm:$0x3]  ;;  %v1769_v41 = vld [vmem:[#allocation2 + $0x158] sm:$0xfe] }
 0x304   : > { %v3009_v59 = vadd.f32 %v2945_v15, %v2809_v61  ;;  %v2944_v8 = vmul.f32 %v9320_v30, %v7770_v31  ;;  %v5479_v54 = vsub.f32 0.0, %v9592_v35  ;;  %v3158_v18 = vmul.f32 %v7812_v19, %v3072_v46  ;;  %v6836_v56 = vpop.eup %6835 }
 0x305   : > { %v3710_v62 = vmul.f32 %v7823_v33, %v3624_v23  ;;  %v9607_v24 = vmul.f32 %v7829_v39, %v9531_v52  ;;  %v2071_v15 = vrot.slane %v1852_v27, 1  ;;  %v2624_v43 = vrot.slane %v2405_v38, 2 }
 0x306   : > { %v3561_v40 = vadd.f32 %v3379_v42, %v3009_v59  ;;  %v4463_v16 = vmul.f32 %v7841_v2, %v4377_v12  ;;  %v5798_v36 = vmul.f32 %v6836_v56, %v9424_v13  ;;  %v5567_v25 = vmul.f32 1.442695, %v5479_v54  ;;  %v6838_v4 = vpop.eup %6837  ;;  %v2322_v12 = vld [vmem:[#allocation2 + $0x158] sm:$0xfc] }
 0x307   : > { %v3376_v37 = vrot.slane %v3158_v18, 1  ;;  %v3928_v26 = vrot.slane %v3710_v62, 2  ;;  %v12264_v22 = vrot.slane %v9499_v6, 1  ;;  %v12265_v5 = vrot.slane %v9504_v28, 2 }
 0x308   : > { %v4113_v14 = vadd.f32 %v3931_v32, %v3561_v40  ;;  %v4681_v49 = vrot.slane %v4463_v16, 1  ;;  %5997 = vmatprep.mubr.f32.mxu1 %v5798_v36  ;;  %v5672_v46 = vadd.f32 1.0, %v6838_v4  ;;  %6841 = vpow2.f32 %v5567_v25 }
 0x309   : > { %v2072_v61 = vsel %vm2004_vm1, %v12264_v22, %v2071_v15  ;;  %v2625_v42 = vsel %vm2557_vm2, %v12265_v5, %v2624_v43  ;;  %v12266_v23 = vrot.slane %v9512_v11, 1  ;;  %v12267_v6 = vrot.slane %v9529_v3, 2  ;;  %v12272_v5 = vld [vmem:[#allocation24_spill] sm:$0xff] }
 0x30a   : > { %v2255_v13 = vadd.f32 %v2072_v61, %v1702_v20  ;;  %v4314_v32 = vadd.f32 %v4250_v47, %v4113_v14  ;;  %v12268_v28 = vrot.slane %v9543_v9, 1  ;;  %v5015_v38 = vmul.f32 %v9200_v21, %v4929_v44  ;;  %v12269_v47 = vld [vmem:[#allocation19_spill] sm:$0xff]  ;;  %v3075_v9 = vld [vmem:[#allocation2 + $0x188] sm:$0xfe] }
 0x30b   : > { %v3377_v34 = vsel %vm2004_vm1, %v12266_v23, %v3376_v37  ;;  %v3929_v59 = vsel %vm2557_vm2, %v12267_v6, %v3928_v26  ;;  %6843 = vrcp.f32 %v5672_v46  ;;  %v1641_v20 = vmul.f32 %v12248_v55, %v7698_v0  ;;  %v3627_v55 = vld [vmem:[#allocation2 + $0x188] sm:$0xfc] }
 0x30c   : > { %v4682_v27 = vsel %vm2004_vm1, %v12268_v28, %v4681_v49  ;;  %v2808_v54 = vadd.f32 %v2625_v42, %v2255_v13  ;;  %v1855_v11 = vmul.f32 %v12126_v45, %v1769_v41  ;;  %v4866_v18 = vadd.f32 %v4684_v57, %v4314_v32  ;;  %v12271_v44 = vld [vmem:[#allocation29_spill] sm:$0xff]  ;;  %v9659_v49 = vld [vmem:[#allocation2 + $0x1b8] sm:$0xff] }
 0x30d   : > { %v5233_v62 = vrot.slane %v5015_v38, 2  ;;  %v9632_v3 = vmul.f32 %v9248_v51, %v12126_v45  ;;  %v2408_v56 = vmul.f32 %v12269_v47, %v2322_v12  ;;  %v1705_v15 = vadd.f32 %v1641_v20, %v7724_v58  ;;  %12273 = vst [vmem:[#allocation20_spill] sm:$0xff] %v9659_v49  ;;  %v12274_v41 = vld [vmem:[#allocation23_spill] sm:$0xff]  ;;  %v9670_v20 = vld [vmem:[#allocation2 + $0x1c8] sm:$0xff] }
 0x30e   : > { %v3008_v40 = vadd.f32 %v2944_v8, %v2808_v54  ;;  %v2078_v21 = vrot.slane %v1855_v11, 1  ;;  %v9638_v43 = vmul.f32 %v9248_v51, %v12269_v47  ;;  %v9640_v16 = vadd.f32 %v5236_v29, %v4866_v18  ;;  %v6840_v22 = vpop.eup %6839  ;;  %v4380_v12 = vld [vmem:[#allocation2 + $0x1b8] sm:$0xfe] }
 0x30f   : > { %v12270_v57 = vrot.slane %v9548_v60, 2  ;;  %v11925_v25 = vrot.slane %v9632_v3, 1  ;;  %v2631_v37 = vrot.slane %v2408_v56, 2  ;;  %v2947_v4 = vmul.f32 %v12271_v44, %v12247_v7  ;;  %v4932_v32 = vld [vmem:[#allocation2 + $0x1b8] sm:$0xfc] }
 0x310   : > { %v3560_v26 = vadd.f32 %v3377_v34, %v3008_v40  ;;  %v11923_v8 = vrot.slane %v9638_v43, 2  ;;  %v3161_v14 = vmul.f32 %v12227_v1, %v3075_v9  ;;  %v5482_v61 = vsub.f32 0.0, %v9640_v16 }
 0x311   : > { %v5234_v36 = vsel %vm2557_vm2, %v12270_v57, %v5233_v62  ;;  %v2080_v60 = vsel %vm2004_vm1, %v2078_v21, %v11925_v25  ;;  %v9656_v29 = vmul.f32 %v9459_v48, %v12227_v1  ;;  %v3713_v42 = vmul.f32 %v12272_v5, %v3627_v55  ;;  %v12275_v62 = vld [vmem:[#allocation25_spill] sm:$0xff] }
 0x312   : > { %v5797_v46 = vmul.f32 %v6840_v22, %v12274_v41  ;;  %v4112_v13 = vadd.f32 %v3929_v59, %v3560_v26  ;;  %v2258_v23 = vadd.f32 %v2080_v60, %v1705_v15  ;;  %v2633_v34 = vsel %vm2557_vm2, %v2631_v37, %v11923_v8  ;;  %v1768_v26 = vld [vmem:[#allocation2 + $0x150] sm:$0xfe]  ;;  %v9758_v8 = vld [vmem:[#allocation8 + $0x10] ss:$0 sm:$0xff] }
 0x313   : > { %v5573_v6 = vmul.f32 1.442695, %v5482_v61  ;;  %v3383_v28 = vrot.slane %v3161_v14, 1  ;;  %v11922_v38 = vrot.slane %v9656_v29, 1  ;;  %v9668_v54 = vmul.f32 %v9459_v48, %v12272_v5 }
 0x314   : > { %5998 = vmatmul.mubr.f32.gmra.mxu1 %v5797_v46  ;;  %v4313_v59 = vadd.f32 %v9607_v24, %v4112_v13  ;;  %v2811_v11 = vadd.f32 %v2633_v34, %v2258_v23  ;;  %v3935_v18 = vrot.slane %v3713_v42, 2  ;;  %v4252_v56 = vmul.f32 %v12275_v62, %v9659_v49  ;;  %v9684_v24 = vld [vmem:[#allocation8 + $0x18] ss:$0 sm:$0xff] }
 0x315   : > { %6845 = vpow2.f32 %v5573_v6  ;;  %v3385_v9 = vsel %vm2004_vm1, %v3383_v28, %v11922_v38  ;;  %v11919_v40 = vrot.slane %v9668_v54, 2  ;;  %v4466_v15 = vmul.f32 %v12188_v17, %v4380_v12  ;;  %v6842_v14 = vpop.eup %6841  ;;  %v2321_v28 = vld [vmem:[#allocation2 + $0x150] sm:$0xfc] }
 0x316   : > { %v4865_v21 = vadd.f32 %v4682_v27, %v4313_v59  ;;  %v3011_v55 = vadd.f32 %v2947_v4, %v2811_v11  ;;  %v9682_v57 = vmul.f32 %v12188_v17, %v9670_v20  ;;  %v5018_v37 = vmul.f32 %v9684_v24, %v4932_v32  ;;  %v12276_v27 = vld [vmem:[#allocation21_spill] sm:$0xff]  ;;  %v12278_v59 = vld [vmem:[#allocation16_spill] sm:$0xff] }
 0x317   : > { %v3937_v22 = vsel %vm2557_vm2, %v3935_v18, %v11919_v40  ;;  %v4688_v61 = vrot.slane %v4466_v15, 1  ;;  %v9692_v60 = vmul.f32 %v9684_v24, %v9670_v20  ;;  %v1640_v4 = vmul.f32 %v12276_v27, %v12131_v50 }
 0x318   : > { %v5671_v42 = vadd.f32 1.0, %v6842_v14  ;;  %v9696_v41 = vadd.f32 %v5234_v36, %v4865_v21  ;;  %v3563_v46 = vadd.f32 %v3385_v9, %v3011_v55  ;;  %v11918_v13 = vrot.slane %v9682_v57, 1  ;;  %v6844_v23 = vpop.eup %6843  ;;  %v3074_v36 = vld [vmem:[#allocation2 + $0x180] sm:$0xfe] }
 0x319   : > { %v5240_v34 = vrot.slane %v5018_v37, 2  ;;  %v11917_v12 = vrot.slane %v9692_v60, 2  ;;  %v1704_v32 = vadd.f32 %v1640_v4, %v12133_v63  ;;  %v1854_v6 = vmul.f32 %v12132_v10, %v1768_v26  ;;  %v3626_v4 = vld [vmem:[#allocation2 + $0x180] sm:$0xfc] }
 0x31a   : > { %12277 = vst [vmem:[#allocation28_spill] sm:$0xff] %v9696_v41  ;;  %v5800_v11 = vmul.f32 %v6844_v23, %v12278_v59  ;;  %6847 = vrcp.f32 %v5671_v42  ;;  %v5481_v18 = vsub.f32 0.0, %v9696_v41  ;;  %v4115_v15 = vadd.f32 %v3937_v22, %v3563_v46  ;;  %v12279_v42 = vld [vmem:[#allocation27_spill] sm:$0xff]  ;;  %v9728_v59 = vld [vmem:[#allocation2 + $0x1b0] sm:$0xff] }
 0x31b   : > { %v4690_v9 = vsel %vm2004_vm1, %v4688_v61, %v11918_v13  ;;  %v5242_v21 = vsel %vm2557_vm2, %v5240_v34, %v11917_v12  ;;  %v9712_v55 = vmul.f32 %v9320_v30, %v12132_v10  ;;  %v2075_v37 = vrot.slane %v1854_v6, 1  ;;  %12280 = vst [vmem:[#allocation17_spill] sm:$0xff] %v9728_v59  ;;  %v9735_v13 = vld [vmem:[#allocation2 + $0x1c0] sm:$0xff] }
 0x31c   : > { %6002 = vmatprep.mubr.f32.mxu1 %v5800_v11  ;;  %v5571_v26 = vmul.f32 1.442695, %v5481_v18  ;;  %v4316_v14 = vadd.f32 %v4252_v56, %v4115_v15  ;;  %v2407_v27 = vmul.f32 %v12134_v53, %v2321_v28  ;;  %v9717_v22 = vmul.f32 %v9320_v30, %v12134_v53  ;;  %v4379_v11 = vld [vmem:[#allocation2 + $0x1b0] sm:$0xfe] }
 0x31d   : > { %v11921_v61 = vrot.slane %v9712_v55, 1  ;;  %v2946_v46 = vmul.f32 %v12279_v42, %v7770_v31  ;;  %v3160_v23 = vmul.f32 %v7812_v19, %v3074_v36  ;;  %v9725_v34 = vmul.f32 %v9531_v52, %v7812_v19 }
 0x31e   : > { %6849 = vpow2.f32 %v5571_v26  ;;  %v4868_v56 = vadd.f32 %v4690_v9, %v4316_v14  ;;  %v2628_v6 = vrot.slane %v2407_v27, 2  ;;  %v11920_v28 = vrot.slane %v9717_v22, 2  ;;  %v4931_v27 = vld [vmem:[#allocation2 + $0x1b0] sm:$0xfc] }
 0x31f   : > { %v2077_v18 = vsel %vm2004_vm1, %v2075_v37, %v11921_v61  ;;  %v3380_v15 = vrot.slane %v3160_v23, 1  ;;  %v11924_v12 = vrot.slane %v9725_v34, 1  ;;  %v3712_v36 = vmul.f32 %v7823_v33, %v3626_v4 }
 0x320   : > { %v9737_v40 = vadd.f32 %v5242_v21, %v4868_v56  ;;  %v2257_v9 = vadd.f32 %v2077_v18, %v1704_v32  ;;  %v2630_v26 = vsel %vm2557_vm2, %v2628_v6, %v11920_v28  ;;  %v9744_v14 = vmul.f32 %v9531_v52, %v7823_v33 }
 0x321   : > { %v3382_v37 = vsel %vm2004_vm1, %v3380_v15, %v11924_v12  ;;  %v3932_v23 = vrot.slane %v3712_v36, 2  ;;  %v4251_v4 = vmul.f32 %v7829_v39, %v9728_v59  ;;  %v4465_v21 = vmul.f32 %v7841_v2, %v4379_v11  ;;  %v1771_v11 = vld [vmem:[#allocation2 + $0x178] sm:$0x1] }
 0x322   : > { %12281 = vst [vmem:[#allocation18_spill] sm:$0xff] %v9737_v40  ;;  %v6846_v32 = vpop.eup %6845  ;;  %v5484_v56 = vsub.f32 0.0, %v9737_v40  ;;  %v2810_v18 = vadd.f32 %v2630_v26, %v2257_v9  ;;  %v11929_v6 = vrot.slane %v9744_v14, 2  ;;  %v9756_v28 = vmul.f32 %v7841_v2, %v9735_v13  ;;  %v2324_v59 = vld [vmem:[#allocation2 + $0x178] sm:$0x3] }
 0x323   : > { %v5674_v61 = vadd.f32 1.0, %v6846_v32  ;;  %v4685_v38 = vrot.slane %v4465_v21, 1  ;;  %v5017_v15 = vmul.f32 %v9758_v8, %v4931_v27  ;;  %v9763_v36 = vmul.f32 %v9758_v8, %v9735_v13  ;;  %v3077_v40 = vld [vmem:[#allocation2 + $0x1a8] sm:$0x1] }
 0x324   : > { %v5577_v12 = vmul.f32 1.442695, %v5484_v56  ;;  %v3010_v25 = vadd.f32 %v2946_v46, %v2810_v18  ;;  %v3934_v9 = vsel %vm2557_vm2, %v3932_v23, %v11929_v6  ;;  %v11930_v26 = vrot.slane %v9756_v28, 1  ;;  %v3629_v23 = vld [vmem:[#allocation2 + $0x1a8] sm:$0x3] }
 0x325   : > { %12282 = vst [vmem:[#allocation29_spill] sm:$0xff] %v9763_v36  ;;  %6851 = vrcp.f32 %v5674_v61  ;;  %v5237_v21 = vrot.slane %v5017_v15, 2  ;;  %v11934_v32 = vrot.slane %v9763_v36, 2  ;;  %v1643_v27 = vmul.f32 %v9248_v51, %v7698_v0  ;;  %v4382_v18 = vld [vmem:[#allocation2 + $0x1d8] sm:$0x1] }
 0x326   : > { %6853 = vpow2.f32 %v5577_v12  ;;  %v3562_v42 = vadd.f32 %v3382_v37, %v3010_v25  ;;  %v4687_v46 = vsel %vm2004_vm1, %v4685_v38, %v11930_v26  ;;  %v1859_v56 = vmul.f32 %v12126_v45, %v1771_v11  ;;  %v4934_v12 = vld [vmem:[#allocation2 + $0x1d8] sm:$0x3] }
 0x327   : > { %v6848_v6 = vpop.eup %6847  ;;  %v5239_v61 = vsel %vm2557_vm2, %v5237_v21, %v11934_v32  ;;  %v1707_v15 = vadd.f32 %v1643_v27, %v7724_v58  ;;  %v2412_v51 = vmul.f32 %v12269_v47, %v2324_v59  ;;  %v2949_v25 = vmul.f32 %v9459_v48, %v12247_v7 }
 0x328   : > { %v5799_v37 = vmul.f32 %v6848_v6, %v9592_v35  ;;  %v4114_v38 = vadd.f32 %v3934_v9, %v3562_v42  ;;  %v2083_v26 = vrot.slane %v1859_v56, 1  ;;  %v3165_v11 = vmul.f32 %v12227_v1, %v3077_v40 }
 0x329   : > { %v2636_v41 = vrot.slane %v2412_v51, 2  ;;  %v3717_v49 = vmul.f32 %v12272_v5, %v3629_v23  ;;  %v4254_v21 = vmul.f32 %v12275_v62, %v9670_v20  ;;  %v4470_v27 = vmul.f32 %v12188_v17, %v4382_v18  ;;  %v1770_v51 = vld [vmem:[#allocation2 + $0x170] sm:$0x1] }
 0x32a   : > { %6003 = vmatmul.mubr.f32.gmra.mxu1 %v5799_v37  ;;  %v4315_v59 = vadd.f32 %v4251_v4, %v4114_v38  ;;  %v12283_v32 = vrot.slane %v9632_v3, 1  ;;  %v3388_v36 = vrot.slane %v3165_v11, 1  ;;  %v5022_v35 = vmul.f32 %v9684_v24, %v4934_v12  ;;  %v4381_v11 = vld [vmem:[#allocation2 + $0x1d0] sm:$0x1] }
 0x32b   : > { %v6850_v42 = vpop.eup %6849  ;;  %v12284_v40 = vrot.slane %v9638_v43, 2  ;;  %v3940_v56 = vrot.slane %v3717_v49, 2  ;;  %v4693_v23 = vrot.slane %v4470_v27, 1  ;;  %v12285_v4 = vrot.slane %v9656_v29, 1 }
 0x32c   : > { %v2084_v7 = vsel %vm2004_vm1, %v12283_v32, %v2083_v26  ;;  %v5673_v62 = vadd.f32 1.0, %v6850_v42  ;;  %v4867_v18 = vadd.f32 %v4687_v46, %v4315_v59  ;;  %v5245_v37 = vrot.slane %v5022_v35, 2  ;;  %v2323_v26 = vld [vmem:[#allocation2 + $0x170] sm:$0x3]  ;;  %v3628_v46 = vld [vmem:[#allocation2 + $0x1a0] sm:$0x3] }
 0x32d   : > { %v2260_v6 = vadd.f32 %v2084_v7, %v1707_v15  ;;  %v2637_v9 = vsel %vm2557_vm2, %v12284_v40, %v2636_v41  ;;  %v3389_v3 = vsel %vm2004_vm1, %v12285_v4, %v3388_v36  ;;  %v12286_v12 = vrot.slane %v9668_v54, 2  ;;  %v3076_v15 = vld [vmem:[#allocation2 + $0x1a0] sm:$0x1] }
 0x32e   : > { %v12287_v43 = vrot.slane %v9682_v57, 1  ;;  %v1642_v49 = vmul.f32 %v9320_v30, %v12131_v50  ;;  %6855 = vrcp.f32 %v5673_v62  ;;  %v9807_v29 = vadd.f32 %v5239_v61, %v4867_v18 }
 0x32f   : > { %v2813_v32 = vadd.f32 %v2637_v9, %v2260_v6  ;;  %v3941_v7 = vsel %vm2557_vm2, %v12286_v12, %v3940_v56  ;;  %v12288_v36 = vrot.slane %v9692_v60, 2  ;;  %v1858_v54 = vmul.f32 %v12132_v10, %v1770_v51 }
 0x330   : > { %v4694_v41 = vsel %vm2004_vm1, %v12287_v43, %v4693_v23  ;;  %v1706_v57 = vadd.f32 %v1642_v49, %v12133_v63  ;;  %v2411_v59 = vmul.f32 %v12134_v53, %v2323_v26  ;;  %v2948_v30 = vmul.f32 %v9531_v52, %v7770_v31 }
 0x331   : > { %v5246_v38 = vsel %vm2557_vm2, %v12288_v36, %v5245_v37  ;;  %v3013_v27 = vadd.f32 %v2949_v25, %v2813_v32  ;;  %v5483_v35 = vsub.f32 0.0, %v9807_v29  ;;  %v2081_v62 = vrot.slane %v1858_v54, 1  ;;  %v4933_v37 = vld [vmem:[#allocation2 + $0x1d0] sm:$0x3] }
 0x332   : > { %v3164_v61 = vmul.f32 %v7812_v19, %v3076_v15  ;;  %v3716_v60 = vmul.f32 %v7823_v33, %v3628_v46  ;;  %v2634_v6 = vrot.slane %v2411_v59, 2  ;;  %v4253_v40 = vmul.f32 %v7829_v39, %v9735_v13  ;;  %v6852_v9 = vpop.eup %6851  ;;  %v1773_v15 = vld [vmem:[#allocation2 + $0x188] sm:$0xfe] }
 0x333   : > { %v3565_v42 = vadd.f32 %v3389_v3, %v3013_v27  ;;  %v4469_v25 = vmul.f32 %v7841_v2, %v4381_v11  ;;  %v5575_v56 = vmul.f32 1.442695, %v5483_v35  ;;  %v12289_v23 = vrot.slane %v9712_v55, 1  ;;  %v6854_v26 = vpop.eup %6853 }
 0x334   : > { %v3386_v18 = vrot.slane %v3164_v61, 1  ;;  %v3938_v4 = vrot.slane %v3716_v60, 2  ;;  %v5802_v32 = vmul.f32 %v6852_v9, %v9640_v16  ;;  %v12290_v43 = vrot.slane %v9717_v22, 2  ;;  %v2326_v22 = vld [vmem:[#allocation2 + $0x188] sm:$0xfc] }
 0x335   : > { %v2082_v51 = vsel %vm2004_vm1, %v12289_v23, %v2081_v62  ;;  %v4117_v12 = vadd.f32 %v3941_v7, %v3565_v42  ;;  %v5676_v46 = vadd.f32 1.0, %v6854_v26  ;;  %6857 = vpow2.f32 %v5575_v56  ;;  %v3079_v42 = vld [vmem:[#allocation2 + $0x1b8] sm:$0xfe]  ;;  %v12296_v26 = vld [vmem:[#allocation22_spill] sm:$0xff] }
 0x336   : > { %v2259_v3 = vadd.f32 %v2082_v51, %v1706_v57  ;;  %v2635_v49 = vsel %vm2557_vm2, %v12290_v43, %v2634_v6  ;;  %v12291_v36 = vrot.slane %v9725_v34, 1  ;;  %v12292_v54 = vrot.slane %v9744_v14, 2  ;;  %6007 = vmatprep.mubr.f32.mxu1 %v5802_v32  ;;  %v12294_v51 = vld [vmem:[#allocation29_spill] sm:$0xff]  ;;  %v12297_v32 = vld [vmem:[#allocation20_spill] sm:$0xff] }
 0x337   : > { %v4318_v27 = vadd.f32 %v4254_v21, %v4117_v12  ;;  %v4691_v7 = vrot.slane %v4469_v25, 1  ;;  %v5021_v57 = vmul.f32 %v9758_v8, %v4933_v37  ;;  %6859 = vrcp.f32 %v5676_v46 }
 0x338   : > { %v3387_v55 = vsel %vm2004_vm1, %v12291_v36, %v3386_v18  ;;  %v3939_v11 = vsel %vm2557_vm2, %v12292_v54, %v3938_v4  ;;  %v2812_v16 = vadd.f32 %v2635_v49, %v2259_v3  ;;  %v1645_v59 = vmul.f32 %v12271_v44, %v7698_v0  ;;  %v9867_v36 = vld [vmem:[#allocation2 + $0x1e8] sm:$0xff] }
 0x339   : > { %v1861_v35 = vmul.f32 %v12126_v45, %v1773_v15  ;;  %v9842_v34 = vmul.f32 %v9459_v48, %v12126_v45  ;;  %v4870_v14 = vadd.f32 %v4694_v41, %v4318_v27  ;;  %v12293_v61 = vrot.slane %v9756_v28, 1  ;;  %12298 = vst [vmem:[#allocation23_spill] sm:$0xff] %v9867_v36 }
 0x33a   : > { %v3012_v62 = vadd.f32 %v2948_v30, %v2812_v16  ;;  %v5243_v60 = vrot.slane %v5021_v57, 2  ;;  %v1709_v6 = vadd.f32 %v1645_v59, %v7724_v58  ;;  %v2414_v44 = vmul.f32 %v12269_v47, %v2326_v22  ;;  %v3631_v30 = vld [vmem:[#allocation2 + $0x1b8] sm:$0xfc]  ;;  %v4384_v57 = vld [vmem:[#allocation2 + $0x1e8] sm:$0xfe] }
 0x33b   : > { %v4692_v21 = vsel %vm2004_vm1, %v12293_v61, %v4691_v7  ;;  %v2088_v25 = vrot.slane %v1861_v35, 1  ;;  %v11945_v9 = vrot.slane %v9842_v34, 1  ;;  %v9850_v56 = vadd.f32 %v5246_v38, %v4870_v14  ;;  %v6856_v3 = vpop.eup %6855  ;;  %v9882_v14 = vld [vmem:[#allocation2 + $0x1f8] sm:$0xff] }
 0x33c   : > { %v3564_v23 = vadd.f32 %v3387_v55, %v3012_v62  ;;  %v12295_v18 = vrot.slane %v12294_v51, 2  ;;  %v9857_v28 = vmul.f32 %v9459_v48, %v12269_v47  ;;  %v2641_v37 = vrot.slane %v2414_v44, 2  ;;  %v12299_v55 = vld [vmem:[#allocation28_spill] sm:$0xff]  ;;  %v4936_v62 = vld [vmem:[#allocation2 + $0x1e8] sm:$0xfc] }
 0x33d   : > { %v2090_v4 = vsel %vm2004_vm1, %v2088_v25, %v11945_v9  ;;  %v2951_v12 = vmul.f32 %v12297_v32, %v12296_v26  ;;  %v3167_v38 = vmul.f32 %v12227_v1, %v3079_v42  ;;  %v5486_v43 = vsub.f32 0.0, %v9850_v56 }
 0x33e   : > { %v5244_v41 = vsel %vm2557_vm2, %v12295_v18, %v5243_v60  ;;  %v4116_v49 = vadd.f32 %v3939_v11, %v3564_v23  ;;  %v2262_v15 = vadd.f32 %v2090_v4, %v1709_v6  ;;  %v11943_v46 = vrot.slane %v9857_v28, 2  ;;  %v12300_v6 = vld [vmem:[#allocation25_spill] sm:$0xff] }
 0x33f   : > { %v5801_v54 = vmul.f32 %v6856_v3, %v12299_v55  ;;  %v9872_v27 = vmul.f32 %v9670_v20, %v12227_v1  ;;  %v3393_v16 = vrot.slane %v3167_v38, 1  ;;  %v3719_v7 = vmul.f32 %v12272_v5, %v3631_v30 }
 0x340   : > { %v5581_v22 = vmul.f32 1.442695, %v5486_v43  ;;  %v4317_v59 = vadd.f32 %v4253_v40, %v4116_v49  ;;  %v2643_v11 = vsel %vm2557_vm2, %v2641_v37, %v11943_v46  ;;  %v9880_v35 = vmul.f32 %v9670_v20, %v12272_v5  ;;  %v1772_v37 = vld [vmem:[#allocation2 + $0x180] sm:$0xfe] }
 0x341   : > { %6008 = vmatmul.mubr.f32.gmra.mxu1 %v5801_v54  ;;  %v2815_v61 = vadd.f32 %v2643_v11, %v2262_v15  ;;  %v11941_v60 = vrot.slane %v9872_v27, 1  ;;  %v3945_v42 = vrot.slane %v3719_v7, 2  ;;  %v4256_v25 = vmul.f32 %v12300_v6, %v9867_v36  ;;  %v2325_v11 = vld [vmem:[#allocation2 + $0x180] sm:$0xfc] }
 0x342   : > { %6861 = vpow2.f32 %v5581_v22  ;;  %v4869_v40 = vadd.f32 %v4692_v21, %v4317_v59  ;;  %v11940_v44 = vrot.slane %v9880_v35, 2  ;;  %v4472_v23 = vmul.f32 %v12188_v17, %v4384_v57  ;;  %v6858_v38 = vpop.eup %6857  ;;  %v12302_v57 = vld [vmem:[#allocation27_spill] sm:$0xff] }
 0x343   : > { %v3015_v51 = vadd.f32 %v2951_v12, %v2815_v61  ;;  %v3395_v18 = vsel %vm2004_vm1, %v3393_v16, %v11941_v60  ;;  %v9894_v30 = vmul.f32 %v12188_v17, %v9882_v14  ;;  %v5024_v4 = vmul.f32 %v9684_v24, %v4936_v62  ;;  %v12303_v62 = vld [vmem:[#allocation18_spill] sm:$0xff]  ;;  %v4935_v60 = vld [vmem:[#allocation2 + $0x1e0] sm:$0xfc] }
 0x344   : > { %v9897_v3 = vadd.f32 %v5244_v41, %v4869_v40  ;;  %v3947_v21 = vsel %vm2557_vm2, %v3945_v42, %v11940_v44  ;;  %v4698_v43 = vrot.slane %v4472_v23, 1  ;;  %v9904_v12 = vmul.f32 %v9684_v24, %v9882_v14  ;;  %v6860_v16 = vpop.eup %6859  ;;  %v3078_v23 = vld [vmem:[#allocation2 + $0x1b0] sm:$0xfe] }
 0x345   : > { %v5675_v49 = vadd.f32 1.0, %v6858_v38  ;;  %v3567_v15 = vadd.f32 %v3395_v18, %v3015_v51  ;;  %v11939_v55 = vrot.slane %v9894_v30, 1  ;;  %v5250_v54 = vrot.slane %v5024_v4, 2 }
 0x346   : > { %12301 = vst [vmem:[#allocation21_spill] sm:$0xff] %v9897_v3  ;;  %v5485_v7 = vsub.f32 0.0, %v9897_v3  ;;  %v11938_v41 = vrot.slane %v9904_v12, 2  ;;  %v1644_v22 = vmul.f32 %v12302_v57, %v12131_v50  ;;  %v1860_v59 = vmul.f32 %v12132_v10, %v1772_v37 }
 0x347   : > { %v5804_v61 = vmul.f32 %v6860_v16, %v12303_v62  ;;  %6863 = vrcp.f32 %v5675_v49  ;;  %v4119_v42 = vadd.f32 %v3947_v21, %v3567_v15  ;;  %v4700_v40 = vsel %vm2004_vm1, %v4698_v43, %v11939_v55  ;;  %v3630_v15 = vld [vmem:[#allocation2 + $0x1b0] sm:$0xfc] }
 0x348   : > { %v5579_v51 = vmul.f32 1.442695, %v5485_v7  ;;  %v5252_v18 = vsel %vm2557_vm2, %v5250_v54, %v11938_v41  ;;  %v1708_v4 = vadd.f32 %v1644_v22, %v12133_v63  ;;  %v9922_v37 = vmul.f32 %v9531_v52, %v12132_v10  ;;  %v12304_v54 = vld [vmem:[#allocation17_spill] sm:$0xff] }
 0x349   : > { %6012 = vmatprep.mubr.f32.mxu1 %v5804_v61  ;;  %v4320_v38 = vadd.f32 %v4256_v25, %v4119_v42  ;;  %v2085_v49 = vrot.slane %v1860_v59, 1  ;;  %v2413_v21 = vmul.f32 %v12134_v53, %v2325_v11  ;;  %v9927_v43 = vmul.f32 %v9531_v52, %v12134_v53  ;;  %v9938_v11 = vld [vmem:[#allocation2 + $0x1e0] sm:$0xff] }
 0x34a   : > { %6865 = vpow2.f32 %v5579_v51  ;;  %v11942_v16 = vrot.slane %v9922_v37, 1  ;;  %v2950_v7 = vmul.f32 %v12304_v54, %v7770_v31  ;;  %v3166_v57 = vmul.f32 %v7812_v19, %v3078_v23  ;;  %12305 = vst [vmem:[#allocation16_spill] sm:$0xff] %v9938_v11  ;;  %v4383_v61 = vld [vmem:[#allocation2 + $0x1e0] sm:$0xfe]  ;;  %v9948_v23 = vld [vmem:[#allocation2 + $0x1f0] sm:$0xff] }
 0x34b   : > { %v4872_v22 = vadd.f32 %v4700_v40, %v4320_v38  ;;  %v2638_v62 = vrot.slane %v2413_v21, 2  ;;  %v11944_v25 = vrot.slane %v9927_v43, 2  ;;  %v9936_v59 = vmul.f32 %v9735_v13, %v7812_v19 }
 0x34c   : > { %v2087_v42 = vsel %vm2004_vm1, %v2085_v49, %v11942_v16  ;;  %v3390_v51 = vrot.slane %v3166_v57, 1  ;;  %v3718_v41 = vmul.f32 %v7823_v33, %v3630_v15  ;;  %v9946_v40 = vmul.f32 %v9735_v13, %v7823_v33 }
 0x34d   : > { %v9950_v38 = vadd.f32 %v5252_v18, %v4872_v22  ;;  %v2261_v21 = vadd.f32 %v2087_v42, %v1708_v4  ;;  %v2640_v55 = vsel %vm2557_vm2, %v2638_v62, %v11944_v25  ;;  %v11949_v44 = vrot.slane %v9936_v59, 1 }
 0x34e   : > { %v3942_v49 = vrot.slane %v3718_v41, 2  ;;  %v11950_v57 = vrot.slane %v9946_v40, 2  ;;  %v4255_v15 = vmul.f32 %v7829_v39, %v9938_v11  ;;  %v4471_v16 = vmul.f32 %v7841_v2, %v4383_v61  ;;  %v1775_v41 = vld [vmem:[#allocation2 + $0x1a8] sm:$0x1] }
 0x34f   : > { %12306 = vst [vmem:[#allocation29_spill] sm:$0xff] %v9950_v38  ;;  %v6862_v46 = vpop.eup %6861  ;;  %v5488_v18 = vsub.f32 0.0, %v9950_v38  ;;  %v2814_v22 = vadd.f32 %v2640_v55, %v2261_v21  ;;  %v3392_v4 = vsel %vm2004_vm1, %v3390_v51, %v11949_v44  ;;  %v9966_v62 = vmul.f32 %v7841_v2, %v9948_v23  ;;  %v2328_v21 = vld [vmem:[#allocation2 + $0x1a8] sm:$0x3] }
 0x350   : > { %v5678_v42 = vadd.f32 1.0, %v6862_v46  ;;  %v3944_v25 = vsel %vm2557_vm2, %v3942_v49, %v11950_v57  ;;  %v4695_v9 = vrot.slane %v4471_v16, 1  ;;  %v5023_v61 = vmul.f32 %v9758_v8, %v4935_v60  ;;  %v3081_v49 = vld [vmem:[#allocation2 + $0x1d8] sm:$0x1] }
 0x351   : > { %v5585_v11 = vmul.f32 1.442695, %v5488_v18  ;;  %v3014_v38 = vadd.f32 %v2950_v7, %v2814_v22  ;;  %v11951_v55 = vrot.slane %v9966_v62, 1  ;;  %v9975_v51 = vmul.f32 %v9758_v8, %v9948_v23  ;;  %v3633_v18 = vld [vmem:[#allocation2 + $0x1d8] sm:$0x3] }
 0x352   : > { %6867 = vrcp.f32 %v5678_v42  ;;  %v5247_v44 = vrot.slane %v5023_v61, 2  ;;  %v1647_v46 = vmul.f32 %v9459_v48, %v7698_v0  ;;  %v1865_v54 = vmul.f32 %v12126_v45, %v1775_v41  ;;  %v4386_v41 = vld [vmem:[#allocation2 + $0x208] sm:$0x1] }
 0x353   : > { %6869 = vpow2.f32 %v5585_v11  ;;  %v3566_v16 = vadd.f32 %v3392_v4, %v3014_v38  ;;  %v4697_v60 = vsel %vm2004_vm1, %v4695_v9, %v11951_v55  ;;  %v11956_v7 = vrot.slane %v9975_v51, 2  ;;  %v4938_v55 = vld [vmem:[#allocation2 + $0x208] sm:$0x3] }
 0x354   : > { %v6864_v22 = vpop.eup %6863  ;;  %v1711_v57 = vadd.f32 %v1647_v46, %v7724_v58  ;;  %v2093_v42 = vrot.slane %v1865_v54, 1  ;;  %v2418_v61 = vmul.f32 %v12269_v47, %v2328_v21  ;;  %v2953_v48 = vmul.f32 %v9670_v20, %v12296_v26 }
 0x355   : > { %v5803_v11 = vmul.f32 %v6864_v22, %v9807_v29  ;;  %v4118_v38 = vadd.f32 %v3944_v25, %v3566_v16  ;;  %v5249_v9 = vsel %vm2557_vm2, %v5247_v44, %v11956_v7  ;;  %v3171_v4 = vmul.f32 %v12227_v1, %v3081_v49 }
 0x356   : > { %v12307_v3 = vrot.slane %v9842_v34, 1  ;;  %v2646_v46 = vrot.slane %v2418_v61, 2  ;;  %v3723_v21 = vmul.f32 %v12272_v5, %v3633_v18  ;;  %v4258_v36 = vmul.f32 %v12300_v6, %v9882_v14 }
 0x357   : > { %v6866_v26 = vpop.eup %6865  ;;  %6013 = vmatmul.mubr.f32.gmra.mxu1 %v5803_v11  ;;  %v4319_v29 = vadd.f32 %v4255_v15, %v4118_v38  ;;  %v3398_v16 = vrot.slane %v3171_v4, 1  ;;  %v4476_v44 = vmul.f32 %v12188_v17, %v4386_v41  ;;  %v12308_v49 = vrot.slane %v9857_v28, 2  ;;  %v3080_v4 = vld [vmem:[#allocation2 + $0x1d0] sm:$0x1] }
 0x358   : > { %v2094_v54 = vsel %vm2004_vm1, %v12307_v3, %v2093_v42  ;;  %v5677_v22 = vadd.f32 1.0, %v6866_v26  ;;  %v3950_v7 = vrot.slane %v3723_v21, 2  ;;  %v5028_v3 = vmul.f32 %v9684_v24, %v4938_v55  ;;  %v1774_v42 = vld [vmem:[#allocation2 + $0x1a0] sm:$0x1] }
 0x359   : > { %v2264_v25 = vadd.f32 %v2094_v54, %v1711_v57  ;;  %v2647_v34 = vsel %vm2557_vm2, %v12308_v49, %v2646_v46  ;;  %v4871_v18 = vadd.f32 %v4697_v60, %v4319_v29  ;;  %v12309_v6 = vrot.slane %v9872_v27, 1  ;;  %v2327_v57 = vld [vmem:[#allocation2 + $0x1a0] sm:$0x3]  ;;  %v3632_v46 = vld [vmem:[#allocation2 + $0x1d0] sm:$0x3] }
 0x35a   : > { %v4703_v15 = vrot.slane %v4476_v44, 1  ;;  %6871 = vrcp.f32 %v5677_v22  ;;  %v12310_v41 = vrot.slane %v9880_v35, 2  ;;  %v5255_v28 = vrot.slane %v5028_v3, 2  ;;  %v4385_v21 = vld [vmem:[#allocation2 + $0x200] sm:$0x1] }
 0x35b   : > { %v2817_v61 = vadd.f32 %v2647_v34, %v2264_v25  ;;  %v3399_v11 = vsel %vm2004_vm1, %v12309_v6, %v3398_v16  ;;  %v1646_v38 = vmul.f32 %v9531_v52, %v12131_v50  ;;  %v10012_v55 = vadd.f32 %v5249_v9, %v4871_v18 }
 0x35c   : > { %v3951_v26 = vsel %vm2557_vm2, %v12310_v41, %v3950_v7  ;;  %v12311_v54 = vrot.slane %v9894_v30, 1  ;;  %v1864_v6 = vmul.f32 %v12132_v10, %v1774_v42  ;;  %v12312_v35 = vrot.slane %v9904_v12, 2 }
 0x35d   : > { %v3017_v60 = vadd.f32 %v2953_v48, %v2817_v61  ;;  %v1710_v29 = vadd.f32 %v1646_v38, %v12133_v63  ;;  %v2417_v52 = vmul.f32 %v12134_v53, %v2327_v57  ;;  %v2952_v9 = vmul.f32 %v9735_v13, %v7770_v31 }
 0x35e   : > { %v4704_v27 = vsel %vm2004_vm1, %v12311_v54, %v4703_v15  ;;  %v5256_v7 = vsel %vm2557_vm2, %v12312_v35, %v5255_v28  ;;  %v5487_v48 = vsub.f32 0.0, %v10012_v55  ;;  %v2091_v25 = vrot.slane %v1864_v6, 1  ;;  %v1777_v54 = vld [vmem:[#allocation2 + $0x1b8] sm:$0xfe] }
 0x35f   : > { %v3569_v30 = vadd.f32 %v3399_v11, %v3017_v60  ;;  %v3170_v16 = vmul.f32 %v7812_v19, %v3080_v4  ;;  %v2644_v44 = vrot.slane %v2417_v52, 2  ;;  %v3722_v22 = vmul.f32 %v7823_v33, %v3632_v46  ;;  %v6868_v34 = vpop.eup %6867  ;;  %v4937_v11 = vld [vmem:[#allocation2 + $0x200] sm:$0x3]  ;;  %v2330_v52 = vld [vmem:[#allocation2 + $0x1b8] sm:$0xfc] }
 0x360   : > { %v4257_v12 = vmul.f32 %v7829_v39, %v9948_v23  ;;  %v4475_v49 = vmul.f32 %v7841_v2, %v4385_v21  ;;  %v5583_v3 = vmul.f32 1.442695, %v5487_v48  ;;  %v12313_v18 = vrot.slane %v9922_v37, 1  ;;  %v6870_v57 = vpop.eup %6869 }
 0x361   : > { %v4121_v42 = vadd.f32 %v3951_v26, %v3569_v30  ;;  %v3396_v15 = vrot.slane %v3170_v16, 1  ;;  %v5806_v41 = vmul.f32 %v6868_v34, %v9850_v56  ;;  %v12314_v38 = vrot.slane %v9927_v43, 2 }
 0x362   : > { %v2092_v61 = vsel %vm2004_vm1, %v12313_v18, %v2091_v25  ;;  %v3948_v60 = vrot.slane %v3722_v22, 2  ;;  %v5680_v6 = vadd.f32 1.0, %v6870_v57  ;;  %6873 = vpow2.f32 %v5583_v3  ;;  %v3083_v22 = vld [vmem:[#allocation2 + $0x1e8] sm:$0xfe]  ;;  %v12320_v57 = vld [vmem:[#allocation23_spill] sm:$0xff] }
 0x363   : > { %v2263_v28 = vadd.f32 %v2092_v61, %v1710_v29  ;;  %v2645_v4 = vsel %vm2557_vm2, %v12314_v38, %v2644_v44  ;;  %v4322_v46 = vadd.f32 %v4258_v36, %v4121_v42  ;;  %v12315_v26 = vrot.slane %v9936_v59, 1  ;;  %6017 = vmatprep.mubr.f32.mxu1 %v5806_v41  ;;  %v3635_v38 = vld [vmem:[#allocation2 + $0x1e8] sm:$0xfc] }
 0x364   : > { %v12316_v35 = vrot.slane %v9946_v40, 2  ;;  %v4701_v29 = vrot.slane %v4475_v49, 1  ;;  %v5027_v43 = vmul.f32 %v9758_v8, %v4937_v11  ;;  %6875 = vrcp.f32 %v5680_v6  ;;  %v12319_v11 = vld [vmem:[#allocation22_spill] sm:$0xff] }
 0x365   : > { %v3397_v37 = vsel %vm2004_vm1, %v12315_v26, %v3396_v15  ;;  %v2816_v21 = vadd.f32 %v2645_v4, %v2263_v28  ;;  %v4874_v48 = vadd.f32 %v4704_v27, %v4322_v46  ;;  %v1649_v30 = vmul.f32 %v12297_v32, %v7698_v0  ;;  %v12321_v4 = vld [vmem:[#allocation21_spill] sm:$0xff]  ;;  %v10076_v46 = vld [vmem:[#allocation2 + $0x218] sm:$0xff] }
 0x366   : > { %v3949_v56 = vsel %vm2557_vm2, %v12316_v35, %v3948_v60  ;;  %v1867_v36 = vmul.f32 %v12126_v45, %v1777_v54  ;;  %v12317_v25 = vrot.slane %v9966_v62, 1  ;;  %v5253_v44 = vrot.slane %v5027_v43, 2  ;;  %12322 = vst [vmem:[#allocation20_spill] sm:$0xff] %v10076_v46 }
 0x367   : > { %v3016_v59 = vadd.f32 %v2952_v9, %v2816_v21  ;;  %v10053_v40 = vmul.f32 %v9670_v20, %v12126_v45  ;;  %v10055_v49 = vadd.f32 %v5256_v7, %v4874_v48  ;;  %v1713_v27 = vadd.f32 %v1649_v30, %v7724_v58  ;;  %v6872_v61 = vpop.eup %6871  ;;  %v10090_v30 = vld [vmem:[#allocation2 + $0x228] sm:$0xff] }
 0x368   : > { %v4702_v16 = vsel %vm2004_vm1, %v12317_v25, %v4701_v29  ;;  %v2098_v34 = vrot.slane %v1867_v36, 1  ;;  %v2420_v32 = vmul.f32 %v12269_v47, %v2330_v52  ;;  %v12318_v9 = vrot.slane %v9975_v51, 2  ;;  %v4388_v29 = vld [vmem:[#allocation2 + $0x218] sm:$0xfe] }
 0x369   : > { %v3568_v3 = vadd.f32 %v3397_v37, %v3016_v59  ;;  %v11965_v42 = vrot.slane %v10053_v40, 1  ;;  %v10065_v18 = vmul.f32 %v9670_v20, %v12269_v47  ;;  %v5490_v7 = vsub.f32 0.0, %v10055_v49  ;;  %v4940_v36 = vld [vmem:[#allocation2 + $0x218] sm:$0xfc] }
 0x36a   : > { %v5254_v62 = vsel %vm2557_vm2, %v12318_v9, %v5253_v44  ;;  %v2651_v15 = vrot.slane %v2420_v32, 2  ;;  %v2955_v41 = vmul.f32 %v12320_v57, %v12319_v11  ;;  %v3173_v28 = vmul.f32 %v12227_v1, %v3083_v22  ;;  %v12323_v44 = vld [vmem:[#allocation25_spill] sm:$0xff] }
 0x36b   : > { %v5805_v51 = vmul.f32 %v6872_v61, %v12321_v4  ;;  %v4120_v60 = vadd.f32 %v3949_v56, %v3568_v3  ;;  %v2100_v54 = vsel %vm2004_vm1, %v2098_v34, %v11965_v42  ;;  %v11964_v6 = vrot.slane %v10065_v18, 2 }
 0x36c   : > { %v5589_v26 = vmul.f32 1.442695, %v5490_v7  ;;  %v2266_v37 = vadd.f32 %v2100_v54, %v1713_v27  ;;  %v10080_v21 = vmul.f32 %v9882_v14, %v12227_v1  ;;  %v3403_v35 = vrot.slane %v3173_v28, 1 }
 0x36d   : > { %6018 = vmatmul.mubr.f32.gmra.mxu1 %v5805_v51  ;;  %v4321_v43 = vadd.f32 %v4257_v12, %v4120_v60  ;;  %v2653_v56 = vsel %vm2557_vm2, %v2651_v15, %v11964_v6  ;;  %v3725_v52 = vmul.f32 %v12272_v5, %v3635_v38  ;;  %v10088_v48 = vmul.f32 %v9882_v14, %v12272_v5  ;;  %v1776_v15 = vld [vmem:[#allocation2 + $0x1b0] sm:$0xfe] }
 0x36e   : > { %6877 = vpow2.f32 %v5589_v26  ;;  %v2819_v59 = vadd.f32 %v2653_v56, %v2266_v37  ;;  %v11963_v25 = vrot.slane %v10080_v21, 1  ;;  %v4260_v12 = vmul.f32 %v12323_v44, %v10076_v46 }
 0x36f   : > { %v4873_v22 = vadd.f32 %v4702_v16, %v4321_v43  ;;  %v3955_v27 = vrot.slane %v3725_v52, 2  ;;  %v11960_v34 = vrot.slane %v10088_v48, 2  ;;  %v4478_v32 = vmul.f32 %v12188_v17, %v4388_v29  ;;  %v6874_v28 = vpop.eup %6873  ;;  %v12325_v29 = vld [vmem:[#allocation17_spill] sm:$0xff]  ;;  %v2329_v52 = vld [vmem:[#allocation2 + $0x1b0] sm:$0xfc] }
 0x370   : > { %v3019_v3 = vadd.f32 %v2955_v41, %v2819_v59  ;;  %v3405_v9 = vsel %vm2004_vm1, %v3403_v35, %v11963_v25  ;;  %v10102_v61 = vmul.f32 %v12188_v17, %v10090_v30  ;;  %v5030_v7 = vmul.f32 %v9684_v24, %v4940_v36  ;;  %v12326_v36 = vld [vmem:[#allocation29_spill] sm:$0xff] }
 0x371   : > { %v10105_v38 = vadd.f32 %v5254_v62, %v4873_v22  ;;  %v3957_v16 = vsel %vm2557_vm2, %v3955_v27, %v11960_v34  ;;  %v4708_v4 = vrot.slane %v4478_v32, 1  ;;  %v10112_v41 = vmul.f32 %v9684_v24, %v10090_v30  ;;  %v6876_v37 = vpop.eup %6875  ;;  %v3082_v27 = vld [vmem:[#allocation2 + $0x1e0] sm:$0xfe]  ;;  %v4939_v34 = vld [vmem:[#allocation2 + $0x210] sm:$0xfc] }
 0x372   : > { %v5679_v51 = vadd.f32 1.0, %v6874_v28  ;;  %v3571_v60 = vadd.f32 %v3405_v9, %v3019_v3  ;;  %v11959_v54 = vrot.slane %v10102_v61, 1  ;;  %v5260_v26 = vrot.slane %v5030_v7, 2 }
 0x373   : > { %12324 = vst [vmem:[#allocation28_spill] sm:$0xff] %v10105_v38  ;;  %v5489_v35 = vsub.f32 0.0, %v10105_v38  ;;  %v11958_v62 = vrot.slane %v10112_v41, 2  ;;  %v1648_v43 = vmul.f32 %v12325_v29, %v12131_v50  ;;  %v1866_v56 = vmul.f32 %v12132_v10, %v1776_v15 }
 0x374   : > { %v5808_v59 = vmul.f32 %v6876_v37, %v12326_v36  ;;  %6879 = vrcp.f32 %v5679_v51  ;;  %v4123_v24 = vadd.f32 %v3957_v16, %v3571_v60  ;;  %v4710_v22 = vsel %vm2004_vm1, %v4708_v4, %v11959_v54  ;;  %v3634_v51 = vld [vmem:[#allocation2 + $0x1e0] sm:$0xfc]  ;;  %v4387_v36 = vld [vmem:[#allocation2 + $0x210] sm:$0xfe] }
 0x375   : > { %v5587_v32 = vmul.f32 1.442695, %v5489_v35  ;;  %v5262_v3 = vsel %vm2557_vm2, %v5260_v26, %v11958_v62  ;;  %v1712_v9 = vadd.f32 %v1648_v43, %v12133_v63  ;;  %v10130_v7 = vmul.f32 %v9735_v13, %v12132_v10  ;;  %v12327_v26 = vld [vmem:[#allocation16_spill] sm:$0xff] }
 0x376   : > { %6022 = vmatprep.mubr.f32.mxu1 %v5808_v59  ;;  %v4324_v15 = vadd.f32 %v4260_v12, %v4123_v24  ;;  %v2095_v28 = vrot.slane %v1866_v56, 1  ;;  %v2419_v16 = vmul.f32 %v12134_v53, %v2329_v52  ;;  %v10135_v4 = vmul.f32 %v9735_v13, %v12134_v53  ;;  %v10146_v52 = vld [vmem:[#allocation2 + $0x210] sm:$0xff]  ;;  %v10162_v54 = vld [vmem:[#allocation2 + $0x220] sm:$0xff] }
 0x377   : > { %6881 = vpow2.f32 %v5587_v32  ;;  %v11961_v60 = vrot.slane %v10130_v7, 1  ;;  %v2954_v37 = vmul.f32 %v12327_v26, %v7770_v31  ;;  %v3172_v35 = vmul.f32 %v7812_v19, %v3082_v27  ;;  %12328 = vst [vmem:[#allocation27_spill] sm:$0xff] %v10146_v52  ;;  %v4942_v26 = vld [vmem:[#allocation2 + $0x238] sm:$0x3] }
 0x378   : > { %v4876_v29 = vadd.f32 %v4710_v22, %v4324_v15  ;;  %v2648_v43 = vrot.slane %v2419_v16, 2  ;;  %v11962_v12 = vrot.slane %v10135_v4, 2  ;;  %v10144_v56 = vmul.f32 %v9948_v23, %v7812_v19 }
 0x379   : > { %v2097_v59 = vsel %vm2004_vm1, %v2095_v28, %v11961_v60  ;;  %v3400_v24 = vrot.slane %v3172_v35, 1  ;;  %v3724_v32 = vmul.f32 %v7823_v33, %v3634_v51  ;;  %v10154_v22 = vmul.f32 %v9948_v23, %v7823_v33 }
 0x37a   : > { %v10156_v27 = vadd.f32 %v5262_v3, %v4876_v29  ;;  %v2265_v15 = vadd.f32 %v2097_v59, %v1712_v9  ;;  %v2650_v16 = vsel %vm2557_vm2, %v2648_v43, %v11962_v12  ;;  %v11966_v62 = vrot.slane %v10144_v56, 1  ;;  %v1779_v12 = vld [vmem:[#allocation2 + $0x1d8] sm:$0x1] }
 0x37b   : > { %v6878_v28 = vpop.eup %6877  ;;  %v3952_v35 = vrot.slane %v3724_v32, 2  ;;  %v11967_v51 = vrot.slane %v10154_v22, 2  ;;  %v4259_v60 = vmul.f32 %v7829_v39, %v10146_v52  ;;  %v4477_v3 = vmul.f32 %v7841_v2, %v4387_v36 }
 0x37c   : > { %12329 = vst [vmem:[#allocation18_spill] sm:$0xff] %v10156_v27  ;;  %v5682_v29 = vadd.f32 1.0, %v6878_v28  ;;  %v5492_v9 = vsub.f32 0.0, %v10156_v27  ;;  %v2818_v59 = vadd.f32 %v2650_v16, %v2265_v15  ;;  %v3402_v43 = vsel %vm2004_vm1, %v3400_v24, %v11966_v62  ;;  %v2332_v28 = vld [vmem:[#allocation2 + $0x1d8] sm:$0x3] }
 0x37d   : > { %v3954_v32 = vsel %vm2557_vm2, %v3952_v35, %v11967_v51  ;;  %v10177_v25 = vmul.f32 %v7841_v2, %v10162_v54  ;;  %v4705_v6 = vrot.slane %v4477_v3, 1  ;;  %v5029_v36 = vmul.f32 %v9758_v8, %v4939_v34 }
 0x37e   : > { %6883 = vrcp.f32 %v5682_v29  ;;  %v5593_v42 = vmul.f32 1.442695, %v5492_v9  ;;  %v3018_v15 = vadd.f32 %v2954_v37, %v2818_v59  ;;  %v10182_v16 = vmul.f32 %v9758_v8, %v10162_v54  ;;  %v3085_v9 = vld [vmem:[#allocation2 + $0x208] sm:$0x1] }
 0x37f   : > { %v11972_v24 = vrot.slane %v10177_v25, 1  ;;  %v5257_v62 = vrot.slane %v5029_v36, 2  ;;  %v1651_v35 = vmul.f32 %v9670_v20, %v7698_v0  ;;  %v1871_v51 = vmul.f32 %v12126_v45, %v1779_v12  ;;  %v3637_v37 = vld [vmem:[#allocation2 + $0x208] sm:$0x3]  ;;  %v4390_v12 = vld [vmem:[#allocation2 + $0x238] sm:$0x1] }
 0x380   : > { %6885 = vpow2.f32 %v5593_v42  ;;  %v3570_v3 = vadd.f32 %v3402_v43, %v3018_v15  ;;  %v11975_v34 = vrot.slane %v10182_v16, 2  ;;  %v2424_v29 = vmul.f32 %v12269_v47, %v2332_v28 }
 0x381   : > { %v6880_v59 = vpop.eup %6879  ;;  %v4707_v52 = vsel %vm2004_vm1, %v4705_v6, %v11972_v24  ;;  %v1715_v36 = vadd.f32 %v1651_v35, %v7724_v58  ;;  %v2103_v27 = vrot.slane %v1871_v51, 1  ;;  %v2957_v20 = vmul.f32 %v9882_v14, %v12319_v11 }
 0x382   : > { %v5807_v42 = vmul.f32 %v6880_v59, %v10012_v55  ;;  %v4122_v43 = vadd.f32 %v3954_v32, %v3570_v3  ;;  %v5259_v28 = vsel %vm2557_vm2, %v5257_v62, %v11975_v34  ;;  %v2656_v15 = vrot.slane %v2424_v29, 2 }
 0x383   : > { %v12330_v38 = vrot.slane %v10053_v40, 1  ;;  %v3177_v35 = vmul.f32 %v12227_v1, %v3085_v9  ;;  %v3729_v51 = vmul.f32 %v12272_v5, %v3637_v37  ;;  %v4262_v24 = vmul.f32 %v12323_v44, %v10090_v30 }
 0x384   : > { %v6882_v46 = vpop.eup %6881  ;;  %6023 = vmatmul.mubr.f32.gmra.mxu1 %v5807_v42  ;;  %v4323_v55 = vadd.f32 %v4259_v60, %v4122_v43  ;;  %v12331_v3 = vrot.slane %v10065_v18, 2  ;;  %v4482_v29 = vmul.f32 %v12188_v17, %v4390_v12  ;;  %v1650_v60 = vmul.f32 %v9735_v13, %v12131_v50  ;;  %v2331_v42 = vld [vmem:[#allocation2 + $0x1d0] sm:$0x3] }
 0x385   : > { %v2104_v6 = vsel %vm2004_vm1, %v12330_v38, %v2103_v27  ;;  %v5681_v40 = vadd.f32 1.0, %v6882_v46  ;;  %v3408_v59 = vrot.slane %v3177_v35, 1  ;;  %v3960_v38 = vrot.slane %v3729_v51, 2  ;;  %v10211_v27 = vld [vmem:[#allocation8 + $0x18] ss:$0 sm:$0xff] }
 0x386   : > { %v2268_v32 = vadd.f32 %v2104_v6, %v1715_v36  ;;  %v2657_v62 = vsel %vm2557_vm2, %v12331_v3, %v2656_v15  ;;  %v5034_v9 = vmul.f32 %v10211_v27, %v4942_v26  ;;  %v4875_v37 = vadd.f32 %v4707_v52, %v4323_v55  ;;  %v1778_v36 = vld [vmem:[#allocation2 + $0x1d0] sm:$0x1]  ;;  %v3084_v6 = vld [vmem:[#allocation2 + $0x200] sm:$0x1] }
 0x387   : > { %v4713_v44 = vrot.slane %v4482_v29, 1  ;;  %6887 = vrcp.f32 %v5681_v40  ;;  %v12332_v18 = vrot.slane %v10080_v21, 1  ;;  %v12333_v46 = vrot.slane %v10088_v48, 2  ;;  %v3636_v26 = vld [vmem:[#allocation2 + $0x200] sm:$0x3] }
 0x388   : > { %v2821_v34 = vadd.f32 %v2657_v62, %v2268_v32  ;;  %v5265_v15 = vrot.slane %v5034_v9, 2  ;;  %v10222_v52 = vadd.f32 %v5259_v28, %v4875_v37  ;;  %v12334_v51 = vrot.slane %v10102_v61, 1  ;;  %v4389_v32 = vld [vmem:[#allocation2 + $0x230] sm:$0x1] }
 0x389   : > { %v3409_v12 = vsel %vm2004_vm1, %v12332_v18, %v3408_v59  ;;  %v3961_v43 = vsel %vm2557_vm2, %v12333_v46, %v3960_v38  ;;  %v1714_v55 = vadd.f32 %v1650_v60, %v12133_v63  ;;  %v12335_v21 = vrot.slane %v10112_v41, 2 }
 0x38a   : > { %v3021_v35 = vadd.f32 %v2957_v20, %v2821_v34  ;;  %v4714_v13 = vsel %vm2004_vm1, %v12334_v51, %v4713_v44  ;;  %v1870_v48 = vmul.f32 %v12132_v10, %v1778_v36  ;;  %v2423_v62 = vmul.f32 %v12134_v53, %v2331_v42  ;;  %v4941_v42 = vld [vmem:[#allocation2 + $0x230] sm:$0x3] }
 0x38b   : > { %v5266_v3 = vsel %vm2557_vm2, %v12335_v21, %v5265_v15  ;;  %v2956_v28 = vmul.f32 %v9948_v23, %v7770_v31  ;;  %v5491_v34 = vsub.f32 0.0, %v10222_v52  ;;  %v3176_v61 = vmul.f32 %v7812_v19, %v3084_v6  ;;  %v6884_v29 = vpop.eup %6883  ;;  %v1781_v21 = vld [vmem:[#allocation2 + $0x1e8] sm:$0xfe] }
 0x38c   : > { %v3573_v20 = vadd.f32 %v3409_v12, %v3021_v35  ;;  %v3728_v44 = vmul.f32 %v7823_v33, %v3636_v26  ;;  %v2101_v40 = vrot.slane %v1870_v48, 1  ;;  %v2654_v59 = vrot.slane %v2423_v62, 2 }
 0x38d   : > { %v10240_v41 = vmul.f32 %v7829_v39, %v10162_v54  ;;  %v4481_v38 = vmul.f32 %v7841_v2, %v4389_v32  ;;  %v5810_v9 = vmul.f32 %v6884_v29, %v10055_v49  ;;  %v5591_v37 = vmul.f32 1.442695, %v5491_v34  ;;  %v6886_v18 = vpop.eup %6885 }
 0x38e   : > { %v4125_v60 = vadd.f32 %v3961_v43, %v3573_v20  ;;  %v3406_v36 = vrot.slane %v3176_v61, 1  ;;  %v12336_v12 = vrot.slane %v10130_v7, 1  ;;  %v12337_v15 = vrot.slane %v10135_v4, 2  ;;  %v2334_v43 = vld [vmem:[#allocation2 + $0x1e8] sm:$0xfc] }
 0x38f   : > { %v3958_v26 = vrot.slane %v3728_v44, 2  ;;  %v4711_v35 = vrot.slane %v4481_v38, 1  ;;  %6027 = vmatprep.mubr.f32.mxu1 %v5810_v9  ;;  %v5684_v51 = vadd.f32 1.0, %v6886_v18  ;;  %6889 = vpow2.f32 %v5591_v37  ;;  %v3087_v38 = vld [vmem:[#allocation2 + $0x218] sm:$0xfe] }
 0x390   : > { %v2102_v46 = vsel %vm2004_vm1, %v12336_v12, %v2101_v40  ;;  %v2655_v6 = vsel %vm2557_vm2, %v12337_v15, %v2654_v59  ;;  %v4326_v32 = vadd.f32 %v4262_v24, %v4125_v60  ;;  %v12338_v48 = vrot.slane %v10144_v56, 1  ;;  %v12342_v12 = vld [vmem:[#allocation20_spill] sm:$0xff]  ;;  %v3639_v15 = vld [vmem:[#allocation2 + $0x218] sm:$0xfc] }
 0x391   : > { %v2267_v49 = vadd.f32 %v2102_v46, %v1714_v55  ;;  %v12339_v7 = vrot.slane %v10154_v22, 2  ;;  %v12340_v4 = vrot.slane %v10177_v25, 1  ;;  %v5033_v61 = vmul.f32 %v9758_v8, %v4941_v42 }
 0x392   : > { %v3407_v62 = vsel %vm2004_vm1, %v12338_v48, %v3406_v36  ;;  %6891 = vrcp.f32 %v5684_v51  ;;  %v4878_v44 = vadd.f32 %v4714_v13, %v4326_v32  ;;  %v1653_v55 = vmul.f32 %v12320_v57, %v7698_v0  ;;  %v10292_v32 = vld [vmem:[#allocation2 + $0x248] sm:$0xff] }
 0x393   : > { %v3959_v34 = vsel %vm2557_vm2, %v12339_v7, %v3958_v26  ;;  %v4712_v20 = vsel %vm2004_vm1, %v12340_v4, %v4711_v35  ;;  %v2820_v24 = vadd.f32 %v2655_v6, %v2267_v49  ;;  %v5263_v29 = vrot.slane %v5033_v61, 2  ;;  %v12343_v6 = vld [vmem:[#allocation28_spill] sm:$0xff]  ;;  %12344 = vst [vmem:[#allocation23_spill] sm:$0xff] %v10292_v32 }
 0x394   : > { %v1873_v56 = vmul.f32 %v12126_v45, %v1781_v21  ;;  %v10265_v22 = vmul.f32 %v9882_v14, %v12126_v45  ;;  %v2426_v40 = vmul.f32 %v12269_v47, %v2334_v43  ;;  %v10268_v25 = vadd.f32 %v5266_v3, %v4878_v44  ;;  %v6888_v42 = vpop.eup %6887 }
 0x395   : > { %v3020_v59 = vadd.f32 %v2956_v28, %v2820_v24  ;;  %v1717_v8 = vadd.f32 %v1653_v55, %v7724_v58  ;;  %v10273_v13 = vmul.f32 %v9882_v14, %v12269_v47  ;;  %v12341_v57 = vrot.slane %v10182_v16, 2  ;;  %v10303_v24 = vld [vmem:[#allocation2 + $0x258] sm:$0xff]  ;;  %v4944_v55 = vld [vmem:[#allocation2 + $0x248] sm:$0xfc] }
 0x396   : > { %v2108_v37 = vrot.slane %v1873_v56, 1  ;;  %v11985_v60 = vrot.slane %v10265_v22, 1  ;;  %v2661_v36 = vrot.slane %v2426_v40, 2  ;;  %v5494_v3 = vsub.f32 0.0, %v10268_v25  ;;  %v12345_v56 = vld [vmem:[#allocation25_spill] sm:$0xff] }
 0x397   : > { %v5264_v9 = vsel %vm2557_vm2, %v12341_v57, %v5263_v29  ;;  %v3572_v18 = vadd.f32 %v3407_v62, %v3020_v59  ;;  %v11983_v28 = vrot.slane %v10273_v13, 2  ;;  %v2959_v46 = vmul.f32 %v12342_v12, %v12319_v11  ;;  %v4392_v62 = vld [vmem:[#allocation2 + $0x248] sm:$0xfe] }
 0x398   : > { %v5809_v26 = vmul.f32 %v6888_v42, %v12343_v6  ;;  %v2110_v16 = vsel %vm2004_vm1, %v2108_v37, %v11985_v60  ;;  %v3179_v35 = vmul.f32 %v12227_v1, %v3087_v38  ;;  %v10290_v51 = vmul.f32 %v10090_v30, %v12227_v1 }
 0x399   : > { %v5597_v49 = vmul.f32 1.442695, %v5494_v3  ;;  %v4124_v21 = vadd.f32 %v3959_v34, %v3572_v18  ;;  %v2270_v43 = vadd.f32 %v2110_v16, %v1717_v8  ;;  %v2663_v48 = vsel %vm2557_vm2, %v2661_v36, %v11983_v28  ;;  %v1780_v3 = vld [vmem:[#allocation2 + $0x1e0] sm:$0xfe]  ;;  %v10389_v28 = vld [vmem:[#allocation8 + $0x10] ss:$0 sm:$0xff] }
 0x39a   : > { %6028 = vmatmul.mubr.f32.gmra.mxu1 %v5809_v26  ;;  %v3413_v7 = vrot.slane %v3179_v35, 1  ;;  %v11982_v4 = vrot.slane %v10290_v51, 1  ;;  %v3731_v61 = vmul.f32 %v12272_v5, %v3639_v15  ;;  %v10301_v44 = vmul.f32 %v10090_v30, %v12272_v5 }
 0x39b   : > { %6893 = vpow2.f32 %v5597_v49  ;;  %v4325_v34 = vadd.f32 %v10240_v41, %v4124_v21  ;;  %v2823_v29 = vadd.f32 %v2663_v48, %v2270_v43  ;;  %v4264_v40 = vmul.f32 %v12345_v56, %v10292_v32 }
 0x39c   : > { %v3415_v59 = vsel %vm2004_vm1, %v3413_v7, %v11982_v4  ;;  %v3965_v8 = vrot.slane %v3731_v61, 2  ;;  %v11979_v38 = vrot.slane %v10301_v44, 2  ;;  %v4484_v57 = vmul.f32 %v12188_v17, %v4392_v62  ;;  %v6890_v18 = vpop.eup %6889 }
 0x39d   : > { %v4877_v37 = vadd.f32 %v4712_v20, %v4325_v34  ;;  %v3023_v36 = vadd.f32 %v2959_v46, %v2823_v29  ;;  %v10315_v42 = vmul.f32 %v12188_v17, %v10303_v24  ;;  %v5036_v41 = vmul.f32 %v10211_v27, %v4944_v55  ;;  %v12346_v20 = vld [vmem:[#allocation16_spill] sm:$0xff]  ;;  %v12348_v34 = vld [vmem:[#allocation18_spill] sm:$0xff] }
 0x39e   : > { %v3967_v15 = vsel %vm2557_vm2, %v3965_v8, %v11979_v38  ;;  %v4718_v6 = vrot.slane %v4484_v57, 1  ;;  %v10323_v26 = vmul.f32 %v10211_v27, %v10303_v24  ;;  %v1652_v46 = vmul.f32 %v12346_v20, %v12131_v50  ;;  %v2333_v55 = vld [vmem:[#allocation2 + $0x1e0] sm:$0xfc] }
 0x39f   : > { %v5683_v16 = vadd.f32 1.0, %v6890_v18  ;;  %v10327_v35 = vadd.f32 %v5264_v9, %v4877_v37  ;;  %v3575_v49 = vadd.f32 %v3415_v59, %v3023_v36  ;;  %v11978_v21 = vrot.slane %v10315_v42, 1  ;;  %v6892_v43 = vpop.eup %6891  ;;  %v3086_v9 = vld [vmem:[#allocation2 + $0x210] sm:$0xfe] }
 0x3a0   : > { %v5270_v48 = vrot.slane %v5036_v41, 2  ;;  %v11977_v62 = vrot.slane %v10323_v26, 2  ;;  %v1716_v7 = vadd.f32 %v1652_v46, %v12133_v63  ;;  %v1872_v61 = vmul.f32 %v12132_v10, %v1780_v3  ;;  %v3638_v46 = vld [vmem:[#allocation2 + $0x210] sm:$0xfc] }
 0x3a1   : > { %12347 = vst [vmem:[#allocation21_spill] sm:$0xff] %v10327_v35  ;;  %v5812_v29 = vmul.f32 %v6892_v43, %v12348_v34  ;;  %6895 = vrcp.f32 %v5683_v16  ;;  %v5493_v8 = vsub.f32 0.0, %v10327_v35  ;;  %v4127_v57 = vadd.f32 %v3967_v15, %v3575_v49  ;;  %v12349_v16 = vld [vmem:[#allocation27_spill] sm:$0xff]  ;;  %v10359_v34 = vld [vmem:[#allocation2 + $0x240] sm:$0xff] }
 0x3a2   : > { %v4720_v59 = vsel %vm2004_vm1, %v4718_v6, %v11978_v21  ;;  %v5272_v37 = vsel %vm2557_vm2, %v5270_v48, %v11977_v62  ;;  %v10343_v36 = vmul.f32 %v9948_v23, %v12132_v10  ;;  %v2105_v41 = vrot.slane %v1872_v61, 1  ;;  %12350 = vst [vmem:[#allocation17_spill] sm:$0xff] %v10359_v34 }
 0x3a3   : > { %6032 = vmatprep.mubr.f32.mxu1 %v5812_v29  ;;  %v5595_v3 = vmul.f32 1.442695, %v5493_v8  ;;  %v4328_v18 = vadd.f32 %v4264_v40, %v4127_v57  ;;  %v2425_v20 = vmul.f32 %v12134_v53, %v2333_v55  ;;  %v10348_v15 = vmul.f32 %v9948_v23, %v12134_v53  ;;  %v4391_v29 = vld [vmem:[#allocation2 + $0x240] sm:$0xfe] }
 0x3a4   : > { %v11981_v6 = vrot.slane %v10343_v36, 1  ;;  %v2958_v49 = vmul.f32 %v12349_v16, %v7770_v31  ;;  %v3178_v43 = vmul.f32 %v7812_v19, %v3086_v9  ;;  %v10356_v48 = vmul.f32 %v10162_v54, %v7812_v19 }
 0x3a5   : > { %6897 = vpow2.f32 %v5595_v3  ;;  %v4880_v40 = vadd.f32 %v4720_v59, %v4328_v18  ;;  %v2658_v61 = vrot.slane %v2425_v20, 2  ;;  %v11980_v55 = vrot.slane %v10348_v15, 2  ;;  %v10375_v18 = vld [vmem:[#allocation2 + $0x250] sm:$0xff]  ;;  %v4943_v20 = vld [vmem:[#allocation2 + $0x240] sm:$0xfc] }
 0x3a6   : > { %v2107_v8 = vsel %vm2004_vm1, %v2105_v41, %v11981_v6  ;;  %v3410_v57 = vrot.slane %v3178_v43, 1  ;;  %v11984_v62 = vrot.slane %v10356_v48, 1  ;;  %v3730_v9 = vmul.f32 %v7823_v33, %v3638_v46 }
 0x3a7   : > { %v10366_v21 = vadd.f32 %v5272_v37, %v4880_v40  ;;  %v2269_v38 = vadd.f32 %v2107_v8, %v1716_v7  ;;  %v2660_v59 = vsel %vm2557_vm2, %v2658_v61, %v11980_v55  ;;  %v10373_v3 = vmul.f32 %v10162_v54, %v7823_v33 }
 0x3a8   : > { %v6894_v41 = vpop.eup %6893  ;;  %v3412_v43 = vsel %vm2004_vm1, %v3410_v57, %v11984_v62  ;;  %v3962_v46 = vrot.slane %v3730_v9, 2  ;;  %v4263_v7 = vmul.f32 %v7829_v39, %v10359_v34  ;;  %v4483_v37 = vmul.f32 %v7841_v2, %v4391_v29  ;;  %v1783_v29 = vld [vmem:[#allocation2 + $0x208] sm:$0x1] }
 0x3a9   : > { %12351 = vst [vmem:[#allocation29_spill] sm:$0xff] %v10366_v21  ;;  %v5686_v40 = vadd.f32 1.0, %v6894_v41  ;;  %v5496_v61 = vsub.f32 0.0, %v10366_v21  ;;  %v2822_v8 = vadd.f32 %v2660_v59, %v2269_v38  ;;  %v11990_v55 = vrot.slane %v10373_v3, 2  ;;  %v2336_v41 = vld [vmem:[#allocation2 + $0x208] sm:$0x3] }
 0x3aa   : > { %v10387_v6 = vmul.f32 %v7841_v2, %v10375_v18  ;;  %v4715_v4 = vrot.slane %v4483_v37, 1  ;;  %v5035_v57 = vmul.f32 %v10389_v28, %v4943_v20  ;;  %v10394_v9 = vmul.f32 %v10389_v28, %v10375_v18 }
 0x3ab   : > { %6899 = vrcp.f32 %v5686_v40  ;;  %v5601_v62 = vmul.f32 1.442695, %v5496_v61  ;;  %v3022_v38 = vadd.f32 %v2958_v49, %v2822_v8  ;;  %v3964_v59 = vsel %vm2557_vm2, %v3962_v46, %v11990_v55  ;;  %v3089_v61 = vld [vmem:[#allocation2 + $0x238] sm:$0x1]  ;;  %v4394_v8 = vld [vmem:[#allocation2 + $0x268] sm:$0x1] }
 0x3ac   : > { %v11995_v60 = vrot.slane %v10387_v6, 1  ;;  %v5267_v37 = vrot.slane %v5035_v57, 2  ;;  %v11994_v34 = vrot.slane %v10394_v9, 2  ;;  %v1655_v20 = vmul.f32 %v9882_v14, %v7698_v0  ;;  %v3641_v49 = vld [vmem:[#allocation2 + $0x238] sm:$0x3] }
 0x3ad   : > { %6901 = vpow2.f32 %v5601_v62  ;;  %v3574_v21 = vadd.f32 %v3412_v43, %v3022_v38  ;;  %v1877_v16 = vmul.f32 %v12126_v45, %v1783_v29  ;;  %v2430_v40 = vmul.f32 %v12269_v47, %v2336_v41  ;;  %v4946_v43 = vld [vmem:[#allocation2 + $0x268] sm:$0x3] }
 0x3ae   : > { %v6896_v35 = vpop.eup %6895  ;;  %v4717_v46 = vsel %vm2004_vm1, %v4715_v4, %v11995_v60  ;;  %v5269_v57 = vsel %vm2557_vm2, %v5267_v37, %v11994_v34  ;;  %v1719_v14 = vadd.f32 %v1655_v20, %v7724_v58  ;;  %v2961_v62 = vmul.f32 %v10090_v30, %v12319_v11 }
 0x3af   : > { %v5811_v29 = vmul.f32 %v6896_v35, %v10222_v52  ;;  %v4126_v41 = vadd.f32 %v3964_v59, %v3574_v21  ;;  %v2113_v38 = vrot.slane %v1877_v16, 1  ;;  %v2666_v55 = vrot.slane %v2430_v40, 2 }
 0x3b0   : > { %v3183_v32 = vmul.f32 %v12227_v1, %v3089_v61  ;;  %v3735_v47 = vmul.f32 %v12272_v5, %v3641_v49  ;;  %v4266_v4 = vmul.f32 %v12345_v56, %v10303_v24  ;;  %v4488_v37 = vmul.f32 %v12188_v17, %v4394_v8 }
 0x3b1   : > { %6033 = vmatmul.mubr.f32.gmra.mxu1 %v5811_v29  ;;  %v4327_v20 = vadd.f32 %v4263_v7, %v4126_v41  ;;  %v12352_v34 = vrot.slane %v10265_v22, 1  ;;  %v12353_v52 = vrot.slane %v10273_v13, 2  ;;  %v5040_v21 = vmul.f32 %v10211_v27, %v4946_v43  ;;  %v1782_v22 = vld [vmem:[#allocation2 + $0x200] sm:$0x1] }
 0x3b2   : > { %v6898_v16 = vpop.eup %6897  ;;  %v3418_v40 = vrot.slane %v3183_v32, 1  ;;  %v3970_v61 = vrot.slane %v3735_v47, 2  ;;  %v4723_v49 = vrot.slane %v4488_v37, 1  ;;  %v1654_v7 = vmul.f32 %v9948_v23, %v12131_v50  ;;  %v2335_v29 = vld [vmem:[#allocation2 + $0x200] sm:$0x3] }
 0x3b3   : > { %v2114_v60 = vsel %vm2004_vm1, %v12352_v34, %v2113_v38  ;;  %v2667_v35 = vsel %vm2557_vm2, %v12353_v52, %v2666_v55  ;;  %v5685_v56 = vadd.f32 1.0, %v6898_v16  ;;  %v4879_v5 = vadd.f32 %v4717_v46, %v4327_v20  ;;  %v3088_v46 = vld [vmem:[#allocation2 + $0x230] sm:$0x1]  ;;  %v4393_v37 = vld [vmem:[#allocation2 + $0x260] sm:$0x1] }
 0x3b4   : > { %v2272_v59 = vadd.f32 %v2114_v60, %v1719_v14  ;;  %v5275_v8 = vrot.slane %v5040_v21, 2  ;;  %v12354_v13 = vrot.slane %v10290_v51, 1  ;;  %v12355_v43 = vrot.slane %v10301_v44, 2  ;;  %v3640_v14 = vld [vmem:[#allocation2 + $0x230] sm:$0x3] }
 0x3b5   : > { %v12356_v47 = vrot.slane %v10315_v42, 1  ;;  %6903 = vrcp.f32 %v5685_v56  ;;  %v10438_v41 = vadd.f32 %v5269_v57, %v4879_v5  ;;  %v12357_v23 = vrot.slane %v10323_v26, 2 }
 0x3b6   : > { %v2825_v34 = vadd.f32 %v2667_v35, %v2272_v59  ;;  %v3419_v55 = vsel %vm2004_vm1, %v12354_v13, %v3418_v40  ;;  %v3971_v60 = vsel %vm2557_vm2, %v12355_v43, %v3970_v61  ;;  %v1718_v51 = vadd.f32 %v1654_v7, %v12133_v63  ;;  %v4945_v7 = vld [vmem:[#allocation2 + $0x260] sm:$0x3] }
 0x3b7   : > { %v4724_v32 = vsel %vm2004_vm1, %v12356_v47, %v4723_v49  ;;  %v5276_v38 = vsel %vm2557_vm2, %v12357_v23, %v5275_v8  ;;  %v1876_v44 = vmul.f32 %v12132_v10, %v1782_v22  ;;  %v2429_v52 = vmul.f32 %v12134_v53, %v2335_v29 }
 0x3b8   : > { %v3025_v20 = vadd.f32 %v2961_v62, %v2825_v34  ;;  %v2960_v42 = vmul.f32 %v10162_v54, %v7770_v31  ;;  %v5495_v35 = vsub.f32 0.0, %v10438_v41  ;;  %v3182_v5 = vmul.f32 %v7812_v19, %v3088_v46  ;;  %v6900_v57 = vpop.eup %6899  ;;  %v1785_v46 = vld [vmem:[#allocation2 + $0x218] sm:$0xfe] }
 0x3b9   : > { %v3734_v56 = vmul.f32 %v7823_v33, %v3640_v14  ;;  %v10453_v26 = vmul.f32 %v7829_v39, %v10375_v18  ;;  %v2111_v62 = vrot.slane %v1876_v44, 1  ;;  %v2664_v16 = vrot.slane %v2429_v52, 2 }
 0x3ba   : > { %v3577_v21 = vadd.f32 %v3419_v55, %v3025_v20  ;;  %v4487_v59 = vmul.f32 %v7841_v2, %v4393_v37  ;;  %v5814_v40 = vmul.f32 %v6900_v57, %v10268_v25  ;;  %v5599_v61 = vmul.f32 1.442695, %v5495_v35  ;;  %v6902_v22 = vpop.eup %6901  ;;  %v2338_v20 = vld [vmem:[#allocation2 + $0x218] sm:$0xfc] }
 0x3bb   : > { %v3416_v49 = vrot.slane %v3182_v5, 1  ;;  %v3968_v8 = vrot.slane %v3734_v56, 2  ;;  %v12358_v34 = vrot.slane %v10343_v36, 1  ;;  %v12359_v43 = vrot.slane %v10348_v15, 2 }
 0x3bc   : > { %v4129_v29 = vadd.f32 %v3971_v60, %v3577_v21  ;;  %v4721_v47 = vrot.slane %v4487_v59, 1  ;;  %6037 = vmatprep.mubr.f32.mxu1 %v5814_v40  ;;  %v5688_v14 = vadd.f32 1.0, %v6902_v22  ;;  %6905 = vpow2.f32 %v5599_v61 }
 0x3bd   : > { %v2112_v13 = vsel %vm2004_vm1, %v12358_v34, %v2111_v62  ;;  %v2665_v55 = vsel %vm2557_vm2, %v12359_v43, %v2664_v16  ;;  %v12360_v23 = vrot.slane %v10356_v48, 1  ;;  %v12361_v36 = vrot.slane %v10373_v3, 2 }
 0x3be   : > { %v2271_v25 = vadd.f32 %v2112_v13, %v1718_v51  ;;  %v4330_v60 = vadd.f32 %v4266_v4, %v4129_v29  ;;  %v12362_v15 = vrot.slane %v10387_v6, 1  ;;  %v5039_v35 = vmul.f32 %v10389_v28, %v4945_v7  ;;  %v12363_v4 = vld [vmem:[#allocation19_spill] sm:$0xff]  ;;  %v3091_v6 = vld [vmem:[#allocation2 + $0x248] sm:$0xfe] }
 0x3bf   : > { %v3417_v37 = vsel %vm2004_vm1, %v12360_v23, %v3416_v49  ;;  %v3969_v44 = vsel %vm2557_vm2, %v12361_v36, %v3968_v8  ;;  %6907 = vrcp.f32 %v5688_v14  ;;  %v1657_v51 = vmul.f32 %v12342_v12, %v7698_v0  ;;  %v3643_v12 = vld [vmem:[#allocation2 + $0x248] sm:$0xfc]  ;;  %v12365_v29 = vld [vmem:[#allocation23_spill] sm:$0xff] }
 0x3c0   : > { %v4722_v52 = vsel %vm2004_vm1, %v12362_v15, %v4721_v47  ;;  %v2824_v5 = vadd.f32 %v2665_v55, %v2271_v25  ;;  %v1879_v48 = vmul.f32 %v12126_v45, %v1785_v46  ;;  %v4882_v56 = vadd.f32 %v4724_v32, %v4330_v60  ;;  %v12366_v47 = vld [vmem:[#allocation24_spill] sm:$0xff]  ;;  %v10505_v14 = vld [vmem:[#allocation2 + $0x278] sm:$0xff]  ;;  %v12368_v25 = vld [vmem:[#allocation21_spill] sm:$0xff] }
 0x3c1   : > { %v5273_v57 = vrot.slane %v5039_v35, 2  ;;  %v10478_v3 = vmul.f32 %v10090_v30, %v12126_v45  ;;  %v2432_v21 = vmul.f32 %v12363_v4, %v2338_v20  ;;  %v1721_v16 = vadd.f32 %v1657_v51, %v7724_v58  ;;  %12367 = vst [vmem:[#allocation20_spill] sm:$0xff] %v10505_v14  ;;  %v4396_v36 = vld [vmem:[#allocation2 + $0x278] sm:$0xfe] }
 0x3c2   : > { %v3024_v62 = vadd.f32 %v2960_v42, %v2824_v5  ;;  %v2118_v59 = vrot.slane %v1879_v48, 1  ;;  %v10484_v40 = vmul.f32 %v10090_v30, %v12363_v4  ;;  %v10486_v61 = vadd.f32 %v5276_v38, %v4882_v56  ;;  %v6904_v43 = vpop.eup %6903  ;;  %v4948_v15 = vld [vmem:[#allocation2 + $0x278] sm:$0xfc]  ;;  %v10516_v56 = vld [vmem:[#allocation2 + $0x288] sm:$0xff] }
 0x3c3   : > { %v12364_v32 = vrot.slane %v10394_v9, 2  ;;  %v12006_v8 = vrot.slane %v10478_v3, 1  ;;  %v2671_v7 = vrot.slane %v2432_v21, 2  ;;  %v2963_v34 = vmul.f32 %v12365_v29, %v12319_v11 }
 0x3c4   : > { %v3576_v22 = vadd.f32 %v3417_v37, %v3024_v62  ;;  %v12004_v42 = vrot.slane %v10484_v40, 2  ;;  %v3185_v13 = vmul.f32 %v12227_v1, %v3091_v6  ;;  %v5498_v55 = vsub.f32 0.0, %v10486_v61  ;;  %v12369_v6 = vld [vmem:[#allocation25_spill] sm:$0xff] }
 0x3c5   : > { %v5274_v49 = vsel %vm2557_vm2, %v12364_v32, %v5273_v57  ;;  %v2120_v9 = vsel %vm2004_vm1, %v2118_v59, %v12006_v8  ;;  %v10502_v38 = vmul.f32 %v10303_v24, %v12227_v1  ;;  %v3737_v46 = vmul.f32 %v12366_v47, %v3643_v12 }
 0x3c6   : > { %v5813_v23 = vmul.f32 %v6904_v43, %v12368_v25  ;;  %v4128_v37 = vadd.f32 %v3969_v44, %v3576_v22  ;;  %v2274_v20 = vadd.f32 %v2120_v9, %v1721_v16  ;;  %v2673_v60 = vsel %vm2557_vm2, %v2671_v7, %v12004_v42 }
 0x3c7   : > { %v5605_v35 = vmul.f32 1.442695, %v5498_v55  ;;  %v3423_v5 = vrot.slane %v3185_v13, 1  ;;  %v12001_v51 = vrot.slane %v10502_v38, 1  ;;  %v10514_v48 = vmul.f32 %v10303_v24, %v12366_v47  ;;  %v1784_v13 = vld [vmem:[#allocation2 + $0x210] sm:$0xfe] }
 0x3c8   : > { %6038 = vmatmul.mubr.f32.gmra.mxu1 %v5813_v23  ;;  %v4329_v44 = vadd.f32 %v10453_v26, %v4128_v37  ;;  %v2827_v57 = vadd.f32 %v2673_v60, %v2274_v20  ;;  %v3975_v21 = vrot.slane %v3737_v46, 2  ;;  %v4268_v62 = vmul.f32 %v12369_v6, %v10505_v14 }
 0x3c9   : > { %6909 = vpow2.f32 %v5605_v35  ;;  %v3425_v16 = vsel %vm2004_vm1, %v3423_v5, %v12001_v51  ;;  %v12000_v59 = vrot.slane %v10514_v48, 2  ;;  %v4490_v12 = vmul.f32 %v12188_v17, %v4396_v36  ;;  %v6906_v43 = vpop.eup %6905 }
 0x3ca   : > { %v4881_v32 = vadd.f32 %v4722_v52, %v4329_v44  ;;  %v3027_v7 = vadd.f32 %v2963_v34, %v2827_v57  ;;  %v10528_v22 = vmul.f32 %v12188_v17, %v10516_v56  ;;  %v5042_v26 = vmul.f32 %v10211_v27, %v4948_v15  ;;  %v12370_v52 = vld [vmem:[#allocation27_spill] sm:$0xff]  ;;  %v2337_v44 = vld [vmem:[#allocation2 + $0x210] sm:$0xfc]  ;;  %v12372_v57 = vld [vmem:[#allocation29_spill] sm:$0xff] }
 0x3cb   : > { %v3977_v55 = vsel %vm2557_vm2, %v3975_v21, %v12000_v59  ;;  %v4728_v9 = vrot.slane %v4490_v12, 1  ;;  %v10536_v46 = vmul.f32 %v10211_v27, %v10516_v56  ;;  %v1656_v34 = vmul.f32 %v12370_v52, %v12131_v50  ;;  %v10579_v59 = vld [vmem:[#allocation2 + $0x280] sm:$0xff] }
 0x3cc   : > { %v5687_v25 = vadd.f32 1.0, %v6906_v43  ;;  %v10540_v23 = vadd.f32 %v5274_v49, %v4881_v32  ;;  %v3579_v37 = vadd.f32 %v3425_v16, %v3027_v7  ;;  %v11999_v20 = vrot.slane %v10528_v22, 1  ;;  %v6908_v60 = vpop.eup %6907  ;;  %v3090_v49 = vld [vmem:[#allocation2 + $0x240] sm:$0xfe] }
 0x3cd   : > { %v5280_v36 = vrot.slane %v5042_v26, 2  ;;  %v11998_v15 = vrot.slane %v10536_v46, 2  ;;  %v1720_v35 = vadd.f32 %v1656_v34, %v12133_v63  ;;  %v1878_v5 = vmul.f32 %v12132_v10, %v1784_v13 }
 0x3ce   : > { %12371 = vst [vmem:[#allocation28_spill] sm:$0xff] %v10540_v23  ;;  %v5816_v21 = vmul.f32 %v6908_v60, %v12372_v57  ;;  %6911 = vrcp.f32 %v5687_v25  ;;  %v5497_v12 = vsub.f32 0.0, %v10540_v23  ;;  %v4131_v43 = vadd.f32 %v3977_v55, %v3579_v37  ;;  %v3642_v25 = vld [vmem:[#allocation2 + $0x240] sm:$0xfc]  ;;  %v12373_v37 = vld [vmem:[#allocation17_spill] sm:$0xff] }
 0x3cf   : > { %v4730_v16 = vsel %vm2004_vm1, %v4728_v9, %v11999_v20  ;;  %v5282_v32 = vsel %vm2557_vm2, %v5280_v36, %v11998_v15  ;;  %v10556_v7 = vmul.f32 %v10162_v54, %v12132_v10  ;;  %v2115_v26 = vrot.slane %v1878_v5, 1 }
 0x3d0   : > { %6042 = vmatprep.mubr.f32.mxu1 %v5816_v21  ;;  %v5603_v13 = vmul.f32 1.442695, %v5497_v12  ;;  %v4332_v52 = vadd.f32 %v4268_v62, %v4131_v43  ;;  %v2431_v34 = vmul.f32 %v12134_v53, %v2337_v44  ;;  %v10561_v55 = vmul.f32 %v10162_v54, %v12134_v53  ;;  %v10572_v21 = vld [vmem:[#allocation2 + $0x270] sm:$0xff] }
 0x3d1   : > { %v12003_v9 = vrot.slane %v10556_v7, 1  ;;  %v2962_v60 = vmul.f32 %v12373_v37, %v7770_v31  ;;  %v3184_v36 = vmul.f32 %v7812_v19, %v3090_v49  ;;  %v10569_v5 = vmul.f32 %v10375_v18, %v7812_v19  ;;  %12374 = vst [vmem:[#allocation16_spill] sm:$0xff] %v10572_v21  ;;  %v4395_v12 = vld [vmem:[#allocation2 + $0x270] sm:$0xfe] }
 0x3d2   : > { %6913 = vpow2.f32 %v5603_v13  ;;  %v4884_v62 = vadd.f32 %v4730_v16, %v4332_v52  ;;  %v2668_v57 = vrot.slane %v2431_v34, 2  ;;  %v12002_v44 = vrot.slane %v10561_v55, 2  ;;  %v4947_v34 = vld [vmem:[#allocation2 + $0x270] sm:$0xfc] }
 0x3d3   : > { %v2117_v43 = vsel %vm2004_vm1, %v2115_v26, %v12003_v9  ;;  %v3420_v15 = vrot.slane %v3184_v36, 1  ;;  %v12005_v20 = vrot.slane %v10569_v5, 1  ;;  %v3736_v49 = vmul.f32 %v7823_v33, %v3642_v25 }
 0x3d4   : > { %v10581_v51 = vadd.f32 %v5282_v32, %v4884_v62  ;;  %v2273_v16 = vadd.f32 %v2117_v43, %v1720_v35  ;;  %v2670_v13 = vsel %vm2557_vm2, %v2668_v57, %v12002_v44  ;;  %v10588_v52 = vmul.f32 %v10375_v18, %v7823_v33 }
 0x3d5   : > { %v3422_v26 = vsel %vm2004_vm1, %v3420_v15, %v12005_v20  ;;  %v3972_v36 = vrot.slane %v3736_v49, 2  ;;  %v4267_v25 = vmul.f32 %v7829_v39, %v10572_v21  ;;  %v4489_v32 = vmul.f32 %v7841_v2, %v4395_v12  ;;  %v1787_v20 = vld [vmem:[#allocation2 + $0x238] sm:$0x1] }
 0x3d6   : > { %12375 = vst [vmem:[#allocation18_spill] sm:$0xff] %v10581_v51  ;;  %v6910_v35 = vpop.eup %6909  ;;  %v5500_v62 = vsub.f32 0.0, %v10581_v51  ;;  %v2826_v43 = vadd.f32 %v2670_v13, %v2273_v16  ;;  %v12010_v57 = vrot.slane %v10588_v52, 2  ;;  %v10600_v44 = vmul.f32 %v7841_v2, %v10579_v59  ;;  %v2340_v21 = vld [vmem:[#allocation2 + $0x238] sm:$0x3] }
 0x3d7   : > { %v5690_v9 = vadd.f32 1.0, %v6910_v35  ;;  %v4725_v42 = vrot.slane %v4489_v32, 1  ;;  %v5041_v15 = vmul.f32 %v10389_v28, %v4947_v34  ;;  %v10605_v49 = vmul.f32 %v10389_v28, %v10579_v59  ;;  %v3093_v35 = vld [vmem:[#allocation2 + $0x268] sm:$0x1] }
 0x3d8   : > { %v5609_v12 = vmul.f32 1.442695, %v5500_v62  ;;  %v3026_v8 = vadd.f32 %v2962_v60, %v2826_v43  ;;  %v3974_v16 = vsel %vm2557_vm2, %v3972_v36, %v12010_v57  ;;  %v12011_v13 = vrot.slane %v10600_v44, 1  ;;  %v3645_v36 = vld [vmem:[#allocation2 + $0x268] sm:$0x3] }
 0x3d9   : > { %12376 = vst [vmem:[#allocation19_spill] sm:$0xff] %v10605_v49  ;;  %6915 = vrcp.f32 %v5690_v9  ;;  %v5277_v51 = vrot.slane %v5041_v15, 2  ;;  %v12015_v32 = vrot.slane %v10605_v49, 2  ;;  %v1659_v34 = vmul.f32 %v10090_v30, %v7698_v0  ;;  %v4398_v43 = vld [vmem:[#allocation2 + $0x298] sm:$0x1] }
 0x3da   : > { %6917 = vpow2.f32 %v5609_v12  ;;  %v3578_v37 = vadd.f32 %v3422_v26, %v3026_v8  ;;  %v4727_v60 = vsel %vm2004_vm1, %v4725_v42, %v12011_v13  ;;  %v1883_v62 = vmul.f32 %v12126_v45, %v1787_v20  ;;  %v4950_v26 = vld [vmem:[#allocation2 + $0x298] sm:$0x3] }
 0x3db   : > { %v6912_v57 = vpop.eup %6911  ;;  %v5279_v9 = vsel %vm2557_vm2, %v5277_v51, %v12015_v32  ;;  %v1723_v15 = vadd.f32 %v1659_v34, %v7724_v58  ;;  %v2436_v30 = vmul.f32 %v12363_v4, %v2340_v21  ;;  %v2965_v8 = vmul.f32 %v10303_v24, %v12319_v11 }
 0x3dc   : > { %v5815_v12 = vmul.f32 %v6912_v57, %v10438_v41  ;;  %v4130_v42 = vadd.f32 %v3974_v16, %v3578_v37  ;;  %v2123_v13 = vrot.slane %v1883_v62, 1  ;;  %v3189_v20 = vmul.f32 %v12227_v1, %v3093_v35 }
 0x3dd   : > { %v2676_v23 = vrot.slane %v2436_v30, 2  ;;  %v3741_v14 = vmul.f32 %v12366_v47, %v3645_v36  ;;  %v4270_v51 = vmul.f32 %v12369_v6, %v10516_v56  ;;  %v4494_v34 = vmul.f32 %v12188_v17, %v4398_v43  ;;  %v1786_v30 = vld [vmem:[#allocation2 + $0x230] sm:$0x1] }
 0x3de   : > { %6043 = vmatmul.mubr.f32.gmra.mxu1 %v5815_v12  ;;  %v4331_v21 = vadd.f32 %v4267_v25, %v4130_v42  ;;  %v12377_v32 = vrot.slane %v10478_v3, 1  ;;  %v3428_v49 = vrot.slane %v3189_v20, 1  ;;  %v5046_v41 = vmul.f32 %v10211_v27, %v4950_v26  ;;  %v4397_v42 = vld [vmem:[#allocation2 + $0x290] sm:$0x1] }
 0x3df   : > { %v6914_v37 = vpop.eup %6913  ;;  %v12378_v16 = vrot.slane %v10484_v40, 2  ;;  %v3980_v62 = vrot.slane %v3741_v14, 2  ;;  %v4733_v36 = vrot.slane %v4494_v34, 1  ;;  %v12379_v25 = vrot.slane %v10502_v38, 1 }
 0x3e0   : > { %v2124_v11 = vsel %vm2004_vm1, %v12377_v32, %v2123_v13  ;;  %v5689_v6 = vadd.f32 1.0, %v6914_v37  ;;  %v4883_v43 = vadd.f32 %v4727_v60, %v4331_v21  ;;  %v5285_v12 = vrot.slane %v5046_v41, 2  ;;  %v2339_v13 = vld [vmem:[#allocation2 + $0x230] sm:$0x3]  ;;  %v3644_v60 = vld [vmem:[#allocation2 + $0x260] sm:$0x3] }
 0x3e1   : > { %v2276_v57 = vadd.f32 %v2124_v11, %v1723_v15  ;;  %v2677_v35 = vsel %vm2557_vm2, %v12378_v16, %v2676_v23  ;;  %v3429_v3 = vsel %vm2004_vm1, %v12379_v25, %v3428_v49  ;;  %v12380_v27 = vrot.slane %v10514_v48, 2  ;;  %v3092_v15 = vld [vmem:[#allocation2 + $0x260] sm:$0x1]  ;;  %v4949_v25 = vld [vmem:[#allocation2 + $0x290] sm:$0x3] }
 0x3e2   : > { %v12381_v40 = vrot.slane %v10528_v22, 1  ;;  %v1658_v14 = vmul.f32 %v10162_v54, %v12131_v50  ;;  %6919 = vrcp.f32 %v5689_v6  ;;  %v10649_v38 = vadd.f32 %v5279_v9, %v4883_v43 }
 0x3e3   : > { %v2829_v32 = vadd.f32 %v2677_v35, %v2276_v57  ;;  %v3981_v11 = vsel %vm2557_vm2, %v12380_v27, %v3980_v62  ;;  %v12382_v49 = vrot.slane %v10536_v46, 2  ;;  %v1882_v48 = vmul.f32 %v12132_v10, %v1786_v30 }
 0x3e4   : > { %v4734_v23 = vsel %vm2004_vm1, %v12381_v40, %v4733_v36  ;;  %v1722_v22 = vadd.f32 %v1658_v14, %v12133_v63  ;;  %v2435_v34 = vmul.f32 %v12134_v53, %v2339_v13  ;;  %v2964_v54 = vmul.f32 %v10375_v18, %v7770_v31  ;;  %v1789_v14 = vld [vmem:[#allocation2 + $0x248] sm:$0xfe] }
 0x3e5   : > { %v5286_v26 = vsel %vm2557_vm2, %v12382_v49, %v5285_v12  ;;  %v3029_v20 = vadd.f32 %v2965_v8, %v2829_v32  ;;  %v5499_v21 = vsub.f32 0.0, %v10649_v38  ;;  %v2121_v6 = vrot.slane %v1882_v48, 1 }
 0x3e6   : > { %v3188_v9 = vmul.f32 %v7812_v19, %v3092_v15  ;;  %v3740_v46 = vmul.f32 %v7823_v33, %v3644_v60  ;;  %v2674_v37 = vrot.slane %v2435_v34, 2  ;;  %v4269_v57 = vmul.f32 %v7829_v39, %v10579_v59  ;;  %v6916_v16 = vpop.eup %6915 }
 0x3e7   : > { %v3581_v41 = vadd.f32 %v3429_v3, %v3029_v20  ;;  %v4493_v8 = vmul.f32 %v7841_v2, %v4397_v42  ;;  %v5607_v35 = vmul.f32 1.442695, %v5499_v21  ;;  %v12383_v62 = vrot.slane %v10556_v7, 1  ;;  %v6918_v12 = vpop.eup %6917 }
 0x3e8   : > { %v3426_v30 = vrot.slane %v3188_v9, 1  ;;  %v3978_v43 = vrot.slane %v3740_v46, 2  ;;  %v5818_v13 = vmul.f32 %v6916_v16, %v10486_v61  ;;  %v12384_v27 = vrot.slane %v10561_v55, 2  ;;  %v2342_v55 = vld [vmem:[#allocation2 + $0x248] sm:$0xfc] }
 0x3e9   : > { %v2122_v36 = vsel %vm2004_vm1, %v12383_v62, %v2121_v6  ;;  %v4133_v32 = vadd.f32 %v3981_v11, %v3581_v41  ;;  %v5692_v15 = vadd.f32 1.0, %v6918_v12  ;;  %6921 = vpow2.f32 %v5607_v35  ;;  %v3095_v46 = vld [vmem:[#allocation2 + $0x278] sm:$0xfe]  ;;  %v12391_v12 = vld [vmem:[#allocation20_spill] sm:$0xff] }
 0x3ea   : > { %v2275_v3 = vadd.f32 %v2122_v36, %v1722_v22  ;;  %v2675_v40 = vsel %vm2557_vm2, %v12384_v27, %v2674_v37  ;;  %v12385_v60 = vrot.slane %v10569_v5, 1  ;;  %v12386_v49 = vrot.slane %v10588_v52, 2  ;;  %6047 = vmatprep.mubr.f32.mxu1 %v5818_v13  ;;  %v12388_v62 = vld [vmem:[#allocation19_spill] sm:$0xff] }
 0x3eb   : > { %v4334_v42 = vadd.f32 %v4270_v51, %v4133_v32  ;;  %v4731_v11 = vrot.slane %v4493_v8, 1  ;;  %v5045_v20 = vmul.f32 %v10389_v28, %v4949_v25  ;;  %6923 = vrcp.f32 %v5692_v15  ;;  %v12390_v25 = vld [vmem:[#allocation22_spill] sm:$0xff]  ;;  %v10709_v15 = vld [vmem:[#allocation2 + $0x2a8] sm:$0xff] }
 0x3ec   : > { %v3427_v7 = vsel %vm2004_vm1, %v12385_v60, %v3426_v30  ;;  %v3979_v48 = vsel %vm2557_vm2, %v12386_v49, %v3978_v43  ;;  %v2828_v61 = vadd.f32 %v2675_v40, %v2275_v3  ;;  %v1661_v22 = vmul.f32 %v12365_v29, %v7698_v0  ;;  %12392 = vst [vmem:[#allocation23_spill] sm:$0xff] %v10709_v15  ;;  %v12393_v60 = vld [vmem:[#allocation28_spill] sm:$0xff] }
 0x3ed   : > { %v1885_v34 = vmul.f32 %v12126_v45, %v1789_v14  ;;  %v10684_v5 = vmul.f32 %v10303_v24, %v12126_v45  ;;  %v4886_v52 = vadd.f32 %v4734_v23, %v4334_v42  ;;  %v12387_v6 = vrot.slane %v10600_v44, 1 }
 0x3ee   : > { %v3028_v21 = vadd.f32 %v2964_v54, %v2828_v61  ;;  %v5283_v9 = vrot.slane %v5045_v20, 2  ;;  %v1725_v41 = vadd.f32 %v1661_v22, %v7724_v58  ;;  %v2438_v29 = vmul.f32 %v12363_v4, %v2342_v55  ;;  %v3647_v54 = vld [vmem:[#allocation2 + $0x278] sm:$0xfc] }
 0x3ef   : > { %v4732_v51 = vsel %vm2004_vm1, %v12387_v6, %v4731_v11  ;;  %v2128_v37 = vrot.slane %v1885_v34, 1  ;;  %v12026_v8 = vrot.slane %v10684_v5, 1  ;;  %v10692_v16 = vadd.f32 %v5286_v26, %v4886_v52  ;;  %v6920_v32 = vpop.eup %6919  ;;  %v4400_v11 = vld [vmem:[#allocation2 + $0x2a8] sm:$0xfe]  ;;  %v10724_v34 = vld [vmem:[#allocation2 + $0x2b8] sm:$0xff] }
 0x3f0   : > { %v3580_v35 = vadd.f32 %v3427_v7, %v3028_v21  ;;  %v12389_v36 = vrot.slane %v12388_v62, 2  ;;  %v10699_v44 = vmul.f32 %v10303_v24, %v12363_v4  ;;  %v2681_v43 = vrot.slane %v2438_v29, 2  ;;  %v4952_v52 = vld [vmem:[#allocation2 + $0x2a8] sm:$0xfc] }
 0x3f1   : > { %v2130_v30 = vsel %vm2004_vm1, %v2128_v37, %v12026_v8  ;;  %v2967_v13 = vmul.f32 %v12391_v12, %v12390_v25  ;;  %v3191_v26 = vmul.f32 %v12227_v1, %v3095_v46  ;;  %v5502_v3 = vsub.f32 0.0, %v10692_v16  ;;  %v12394_v46 = vld [vmem:[#allocation25_spill] sm:$0xff] }
 0x3f2   : > { %v5284_v23 = vsel %vm2557_vm2, %v12389_v36, %v5283_v9  ;;  %v4132_v27 = vadd.f32 %v3979_v48, %v3580_v35  ;;  %v2278_v40 = vadd.f32 %v2130_v30, %v1725_v41  ;;  %v12024_v14 = vrot.slane %v10699_v44, 2 }
 0x3f3   : > { %v5817_v7 = vmul.f32 %v6920_v32, %v12393_v60  ;;  %v10714_v49 = vmul.f32 %v10516_v56, %v12227_v1  ;;  %v3433_v42 = vrot.slane %v3191_v26, 1  ;;  %v3743_v61 = vmul.f32 %v12366_v47, %v3647_v54  ;;  %v10738_v54 = vld [vmem:[#allocation8 + $0x18] ss:$0 sm:$0xff] }
 0x3f4   : > { %v5613_v20 = vmul.f32 1.442695, %v5502_v3  ;;  %v4333_v55 = vadd.f32 %v4269_v57, %v4132_v27  ;;  %v2683_v48 = vsel %vm2557_vm2, %v2681_v43, %v12024_v14  ;;  %v10722_v22 = vmul.f32 %v10516_v56, %v12366_v47  ;;  %v1788_v43 = vld [vmem:[#allocation2 + $0x240] sm:$0xfe] }
 0x3f5   : > { %6048 = vmatmul.mubr.f32.gmra.mxu1 %v5817_v7  ;;  %v2831_v21 = vadd.f32 %v2683_v48, %v2278_v40  ;;  %v12022_v6 = vrot.slane %v10714_v49, 1  ;;  %v3985_v9 = vrot.slane %v3743_v61, 2  ;;  %v4272_v41 = vmul.f32 %v12394_v46, %v10709_v15  ;;  %v2341_v48 = vld [vmem:[#allocation2 + $0x240] sm:$0xfc] }
 0x3f6   : > { %6925 = vpow2.f32 %v5613_v20  ;;  %v4885_v57 = vadd.f32 %v4732_v51, %v4333_v55  ;;  %v12021_v37 = vrot.slane %v10722_v22, 2  ;;  %v4496_v29 = vmul.f32 %v12188_v17, %v4400_v11  ;;  %v6922_v26 = vpop.eup %6921  ;;  %v12396_v11 = vld [vmem:[#allocation17_spill] sm:$0xff] }
 0x3f7   : > { %v3031_v35 = vadd.f32 %v2967_v13, %v2831_v21  ;;  %v3435_v62 = vsel %vm2004_vm1, %v3433_v42, %v12022_v6  ;;  %v10736_v36 = vmul.f32 %v12188_v17, %v10724_v34  ;;  %v5048_v30 = vmul.f32 %v10738_v54, %v4952_v52  ;;  %v12397_v52 = vld [vmem:[#allocation18_spill] sm:$0xff]  ;;  %v4951_v6 = vld [vmem:[#allocation2 + $0x2a0] sm:$0xfc] }
 0x3f8   : > { %v10741_v51 = vadd.f32 %v5284_v23, %v4885_v57  ;;  %v3987_v13 = vsel %vm2557_vm2, %v3985_v9, %v12021_v37  ;;  %v4738_v32 = vrot.slane %v4496_v29, 1  ;;  %v10748_v3 = vmul.f32 %v10738_v54, %v10724_v34  ;;  %v6924_v42 = vpop.eup %6923  ;;  %v3094_v29 = vld [vmem:[#allocation2 + $0x270] sm:$0xfe] }
 0x3f9   : > { %v5691_v27 = vadd.f32 1.0, %v6922_v26  ;;  %v3583_v40 = vadd.f32 %v3435_v62, %v3031_v35  ;;  %v12020_v60 = vrot.slane %v10736_v36, 1  ;;  %v5290_v7 = vrot.slane %v5048_v30, 2 }
 0x3fa   : > { %12395 = vst [vmem:[#allocation24_spill] sm:$0xff] %v10741_v51  ;;  %v5501_v61 = vsub.f32 0.0, %v10741_v51  ;;  %v12019_v23 = vrot.slane %v10748_v3, 2  ;;  %v1660_v20 = vmul.f32 %v12396_v11, %v12131_v50  ;;  %v1884_v55 = vmul.f32 %v12132_v10, %v1788_v43 }
 0x3fb   : > { %v5820_v21 = vmul.f32 %v6924_v42, %v12397_v52  ;;  %6927 = vrcp.f32 %v5691_v27  ;;  %v4135_v9 = vadd.f32 %v3987_v13, %v3583_v40  ;;  %v4740_v57 = vsel %vm2004_vm1, %v4738_v32, %v12020_v60  ;;  %v3646_v40 = vld [vmem:[#allocation2 + $0x270] sm:$0xfc] }
 0x3fc   : > { %v5611_v35 = vmul.f32 1.442695, %v5501_v61  ;;  %v5292_v62 = vsel %vm2557_vm2, %v5290_v7, %v12019_v23  ;;  %v1724_v30 = vadd.f32 %v1660_v20, %v12133_v63  ;;  %v10766_v43 = vmul.f32 %v10375_v18, %v12132_v10  ;;  %v12398_v7 = vld [vmem:[#allocation16_spill] sm:$0xff] }
 0x3fd   : > { %6052 = vmatprep.mubr.f32.mxu1 %v5820_v21  ;;  %v4336_v26 = vadd.f32 %v4272_v41, %v4135_v9  ;;  %v2125_v27 = vrot.slane %v1884_v55, 1  ;;  %v2437_v13 = vmul.f32 %v12134_v53, %v2341_v48  ;;  %v10771_v32 = vmul.f32 %v10375_v18, %v12134_v53  ;;  %v10782_v48 = vld [vmem:[#allocation2 + $0x2a0] sm:$0xff] }
 0x3fe   : > { %6929 = vpow2.f32 %v5611_v35  ;;  %v12023_v42 = vrot.slane %v10766_v43, 1  ;;  %v2966_v61 = vmul.f32 %v12398_v7, %v7770_v31  ;;  %v3190_v11 = vmul.f32 %v7812_v19, %v3094_v29  ;;  %12399 = vst [vmem:[#allocation21_spill] sm:$0xff] %v10782_v48  ;;  %v4399_v21 = vld [vmem:[#allocation2 + $0x2a0] sm:$0xfe]  ;;  %v10792_v29 = vld [vmem:[#allocation2 + $0x2b0] sm:$0xff] }
 0x3ff   : > { %v4888_v20 = vadd.f32 %v4740_v57, %v4336_v26  ;;  %v2678_v52 = vrot.slane %v2437_v13, 2  ;;  %v12025_v41 = vrot.slane %v10771_v32, 2  ;;  %v10780_v55 = vmul.f32 %v10579_v59, %v7812_v19 }
 0x400   : > { %v2127_v9 = vsel %vm2004_vm1, %v2125_v27, %v12023_v42  ;;  %v3430_v35 = vrot.slane %v3190_v11, 1  ;;  %v3742_v23 = vmul.f32 %v7823_v33, %v3646_v40  ;;  %v10790_v57 = vmul.f32 %v10579_v59, %v7823_v33 }
 0x401   : > { %v10794_v26 = vadd.f32 %v5292_v62, %v4888_v20  ;;  %v2277_v13 = vadd.f32 %v2127_v9, %v1724_v30  ;;  %v2680_v60 = vsel %vm2557_vm2, %v2678_v52, %v12025_v41  ;;  %v12030_v37 = vrot.slane %v10780_v55, 1 }
 0x402   : > { %v3982_v27 = vrot.slane %v3742_v23, 2  ;;  %v12031_v11 = vrot.slane %v10790_v57, 2  ;;  %v4271_v40 = vmul.f32 %v7829_v39, %v10782_v48  ;;  %v4495_v42 = vmul.f32 %v7841_v2, %v4399_v21  ;;  %v1791_v23 = vld [vmem:[#allocation2 + $0x268] sm:$0x1] }
 0x403   : > { %12400 = vst [vmem:[#allocation27_spill] sm:$0xff] %v10794_v26  ;;  %v6926_v14 = vpop.eup %6925  ;;  %v5504_v62 = vsub.f32 0.0, %v10794_v26  ;;  %v2830_v20 = vadd.f32 %v2680_v60, %v2277_v13  ;;  %v3432_v30 = vsel %vm2004_vm1, %v3430_v35, %v12030_v37  ;;  %v10810_v52 = vmul.f32 %v7841_v2, %v10792_v29  ;;  %v2344_v13 = vld [vmem:[#allocation2 + $0x268] sm:$0x3] }
 0x404   : > { %v5694_v9 = vadd.f32 1.0, %v6926_v14  ;;  %v3984_v41 = vsel %vm2557_vm2, %v3982_v27, %v12031_v11  ;;  %v4735_v8 = vrot.slane %v4495_v42, 1  ;;  %v5047_v21 = vmul.f32 %v10389_v28, %v4951_v6  ;;  %v3097_v27 = vld [vmem:[#allocation2 + $0x298] sm:$0x1] }
 0x405   : > { %v5617_v48 = vmul.f32 1.442695, %v5504_v62  ;;  %v3030_v26 = vadd.f32 %v2966_v61, %v2830_v20  ;;  %v12032_v60 = vrot.slane %v10810_v52, 1  ;;  %v10819_v35 = vmul.f32 %v10389_v28, %v10792_v29  ;;  %v3649_v62 = vld [vmem:[#allocation2 + $0x298] sm:$0x3] }
 0x406   : > { %6931 = vrcp.f32 %v5694_v9  ;;  %v5287_v37 = vrot.slane %v5047_v21, 2  ;;  %v1663_v14 = vmul.f32 %v10303_v24, %v7698_v0  ;;  %v1889_v7 = vmul.f32 %v12126_v45, %v1791_v23  ;;  %v4402_v23 = vld [vmem:[#allocation2 + $0x2c8] sm:$0x1] }
 0x407   : > { %6933 = vpow2.f32 %v5617_v48  ;;  %v3582_v42 = vadd.f32 %v3432_v30, %v3030_v26  ;;  %v4737_v6 = vsel %vm2004_vm1, %v4735_v8, %v12032_v60  ;;  %v12037_v61 = vrot.slane %v10819_v35, 2  ;;  %v4954_v60 = vld [vmem:[#allocation2 + $0x2c8] sm:$0x3] }
 0x408   : > { %v6928_v20 = vpop.eup %6927  ;;  %v1727_v11 = vadd.f32 %v1663_v14, %v7724_v58  ;;  %v2133_v9 = vrot.slane %v1889_v7, 1  ;;  %v2442_v21 = vmul.f32 %v12363_v4, %v2344_v13  ;;  %v2969_v24 = vmul.f32 %v10516_v56, %v12390_v25 }
 0x409   : > { %v5819_v48 = vmul.f32 %v6928_v20, %v10649_v38  ;;  %v4134_v26 = vadd.f32 %v3984_v41, %v3582_v42  ;;  %v5289_v8 = vsel %vm2557_vm2, %v5287_v37, %v12037_v61  ;;  %v3195_v30 = vmul.f32 %v12227_v1, %v3097_v27 }
 0x40a   : > { %v12401_v51 = vrot.slane %v10684_v5, 1  ;;  %v2686_v14 = vrot.slane %v2442_v21, 2  ;;  %v3747_v13 = vmul.f32 %v12366_v47, %v3649_v62  ;;  %v4274_v15 = vmul.f32 %v12394_v46, %v10724_v34 }
 0x40b   : > { %v6930_v25 = vpop.eup %6929  ;;  %6053 = vmatmul.mubr.f32.gmra.mxu1 %v5819_v48  ;;  %v4335_v38 = vadd.f32 %v4271_v40, %v4134_v26  ;;  %v3438_v42 = vrot.slane %v3195_v30, 1  ;;  %v4500_v37 = vmul.f32 %v12188_v17, %v4402_v23  ;;  %v12402_v27 = vrot.slane %v10699_v44, 2  ;;  %v3096_v30 = vld [vmem:[#allocation2 + $0x290] sm:$0x1] }
 0x40c   : > { %v2134_v7 = vsel %vm2004_vm1, %v12401_v51, %v2133_v9  ;;  %v5693_v20 = vadd.f32 1.0, %v6930_v25  ;;  %v3990_v61 = vrot.slane %v3747_v13, 2  ;;  %v5052_v51 = vmul.f32 %v10738_v54, %v4954_v60  ;;  %v1790_v9 = vld [vmem:[#allocation2 + $0x260] sm:$0x1] }
 0x40d   : > { %v2280_v41 = vadd.f32 %v2134_v7, %v1727_v11  ;;  %v2687_v5 = vsel %vm2557_vm2, %v12402_v27, %v2686_v14  ;;  %v4887_v62 = vadd.f32 %v4737_v6, %v4335_v38  ;;  %v12403_v46 = vrot.slane %v10714_v49, 1  ;;  %v2343_v11 = vld [vmem:[#allocation2 + $0x260] sm:$0x3]  ;;  %v3648_v14 = vld [vmem:[#allocation2 + $0x290] sm:$0x3] }
 0x40e   : > { %v4743_v40 = vrot.slane %v4500_v37, 1  ;;  %6935 = vrcp.f32 %v5693_v20  ;;  %v12404_v23 = vrot.slane %v10722_v22, 2  ;;  %v5295_v44 = vrot.slane %v5052_v51, 2  ;;  %v4401_v13 = vld [vmem:[#allocation2 + $0x2c0] sm:$0x1] }
 0x40f   : > { %v2833_v21 = vadd.f32 %v2687_v5, %v2280_v41  ;;  %v3439_v48 = vsel %vm2004_vm1, %v12403_v46, %v3438_v42  ;;  %v1662_v26 = vmul.f32 %v10375_v18, %v12131_v50  ;;  %v10856_v60 = vadd.f32 %v5289_v8, %v4887_v62 }
 0x410   : > { %v3991_v25 = vsel %vm2557_vm2, %v12404_v23, %v3990_v61  ;;  %v12405_v7 = vrot.slane %v10736_v36, 1  ;;  %v1888_v46 = vmul.f32 %v12132_v10, %v1790_v9  ;;  %v12406_v22 = vrot.slane %v10748_v3, 2 }
 0x411   : > { %v3033_v6 = vadd.f32 %v2969_v24, %v2833_v21  ;;  %v1726_v38 = vadd.f32 %v1662_v26, %v12133_v63  ;;  %v2441_v18 = vmul.f32 %v12134_v53, %v2343_v11  ;;  %v2968_v8 = vmul.f32 %v10579_v59, %v7770_v31 }
 0x412   : > { %v4744_v49 = vsel %vm2004_vm1, %v12405_v7, %v4743_v40  ;;  %v5296_v61 = vsel %vm2557_vm2, %v12406_v22, %v5295_v44  ;;  %v5503_v24 = vsub.f32 0.0, %v10856_v60  ;;  %v2131_v41 = vrot.slane %v1888_v46, 1  ;;  %v1793_v7 = vld [vmem:[#allocation2 + $0x278] sm:$0xfe] }
 0x413   : > { %v3585_v36 = vadd.f32 %v3439_v48, %v3033_v6  ;;  %v3194_v42 = vmul.f32 %v7812_v19, %v3096_v30  ;;  %v2684_v37 = vrot.slane %v2441_v18, 2  ;;  %v3746_v20 = vmul.f32 %v7823_v33, %v3648_v14  ;;  %v6932_v5 = vpop.eup %6931  ;;  %v4953_v48 = vld [vmem:[#allocation2 + $0x2c0] sm:$0x3]  ;;  %v2346_v18 = vld [vmem:[#allocation2 + $0x278] sm:$0xfc] }
 0x414   : > { %v4273_v3 = vmul.f32 %v7829_v39, %v10792_v29  ;;  %v4499_v27 = vmul.f32 %v7841_v2, %v4401_v13  ;;  %v5615_v51 = vmul.f32 1.442695, %v5503_v24  ;;  %v12407_v62 = vrot.slane %v10766_v43, 1  ;;  %v6934_v11 = vpop.eup %6933 }
 0x415   : > { %v4137_v9 = vadd.f32 %v3991_v25, %v3585_v36  ;;  %v3436_v40 = vrot.slane %v3194_v42, 1  ;;  %v5822_v23 = vmul.f32 %v6932_v5, %v10692_v16  ;;  %v12408_v26 = vrot.slane %v10771_v32, 2 }
 0x416   : > { %v2132_v21 = vsel %vm2004_vm1, %v12407_v62, %v2131_v41  ;;  %v3988_v6 = vrot.slane %v3746_v20, 2  ;;  %v5696_v46 = vadd.f32 1.0, %v6934_v11  ;;  %6937 = vpow2.f32 %v5615_v51  ;;  %v3099_v20 = vld [vmem:[#allocation2 + $0x2a8] sm:$0xfe] }
 0x417   : > { %v2279_v44 = vadd.f32 %v2132_v21, %v1726_v38  ;;  %v2685_v30 = vsel %vm2557_vm2, %v12408_v26, %v2684_v37  ;;  %v4338_v14 = vadd.f32 %v4274_v15, %v4137_v9  ;;  %v12409_v25 = vrot.slane %v10780_v55, 1  ;;  %6057 = vmatprep.mubr.f32.mxu1 %v5822_v23  ;;  %v12415_v26 = vld [vmem:[#allocation24_spill] sm:$0xff] }
 0x418   : > { %v12410_v22 = vrot.slane %v10790_v57, 2  ;;  %v4741_v38 = vrot.slane %v4499_v27, 1  ;;  %v5051_v32 = vmul.f32 %v10389_v28, %v4953_v48  ;;  %6939 = vrcp.f32 %v5696_v46  ;;  %v12414_v48 = vld [vmem:[#allocation23_spill] sm:$0xff] }
 0x419   : > { %v3437_v43 = vsel %vm2004_vm1, %v12409_v25, %v3436_v40  ;;  %v2832_v13 = vadd.f32 %v2685_v30, %v2279_v44  ;;  %v4890_v24 = vadd.f32 %v4744_v49, %v4338_v14  ;;  %v1665_v36 = vmul.f32 %v12391_v12, %v7698_v0  ;;  %v12413_v40 = vld [vmem:[#allocation22_spill] sm:$0xff]  ;;  %v3651_v44 = vld [vmem:[#allocation2 + $0x2a8] sm:$0xfc]  ;;  %v10920_v46 = vld [vmem:[#allocation2 + $0x2d8] sm:$0xff] }
 0x41a   : > { %v3989_v16 = vsel %vm2557_vm2, %v12410_v22, %v3988_v6  ;;  %v1891_v15 = vmul.f32 %v12126_v45, %v1793_v7  ;;  %v12411_v41 = vrot.slane %v10810_v52, 1  ;;  %v5293_v37 = vrot.slane %v5051_v32, 2  ;;  %12416 = vst [vmem:[#allocation29_spill] sm:$0xff] %v10920_v46  ;;  %v4404_v22 = vld [vmem:[#allocation2 + $0x2d8] sm:$0xfe] }
 0x41b   : > { %v3032_v55 = vadd.f32 %v2968_v8, %v2832_v13  ;;  %v10897_v57 = vmul.f32 %v10516_v56, %v12126_v45  ;;  %v10899_v28 = vadd.f32 %v5296_v61, %v4890_v24  ;;  %v1729_v49 = vadd.f32 %v1665_v36, %v7724_v58  ;;  %v6936_v62 = vpop.eup %6935  ;;  %v10934_v24 = vld [vmem:[#allocation2 + $0x2e8] sm:$0xff]  ;;  %v4956_v36 = vld [vmem:[#allocation2 + $0x2d8] sm:$0xfc] }
 0x41c   : > { %v4742_v42 = vsel %vm2004_vm1, %v12411_v41, %v4741_v38  ;;  %v2138_v27 = vrot.slane %v1891_v15, 1  ;;  %v2444_v12 = vmul.f32 %v12363_v4, %v2346_v18  ;;  %v12412_v8 = vrot.slane %v10819_v35, 2  ;;  %v12417_v41 = vld [vmem:[#allocation25_spill] sm:$0xff] }
 0x41d   : > { %v3584_v5 = vadd.f32 %v3437_v43, %v3032_v55  ;;  %v12046_v51 = vrot.slane %v10897_v57, 1  ;;  %v10909_v9 = vmul.f32 %v10516_v56, %v12363_v4  ;;  %v5506_v61 = vsub.f32 0.0, %v10899_v28 }
 0x41e   : > { %v5294_v52 = vsel %vm2557_vm2, %v12412_v8, %v5293_v37  ;;  %v2691_v21 = vrot.slane %v2444_v12, 2  ;;  %v2971_v11 = vmul.f32 %v12414_v48, %v12413_v40  ;;  %v3197_v23 = vmul.f32 %v12227_v1, %v3099_v20 }
 0x41f   : > { %v5821_v35 = vmul.f32 %v6936_v62, %v12415_v26  ;;  %v4136_v30 = vadd.f32 %v3989_v16, %v3584_v5  ;;  %v2140_v6 = vsel %vm2004_vm1, %v2138_v27, %v12046_v51  ;;  %v12045_v7 = vrot.slane %v10909_v9, 2  ;;  %v11023_v51 = vld [vmem:[#allocation8 + $0x10] ss:$0 sm:$0xff] }
 0x420   : > { %v5621_v14 = vmul.f32 1.442695, %v5506_v61  ;;  %v2282_v25 = vadd.f32 %v2140_v6, %v1729_v49  ;;  %v10924_v43 = vmul.f32 %v10724_v34, %v12227_v1  ;;  %v3443_v13 = vrot.slane %v3197_v23, 1  ;;  %v1792_v61 = vld [vmem:[#allocation2 + $0x270] sm:$0xfe] }
 0x421   : > { %6058 = vmatmul.mubr.f32.gmra.mxu1 %v5821_v35  ;;  %v4337_v38 = vadd.f32 %v4273_v3, %v4136_v30  ;;  %v2693_v16 = vsel %vm2557_vm2, %v2691_v21, %v12045_v7  ;;  %v3749_v32 = vmul.f32 %v12366_v47, %v3651_v44  ;;  %v10932_v18 = vmul.f32 %v10724_v34, %v12366_v47 }
 0x422   : > { %6941 = vpow2.f32 %v5621_v14  ;;  %v2835_v15 = vadd.f32 %v2693_v16, %v2282_v25  ;;  %v12044_v55 = vrot.slane %v10924_v43, 1  ;;  %v4276_v3 = vmul.f32 %v12417_v41, %v10920_v46  ;;  %v2345_v16 = vld [vmem:[#allocation2 + $0x270] sm:$0xfc] }
 0x423   : > { %v4889_v37 = vadd.f32 %v4742_v42, %v4337_v38  ;;  %v3995_v20 = vrot.slane %v3749_v32, 2  ;;  %v12041_v49 = vrot.slane %v10932_v18, 2  ;;  %v4502_v27 = vmul.f32 %v12188_v17, %v4404_v22  ;;  %v6938_v21 = vpop.eup %6937  ;;  %v12420_v32 = vld [vmem:[#allocation27_spill] sm:$0xff] }
 0x424   : > { %v3035_v12 = vadd.f32 %v2971_v11, %v2835_v15  ;;  %v3445_v5 = vsel %vm2004_vm1, %v3443_v13, %v12044_v55  ;;  %v10946_v8 = vmul.f32 %v12188_v17, %v10934_v24  ;;  %v5054_v62 = vmul.f32 %v10738_v54, %v4956_v36  ;;  %v12419_v13 = vld [vmem:[#allocation16_spill] sm:$0xff] }
 0x425   : > { %v10949_v23 = vadd.f32 %v5294_v52, %v4889_v37  ;;  %v3997_v42 = vsel %vm2557_vm2, %v3995_v20, %v12041_v49  ;;  %v4748_v44 = vrot.slane %v4502_v27, 1  ;;  %v10956_v11 = vmul.f32 %v10738_v54, %v10934_v24  ;;  %v6940_v14 = vpop.eup %6939  ;;  %v3098_v20 = vld [vmem:[#allocation2 + $0x2a0] sm:$0xfe]  ;;  %v4955_v49 = vld [vmem:[#allocation2 + $0x2d0] sm:$0xfc] }
 0x426   : > { %v5695_v26 = vadd.f32 1.0, %v6938_v21  ;;  %v3587_v35 = vadd.f32 %v3445_v5, %v3035_v12  ;;  %v12040_v30 = vrot.slane %v10946_v8, 1  ;;  %v5300_v6 = vrot.slane %v5054_v62, 2 }
 0x427   : > { %12418 = vst [vmem:[#allocation19_spill] sm:$0xff] %v10949_v23  ;;  %v5505_v25 = vsub.f32 0.0, %v10949_v23  ;;  %v12039_v52 = vrot.slane %v10956_v11, 2  ;;  %v1664_v22 = vmul.f32 %v12419_v13, %v12131_v50  ;;  %v1890_v38 = vmul.f32 %v12132_v10, %v1792_v61  ;;  %v4958_v23 = vld [vmem:[#allocation2 + $0x2f8] sm:$0x3] }
 0x428   : > { %v5824_v36 = vmul.f32 %v6940_v14, %v12420_v32  ;;  %6943 = vrcp.f32 %v5695_v26  ;;  %v4139_v15 = vadd.f32 %v3997_v42, %v3587_v35  ;;  %v4750_v37 = vsel %vm2004_vm1, %v4748_v44, %v12040_v30  ;;  %v3650_v26 = vld [vmem:[#allocation2 + $0x2a0] sm:$0xfc]  ;;  %v4403_v32 = vld [vmem:[#allocation2 + $0x2d0] sm:$0xfe] }
 0x429   : > { %v5619_v27 = vmul.f32 1.442695, %v5505_v25  ;;  %v5302_v12 = vsel %vm2557_vm2, %v5300_v6, %v12039_v52  ;;  %v1728_v5 = vadd.f32 %v1664_v22, %v12133_v63  ;;  %v10974_v62 = vmul.f32 %v10579_v59, %v12132_v10  ;;  %v12421_v6 = vld [vmem:[#allocation21_spill] sm:$0xff]  ;;  %v11006_v30 = vld [vmem:[#allocation2 + $0x2e0] sm:$0xff] }
 0x42a   : > { %6062 = vmatprep.mubr.f32.mxu1 %v5824_v36  ;;  %v4340_v61 = vadd.f32 %v4276_v3, %v4139_v15  ;;  %v2135_v21 = vrot.slane %v1890_v38, 1  ;;  %v2443_v42 = vmul.f32 %v12134_v53, %v2345_v16  ;;  %v10979_v44 = vmul.f32 %v10579_v59, %v12134_v53  ;;  %v10990_v16 = vld [vmem:[#allocation2 + $0x2d0] sm:$0xff] }
 0x42b   : > { %6945 = vpow2.f32 %v5619_v27  ;;  %v12042_v35 = vrot.slane %v10974_v62, 1  ;;  %v2970_v14 = vmul.f32 %v12421_v6, %v7770_v31  ;;  %v3196_v25 = vmul.f32 %v7812_v19, %v3098_v20  ;;  %12422 = vst [vmem:[#allocation20_spill] sm:$0xff] %v10990_v16 }
 0x42c   : > { %v4892_v13 = vadd.f32 %v4750_v37, %v4340_v61  ;;  %v2688_v22 = vrot.slane %v2443_v42, 2  ;;  %v12043_v3 = vrot.slane %v10979_v44, 2  ;;  %v10988_v38 = vmul.f32 %v10792_v29, %v7812_v19 }
 0x42d   : > { %v2137_v36 = vsel %vm2004_vm1, %v2135_v21, %v12042_v35  ;;  %v3440_v15 = vrot.slane %v3196_v25, 1  ;;  %v3748_v27 = vmul.f32 %v7823_v33, %v3650_v26  ;;  %v10998_v37 = vmul.f32 %v10792_v29, %v7823_v33 }
 0x42e   : > { %v11000_v20 = vadd.f32 %v5302_v12, %v4892_v13  ;;  %v2281_v61 = vadd.f32 %v2137_v36, %v1728_v5  ;;  %v2690_v42 = vsel %vm2557_vm2, %v2688_v22, %v12043_v3  ;;  %v12047_v52 = vrot.slane %v10988_v38, 1  ;;  %v1795_v3 = vld [vmem:[#allocation2 + $0x298] sm:$0x1] }
 0x42f   : > { %v6942_v21 = vpop.eup %6941  ;;  %v3992_v25 = vrot.slane %v3748_v27, 2  ;;  %v12048_v26 = vrot.slane %v10998_v37, 2  ;;  %v4275_v35 = vmul.f32 %v7829_v39, %v10990_v16  ;;  %v4501_v12 = vmul.f32 %v7841_v2, %v4403_v32 }
 0x430   : > { %12423 = vst [vmem:[#allocation28_spill] sm:$0xff] %v11000_v20  ;;  %v5698_v13 = vadd.f32 1.0, %v6942_v21  ;;  %v5508_v5 = vsub.f32 0.0, %v11000_v20  ;;  %v2834_v36 = vadd.f32 %v2690_v42, %v2281_v61  ;;  %v3442_v22 = vsel %vm2004_vm1, %v3440_v15, %v12047_v52  ;;  %v2348_v21 = vld [vmem:[#allocation2 + $0x298] sm:$0x3] }
 0x431   : > { %v3994_v27 = vsel %vm2557_vm2, %v3992_v25, %v12048_v26  ;;  %v11021_v55 = vmul.f32 %v7841_v2, %v11006_v30  ;;  %v4745_v7 = vrot.slane %v4501_v12, 1  ;;  %v5053_v32 = vmul.f32 %v11023_v51, %v4955_v49 }
 0x432   : > { %6947 = vrcp.f32 %v5698_v13  ;;  %v5625_v61 = vmul.f32 1.442695, %v5508_v5  ;;  %v3034_v42 = vadd.f32 %v2970_v14, %v2834_v36  ;;  %v11028_v15 = vmul.f32 %v11023_v51, %v11006_v30  ;;  %v3101_v5 = vld [vmem:[#allocation2 + $0x2c8] sm:$0x1] }
 0x433   : > { %v12055_v52 = vrot.slane %v11021_v55, 1  ;;  %v5297_v25 = vrot.slane %v5053_v32, 2  ;;  %v1667_v26 = vmul.f32 %v10516_v56, %v7698_v0  ;;  %v1895_v12 = vmul.f32 %v12126_v45, %v1795_v3  ;;  %v3653_v14 = vld [vmem:[#allocation2 + $0x2c8] sm:$0x3]  ;;  %v4406_v3 = vld [vmem:[#allocation2 + $0x2f8] sm:$0x1] }
 0x434   : > { %6949 = vpow2.f32 %v5625_v61  ;;  %v3586_v16 = vadd.f32 %v3442_v22, %v3034_v42  ;;  %v12057_v49 = vrot.slane %v11028_v15, 2  ;;  %v2448_v13 = vmul.f32 %v12363_v4, %v2348_v21 }
 0x435   : > { %v6944_v36 = vpop.eup %6943  ;;  %v4747_v20 = vsel %vm2004_vm1, %v4745_v7, %v12055_v52  ;;  %v1731_v32 = vadd.f32 %v1667_v26, %v7724_v58  ;;  %v2143_v6 = vrot.slane %v1895_v12, 1  ;;  %v2973_v56 = vmul.f32 %v10724_v34, %v12413_v40 }
 0x436   : > { %v5823_v22 = vmul.f32 %v6944_v36, %v10856_v60  ;;  %v4138_v61 = vadd.f32 %v3994_v27, %v3586_v16  ;;  %v5299_v21 = vsel %vm2557_vm2, %v5297_v25, %v12057_v49  ;;  %v2696_v42 = vrot.slane %v2448_v13, 2 }
 0x437   : > { %v12424_v46 = vrot.slane %v10897_v57, 1  ;;  %v3201_v26 = vmul.f32 %v12227_v1, %v3101_v5  ;;  %v3753_v12 = vmul.f32 %v12366_v47, %v3653_v14  ;;  %v4278_v52 = vmul.f32 %v12417_v41, %v10934_v24 }
 0x438   : > { %v6946_v40 = vpop.eup %6945  ;;  %6063 = vmatmul.mubr.f32.gmra.mxu1 %v5823_v22  ;;  %v4339_v60 = vadd.f32 %v4275_v35, %v4138_v61  ;;  %v12425_v27 = vrot.slane %v10909_v9, 2  ;;  %v4506_v13 = vmul.f32 %v12188_v17, %v4406_v3  ;;  %v1666_v41 = vmul.f32 %v10579_v59, %v12131_v50  ;;  %v1794_v22 = vld [vmem:[#allocation2 + $0x290] sm:$0x1] }
 0x439   : > { %v2144_v7 = vsel %vm2004_vm1, %v12424_v46, %v2143_v6  ;;  %v5697_v57 = vadd.f32 1.0, %v6946_v40  ;;  %v3448_v36 = vrot.slane %v3201_v26, 1  ;;  %v4000_v46 = vrot.slane %v3753_v12, 2  ;;  %v2347_v35 = vld [vmem:[#allocation2 + $0x290] sm:$0x3] }
 0x43a   : > { %v2284_v16 = vadd.f32 %v2144_v7, %v1731_v32  ;;  %v2697_v25 = vsel %vm2557_vm2, %v12425_v27, %v2696_v42  ;;  %v5058_v6 = vmul.f32 %v10738_v54, %v4958_v23  ;;  %v4891_v5 = vadd.f32 %v4747_v20, %v4339_v60  ;;  %v3100_v42 = vld [vmem:[#allocation2 + $0x2c0] sm:$0x1]  ;;  %v4405_v60 = vld [vmem:[#allocation2 + $0x2f0] sm:$0x1] }
 0x43b   : > { %v4753_v49 = vrot.slane %v4506_v13, 1  ;;  %6951 = vrcp.f32 %v5697_v57  ;;  %v12426_v9 = vrot.slane %v10924_v43, 1  ;;  %v12427_v3 = vrot.slane %v10932_v18, 2  ;;  %v3652_v23 = vld [vmem:[#allocation2 + $0x2c0] sm:$0x3] }
 0x43c   : > { %v2837_v14 = vadd.f32 %v2697_v25, %v2284_v16  ;;  %v5305_v61 = vrot.slane %v5058_v6, 2  ;;  %v11066_v20 = vadd.f32 %v5299_v21, %v4891_v5  ;;  %v12428_v26 = vrot.slane %v10946_v8, 1 }
 0x43d   : > { %v3449_v32 = vsel %vm2004_vm1, %v12426_v9, %v3448_v36  ;;  %v4001_v40 = vsel %vm2557_vm2, %v12427_v3, %v4000_v46  ;;  %v1730_v12 = vadd.f32 %v1666_v41, %v12133_v63  ;;  %v12429_v43 = vrot.slane %v10956_v11, 2 }
 0x43e   : > { %v3037_v7 = vadd.f32 %v2973_v56, %v2837_v14  ;;  %v4754_v59 = vsel %vm2004_vm1, %v12428_v26, %v4753_v49  ;;  %v1894_v18 = vmul.f32 %v12132_v10, %v1794_v22  ;;  %v2447_v27 = vmul.f32 %v12134_v53, %v2347_v35  ;;  %v4957_v22 = vld [vmem:[#allocation2 + $0x2f0] sm:$0x3] }
 0x43f   : > { %v5306_v16 = vsel %vm2557_vm2, %v12429_v43, %v5305_v61  ;;  %v2972_v21 = vmul.f32 %v10792_v29, %v7770_v31  ;;  %v5507_v56 = vsub.f32 0.0, %v11066_v20  ;;  %v3200_v8 = vmul.f32 %v7812_v19, %v3100_v42  ;;  %v6948_v41 = vpop.eup %6947 }
 0x440   : > { %v3589_v25 = vadd.f32 %v3449_v32, %v3037_v7  ;;  %v3752_v49 = vmul.f32 %v7823_v33, %v3652_v23  ;;  %v2141_v13 = vrot.slane %v1894_v18, 1  ;;  %v2694_v57 = vrot.slane %v2447_v27, 2 }
 0x441   : > { %v11084_v11 = vmul.f32 %v7829_v39, %v11006_v30  ;;  %v4505_v36 = vmul.f32 %v7841_v2, %v4405_v60  ;;  %v5826_v46 = vmul.f32 %v6948_v41, %v10899_v28  ;;  %v5623_v6 = vmul.f32 1.442695, %v5507_v56  ;;  %v6950_v35 = vpop.eup %6949  ;;  %v1797_v60 = vld [vmem:[#allocation2 + $0x2a8] sm:$0xfe] }
 0x442   : > { %v4141_v5 = vadd.f32 %v4001_v40, %v3589_v25  ;;  %v3446_v14 = vrot.slane %v3200_v8, 1  ;;  %v12430_v9 = vrot.slane %v10974_v62, 1  ;;  %v12431_v3 = vrot.slane %v10979_v44, 2  ;;  %v2350_v40 = vld [vmem:[#allocation2 + $0x2a8] sm:$0xfc] }
 0x443   : > { %v3998_v42 = vrot.slane %v3752_v49, 2  ;;  %v4751_v23 = vrot.slane %v4505_v36, 1  ;;  %6067 = vmatprep.mubr.f32.mxu1 %v5826_v46  ;;  %v5700_v7 = vadd.f32 1.0, %v6950_v35  ;;  %6953 = vpow2.f32 %v5623_v6  ;;  %v3103_v36 = vld [vmem:[#allocation2 + $0x2d8] sm:$0xfe] }
 0x444   : > { %v2142_v32 = vsel %vm2004_vm1, %v12430_v9, %v2141_v13  ;;  %v2695_v61 = vsel %vm2557_vm2, %v12431_v3, %v2694_v57  ;;  %v4342_v26 = vadd.f32 %v4278_v52, %v4141_v5  ;;  %v12432_v43 = vrot.slane %v10988_v38, 1  ;;  %v12436_v9 = vld [vmem:[#allocation22_spill] sm:$0xff] }
 0x445   : > { %v2283_v28 = vadd.f32 %v2142_v32, %v1730_v12  ;;  %v12433_v62 = vrot.slane %v10998_v37, 2  ;;  %v12434_v44 = vrot.slane %v11021_v55, 1  ;;  %v5057_v25 = vmul.f32 %v11023_v51, %v4957_v22  ;;  %v12437_v32 = vld [vmem:[#allocation29_spill] sm:$0xff] }
 0x446   : > { %v3447_v18 = vsel %vm2004_vm1, %v12432_v43, %v3446_v14  ;;  %6955 = vrcp.f32 %v5700_v7  ;;  %v4894_v8 = vadd.f32 %v4754_v59, %v4342_v26  ;;  %v1669_v12 = vmul.f32 %v12414_v48, %v7698_v0  ;;  %v11136_v26 = vld [vmem:[#allocation2 + $0x308] sm:$0xff] }
 0x447   : > { %v3999_v27 = vsel %vm2557_vm2, %v12433_v62, %v3998_v42  ;;  %v4752_v56 = vsel %vm2004_vm1, %v12434_v44, %v4751_v23  ;;  %v2836_v52 = vadd.f32 %v2695_v61, %v2283_v28  ;;  %v5303_v49 = vrot.slane %v5057_v25, 2  ;;  %v12438_v61 = vld [vmem:[#allocation19_spill] sm:$0xff]  ;;  %12439 = vst [vmem:[#allocation17_spill] sm:$0xff] %v11136_v26  ;;  %v11138_v28 = vpop.f32.mrf.mxu0  ;;  %v4408_v44 = vld [vmem:[#allocation2 + $0x308] sm:$0xfe] }
 0x448   : > { %v1897_v38 = vmul.f32 %v12126_v45, %v1797_v60  ;;  %v11109_v37 = vmul.f32 %v10724_v34, %v12126_v45  ;;  %v2450_v41 = vmul.f32 %v12363_v4, %v2350_v40  ;;  %v11112_v55 = vadd.f32 %v5306_v16, %v4894_v8  ;;  %v6952_v22 = vpop.eup %6951  ;;  %12440 = vst [vmem:[#allocation18_spill] sm:$0xff] %v11138_v28  ;;  %v11140_v60 = vpop.f32.mrf.mxu1 }
 0x449   : > { %v3036_v13 = vadd.f32 %v2972_v21, %v2836_v52  ;;  %v1733_v57 = vadd.f32 %v1669_v12, %v7724_v58  ;;  %v11117_v59 = vmul.f32 %v10724_v34, %v12363_v4  ;;  %v12435_v48 = vrot.slane %v11028_v15, 2  ;;  %v3655_v34 = vld [vmem:[#allocation2 + $0x2d8] sm:$0xfc]  ;;  %12441 = vst [vmem:[#allocation23_spill] sm:$0xff] %v11140_v60 }
 0x44a   : > { %v2148_v6 = vrot.slane %v1897_v38, 1  ;;  %v12064_v5 = vrot.slane %v11109_v37, 1  ;;  %v2701_v14 = vrot.slane %v2450_v41, 2  ;;  %v5510_v16 = vsub.f32 0.0, %v11112_v55  ;;  %v4960_v38 = vld [vmem:[#allocation2 + $0x308] sm:$0xfc]  ;;  %v5966_v41 = vpop.f32.mrf.mxu1 }
 0x44b   : > { %v5304_v46 = vsel %vm2557_vm2, %v12435_v48, %v5303_v49  ;;  %v3588_v35 = vadd.f32 %v3447_v18, %v3036_v13  ;;  %v12063_v21 = vrot.slane %v11117_v59, 2  ;;  %v2975_v3 = vmul.f32 %v12437_v32, %v12436_v9  ;;  %v11151_v49 = vld [vmem:[#allocation2 + $0x318] sm:$0xff] }
 0x44c   : > { %v5825_v42 = vmul.f32 %v6952_v22, %v12438_v61  ;;  %v2150_v15 = vsel %vm2004_vm1, %v2148_v6, %v12064_v5  ;;  %v3203_v23 = vmul.f32 %v12227_v1, %v3103_v36  ;;  %v11134_v7 = vmul.f32 %v10934_v24, %v12227_v1  ;;  %v12442_v36 = vld [vmem:[#allocation25_spill] sm:$0xff] }
 0x44d   : > { %v5629_v40 = vmul.f32 1.442695, %v5510_v16  ;;  %v4140_v43 = vadd.f32 %v3999_v27, %v3588_v35  ;;  %v2286_v18 = vadd.f32 %v2150_v15, %v1733_v57  ;;  %v2703_v62 = vsel %vm2557_vm2, %v2701_v14, %v12063_v21  ;;  %v5946_v27 = vpop.f32.mrf.mxu0 }
 0x44e   : > { %6068 = vmatmul.mubr.f32.gmra.mxu1 %v5825_v42  ;;  %v3453_v25 = vrot.slane %v3203_v23, 1  ;;  %v12060_v8 = vrot.slane %v11134_v7, 1  ;;  %v3755_v52 = vmul.f32 %v12366_v47, %v3655_v34  ;;  %v11149_v12 = vmul.f32 %v10934_v24, %v12366_v47  ;;  %v11163_v34 = vpop.f32.mrf.mxu1  ;;  %v1796_v23 = vld [vmem:[#allocation2 + $0x2a0] sm:$0xfe] }
 0x44f   : > { %6957 = vpow2.f32 %v5629_v40  ;;  %v4341_v13 = vadd.f32 %v11084_v11, %v4140_v43  ;;  %v2839_v57 = vadd.f32 %v2703_v62, %v2286_v18  ;;  %v4280_v48 = vmul.f32 %v12442_v36, %v11136_v26  ;;  %v11161_v35 = vpop.f32.mrf.mxu0  ;;  %12444 = vst [vmem:[#allocation16_spill] sm:$0xff] %v11163_v34 }
 0x450   : > { %v3455_v6 = vsel %vm2004_vm1, %v3453_v25, %v12060_v8  ;;  %v4005_v14 = vrot.slane %v3755_v52, 2  ;;  %v12059_v22 = vrot.slane %v11149_v12, 2  ;;  %v4508_v16 = vmul.f32 %v12188_v17, %v4408_v44  ;;  %12443 = vst [vmem:[#allocation24_spill] sm:$0xff] %v11161_v35  ;;  %v6954_v40 = vpop.eup %6953  ;;  %v5971_v25 = vpop.f32.mrf.mxu1 }
 0x451   : > { %v4893_v61 = vadd.f32 %v4752_v56, %v4341_v13  ;;  %v3039_v42 = vadd.f32 %v2975_v3, %v2839_v57  ;;  %v11167_v11 = vmul.f32 %v12188_v17, %v11151_v49  ;;  %v5060_v15 = vmul.f32 %v10738_v54, %v4960_v38  ;;  %v12445_v56 = vld [vmem:[#allocation21_spill] sm:$0xff]  ;;  %v5951_v44 = vpop.f32.mrf.mxu0 }
 0x452   : > { %v4007_v43 = vsel %vm2557_vm2, %v4005_v14, %v12059_v22  ;;  %v4758_v18 = vrot.slane %v4508_v16, 1  ;;  %v11175_v62 = vmul.f32 %v10738_v54, %v11151_v49  ;;  %v1668_v3 = vmul.f32 %v12445_v56, %v12131_v50  ;;  %v2349_v22 = vld [vmem:[#allocation2 + $0x2a0] sm:$0xfc]  ;;  %v11187_v56 = vpop.f32.mrf.mxu1 }
 0x453   : > { %v5699_v52 = vadd.f32 1.0, %v6954_v40  ;;  %v11179_v27 = vadd.f32 %v5304_v46, %v4893_v61  ;;  %v3591_v38 = vadd.f32 %v3455_v6, %v3039_v42  ;;  %v12061_v41 = vrot.slane %v11167_v11, 1  ;;  %v6956_v13 = vpop.eup %6955  ;;  %v11185_v8 = vpop.f32.mrf.mxu0  ;;  %12448 = vst [vmem:[#allocation29_spill] sm:$0xff] %v11187_v56  ;;  %v12449_v44 = vld [vmem:[#allocation28_spill] sm:$0xff]  ;;  %v3102_v61 = vld [vmem:[#allocation2 + $0x2d0] sm:$0xfe] }
 0x454   : > { %v5310_v57 = vrot.slane %v5060_v15, 2  ;;  %v12062_v14 = vrot.slane %v11175_v62, 2  ;;  %v1732_v16 = vadd.f32 %v1668_v3, %v12133_v63  ;;  %v1896_v54 = vmul.f32 %v12132_v10, %v1796_v23  ;;  %12447 = vst [vmem:[#allocation22_spill] sm:$0xff] %v11185_v8 }
 0x455   : > { %12446 = vst [vmem:[#allocation27_spill] sm:$0xff] %v11179_v27  ;;  %v5828_v40 = vmul.f32 %v6956_v13, %v12449_v44  ;;  %6959 = vrcp.f32 %v5699_v52  ;;  %v5509_v46 = vsub.f32 0.0, %v11179_v27  ;;  %v4143_v6 = vadd.f32 %v4007_v43, %v3591_v38  ;;  %v5956_v25 = vpop.f32.mrf.mxu0  ;;  %v5976_v13 = vpop.f32.mrf.mxu1 }
 0x456   : > { %v4760_v42 = vsel %vm2004_vm1, %v4758_v18, %v12061_v41  ;;  %v5312_v15 = vsel %vm2557_vm2, %v5310_v57, %v12062_v14  ;;  %v11199_v23 = vmul.f32 %v10792_v29, %v12132_v10  ;;  %v2145_v3 = vrot.slane %v1896_v54, 1  ;;  %v3654_v18 = vld [vmem:[#allocation2 + $0x2d0] sm:$0xfc]  ;;  %v12450_v57 = vld [vmem:[#allocation20_spill] sm:$0xff] }
 0x457   : > { %6072 = vmatprep.mubr.f32.mxu1 %v5828_v40  ;;  %v5627_v52 = vmul.f32 1.442695, %v5509_v46  ;;  %v4344_v44 = vadd.f32 %v4280_v48, %v4143_v6  ;;  %v2449_v43 = vmul.f32 %v12134_v53, %v2349_v22  ;;  %v11204_v38 = vmul.f32 %v10792_v29, %v12134_v53  ;;  %v11214_v40 = vpop.f32.mrf.mxu0  ;;  %v11216_v48 = vpop.f32.mrf.mxu1  ;;  %v11219_v25 = vld [vmem:[#allocation2 + $0x300] sm:$0xff] }
 0x458   : > { %v12066_v41 = vrot.slane %v11199_v23, 1  ;;  %v2974_v14 = vmul.f32 %v12450_v57, %v7770_v31  ;;  %v3202_v21 = vmul.f32 %v7812_v19, %v3102_v61  ;;  %v11212_v54 = vmul.f32 %v11006_v30, %v7812_v19  ;;  %12451 = vst [vmem:[#allocation19_spill] sm:$0xff] %v11214_v40  ;;  %12452 = vst [vmem:[#allocation25_spill] sm:$0xff] %v11216_v48  ;;  %v4407_v13 = vld [vmem:[#allocation2 + $0x300] sm:$0xfe] }
 0x459   : > { %6961 = vpow2.f32 %v5627_v52  ;;  %v4896_v22 = vadd.f32 %v4760_v42, %v4344_v44  ;;  %v2698_v46 = vrot.slane %v2449_v43, 2  ;;  %v12065_v6 = vrot.slane %v11204_v38, 2  ;;  %12453 = vst [vmem:[#allocation21_spill] sm:$0xff] %v11219_v25  ;;  %v5961_v60 = vpop.f32.mrf.mxu0  ;;  %v5981_v40 = vpop.f32.mrf.mxu1  ;;  %v11235_v43 = vld [vmem:[#allocation2 + $0x310] sm:$0xff] }
 0x45a   : > { %v2147_v61 = vsel %vm2004_vm1, %v2145_v3, %v12066_v41  ;;  %v3450_v5 = vrot.slane %v3202_v21, 1  ;;  %v12067_v56 = vrot.slane %v11212_v54, 1  ;;  %v3754_v34 = vmul.f32 %v7823_v33, %v3654_v18  ;;  %v4959_v21 = vld [vmem:[#allocation2 + $0x300] sm:$0xfc] }
 0x45b   : > { %v11226_v48 = vadd.f32 %v5312_v15, %v4896_v22  ;;  %v2285_v42 = vadd.f32 %v2147_v61, %v1732_v16  ;;  %v2700_v52 = vsel %vm2557_vm2, %v2698_v46, %v12065_v6  ;;  %v11233_v44 = vmul.f32 %v11006_v30, %v7823_v33  ;;  %v11243_v40 = vpop.f32.mrf.mxu1 }
 0x45c   : > { %v6958_v3 = vpop.eup %6957  ;;  %v3452_v60 = vsel %vm2004_vm1, %v3450_v5, %v12067_v56  ;;  %v4002_v18 = vrot.slane %v3754_v34, 2  ;;  %v4279_v16 = vmul.f32 %v7829_v39, %v11219_v25  ;;  %v4507_v15 = vmul.f32 %v7841_v2, %v4407_v13  ;;  %12455 = vst [vmem:[#allocation30_spill] sm:$0xff] %v11243_v40  ;;  %v1799_v13 = vld [vmem:[#allocation2 + $0x2c8] sm:$0x1] }
 0x45d   : > { %12454 = vst [vmem:[#allocation28_spill] sm:$0xff] %v11226_v48  ;;  %v5702_v22 = vadd.f32 1.0, %v6958_v3  ;;  %v5512_v46 = vsub.f32 0.0, %v11226_v48  ;;  %v2838_v61 = vadd.f32 %v2700_v52, %v2285_v42  ;;  %v12070_v6 = vrot.slane %v11233_v44, 2  ;;  %v2352_v56 = vld [vmem:[#allocation2 + $0x2c8] sm:$0x3]  ;;  %v5986_v40 = vpop.f32.mrf.mxu1 }
 0x45e   : > { %v11249_v41 = vmul.f32 %v7841_v2, %v11235_v43  ;;  %v4755_v8 = vrot.slane %v4507_v15, 1  ;;  %v5059_v5 = vmul.f32 %v11023_v51, %v4959_v21  ;;  %v11254_v34 = vmul.f32 %v11023_v51, %v11235_v43  ;;  %v7013_v21 = vld [vmem:[#allocation2 + $0x2b8] sm:$0xff] }
 0x45f   : > { %6963 = vrcp.f32 %v5702_v22  ;;  %v5633_v3 = vmul.f32 1.442695, %v5512_v46  ;;  %v3038_v35 = vadd.f32 %v2974_v14, %v2838_v61  ;;  %v4004_v42 = vsel %vm2557_vm2, %v4002_v18, %v12070_v6  ;;  %v11262_v48 = vpop.f32.mrf.mxu1  ;;  %v3105_v22 = vld [vmem:[#allocation2 + $0x2f8] sm:$0x1]  ;;  %v4410_v61 = vld [vmem:[#allocation2 + $0x328] sm:$0x1] }
 0x460   : > { %v12073_v52 = vrot.slane %v11249_v41, 1  ;;  %v5307_v28 = vrot.slane %v5059_v5, 2  ;;  %v12074_v15 = vrot.slane %v11254_v34, 2  ;;  %v1671_v25 = vmul.f32 %v7013_v21, %v7698_v0  ;;  %12456 = vst [vmem:[#allocation31_spill] sm:$0xff] %v11262_v48  ;;  %v3657_v46 = vld [vmem:[#allocation2 + $0x2f8] sm:$0x3] }
 0x461   : > { %6965 = vpow2.f32 %v5633_v3  ;;  %v3590_v57 = vadd.f32 %v3452_v60, %v3038_v35  ;;  %v1901_v40 = vmul.f32 %v12126_v45, %v1799_v13  ;;  %v2454_v14 = vmul.f32 %v12363_v4, %v2352_v56  ;;  %v4962_v60 = vld [vmem:[#allocation2 + $0x328] sm:$0x3]  ;;  %v5991_v13 = vpop.f32.mrf.mxu1 }
 0x462   : > { %v6960_v18 = vpop.eup %6959  ;;  %v4757_v5 = vsel %vm2004_vm1, %v4755_v8, %v12073_v52  ;;  %v5309_v21 = vsel %vm2557_vm2, %v5307_v28, %v12074_v15  ;;  %v1735_v6 = vadd.f32 %v1671_v25, %v7724_v58  ;;  %v2977_v35 = vmul.f32 %v10934_v24, %v12436_v9 }
 0x463   : > { %v5827_v56 = vmul.f32 %v6960_v18, %v11066_v20  ;;  %v4142_v3 = vadd.f32 %v4004_v42, %v3590_v57  ;;  %v2153_v48 = vrot.slane %v1901_v40, 1  ;;  %v2706_v27 = vrot.slane %v2454_v14, 2  ;;  %v11283_v25 = vpop.f32.mrf.mxu1  ;;  %v11291_v40 = vld [vmem:[#allocation8 + $0x18] ss:$0 sm:$0xff] }
 0x464   : > { %v3207_v26 = vmul.f32 %v12227_v1, %v3105_v22  ;;  %v3759_v8 = vmul.f32 %v12366_v47, %v3657_v46  ;;  %v11280_v52 = vmul.f32 %v12442_v36, %v11151_v49  ;;  %v4512_v28 = vmul.f32 %v12188_v17, %v4410_v61  ;;  %12457 = vst [vmem:[#allocation32_spill] sm:$0xff] %v11283_v25 }
 0x465   : > { %6073 = vmatmul.mubr.f32.gmra.mxu1 %v5827_v56  ;;  %v4343_v15 = vadd.f32 %v4279_v16, %v4142_v3  ;;  %v12458_v13 = vrot.slane %v11109_v37, 1  ;;  %v12459_v57 = vrot.slane %v11117_v59, 2  ;;  %v5064_v14 = vmul.f32 %v11291_v40, %v4962_v60  ;;  %v5996_v25 = vpop.f32.mrf.mxu1  ;;  %v2351_v59 = vld [vmem:[#allocation2 + $0x2c0] sm:$0x3] }
 0x466   : > { %v6962_v22 = vpop.eup %6961  ;;  %v3458_v18 = vrot.slane %v3207_v26, 1  ;;  %v4010_v61 = vrot.slane %v3759_v8, 2  ;;  %v4763_v17 = vrot.slane %v4512_v28, 1  ;;  %v1670_v37 = vmul.f32 %v10792_v29, %v12131_v50 }
 0x467   : > { %v2154_v20 = vsel %vm2004_vm1, %v12458_v13, %v2153_v48  ;;  %v2707_v42 = vsel %vm2557_vm2, %v12459_v57, %v2706_v27  ;;  %v5701_v56 = vadd.f32 1.0, %v6962_v22  ;;  %v4895_v16 = vadd.f32 %v4757_v5, %v4343_v15  ;;  %v1798_v48 = vld [vmem:[#allocation2 + $0x2c0] sm:$0x1]  ;;  %v3104_v15 = vld [vmem:[#allocation2 + $0x2f0] sm:$0x1]  ;;  %v11305_v28 = vpop.f32.mrf.mxu1 }
 0x468   : > { %v2288_v46 = vadd.f32 %v2154_v20, %v1735_v6  ;;  %v5315_v3 = vrot.slane %v5064_v14, 2  ;;  %v12460_v27 = vrot.slane %v11134_v7, 1  ;;  %v12461_v60 = vrot.slane %v11149_v12, 2  ;;  %v3656_v5 = vld [vmem:[#allocation2 + $0x2f0] sm:$0x3] }
 0x469   : > { %v12462_v6 = vrot.slane %v11167_v11, 1  ;;  %6967 = vrcp.f32 %v5701_v56  ;;  %v11307_v29 = vadd.f32 %v5309_v21, %v4895_v16  ;;  %v12463_v25 = vrot.slane %v11175_v62, 2  ;;  %v4409_v12 = vld [vmem:[#allocation2 + $0x320] sm:$0x1]  ;;  %v6001_v22 = vpop.f32.mrf.mxu1 }
 0x46a   : > { %v2841_v13 = vadd.f32 %v2707_v42, %v2288_v46  ;;  %v3459_v57 = vsel %vm2004_vm1, %v12460_v27, %v3458_v18  ;;  %v4011_v26 = vsel %vm2557_vm2, %v12461_v60, %v4010_v61  ;;  %v1734_v20 = vadd.f32 %v1670_v37, %v12133_v63  ;;  %v4961_v60 = vld [vmem:[#allocation2 + $0x320] sm:$0x3] }
 0x46b   : > { %v4764_v8 = vsel %vm2004_vm1, %v12462_v6, %v4763_v17  ;;  %v5316_v7 = vsel %vm2557_vm2, %v12463_v25, %v5315_v3  ;;  %v1900_v14 = vmul.f32 %v12132_v10, %v1798_v48  ;;  %v2453_v11 = vmul.f32 %v12134_v53, %v2351_v59  ;;  %v11325_v37 = vpop.f32.mrf.mxu1 }
 0x46c   : > { %v3041_v42 = vadd.f32 %v2977_v35, %v2841_v13  ;;  %v2976_v17 = vmul.f32 %v11006_v30, %v7770_v31  ;;  %v5511_v46 = vsub.f32 0.0, %v11307_v29  ;;  %v3206_v21 = vmul.f32 %v7812_v19, %v3104_v15  ;;  %v6964_v61 = vpop.eup %6963 }
 0x46d   : > { %v3758_v62 = vmul.f32 %v7823_v33, %v3656_v5  ;;  %v11322_v18 = vmul.f32 %v7829_v39, %v11235_v43  ;;  %v2151_v56 = vrot.slane %v1900_v14, 1  ;;  %v2704_v16 = vrot.slane %v2453_v11, 2  ;;  %v6006_v11 = vpop.f32.mrf.mxu1 }
 0x46e   : > { %v3593_v35 = vadd.f32 %v3459_v57, %v3041_v42  ;;  %v4511_v3 = vmul.f32 %v7841_v2, %v4409_v12  ;;  %v5830_v48 = vmul.f32 %v6964_v61, %v11112_v55  ;;  %v5631_v59 = vmul.f32 1.442695, %v5511_v46  ;;  %v6966_v6 = vpop.eup %6965  ;;  %v1801_v12 = vld [vmem:[#allocation2 + $0x2d8] sm:$0xfe]  ;;  %v12470_v11 = vld [vmem:[#allocation17_spill] sm:$0xff] }
 0x46f   : > { %v3456_v13 = vrot.slane %v3206_v21, 1  ;;  %v4008_v27 = vrot.slane %v3758_v62, 2  ;;  %v12464_v5 = vrot.slane %v11199_v23, 1  ;;  %v12465_v57 = vrot.slane %v11204_v38, 2 }
 0x470   : > { %v4145_v15 = vadd.f32 %v4011_v26, %v3593_v35  ;;  %v4761_v14 = vrot.slane %v4511_v3, 1  ;;  %6077 = vmatprep.mubr.f32.mxu1 %v5830_v48  ;;  %v5704_v22 = vadd.f32 1.0, %v6966_v6  ;;  %6969 = vpow2.f32 %v5631_v59  ;;  %v2354_v26 = vld [vmem:[#allocation2 + $0x2d8] sm:$0xfc]  ;;  %v3107_v59 = vld [vmem:[#allocation2 + $0x308] sm:$0xfe] }
 0x471   : > { %v2152_v25 = vsel %vm2004_vm1, %v12464_v5, %v2151_v56  ;;  %v2705_v42 = vsel %vm2557_vm2, %v12465_v57, %v2704_v16  ;;  %v12466_v46 = vrot.slane %v11212_v54, 1  ;;  %v12467_v62 = vrot.slane %v11233_v44, 2  ;;  %v11345_v16 = vpop.f32.mrf.mxu1 }
 0x472   : > { %v2287_v55 = vadd.f32 %v2152_v25, %v1734_v20  ;;  %v4346_v23 = vadd.f32 %v11280_v52, %v4145_v15  ;;  %v12468_v61 = vrot.slane %v11249_v41, 1  ;;  %v5063_v56 = vmul.f32 %v11023_v51, %v4961_v60 }
 0x473   : > { %v3457_v21 = vsel %vm2004_vm1, %v12466_v46, %v3456_v13  ;;  %v4009_v38 = vsel %vm2557_vm2, %v12467_v62, %v4008_v27  ;;  %6971 = vrcp.f32 %v5704_v22  ;;  %v1673_v54 = vmul.f32 %v12437_v32, %v7698_v0  ;;  %v6011_v13 = vpop.f32.mrf.mxu1  ;;  %v3659_v32 = vld [vmem:[#allocation2 + $0x308] sm:$0xfc] }
 0x474   : > { %v4762_v35 = vsel %vm2004_vm1, %v12468_v61, %v4761_v14  ;;  %v2840_v20 = vadd.f32 %v2705_v42, %v2287_v55  ;;  %v1903_v3 = vmul.f32 %v12126_v45, %v1801_v12  ;;  %v4898_v52 = vadd.f32 %v4764_v8, %v4346_v23  ;;  %v12471_v23 = vld [vmem:[#allocation27_spill] sm:$0xff] }
 0x475   : > { %v5313_v48 = vrot.slane %v5063_v56, 2  ;;  %v11352_v44 = vmul.f32 %v10934_v24, %v12126_v45  ;;  %v2456_v41 = vmul.f32 %v12363_v4, %v2354_v26  ;;  %v1737_v60 = vadd.f32 %v1673_v54, %v7724_v58  ;;  %v11366_v14 = vpop.f32.mrf.mxu1  ;;  %v4412_v54 = vld [vmem:[#allocation2 + $0x338] sm:$0xfe] }
 0x476   : > { %v3040_v27 = vadd.f32 %v2976_v17, %v2840_v20  ;;  %v2158_v6 = vrot.slane %v1903_v3, 1  ;;  %v11358_v15 = vmul.f32 %v10934_v24, %v12363_v4  ;;  %v11360_v5 = vadd.f32 %v5316_v7, %v4898_v52  ;;  %v6968_v55 = vpop.eup %6967 }
 0x477   : > { %v12469_v8 = vrot.slane %v11254_v34, 2  ;;  %v12081_v57 = vrot.slane %v11352_v44, 1  ;;  %v2711_v42 = vrot.slane %v2456_v41, 2  ;;  %v2979_v22 = vmul.f32 %v12470_v11, %v12436_v9  ;;  %v6016_v26 = vpop.f32.mrf.mxu1 }
 0x478   : > { %v3592_v17 = vadd.f32 %v3457_v21, %v3040_v27  ;;  %v12080_v12 = vrot.slane %v11358_v15, 2  ;;  %v3209_v24 = vmul.f32 %v12227_v1, %v3107_v59  ;;  %v5514_v7 = vsub.f32 0.0, %v11360_v5  ;;  %v4964_v59 = vld [vmem:[#allocation2 + $0x338] sm:$0xfc] }
 0x479   : > { %v5314_v25 = vsel %vm2557_vm2, %v12469_v8, %v5313_v48  ;;  %v2160_v34 = vsel %vm2004_vm1, %v2158_v6, %v12081_v57  ;;  %v11378_v46 = vmul.f32 %v11151_v49, %v12227_v1  ;;  %v3761_v21 = vmul.f32 %v12366_v47, %v3659_v32  ;;  %v11390_v13 = vpop.f32.mrf.mxu1  ;;  %v11393_v6 = vld [vmem:[#allocation2] sm:$0xff] }
 0x47a   : > { %v5829_v62 = vmul.f32 %v6968_v55, %v12471_v23  ;;  %v4144_v61 = vadd.f32 %v4009_v38, %v3592_v17  ;;  %v2290_v56 = vadd.f32 %v2160_v34, %v1737_v60  ;;  %v2713_v20 = vsel %vm2557_vm2, %v2711_v42, %v12080_v12  ;;  %v12472_v17 = vld [vmem:[#allocation26_spill] sm:$0xff] }
 0x47b   : > { %v5637_v3 = vmul.f32 1.442695, %v5514_v7  ;;  %v3463_v52 = vrot.slane %v3209_v24, 1  ;;  %v12079_v48 = vrot.slane %v11378_v46, 1  ;;  %v11388_v41 = vmul.f32 %v11151_v49, %v12366_v47  ;;  %v6021_v24 = vpop.f32.mrf.mxu1 }
 0x47c   : > { %6078 = vmatmul.mubr.f32.gmra.mxu1 %v5829_v62  ;;  %v4345_v38 = vadd.f32 %v11322_v18, %v4144_v61  ;;  %v2843_v27 = vadd.f32 %v2713_v20, %v2290_v56  ;;  %v4015_v60 = vrot.slane %v3761_v21, 2  ;;  %v11397_v32 = vmul.f32 %v11393_v6, %v12442_v36  ;;  %v1800_v36 = vld [vmem:[#allocation2 + $0x2d0] sm:$0xfe] }
 0x47d   : > { %6973 = vpow2.f32 %v5637_v3  ;;  %v3465_v8 = vsel %vm2004_vm1, %v3463_v52, %v12079_v48  ;;  %v12076_v42 = vrot.slane %v11388_v41, 2  ;;  %v4514_v11 = vmul.f32 %v12472_v17, %v4412_v54  ;;  %v6970_v21 = vpop.eup %6969  ;;  %v11418_v61 = vpop.f32.mrf.mxu1 }
 0x47e   : > { %v4897_v55 = vadd.f32 %v4762_v35, %v4345_v38  ;;  %v3043_v18 = vadd.f32 %v2979_v22, %v2843_v27  ;;  %v11406_v7 = vmul.f32 %v11393_v6, %v12472_v17  ;;  %v5066_v34 = vmul.f32 %v11291_v40, %v4964_v59  ;;  %v12473_v35 = vld [vmem:[#allocation20_spill] sm:$0xff]  ;;  %12474 = vst [vmem:[#allocation17_spill] sm:$0xff] %v11418_v61  ;;  %v3109_v61 = vld [vmem:[#allocation2 + $0x328] sm:$0x1] }
 0x47f   : > { %v4017_v26 = vsel %vm2557_vm2, %v4015_v60, %v12076_v42  ;;  %v4768_v23 = vrot.slane %v4514_v11, 1  ;;  %v11414_v62 = vmul.f32 %v11393_v6, %v11291_v40  ;;  %v1672_v22 = vmul.f32 %v12473_v35, %v12131_v50  ;;  %v2353_v11 = vld [vmem:[#allocation2 + $0x2d0] sm:$0xfc]  ;;  %v6026_v24 = vpop.f32.mrf.mxu1  ;;  %v12475_v42 = vld [vmem:[#allocation28_spill] sm:$0xff] }
 0x480   : > { %v5703_v56 = vadd.f32 1.0, %v6970_v21  ;;  %v11420_v20 = vadd.f32 %v5314_v25, %v4897_v55  ;;  %v3595_v54 = vadd.f32 %v3465_v8, %v3043_v18  ;;  %v12078_v3 = vrot.slane %v11406_v7, 1  ;;  %v6972_v52 = vpop.eup %6971  ;;  %v3106_v55 = vld [vmem:[#allocation2 + $0x300] sm:$0xfe] }
 0x481   : > { %v5320_v59 = vrot.slane %v5066_v34, 2  ;;  %v12077_v38 = vrot.slane %v11414_v62, 2  ;;  %v1736_v27 = vadd.f32 %v1672_v22, %v12133_v63  ;;  %v1902_v60 = vmul.f32 %v12132_v10, %v1800_v36  ;;  %v11438_v22 = vpop.f32.mrf.mxu1 }
 0x482   : > { %v5832_v35 = vmul.f32 %v6972_v52, %v12475_v42  ;;  %6975 = vrcp.f32 %v5703_v56  ;;  %v5513_v21 = vsub.f32 0.0, %v11420_v20  ;;  %v4147_v25 = vadd.f32 %v4017_v26, %v3595_v54  ;;  %12476 = vst [vmem:[#allocation27_spill] sm:$0xff] %v11438_v22  ;;  %v3658_v54 = vld [vmem:[#allocation2 + $0x300] sm:$0xfc] }
 0x483   : > { %v4770_v8 = vsel %vm2004_vm1, %v4768_v23, %v12078_v3  ;;  %v5322_v18 = vsel %vm2557_vm2, %v5320_v59, %v12077_v38  ;;  %v11436_v34 = vmul.f32 %v11006_v30, %v12132_v10  ;;  %v2155_v36 = vrot.slane %v1902_v60, 1  ;;  %v12477_v59 = vld [vmem:[#allocation21_spill] sm:$0xff]  ;;  %v4411_v3 = vld [vmem:[#allocation2 + $0x330] sm:$0xfe] }
 0x484   : > { %6082 = vmatprep.mubr.f32.mxu1 %v5832_v35  ;;  %v5635_v42 = vmul.f32 1.442695, %v5513_v21  ;;  %v4348_v26 = vadd.f32 %v11397_v32, %v4147_v25  ;;  %v2455_v56 = vmul.f32 %v12134_v53, %v2353_v11  ;;  %v11444_v23 = vmul.f32 %v11006_v30, %v12134_v53  ;;  %v6031_v21 = vpop.f32.mrf.mxu1 }
 0x485   : > { %v12083_v52 = vrot.slane %v11436_v34, 1  ;;  %v2978_v24 = vmul.f32 %v12477_v59, %v7770_v31  ;;  %v3208_v60 = vmul.f32 %v7812_v19, %v3106_v55  ;;  %v11452_v35 = vmul.f32 %v11235_v43, %v7812_v19 }
 0x486   : > { %6977 = vpow2.f32 %v5635_v42  ;;  %v4900_v25 = vadd.f32 %v4770_v8, %v4348_v26  ;;  %v2708_v11 = vrot.slane %v2455_v56, 2  ;;  %v12082_v38 = vrot.slane %v11444_v23, 2  ;;  %v11460_v57 = vpop.f32.mrf.mxu1  ;;  %v4963_v26 = vld [vmem:[#allocation2 + $0x330] sm:$0xfc] }
 0x487   : > { %v2157_v48 = vsel %vm2004_vm1, %v2155_v36, %v12083_v52  ;;  %v3460_v12 = vrot.slane %v3208_v60, 1  ;;  %v12084_v59 = vrot.slane %v11452_v35, 1  ;;  %v3760_v55 = vmul.f32 %v7823_v33, %v3658_v54  ;;  %12478 = vst [vmem:[#allocation26_spill] sm:$0xff] %v11460_v57 }
 0x488   : > { %v11462_v22 = vadd.f32 %v5322_v18, %v4900_v25  ;;  %v2289_v21 = vadd.f32 %v2157_v48, %v1736_v27  ;;  %v2710_v8 = vsel %vm2557_vm2, %v2708_v11, %v12082_v38  ;;  %v11469_v42 = vmul.f32 %v11235_v43, %v7823_v33  ;;  %v6036_v27 = vpop.f32.mrf.mxu1 }
 0x489   : > { %v3462_v36 = vsel %vm2004_vm1, %v3460_v12, %v12084_v59  ;;  %v4012_v56 = vrot.slane %v3760_v55, 2  ;;  %v11476_v54 = vmul.f32 %v11393_v6, %v7829_v39  ;;  %v4513_v48 = vmul.f32 %v7841_v2, %v4411_v3  ;;  %v1803_v3 = vld [vmem:[#allocation2 + $0x2f8] sm:$0x1] }
 0x48a   : > { %12479 = vst [vmem:[#allocation20_spill] sm:$0xff] %v11462_v22  ;;  %v6974_v18 = vpop.eup %6973  ;;  %v5516_v60 = vsub.f32 0.0, %v11462_v22  ;;  %v2842_v25 = vadd.f32 %v2710_v8, %v2289_v21  ;;  %v12086_v11 = vrot.slane %v11469_v42, 2  ;;  %v11483_v38 = vmul.f32 %v11393_v6, %v7841_v2  ;;  %v2356_v22 = vld [vmem:[#allocation2 + $0x2f8] sm:$0x3] }
 0x48b   : > { %v5706_v52 = vadd.f32 1.0, %v6974_v18  ;;  %v4765_v12 = vrot.slane %v4513_v48, 1  ;;  %v5065_v55 = vmul.f32 %v11023_v51, %v4963_v26  ;;  %v11488_v39 = vmul.f32 %v11393_v6, %v11023_v51  ;;  %v7016_v18 = vld [vmem:[#allocation2 + $0x2e8] sm:$0xff] }
 0x48c   : > { %v5641_v27 = vmul.f32 1.442695, %v5516_v60  ;;  %v3042_v59 = vadd.f32 %v2978_v24, %v2842_v25  ;;  %v4014_v21 = vsel %vm2557_vm2, %v4012_v56, %v12086_v11  ;;  %v12087_v8 = vrot.slane %v11483_v38, 1  ;;  %v3661_v56 = vld [vmem:[#allocation2 + $0x328] sm:$0x3] }
 0x48d   : > { %6979 = vrcp.f32 %v5706_v52  ;;  %v5317_v57 = vrot.slane %v5065_v55, 2  ;;  %v5318_v48 = vrot.slane %v11488_v39, 2  ;;  %v1675_v26 = vmul.f32 %v7016_v18, %v7698_v0  ;;  %v4414_v60 = vld [vmem:[#allocation2 + $0x358] sm:$0x1] }
 0x48e   : > { %6981 = vpow2.f32 %v5641_v27  ;;  %v3594_v51 = vadd.f32 %v3462_v36, %v3042_v59  ;;  %v4767_v6 = vsel %vm2004_vm1, %v4765_v12, %v12087_v8  ;;  %v1907_v24 = vmul.f32 %v12126_v45, %v1803_v3  ;;  %v4966_v25 = vld [vmem:[#allocation2 + $0x358] sm:$0x3] }
 0x48f   : > { %v6976_v11 = vpop.eup %6975  ;;  %v5319_v52 = vsel %vm2557_vm2, %v5317_v57, %v5318_v48  ;;  %v1739_v55 = vadd.f32 %v1675_v26, %v7724_v58  ;;  %v2460_v0 = vmul.f32 %v12363_v4, %v2356_v22  ;;  %v2981_v59 = vmul.f32 %v11151_v49, %v12436_v9  ;;  %v7021_v39 = vld [vmem:[%s7429_s18 + $0x18] sm:$0xff] }
 0x490   : > { %v5831_v36 = vmul.f32 %v6976_v11, %v11307_v29  ;;  %v4146_v12 = vadd.f32 %v4014_v21, %v3594_v51  ;;  %v2163_v27 = vrot.slane %v1907_v24, 1  ;;  %v3213_v45 = vmul.f32 %v12227_v1, %v3109_v61 }
 0x491   : > { %v2716_v3 = vrot.slane %v2460_v0, 2  ;;  %v3765_v18 = vmul.f32 %v12366_v47, %v3661_v56  ;;  %v4518_v8 = vmul.f32 %v12472_v17, %v4414_v60  ;;  %v5070_v57 = vmul.f32 %v11291_v40, %v4966_v25  ;;  %v1802_v40 = vld [vmem:[#allocation2 + $0x2f0] sm:$0x1]  ;;  %v3108_v60 = vld [vmem:[#allocation2 + $0x320] sm:$0x1]  ;;  %v11524_v25 = vpop.f32.mrf.mxu1 }
 0x492   : > { %6083 = vmatmul.mubr.f32.gmra.mxu1 %v5831_v36  ;;  %v4347_v58 = vadd.f32 %v11476_v54, %v4146_v12  ;;  %v12480_v4 = vrot.slane %v11352_v44, 1  ;;  %v3468_v49 = vrot.slane %v3213_v45, 1  ;;  %v1674_v29 = vmul.f32 %v11006_v30, %v12131_v50  ;;  %v2355_v56 = vld [vmem:[#allocation2 + $0x2f0] sm:$0x3]  ;;  %v3660_v0 = vld [vmem:[#allocation2 + $0x320] sm:$0x3] }
 0x493   : > { %v6978_v22 = vpop.eup %6977  ;;  %v12481_v61 = vrot.slane %v11358_v15, 2  ;;  %v4020_v17 = vrot.slane %v3765_v18, 2  ;;  %v4773_v11 = vrot.slane %v4518_v8, 1  ;;  %v12482_v51 = vrot.slane %v11378_v46, 1  ;;  %v4413_v46 = vld [vmem:[#allocation2 + $0x350] sm:$0x1] }
 0x494   : > { %v2164_v9 = vsel %vm2004_vm1, %v12480_v4, %v2163_v27  ;;  %v5705_v21 = vadd.f32 1.0, %v6978_v22  ;;  %v4899_v26 = vadd.f32 %v4767_v6, %v4347_v58  ;;  %v5325_v24 = vrot.slane %v5070_v57, 2 }
 0x495   : > { %v2292_v1 = vadd.f32 %v2164_v9, %v1739_v55  ;;  %v2717_v47 = vsel %vm2557_vm2, %v12481_v61, %v2716_v3  ;;  %v3469_v44 = vsel %vm2004_vm1, %v12482_v51, %v3468_v49  ;;  %v12483_v30 = vrot.slane %v11388_v41, 2  ;;  %v4965_v41 = vld [vmem:[#allocation2 + $0x350] sm:$0x3]  ;;  %v6041_v3 = vpop.f32.mrf.mxu1 }
 0x496   : > { %v12484_v55 = vrot.slane %v11406_v7, 1  ;;  %v1738_v6 = vadd.f32 %v1674_v29, %v12133_v63  ;;  %6983 = vrcp.f32 %v5705_v21  ;;  %v11533_v36 = vadd.f32 %v5319_v52, %v4899_v26  ;;  %v7017_v29 = vld [vmem:[#allocation8 + $0x10] ss:$0 sm:$0xff] }
 0x497   : > { %v2845_v50 = vadd.f32 %v2717_v47, %v2292_v1  ;;  %v4021_v15 = vsel %vm2557_vm2, %v12483_v30, %v4020_v17  ;;  %v12485_v12 = vrot.slane %v11414_v62, 2  ;;  %v1906_v45 = vmul.f32 %v12132_v10, %v1802_v40  ;;  %v11556_v40 = vld [vmem:[%s11758_s6] ss:$0 sm:$0xff] }
 0x498   : > { %v4774_v8 = vsel %vm2004_vm1, %v12484_v55, %v4773_v11  ;;  %v2459_v7 = vmul.f32 %v12134_v53, %v2355_v56  ;;  %v2980_v57 = vmul.f32 %v11235_v43, %v7770_v31  ;;  %v3212_v63 = vmul.f32 %v7812_v19, %v3108_v60  ;;  %v12492_v30 = vld [vmem:[#allocation24_spill] sm:$0xff] }
 0x499   : > { %v5326_v27 = vsel %vm2557_vm2, %v12485_v12, %v5325_v24  ;;  %v3045_v18 = vadd.f32 %v2981_v59, %v2845_v50  ;;  %v5515_v58 = vsub.f32 0.0, %v11533_v36  ;;  %v2161_v52 = vrot.slane %v1906_v45, 1  ;;  %v7018_v12 = vld [vmem:[%s7429_s18] sm:$0xff] }
 0x49a   : > { %v3764_v4 = vmul.f32 %v7823_v33, %v3660_v0  ;;  %v4517_v62 = vmul.f32 %v7841_v2, %v4413_v46  ;;  %v2714_v49 = vrot.slane %v2459_v7, 2  ;;  %v3466_v10 = vrot.slane %v3212_v63, 1  ;;  %v6980_v59 = vpop.eup %6979  ;;  %v12494_v0 = vld [vmem:[#allocation19_spill] sm:$0xff] }
 0x49b   : > { %v3597_v9 = vadd.f32 %v3469_v44, %v3045_v18  ;;  %v5069_v22 = vmul.f32 %v7017_v29, %v4965_v41  ;;  %v5639_v1 = vmul.f32 1.442695, %v5515_v58  ;;  %v12486_v53 = vrot.slane %v11436_v34, 1  ;;  %v6982_v61 = vpop.eup %6981  ;;  %v7019_v41 = vld [vmem:[%s7429_s18 + $0x8] sm:$0xff]  ;;  %v7020_v18 = vld [vmem:[%s7429_s18 + $0x10] sm:$0xff]  ;;  %v12495_v63 = vld [vmem:[#allocation23_spill] sm:$0xff] }
 0x49c   : > { %v4018_v43 = vrot.slane %v3764_v4, 2  ;;  %v4771_v19 = vrot.slane %v4517_v62, 1  ;;  %v5834_v47 = vmul.f32 %v6980_v59, %v11360_v5  ;;  %v12487_v2 = vrot.slane %v11444_v23, 2 }
 0x49d   : > { %v2162_v31 = vsel %vm2004_vm1, %v12486_v53, %v2161_v52  ;;  %v4149_v17 = vadd.f32 %v4021_v15, %v3597_v9  ;;  %v5708_v21 = vadd.f32 1.0, %v6982_v61  ;;  %6985 = vpow2.f32 %v5639_v1  ;;  %v12493_v15 = vld [vmem:[#allocation22_spill] sm:$0xff]  ;;  %v12496_v52 = vld [vmem:[#allocation16_spill] sm:$0xff]  ;;  %v12497_v9 = vld [vmem:[#allocation29_spill] sm:$0xff] }
 0x49e   : > { %v2291_v33 = vadd.f32 %v2162_v31, %v1738_v6  ;;  %v2715_v11 = vsel %vm2557_vm2, %v12487_v2, %v2714_v49  ;;  %v12488_v34 = vrot.slane %v11452_v35, 1  ;;  %v12489_v5 = vrot.slane %v11469_v42, 2  ;;  %6087 = vmatprep.mubr.f32.mxu1 %v5834_v47  ;;  %v12491_v35 = vld [vmem:[#allocation18_spill] sm:$0xff]  ;;  %v12500_v61 = vld [vmem:[#allocation31_spill] sm:$0xff] }
 0x49f   : > { %v4350_v23 = vadd.f32 %v11397_v32, %v4149_v17  ;;  %v12490_v24 = vrot.slane %v11483_v38, 1  ;;  %v5323_v60 = vrot.slane %v5069_v22, 2  ;;  %6987 = vrcp.f32 %v5708_v21  ;;  %v12499_v22 = vld [vmem:[#allocation30_spill] sm:$0xff] }
 0x4a0   : > { %v3467_v26 = vsel %vm2004_vm1, %v12488_v34, %v3466_v10  ;;  %v4019_v51 = vsel %vm2557_vm2, %v12489_v5, %v4018_v43  ;;  %v2844_v44 = vadd.f32 %v2715_v11, %v2291_v33  ;;  %v5945_v50 = vadd.f32 %v11556_v40, %v12491_v35  ;;  %v12498_v10 = vld [vmem:[#allocation25_spill] sm:$0xff]  ;;  %v7024_v33 = vld [vmem:[%s7429_s18 + $0x30] sm:$0xff]  ;;  %v7025_v11 = vld [vmem:[%s7429_s18 + $0x38] sm:$0xff] }
 0x4a1   : > { %v4772_v56 = vsel %vm2004_vm1, %v12490_v24, %v4771_v19  ;;  %v5950_v42 = vadd.f32 %v11556_v40, %v12492_v30  ;;  %v5955_v55 = vadd.f32 %v11556_v40, %v12493_v15  ;;  %v4902_v6 = vadd.f32 %v4774_v8, %v4350_v23  ;;  %v7023_v43 = vld [vmem:[%s7429_s18 + $0x28] sm:$0xff]  ;;  %v7026_v34 = vld [vmem:[%s7429_s18 + $0x40] sm:$0xff] }
 0x4a2   : > { %v3044_v32 = vadd.f32 %v2980_v57, %v2844_v44  ;;  %v11577_v38 = vsel %vm2557_vm2, %v5318_v48, %v5323_v60  ;;  %v5960_v46 = vadd.f32 %v11556_v40, %v12494_v0  ;;  %v6103_v45 = vadd.f32 %v7018_v12, %v5945_v50  ;;  %v7027_v23 = vld [vmem:[%s7429_s18 + $0x48] sm:$0xff]  ;;  %v12501_v24 = vld [vmem:[#allocation32_spill] sm:$0xff]  ;;  %v7032_v0 = vld [vmem:[%s7429_s18 + $0x70] sm:$0xff] }
 0x4a3   : > { %v6104_v3 = vadd.f32 %v7019_v41, %v5950_v42  ;;  %v6105_v7 = vadd.f32 %v7020_v18, %v5955_v55  ;;  %v5965_v8 = vadd.f32 %v11556_v40, %v12495_v63  ;;  %v11586_v58 = vadd.f32 %v5326_v27, %v4902_v6  ;;  %v7022_v27 = vld [vmem:[%s7429_s18 + $0x20] sm:$0xff]  ;;  %v6984_v1 = vpop.eup %6983  ;;  %v7028_v42 = vld [vmem:[%s7429_s18 + $0x50] sm:$0xff]  ;;  %v7029_v55 = vld [vmem:[%s7429_s18 + $0x58] sm:$0xff] }
 0x4a4   : > { %v3596_v57 = vadd.f32 %v3467_v26, %v3044_v32  ;;  %v6106_v48 = vadd.f32 %v7021_v39, %v5960_v46  ;;  %v5970_v4 = vadd.f32 %v11556_v40, %v12496_v52  ;;  %6135 = vst [vmem:[%s11593_s14] sm:$0xff] %v6103_v45  ;;  %v5975_v49 = vadd.f32 %v11556_v40, %v12497_v9  ;;  %v7031_v32 = vld [vmem:[%s7429_s18 + $0x68] sm:$0xff]  ;;  %v7033_v45 = vld [vmem:[%s7429_s18 + $0x78] sm:$0xff]  ;;  %v6044_v39 = vpop.f32.mrf.mxu1 }
 0x4a5   : > { %6136 = vst [vmem:[%s11593_s14 + $0x8] sm:$0xff] %v6104_v3  ;;  %6137 = vst [vmem:[%s11593_s14 + $0x10] sm:$0xff] %v6105_v7  ;;  %v6107_v62 = vadd.f32 %v7022_v27, %v5965_v8  ;;  %v5980_v29 = vadd.f32 %v11556_v40, %v12498_v10  ;;  %v5985_v59 = vadd.f32 %v11556_v40, %v12499_v22  ;;  %v5518_v53 = vsub.f32 0.0, %v11586_v58  ;;  %v12502_v41 = vld [vmem:[#allocation17_spill] sm:$0xff]  ;;  %v12503_v18 = vld [vmem:[#allocation27_spill] sm:$0xff] }
 0x4a6   : > { %v4148_v31 = vadd.f32 %v4019_v51, %v3596_v57  ;;  %6138 = vst [vmem:[%s11593_s14 + $0x18] sm:$0xff] %v6106_v48  ;;  %v6108_v19 = vadd.f32 %v7023_v43, %v5970_v4  ;;  %v5990_v47 = vadd.f32 %v11556_v40, %v12500_v61  ;;  %v5833_v17 = vmul.f32 %v6984_v1, %v11420_v20  ;;  %v12504_v8 = vld [vmem:[#allocation26_spill] sm:$0xff]  ;;  %v7034_v4 = vld [vmem:[%s7429_s18 + $0x80] sm:$0xff] }
 0x4a7   : > { %6139 = vst [vmem:[%s11593_s14 + $0x20] sm:$0xff] %v6107_v62  ;;  %v6109_v2 = vadd.f32 %v7024_v33, %v5975_v49  ;;  %v6110_v21 = vadd.f32 %v7025_v11, %v5980_v29  ;;  %v6111_v26 = vadd.f32 %v7026_v34, %v5985_v59  ;;  %v5645_v5 = vmul.f32 1.442695, %v5518_v53  ;;  %v7035_v62 = vld [vmem:[%s7429_s18 + $0x88] sm:$0xff]  ;;  %v12505_v10 = vld [vmem:[#allocation20_spill] sm:$0xff]  ;;  %v7037_v59 = vld [vmem:[%s7429_s18 + $0x98] sm:$0xff]  ;;  %v6046_v53 = vpop.f32.mrf.mxu1 }
 0x4a8   : > { %v4349_v51 = vadd.f32 %v11476_v54, %v4148_v31  ;;  %6140 = vst [vmem:[%s11593_s14 + $0x28] sm:$0xff] %v6108_v19  ;;  %v6112_v44 = vadd.f32 %v7027_v23, %v5990_v47  ;;  %v5995_v20 = vadd.f32 %v11556_v40, %v12501_v24  ;;  %6088 = vmatmul.mubr.f32.gmra.mxu1 %v5833_v17  ;;  %v7038_v43 = vld [vmem:[%s7429_s18 + $0xa0] sm:$0xff] }
 0x4a9   : > { %6141 = vst [vmem:[%s11593_s14 + $0x30] sm:$0xff] %v6109_v2  ;;  %6142 = vst [vmem:[%s11593_s14 + $0x38] sm:$0xff] %v6110_v21  ;;  %v6000_v60 = vadd.f32 %v11556_v40, %v11305_v28  ;;  %v6005_v54 = vadd.f32 %v11556_v40, %v11325_v37  ;;  %v6010_v35 = vadd.f32 %v11556_v40, %v11345_v16  ;;  %6989 = vpow2.f32 %v5645_v5  ;;  %v7030_v37 = vld [vmem:[%s7429_s18 + $0x60] sm:$0xff]  ;;  %v7039_v5 = vld [vmem:[%s7429_s18 + $0xa8] sm:$0xff] }
 0x4aa   : > { %6143 = vst [vmem:[%s11593_s14 + $0x40] sm:$0xff] %v6111_v26  ;;  %v6015_v50 = vadd.f32 %v11556_v40, %v11366_v14  ;;  %v4901_v30 = vadd.f32 %v4772_v56, %v4349_v51  ;;  %6144 = vst [vmem:[%s11593_s14 + $0x48] sm:$0xff] %v6112_v44  ;;  %v6113_v15 = vadd.f32 %v7028_v42, %v5995_v20  ;;  %v6986_v56 = vpop.eup %6985 }
 0x4ab   : > { %v6020_v28 = vadd.f32 %v11556_v40, %v11390_v13  ;;  %v6114_v6 = vadd.f32 %v7029_v55, %v6000_v60  ;;  %v6115_v16 = vadd.f32 %v7030_v37, %v6005_v54  ;;  %v6116_v14 = vadd.f32 %v7031_v32, %v6010_v35  ;;  %v7040_v35 = vld [vmem:[%s7429_s18 + $0xb0] sm:$0xff] }
 0x4ac   : > { %v6117_v46 = vadd.f32 %v7032_v0, %v6015_v50  ;;  %v5453_v12 = vadd.f32 %v11577_v38, %v4901_v30  ;;  %6145 = vst [vmem:[%s11593_s14 + $0x50] sm:$0xff] %v6113_v15  ;;  %v6025_v3 = vadd.f32 %v11556_v40, %v12502_v41  ;;  %v6030_v7 = vadd.f32 %v11556_v40, %v12503_v18  ;;  %v6988_v48 = vpop.eup %6987  ;;  %v7041_v15 = vld [vmem:[%s7429_s18 + $0xb8] sm:$0xff] }
 0x4ad   : > { %v6118_v13 = vadd.f32 %v7033_v45, %v6020_v28  ;;  %v5707_v63 = vadd.f32 1.0, %v6986_v56  ;;  %6146 = vst [vmem:[%s11593_s14 + $0x58] sm:$0xff] %v6114_v6  ;;  %6147 = vst [vmem:[%s11593_s14 + $0x60] sm:$0xff] %v6115_v16  ;;  %v6035_v38 = vadd.f32 %v11556_v40, %v12504_v8  ;;  %v6040_v57 = vadd.f32 %v11556_v40, %v11524_v25  ;;  %v7036_v25 = vld [vmem:[%s7429_s18 + $0x90] sm:$0xff]  ;;  %v7042_v16 = vld [vmem:[%s7429_s18 + $0xc0] sm:$0xff] }
 0x4ae   : > { %6148 = vst [vmem:[%s11593_s14 + $0x68] sm:$0xff] %v6116_v14  ;;  %6149 = vst [vmem:[%s11593_s14 + $0x70] sm:$0xff] %v6117_v46  ;;  %v5517_v52 = vsub.f32 0.0, %v5453_v12  ;;  %v6119_v27 = vadd.f32 %v7034_v4, %v6025_v3  ;;  %v6120_v9 = vadd.f32 %v7035_v62, %v6030_v7  ;;  %v6045_v49 = vadd.f32 %v11556_v40, %v6044_v39  ;;  %v7043_v56 = vld [vmem:[%s7429_s18 + $0xc8] sm:$0xff]  ;;  %v7044_v3 = vld [vmem:[%s7429_s18 + $0xd0] sm:$0xff] }
 0x4af   : > { %6150 = vst [vmem:[%s11593_s14 + $0x78] sm:$0xff] %v6118_v13  ;;  %v5836_v29 = vmul.f32 %v6988_v48, %v12505_v10  ;;  %6991 = vrcp.f32 %v5707_v63  ;;  %v6121_v22 = vadd.f32 %v7036_v25, %v6035_v38  ;;  %v6122_v1 = vadd.f32 %v7037_v59, %v6040_v57  ;;  %v7045_v38 = vld [vmem:[%s7429_s18 + $0xd8] sm:$0xff]  ;;  %v7046_v4 = vld [vmem:[%s7429_s18 + $0xe0] sm:$0xff]  ;;  %v7047_v10 = vld [vmem:[%s7429_s18 + $0xe8] sm:$0xff] }
 0x4b0   : > { %v5643_v31 = vmul.f32 1.442695, %v5517_v52  ;;  %6151 = vst [vmem:[%s11593_s14 + $0x80] sm:$0xff] %v6119_v27  ;;  %6152 = vst [vmem:[%s11593_s14 + $0x88] sm:$0xff] %v6120_v9  ;;  %v6123_v19 = vadd.f32 %v7038_v43, %v6045_v49 }
 0x4b1   : > { %6092 = vmatprep.mubr.f32.mxu1 %v5836_v29  ;;  %6153 = vst [vmem:[%s11593_s14 + $0x90] sm:$0xff] %v6121_v22  ;;  %6154 = vst [vmem:[%s11593_s14 + $0x98] sm:$0xff] %v6122_v1  ;;  %v7048_v1 = vld [vmem:[%s7429_s18 + $0xf0] sm:$0xff] }
 0x4b2   : > { %6993 = vpow2.f32 %v5643_v31  ;;  %6155 = vst [vmem:[%s11593_s14 + $0xa0] sm:$0xff] %v6123_v19 }
 0x4b5   : > { %v6049_v21 = vpop.f32.mrf.mxu1 }
 0x4b6   : > { %v6990_v61 = vpop.eup %6989  ;;  %v6050_v34 = vadd.f32 %v11556_v40, %v6049_v21 }
 0x4b7   : > { %v5710_v47 = vadd.f32 1.0, %v6990_v61  ;;  %v6051_v26 = vpop.f32.mrf.mxu1  ;;  %v7049_v61 = vld [vmem:[%s7429_s18 + $0xf8] sm:$0xff] }
 0x4b8   : > { %v6124_v51 = vadd.f32 %v7039_v5, %v6050_v34 }
 0x4b9   : > { %6995 = vrcp.f32 %v5710_v47 }
 0x4ba   : > { %6156 = vst [vmem:[%s11593_s14 + $0xa8] sm:$0xff] %v6124_v51 }
 0x4bc   : > { %v6992_v17 = vpop.eup %6991 }
 0x4bd   : > { %v5835_v33 = vmul.f32 %v6992_v17, %v11533_v36 }
 0x4bf   : > { %v6994_v2 = vpop.eup %6993  ;;  %6093 = vmatmul.mubr.f32.gmra.mxu1 %v5835_v33 }
 0x4c0   : > { %v5709_v11 = vadd.f32 1.0, %v6994_v2 }
 0x4c2   : > { %6997 = vrcp.f32 %v5709_v11 }
 0x4c6   : > { %v6996_v23 = vpop.eup %6995 }
 0x4c7   : > { %v5838_v44 = vmul.f32 %v6996_v23, %v11586_v58 }
 0x4c9   : > { %6097 = vmatprep.mubr.f32.mxu1 %v5838_v44 }
 0x4cb   : > { %v6054_v20 = vpop.f32.mrf.mxu1 }
 0x4cc   : > { %v6055_v60 = vadd.f32 %v11556_v40, %v6054_v20 }
 0x4cd   : > { %v6056_v54 = vpop.f32.mrf.mxu1 }
 0x4ce   : > { %v6125_v50 = vadd.f32 %v7040_v35, %v6055_v60 }
 0x4cf   : > { %v6998_v36 = vpop.eup %6997 }
 0x4d0   : > { %v5837_v24 = vmul.f32 %v6998_v36, %v5453_v12  ;;  %6157 = vst [vmem:[%s11593_s14 + $0xb0] sm:$0xff] %v6125_v50 }
 0x4d2   : > { %6098 = vmatmul.mubr.f32.gmra.mxu1 %v5837_v24 }
 0x4e1   : > { %v6059_v30 = vpop.f32.mrf.mxu1 }
 0x4e2   : > { %v6060_v42 = vadd.f32 %v11556_v40, %v6059_v30 }
 0x4e3   : > { %v6061_v58 = vpop.f32.mrf.mxu1 }
 0x4e4   : > { %v6126_v28 = vadd.f32 %v7041_v15, %v6060_v42 }
 0x4e6   : > { %6158 = vst [vmem:[%s11593_s14 + $0xb8] sm:$0xff] %v6126_v28 }
 0x4f8   : > { %v6064_v55 = vpop.f32.mrf.mxu1 }
 0x4f9   : > { %v6065_v6 = vadd.f32 %v11556_v40, %v6064_v55 }
 0x4fa   : > { %v6066_v37 = vpop.f32.mrf.mxu1 }
 0x4fb   : > { %v6127_v32 = vadd.f32 %v7042_v16, %v6065_v6 }
 0x4fd   : > { %6159 = vst [vmem:[%s11593_s14 + $0xc0] sm:$0xff] %v6127_v32 }
 0x50e   : > { %v6069_v14 = vpop.f32.mrf.mxu1 }
 0x50f   : > { %v6070_v0 = vadd.f32 %v11556_v40, %v6069_v14 }
 0x510   : > { %v6071_v46 = vpop.f32.mrf.mxu1 }
 0x511   : > { %v6128_v12 = vadd.f32 %v7043_v56, %v6070_v0 }
 0x513   : > { %6160 = vst [vmem:[%s11593_s14 + $0xc8] sm:$0xff] %v6128_v12 }
 0x525   : > { %v6074_v45 = vpop.f32.mrf.mxu1 }
 0x526   : > { %v6075_v13 = vadd.f32 %v11556_v40, %v6074_v45 }
 0x527   : > { %v6076_v41 = vpop.f32.mrf.mxu1 }
 0x528   : > { %v6129_v18 = vadd.f32 %v7044_v3, %v6075_v13 }
 0x52a   : > { %6161 = vst [vmem:[%s11593_s14 + $0xd0] sm:$0xff] %v6129_v18 }
 0x53c   : > { %v6079_v7 = vpop.f32.mrf.mxu1 }
 0x53d   : > { %v6080_v63 = vadd.f32 %v11556_v40, %v6079_v7 }
 0x53e   : > { %v6081_v8 = vpop.f32.mrf.mxu1 }
 0x53f   : > { %v6130_v57 = vadd.f32 %v7045_v38, %v6080_v63 }
 0x541   : > { %6162 = vst [vmem:[%s11593_s14 + $0xd8] sm:$0xff] %v6130_v57 }
 0x552   : > { %v6084_v39 = vpop.f32.mrf.mxu1 }
 0x553   : > { %v6085_v48 = vadd.f32 %v11556_v40, %v6084_v39 }
 0x554   : > { %v6086_v52 = vpop.f32.mrf.mxu1 }
 0x555   : > { %v6131_v27 = vadd.f32 %v7046_v4, %v6085_v48 }
 0x557   : > { %6163 = vst [vmem:[%s11593_s14 + $0xe0] sm:$0xff] %v6131_v27 }
 0x568   : > { %v6089_v62 = vpop.f32.mrf.mxu1 }
 0x569   : > { %v6090_v9 = vadd.f32 %v11556_v40, %v6089_v62 }
 0x56a   : > { %v6091_v49 = vpop.f32.mrf.mxu1 }
 0x56b   : > { %v6132_v29 = vadd.f32 %v7047_v10, %v6090_v9 }
 0x56d   : > { %6164 = vst [vmem:[%s11593_s14 + $0xe8] sm:$0xff] %v6132_v29 }
 0x57f   : > { %v6094_v25 = vpop.f32.mrf.mxu1 }
 0x580   : > { %v6095_v22 = vadd.f32 %v11556_v40, %v6094_v25 }
 0x581   : > { %v6096_v59 = vpop.f32.mrf.mxu1 }
 0x582   : > { %v6133_v53 = vadd.f32 %v7048_v1, %v6095_v22 }
 0x584   : > { %6165 = vst [vmem:[%s11593_s14 + $0xf0] sm:$0xff] %v6133_v53 }
 0x592   : > { %v6099_v31 = vpop.f32.mrf.mxu1 }
 0x593   : > { %v6100_v43 = vadd.f32 %v11556_v40, %v6099_v31 }
 0x594   : > { %v6101_v19 = vpop.f32.mrf.mxu1 }
 0x595   : > { %v6134_v47 = vadd.f32 %v7049_v61, %v6100_v43 }
 0x597   : > { %6166 = vst [vmem:[%s11593_s14 + $0xf8] sm:$0xff] %v6134_v47 }
 0x598   : > { %7169 = shalt.err (!%p7166_p9)
}
 0x599   : > { %s7170_s18 = scalar_lea.hbm %s11705_s1, 4096  ;;  %s7174_s29 = scalar_lea.hbm %s11759_s7, 8192 }
 0x59a   : > { %p7171_p1 = scmp.ne.s32.totalorder %s11705_s1, %s7170_s18  ;;  %p7175_p11 = scmp.lt.s32.totalorder %s11705_s1, %s11759_s7 }
 0x59b   : > { %p7176_p13 = scmp.lt.s32.totalorder %s7174_s29, %s7170_s18 }
 0x59c   : > { %p7172_p8 = pnand %p7171_p1, %p12506_p6 }
 0x59d   : > { %p7177_p2 = por %p7176_p13, %p7175_p11 }
 0x59e   : > { %p7173_p10 = pneg %p7172_p8 }
 0x5a0   : > { %p7178_p4 = pnand %p7177_p2, %p7173_p10 }
 0x5a2   : > { %7181 = shalt.err (!%p7178_p4)
}
 0x5a3   : > { %s7240_s11 = smov 128   ;;  %s7241_s23 = smov 8  }
 0x5a4   : > { %6417 = dma.vmem_to_hbm [thread:$0]  (%p12506_p6), %s11707_s22, 4096, %s11705_s1, %s6168_s16, %s7240_s11, %s7240_s11, %s7241_s23  }
 0x5a5 PF: > { %s6196_s28 = sand.u32 1, %s7216_s24   ;;  %p12507_p12 = scmp.ne.s32.totalorder %s12090_s8, 0 }
 0x5a6   : > { %p12508_p0 = scmp.ge.s32.totalorder %s7228_s27, 2  ;;  %s6197_s30 = scalar_lea.sflag [#allocation5], %s6196_s28 }
 0x5a8   : > { %p6434_p5 = pnand %p12508_p0, %p12507_p12 }
 0x5aa   : > { %p6435_p3 = pneg %p6434_p5 }
 0x5ac   : > { %7211 = dma.done.wait (%p6435_p3), %s6197_s30, 4096  }
 0x5ad   : > { %7213 = vsyncadd (%p6435_p3), %s6197_s30, 4294963200  ;;  %p22_p7 = scmp.ge.s32.totalorder %s7365_s17, 4   ;;  %s12509_s24 = smov %s7220_s25 }
 0x5ae   : > { %s12510_s25 = smov %s7224_s26  ;;  %s12511_s26 = smov %s7375_s20 }
 0x5af   : > { %s12512_s27 = smov %s7365_s17  ;;  %24 = sbr.rel (!%p22_p7) target bundleno = 9 (0x9), region = 139 }
 0x5b4   :  { %6202 = vsyncpa [#allocation4], 1 }
 0x5b5   :  { %6204 = vsyncpa [#allocation4 + $0x1], 1 }
 0x5b6   :  { %6205 = vsyncpa [#allocation7], 1 }
 0x5b7   :  { %6206 = vsyncpa [#allocation10], 1 }
 0x5b8   :  { %6207 = vsyncpa [#allocation5], 1 }
 0x5b9   :  { %6209 = vsyncpa [#allocation5 + $0x1], 1 }

</bundles_post_ra>
